<compile_context>
chip_gen: v6e
topology: v6e:2x2x1
jax: 0.10.0
libtpu: 0.0.40
codegen_flags: <defaults>
</compile_context>

<pallas_src>
import jax
import jax.numpy as jnp
import numpy as np
from jax import lax
from jax.experimental import pallas as pl
from jax.experimental.pallas import tpu as pltpu


# Network geometry is fixed by the module: Linear(1*10*10) forces an 80x80 input.
IN_H = IN_W = 80
C1, C2 = 16, 32
H2 = W2 = 40                     # spatial size after pool1 (conv2 input)
H3 = W3 = 20                     # spatial size after pool2 (conv3 input)
H4 = W4 = 10                     # spatial size after pool3 (flatten -> 100)
WP2 = W2 + 4                     # row pitch of padded stage-2 buffers = 44
WP3 = W3 + 4                     # row pitch of padded stage-3 buffer  = 24
XP2_ROWS = (H2 + 4) * WP2 + 8    # flat padded buffer rows (+8 tap-overrun rows)
XP3_ROWS = (H3 + 4) * WP3 + 8


def _taps():
    for dy in range(5):
        for dx in range(5):
            yield dy * 5 + dx, dy, dx


def _dqn_kernel(cols_ref, w1_ref, b1_ref, w2a_ref, b2a_ref, w2b_ref, b2b_ref,
                w3_ref, b3_ref, wo_ref, bo_ref, o_ref,
                xp2, xp2b, xp3, flat, hb1, hb2, hb3):
    """One grid step == one batch element; everything stays in VMEM."""
    f32 = jnp.float32

    # Padded activation buffers: the pad border (and the small tap-overrun
    # region at the end) must read as exact zeros.
    xp2[...] = jnp.zeros_like(xp2)
    xp2b[...] = jnp.zeros_like(xp2b)
    xp3[...] = jnp.zeros_like(xp3)

    # ---- conv1 (im2col matmul, K=25) + ReLU + 2x2 maxpool -> xp2 interior ----
    def stage1(ho, carry):
        rows = cols_ref[pl.ds(ho * (2 * IN_W), 2 * IN_W), :]            # (160, 25)
        y = jnp.dot(rows, w1_ref[...], preferred_element_type=f32) + b1_ref[...]
        y = jnp.maximum(y, 0.0)                                          # (160, 16)
        vm = jnp.maximum(y[0:IN_W, :], y[IN_W:2 * IN_W, :])              # (80, 16)
        hb1[...] = vm
        hp = jnp.maximum(hb1[pl.ds(0, W2, stride=2), :],
                         hb1[pl.ds(1, W2, stride=2), :])                 # (40, 16)
        xp2[pl.ds((ho + 2) * WP2 + 2, W2), :] = hp
        return carry
    lax.fori_loop(0, H2, stage1, 0)

    # ---- conv2a (16->32) + ReLU -> xp2b interior (no pool after this conv) ---
    def stage2a(h, carry):
        acc = jnp.zeros((WP2, C2), f32)
        for t, dy, dx in _taps():
            slab = xp2[pl.ds((h + dy) * WP2 + dx, WP2), :]               # (44, 16)
            acc = acc + jnp.dot(slab, w2a_ref[t], preferred_element_type=f32)
        y = jnp.maximum(acc + b2a_ref[...], 0.0)                         # (44, 32)
        xp2b[pl.ds((h + 2) * WP2 + 2, W2), :] = y[0:W2, :]
        return carry
    lax.fori_loop(0, H2, stage2a, 0)

    # ---- conv2b (32->32) + ReLU + 2x2 maxpool -> xp3 interior ----------------
    def stage2b(ho, carry):
        acc = jnp.zeros((2 * WP2, C2), f32)
        for t, dy, dx in _taps():
            slab = xp2b[pl.ds((2 * ho + dy) * WP2 + dx, 2 * WP2), :]     # (88, 32)
            acc = acc + jnp.dot(slab, w2b_ref[t], preferred_element_type=f32)
        y = jnp.maximum(acc + b2b_ref[...], 0.0)                         # (88, 32)
        vm = jnp.maximum(y[0:WP2, :], y[WP2:2 * WP2, :])                 # (44, 32)
        hb2[...] = vm
        hp = jnp.maximum(hb2[pl.ds(0, W3, stride=2), :],
                         hb2[pl.ds(1, W3, stride=2), :])                 # (20, 32)
        xp3[pl.ds((ho + 2) * WP3 + 2, W3), :] = hp
        return carry
    lax.fori_loop(0, H3, stage2b, 0)

    # ---- conv3 (32->1) + ReLU + 2x2 maxpool -> flat (100, 1) -----------------
    def stage3(ho, carry):
        acc = jnp.zeros((2 * WP3, 1), f32)
        for t, dy, dx in _taps():
            slab = xp3[pl.ds((2 * ho + dy) * WP3 + dx, 2 * WP3), :]      # (48, 32)
            acc = acc + jnp.dot(slab, w3_ref[t], preferred_element_type=f32)
        y = jnp.maximum(acc + b3_ref[...], 0.0)                          # (48, 1)
        vm = jnp.maximum(y[0:WP3, :], y[WP3:2 * WP3, :])                 # (24, 1)
        hb3[...] = vm
        hp = jnp.maximum(hb3[pl.ds(0, W4, stride=2), :],
                         hb3[pl.ds(1, W4, stride=2), :])                 # (10, 1)
        flat[pl.ds(ho * W4, W4), :] = hp                                 # rows = h*10+w
        return carry
    lax.fori_loop(0, H4, stage3, 0)

    # ---- out head: Linear(100 -> A) as VPU multiply + sublane reduction ------
    q = jnp.sum(flat[...] * wo_ref[...], axis=0, keepdims=True) + bo_ref[...]
    o_ref[...] = q.reshape(1, 1, -1).astype(o_ref.dtype)


def dqn_forward(x_nchw, params):
    B = x_nchw.shape[0]
    A = params["wo"].shape[1]
    assert x_nchw.shape[1:] == (1, IN_H, IN_W), x_nchw.shape

    # conv1 im2col on the host (tiny: B*6400*25 f32); every later stage is
    # computed entirely inside the fused kernel from VMEM-resident buffers.
    x2 = x_nchw[:, 0, :, :]                                       # (B, 80, 80)
    xp = jnp.pad(x2, ((0, 0), (2, 2), (2, 2)))                    # (B, 84, 84)
    cols = jnp.stack(
        [xp[:, dy:dy + IN_H, dx:dx + IN_W] for dy in range(5) for dx in range(5)],
        axis=-1).reshape(B * IN_H * IN_W, 25)                     # (B*6400, 25)

    w1m = params["w1"].reshape(25, C1)
    w2a = params["w2a"].reshape(25, C1, C2)
    w2b = params["w2b"].reshape(25, C2, C2)
    w3m = params["w3"].reshape(25, C2, 1)
    b1 = params["b1"].reshape(1, C1)
    b2a = params["b2a"].reshape(1, C2)
    b2b = params["b2b"].reshape(1, C2)
    b3 = params["b3"].reshape(1, 1)
    wo = params["wo"]
    bo = params["bo"].reshape(1, A)

    def full(shape):
        return pl.BlockSpec(shape, lambda b, _s=shape: (0,) * len(_s))

    out = pl.pallas_call(
        _dqn_kernel,
        out_shape=jax.ShapeDtypeStruct((B, 1, A), jnp.float32),
        grid=(B,),
        in_specs=[
            pl.BlockSpec((IN_H * IN_W, 25), lambda b: (b, 0)),   # conv1 im2col rows
            full((25, C1)), full((1, C1)),                       # w1, b1
            full((25, C1, C2)), full((1, C2)),                   # w2a, b2a
            full((25, C2, C2)), full((1, C2)),                   # w2b, b2b
            full((25, C2, 1)), full((1, 1)),                     # w3, b3
            full((H4 * W4, A)), full((1, A)),                    # wo, bo
        ],
        out_specs=pl.BlockSpec((1, 1, A), lambda b: (b, 0, 0)),
        scratch_shapes=[
            pltpu.VMEM((XP2_ROWS, C1), jnp.float32),   # xp2  : padded pool1 output
            pltpu.VMEM((XP2_ROWS, C2), jnp.float32),   # xp2b : padded conv2a output
            pltpu.VMEM((XP3_ROWS, C2), jnp.float32),   # xp3  : padded pool2 output
            pltpu.VMEM((H4 * W4, 1), jnp.float32),     # flat : conv3 pooled, flattened
            pltpu.VMEM((IN_W, C1), jnp.float32),       # hb1  : pool helper
            pltpu.VMEM((WP2, C2), jnp.float32),        # hb2  : pool helper
            pltpu.VMEM((WP3, 1), jnp.float32),         # hb3  : pool helper
        ],
        compiler_params=pltpu.CompilerParams(
            dimension_semantics=("parallel",),
            vmem_limit_bytes=32 * 1024 * 1024),
    )(cols, w1m, b1, w2a, b2a, w2b, b2b, w3m, b3, wo, bo)
    return out.reshape(B, A)


# ----------------------------------------------------------------------------
# Pure-JAX reference (for correctness check)
# ----------------------------------------------------------------------------
def dqn_forward_ref(x_nchw, params):
    def conv(x, w, b):
        y = lax.conv_general_dilated(
            x, w, window_strides=(1, 1), padding="SAME",
            dimension_numbers=("NHWC", "HWIO", "NHWC"))
        return jax.nn.relu(y + b)

    def pool(x):
        return lax.reduce_window(x, -jnp.inf, lax.max,
                                 (1, 2, 2, 1), (1, 2, 2, 1), "VALID")

    B = x_nchw.shape[0]
    x = jnp.transpose(x_nchw, (0, 2, 3, 1))
    x = pool(conv(x, params["w1"], params["b1"]))
    x = conv(x, params["w2a"], params["b2a"])
    x = pool(conv(x, params["w2b"], params["b2b"]))
    x = pool(conv(x, params["w3"], params["b3"]))
    x = x.reshape(B, H4 * W4)
    return x @ params["wo"] + params["bo"]


# ----------------------------------------------------------------------------
# Deterministic parameter init (shapes from DQN.__init__; synthetic weights)
# ----------------------------------------------------------------------------
def init_params(key, action_size):
    ks = jax.random.split(key, 5)
    scale = 0.05
    # Conv weights stored HWIO (kh, kw, Cin, Cout) == torch (Cout,Cin,kh,kw) permuted.
    return {
        "w1":  scale * jax.random.normal(ks[0], (5, 5, 1, C1), jnp.float32),
        "b1":  jnp.zeros((C1,), jnp.float32),
        "w2a": scale * jax.random.normal(ks[1], (5, 5, C1, C2), jnp.float32),
        "b2a": jnp.full((C2,), 0.01, jnp.float32),
        "w2b": scale * jax.random.normal(ks[2], (5, 5, C2, C2), jnp.float32),
        "b2b": jnp.full((C2,), 0.01, jnp.float32),
        "w3":  scale * jax.random.normal(ks[3], (5, 5, C2, 1), jnp.float32),
        "b3":  jnp.full((1,), 0.01, jnp.float32),
        # Linear stored as (in=100, out=action_size) == torch weight.T
        "wo":  scale * jax.random.normal(ks[4], (H4 * W4, action_size), jnp.float32),
        "bo":  jnp.zeros((action_size,), jnp.float32),
    }


if __name__ == "__main__":
    key = jax.random.PRNGKey(0)
    k_x, k_p = jax.random.split(key)

    action_size = 4
    # Input must be 80x80 so that three MaxPool(2) stages give 1*10*10 = 100
    # features for the Linear layer (as the PyTorch module requires).
    x = jax.random.normal(k_x, (2, 1, IN_H, IN_W), jnp.float32)   # NCHW, batch=2
    params = init_params(k_p, action_size)

    out = jax.block_until_ready(jax.jit(dqn_forward)(x, params))
    assert out.shape == (2, action_size), out.shape

    ref = jax.block_until_ready(dqn_forward_ref(x, params))
    np.testing.assert_allclose(np.asarray(out), np.asarray(ref),
                               rtol=1e-3, atol=1e-3)

    print("KERNEL_OK")
</pallas_src>

<mosaic_0001>
module attributes {stable_mosaic.version = 11 : i64} {
  func.func @_dqn_kernel(%arg0: i32, %arg1: memref<6400x25xf32, #tpu.memory_space<vmem>>, %arg2: memref<25x16xf32, #tpu.memory_space<vmem>>, %arg3: memref<1x16xf32, #tpu.memory_space<vmem>>, %arg4: memref<25x16x32xf32, #tpu.memory_space<vmem>>, %arg5: memref<1x32xf32, #tpu.memory_space<vmem>>, %arg6: memref<25x32x32xf32, #tpu.memory_space<vmem>>, %arg7: memref<1x32xf32, #tpu.memory_space<vmem>>, %arg8: memref<25x32x1xf32, #tpu.memory_space<vmem>>, %arg9: memref<1x1xf32, #tpu.memory_space<vmem>>, %arg10: memref<100x4xf32, #tpu.memory_space<vmem>>, %arg11: memref<1x4xf32, #tpu.memory_space<vmem>>, %arg12: memref<1x1x4xf32, #tpu.memory_space<vmem>>, %arg13: memref<1944x16xf32, #tpu.memory_space<vmem>>, %arg14: memref<1944x32xf32, #tpu.memory_space<vmem>>, %arg15: memref<584x32xf32, #tpu.memory_space<vmem>>, %arg16: memref<100x1xf32, #tpu.memory_space<vmem>>, %arg17: memref<80x16xf32, #tpu.memory_space<vmem>>, %arg18: memref<44x32xf32, #tpu.memory_space<vmem>>, %arg19: memref<24x1xf32, #tpu.memory_space<vmem>>) attributes {dimension_semantics = [#tpu.dimension_semantics<parallel>], iteration_bounds = array<i64: 2>, scalar_prefetch = 0 : i64, scratch_operands = 7 : i64, tpu.core_type = #tpu.core_type<tc>, window_params = [{transform_indices = @transform_0, window_bounds = array<i64: 6400, 25>}, {pipeline_mode = #tpu.pipeline_mode<synchronous>, transform_indices = @transform_1, window_bounds = array<i64: 25, 16>}, {pipeline_mode = #tpu.pipeline_mode<synchronous>, transform_indices = @transform_2, window_bounds = array<i64: 1, 16>}, {pipeline_mode = #tpu.pipeline_mode<synchronous>, transform_indices = @transform_3, window_bounds = array<i64: 25, 16, 32>}, {pipeline_mode = #tpu.pipeline_mode<synchronous>, transform_indices = @transform_4, window_bounds = array<i64: 1, 32>}, {pipeline_mode = #tpu.pipeline_mode<synchronous>, transform_indices = @transform_5, window_bounds = array<i64: 25, 32, 32>}, {pipeline_mode = #tpu.pipeline_mode<synchronous>, transform_indices = @transform_6, window_bounds = array<i64: 1, 32>}, {pipeline_mode = #tpu.pipeline_mode<synchronous>, transform_indices = @transform_7, window_bounds = array<i64: 25, 32, 1>}, {pipeline_mode = #tpu.pipeline_mode<synchronous>, transform_indices = @transform_8, window_bounds = array<i64: 1, 1>}, {pipeline_mode = #tpu.pipeline_mode<synchronous>, transform_indices = @transform_9, window_bounds = array<i64: 100, 4>}, {pipeline_mode = #tpu.pipeline_mode<synchronous>, transform_indices = @transform_10, window_bounds = array<i64: 1, 4>}, {transform_indices = @transform_11, window_bounds = array<i64: 1, 1, 4>}]} {
    %cst = arith.constant 0.000000e+00 : f32
    %0 = vector.broadcast %cst : f32 to vector<1944x16xf32>
    %c0 = arith.constant 0 : index
    %c0_0 = arith.constant 0 : index
    %1 = vector.load %arg13[%c0, %c0_0] : memref<1944x16xf32, #tpu.memory_space<vmem>>, vector<1944x16xf32>
    tpu.vector_store %arg13[%c0, %c0_0], %0 {strides = array<i32>} : memref<1944x16xf32, #tpu.memory_space<vmem>>, vector<1944x16xf32>,
    %cst_1 = arith.constant 0.000000e+00 : f32
    %2 = vector.broadcast %cst_1 : f32 to vector<1944x32xf32>
    %c0_2 = arith.constant 0 : index
    %c0_3 = arith.constant 0 : index
    %3 = vector.load %arg14[%c0_2, %c0_3] : memref<1944x32xf32, #tpu.memory_space<vmem>>, vector<1944x32xf32>
    tpu.vector_store %arg14[%c0_2, %c0_3], %2 {strides = array<i32>} : memref<1944x32xf32, #tpu.memory_space<vmem>>, vector<1944x32xf32>,
    %cst_4 = arith.constant 0.000000e+00 : f32
    %4 = vector.broadcast %cst_4 : f32 to vector<584x32xf32>
    %c0_5 = arith.constant 0 : index
    %c0_6 = arith.constant 0 : index
    %5 = vector.load %arg15[%c0_5, %c0_6] : memref<584x32xf32, #tpu.memory_space<vmem>>, vector<584x32xf32>
    tpu.vector_store %arg15[%c0_5, %c0_6], %4 {strides = array<i32>} : memref<584x32xf32, #tpu.memory_space<vmem>>, vector<584x32xf32>,
    %c0_i32 = arith.constant 0 : i32
    %c40_i32 = arith.constant 40 : i32
    %6 = arith.addi %c0_i32, %c40_i32 : i32
    %c1_i32 = arith.constant 1 : i32
    scf.for %arg20 = %c0_i32 to %6 step %c1_i32  : i32 {
      %c160_i32 = arith.constant 160 : i32
      %20 = arith.muli %arg20, %c160_i32 : i32
      %21 = arith.index_cast %20 : i32 to index
      %c0_28 = arith.constant 0 : index
      %22 = vector.load %arg1[%21, %c0_28] : memref<6400x25xf32, #tpu.memory_space<vmem>>, vector<160x25xf32>
      %c0_29 = arith.constant 0 : index
      %c0_30 = arith.constant 0 : index
      %23 = vector.load %arg2[%c0_29, %c0_30] : memref<25x16xf32, #tpu.memory_space<vmem>>, vector<25x16xf32>
      %cst_31 = arith.constant dense<0.000000e+00> : vector<160x16xf32>
      %24 = tpu.matmul %22, %23, %cst_31 {dimension_numbers = #tpu.dot_dimension_numbers<[1], [0], [0], [1], [0, 0, 1, 1], [], []>} : vector<160x25xf32>, vector<25x16xf32>, vector<160x16xf32> -> vector<160x16xf32>
      %c0_32 = arith.constant 0 : index
      %c0_33 = arith.constant 0 : index
      %25 = vector.load %arg3[%c0_32, %c0_33] : memref<1x16xf32, #tpu.memory_space<vmem>>, vector<1x16xf32>
      %26 = vector.broadcast %25 : vector<1x16xf32> to vector<160x16xf32>
      %27 = arith.addf %24, %26 : vector<160x16xf32>
      %cst_34 = arith.constant 0.000000e+00 : f32
      %28 = vector.broadcast %cst_34 : f32 to vector<160x16xf32>
      %29 = arith.maximumf %27, %28 : vector<160x16xf32>
      %30 = vector.extract_strided_slice %29 {offsets = [0, 0], sizes = [80, 16], strides = [1, 1]} : vector<160x16xf32> to vector<80x16xf32>
      %31 = vector.extract_strided_slice %29 {offsets = [80, 0], sizes = [80, 16], strides = [1, 1]} : vector<160x16xf32> to vector<80x16xf32>
      %32 = arith.maximumf %30, %31 : vector<80x16xf32>
      %c0_35 = arith.constant 0 : index
      %c0_36 = arith.constant 0 : index
      %33 = vector.load %arg17[%c0_35, %c0_36] : memref<80x16xf32, #tpu.memory_space<vmem>>, vector<80x16xf32>
      tpu.vector_store %arg17[%c0_35, %c0_36], %32 {strides = array<i32>} : memref<80x16xf32, #tpu.memory_space<vmem>>, vector<80x16xf32>,
      %c0_37 = arith.constant 0 : index
      %c0_38 = arith.constant 0 : index
      %34 = tpu.strided_load %arg17[%c0_37, %c0_38] {strides = array<i32: 2, 1>} : memref<80x16xf32, #tpu.memory_space<vmem>>, vector<40x16xf32>
      %c1 = arith.constant 1 : index
      %c0_39 = arith.constant 0 : index
      %35 = tpu.strided_load %arg17[%c1, %c0_39] {strides = array<i32: 2, 1>} : memref<80x16xf32, #tpu.memory_space<vmem>>, vector<40x16xf32>
      %36 = arith.maximumf %34, %35 : vector<40x16xf32>
      %c2_i32 = arith.constant 2 : i32
      %37 = arith.addi %arg20, %c2_i32 : i32
      %c44_i32 = arith.constant 44 : i32
      %38 = arith.muli %37, %c44_i32 : i32
      %c2_i32_40 = arith.constant 2 : i32
      %39 = arith.addi %38, %c2_i32_40 : i32
      %40 = arith.index_cast %39 : i32 to index
      %c0_41 = arith.constant 0 : index
      %41 = vector.load %arg13[%40, %c0_41] : memref<1944x16xf32, #tpu.memory_space<vmem>>, vector<40x16xf32>
      tpu.vector_store %arg13[%40, %c0_41], %36 {strides = array<i32>} : memref<1944x16xf32, #tpu.memory_space<vmem>>, vector<40x16xf32>,
    }
    %c40_i32_7 = arith.constant 40 : i32
    %c0_i32_8 = arith.constant 0 : i32
    %c40_i32_9 = arith.constant 40 : i32
    %7 = arith.addi %c0_i32_8, %c40_i32_9 : i32
    %c1_i32_10 = arith.constant 1 : i32
    scf.for %arg20 = %c0_i32_8 to %7 step %c1_i32_10  : i32 {
      %cst_28 = arith.constant 0.000000e+00 : f32
      %20 = vector.broadcast %cst_28 : f32 to vector<44x32xf32>
      %c0_i32_29 = arith.constant 0 : i32
      %21 = arith.addi %arg20, %c0_i32_29 : i32
      %c44_i32 = arith.constant 44 : i32
      %22 = arith.muli %21, %c44_i32 : i32
      %c0_i32_30 = arith.constant 0 : i32
      %23 = arith.addi %22, %c0_i32_30 : i32
      %24 = arith.index_cast %23 : i32 to index
      %c0_31 = arith.constant 0 : index
      %25 = vector.load %arg13[%24, %c0_31] : memref<1944x16xf32, #tpu.memory_space<vmem>>, vector<44x16xf32>
      %c0_32 = arith.constant 0 : index
      %c0_33 = arith.constant 0 : index
      %c0_34 = arith.constant 0 : index
      %26 = vector.load %arg4[%c0_32, %c0_33, %c0_34] : memref<25x16x32xf32, #tpu.memory_space<vmem>>, vector<1x16x32xf32>
      %27 = vector.shape_cast %26 : vector<1x16x32xf32> to vector<16x32xf32>
      %cst_35 = arith.constant dense<0.000000e+00> : vector<44x32xf32>
      %28 = tpu.matmul %25, %27, %cst_35 {dimension_numbers = #tpu.dot_dimension_numbers<[1], [0], [0], [1], [0, 0, 1, 1], [], []>} : vector<44x16xf32>, vector<16x32xf32>, vector<44x32xf32> -> vector<44x32xf32>
      %29 = arith.addf %20, %28 : vector<44x32xf32>
      %c0_i32_36 = arith.constant 0 : i32
      %30 = arith.addi %arg20, %c0_i32_36 : i32
      %c44_i32_37 = arith.constant 44 : i32
      %31 = arith.muli %30, %c44_i32_37 : i32
      %c1_i32_38 = arith.constant 1 : i32
      %32 = arith.addi %31, %c1_i32_38 : i32
      %33 = arith.index_cast %32 : i32 to index
      %c0_39 = arith.constant 0 : index
      %34 = vector.load %arg13[%33, %c0_39] : memref<1944x16xf32, #tpu.memory_space<vmem>>, vector<44x16xf32>
      %c1 = arith.constant 1 : index
      %c0_40 = arith.constant 0 : index
      %c0_41 = arith.constant 0 : index
      %35 = vector.load %arg4[%c1, %c0_40, %c0_41] : memref<25x16x32xf32, #tpu.memory_space<vmem>>, vector<1x16x32xf32>
      %36 = vector.shape_cast %35 : vector<1x16x32xf32> to vector<16x32xf32>
      %cst_42 = arith.constant dense<0.000000e+00> : vector<44x32xf32>
      %37 = tpu.matmul %34, %36, %cst_42 {dimension_numbers = #tpu.dot_dimension_numbers<[1], [0], [0], [1], [0, 0, 1, 1], [], []>} : vector<44x16xf32>, vector<16x32xf32>, vector<44x32xf32> -> vector<44x32xf32>
      %38 = arith.addf %29, %37 : vector<44x32xf32>
      %c0_i32_43 = arith.constant 0 : i32
      %39 = arith.addi %arg20, %c0_i32_43 : i32
      %c44_i32_44 = arith.constant 44 : i32
      %40 = arith.muli %39, %c44_i32_44 : i32
      %c2_i32 = arith.constant 2 : i32
      %41 = arith.addi %40, %c2_i32 : i32
      %42 = arith.index_cast %41 : i32 to index
      %c0_45 = arith.constant 0 : index
      %43 = vector.load %arg13[%42, %c0_45] : memref<1944x16xf32, #tpu.memory_space<vmem>>, vector<44x16xf32>
      %c2 = arith.constant 2 : index
      %c0_46 = arith.constant 0 : index
      %c0_47 = arith.constant 0 : index
      %44 = vector.load %arg4[%c2, %c0_46, %c0_47] : memref<25x16x32xf32, #tpu.memory_space<vmem>>, vector<1x16x32xf32>
      %45 = vector.shape_cast %44 : vector<1x16x32xf32> to vector<16x32xf32>
      %cst_48 = arith.constant dense<0.000000e+00> : vector<44x32xf32>
      %46 = tpu.matmul %43, %45, %cst_48 {dimension_numbers = #tpu.dot_dimension_numbers<[1], [0], [0], [1], [0, 0, 1, 1], [], []>} : vector<44x16xf32>, vector<16x32xf32>, vector<44x32xf32> -> vector<44x32xf32>
      %47 = arith.addf %38, %46 : vector<44x32xf32>
      %c0_i32_49 = arith.constant 0 : i32
      %48 = arith.addi %arg20, %c0_i32_49 : i32
      %c44_i32_50 = arith.constant 44 : i32
      %49 = arith.muli %48, %c44_i32_50 : i32
      %c3_i32 = arith.constant 3 : i32
      %50 = arith.addi %49, %c3_i32 : i32
      %51 = arith.index_cast %50 : i32 to index
      %c0_51 = arith.constant 0 : index
      %52 = vector.load %arg13[%51, %c0_51] : memref<1944x16xf32, #tpu.memory_space<vmem>>, vector<44x16xf32>
      %c3 = arith.constant 3 : index
      %c0_52 = arith.constant 0 : index
      %c0_53 = arith.constant 0 : index
      %53 = vector.load %arg4[%c3, %c0_52, %c0_53] : memref<25x16x32xf32, #tpu.memory_space<vmem>>, vector<1x16x32xf32>
      %54 = vector.shape_cast %53 : vector<1x16x32xf32> to vector<16x32xf32>
      %cst_54 = arith.constant dense<0.000000e+00> : vector<44x32xf32>
      %55 = tpu.matmul %52, %54, %cst_54 {dimension_numbers = #tpu.dot_dimension_numbers<[1], [0], [0], [1], [0, 0, 1, 1], [], []>} : vector<44x16xf32>, vector<16x32xf32>, vector<44x32xf32> -> vector<44x32xf32>
      %56 = arith.addf %47, %55 : vector<44x32xf32>
      %c0_i32_55 = arith.constant 0 : i32
      %57 = arith.addi %arg20, %c0_i32_55 : i32
      %c44_i32_56 = arith.constant 44 : i32
      %58 = arith.muli %57, %c44_i32_56 : i32
      %c4_i32 = arith.constant 4 : i32
      %59 = arith.addi %58, %c4_i32 : i32
      %60 = arith.index_cast %59 : i32 to index
      %c0_57 = arith.constant 0 : index
      %61 = vector.load %arg13[%60, %c0_57] : memref<1944x16xf32, #tpu.memory_space<vmem>>, vector<44x16xf32>
      %c4 = arith.constant 4 : index
      %c0_58 = arith.constant 0 : index
      %c0_59 = arith.constant 0 : index
      %62 = vector.load %arg4[%c4, %c0_58, %c0_59] : memref<25x16x32xf32, #tpu.memory_space<vmem>>, vector<1x16x32xf32>
      %63 = vector.shape_cast %62 : vector<1x16x32xf32> to vector<16x32xf32>
      %cst_60 = arith.constant dense<0.000000e+00> : vector<44x32xf32>
      %64 = tpu.matmul %61, %63, %cst_60 {dimension_numbers = #tpu.dot_dimension_numbers<[1], [0], [0], [1], [0, 0, 1, 1], [], []>} : vector<44x16xf32>, vector<16x32xf32>, vector<44x32xf32> -> vector<44x32xf32>
      %65 = arith.addf %56, %64 : vector<44x32xf32>
      %c1_i32_61 = arith.constant 1 : i32
      %66 = arith.addi %arg20, %c1_i32_61 : i32
      %c44_i32_62 = arith.constant 44 : i32
      %67 = arith.muli %66, %c44_i32_62 : i32
      %c0_i32_63 = arith.constant 0 : i32
      %68 = arith.addi %67, %c0_i32_63 : i32
      %69 = arith.index_cast %68 : i32 to index
      %c0_64 = arith.constant 0 : index
      %70 = vector.load %arg13[%69, %c0_64] : memref<1944x16xf32, #tpu.memory_space<vmem>>, vector<44x16xf32>
      %c5 = arith.constant 5 : index
      %c0_65 = arith.constant 0 : index
      %c0_66 = arith.constant 0 : index
      %71 = vector.load %arg4[%c5, %c0_65, %c0_66] : memref<25x16x32xf32, #tpu.memory_space<vmem>>, vector<1x16x32xf32>
      %72 = vector.shape_cast %71 : vector<1x16x32xf32> to vector<16x32xf32>
      %cst_67 = arith.constant dense<0.000000e+00> : vector<44x32xf32>
      %73 = tpu.matmul %70, %72, %cst_67 {dimension_numbers = #tpu.dot_dimension_numbers<[1], [0], [0], [1], [0, 0, 1, 1], [], []>} : vector<44x16xf32>, vector<16x32xf32>, vector<44x32xf32> -> vector<44x32xf32>
      %74 = arith.addf %65, %73 : vector<44x32xf32>
      %c1_i32_68 = arith.constant 1 : i32
      %75 = arith.addi %arg20, %c1_i32_68 : i32
      %c44_i32_69 = arith.constant 44 : i32
      %76 = arith.muli %75, %c44_i32_69 : i32
      %c1_i32_70 = arith.constant 1 : i32
      %77 = arith.addi %76, %c1_i32_70 : i32
      %78 = arith.index_cast %77 : i32 to index
      %c0_71 = arith.constant 0 : index
      %79 = vector.load %arg13[%78, %c0_71] : memref<1944x16xf32, #tpu.memory_space<vmem>>, vector<44x16xf32>
      %c6 = arith.constant 6 : index
      %c0_72 = arith.constant 0 : index
      %c0_73 = arith.constant 0 : index
      %80 = vector.load %arg4[%c6, %c0_72, %c0_73] : memref<25x16x32xf32, #tpu.memory_space<vmem>>, vector<1x16x32xf32>
      %81 = vector.shape_cast %80 : vector<1x16x32xf32> to vector<16x32xf32>
      %cst_74 = arith.constant dense<0.000000e+00> : vector<44x32xf32>
      %82 = tpu.matmul %79, %81, %cst_74 {dimension_numbers = #tpu.dot_dimension_numbers<[1], [0], [0], [1], [0, 0, 1, 1], [], []>} : vector<44x16xf32>, vector<16x32xf32>, vector<44x32xf32> -> vector<44x32xf32>
      %83 = arith.addf %74, %82 : vector<44x32xf32>
      %c1_i32_75 = arith.constant 1 : i32
      %84 = arith.addi %arg20, %c1_i32_75 : i32
      %c44_i32_76 = arith.constant 44 : i32
      %85 = arith.muli %84, %c44_i32_76 : i32
      %c2_i32_77 = arith.constant 2 : i32
      %86 = arith.addi %85, %c2_i32_77 : i32
      %87 = arith.index_cast %86 : i32 to index
      %c0_78 = arith.constant 0 : index
      %88 = vector.load %arg13[%87, %c0_78] : memref<1944x16xf32, #tpu.memory_space<vmem>>, vector<44x16xf32>
      %c7 = arith.constant 7 : index
      %c0_79 = arith.constant 0 : index
      %c0_80 = arith.constant 0 : index
      %89 = vector.load %arg4[%c7, %c0_79, %c0_80] : memref<25x16x32xf32, #tpu.memory_space<vmem>>, vector<1x16x32xf32>
      %90 = vector.shape_cast %89 : vector<1x16x32xf32> to vector<16x32xf32>
      %cst_81 = arith.constant dense<0.000000e+00> : vector<44x32xf32>
      %91 = tpu.matmul %88, %90, %cst_81 {dimension_numbers = #tpu.dot_dimension_numbers<[1], [0], [0], [1], [0, 0, 1, 1], [], []>} : vector<44x16xf32>, vector<16x32xf32>, vector<44x32xf32> -> vector<44x32xf32>
      %92 = arith.addf %83, %91 : vector<44x32xf32>
      %c1_i32_82 = arith.constant 1 : i32
      %93 = arith.addi %arg20, %c1_i32_82 : i32
      %c44_i32_83 = arith.constant 44 : i32
      %94 = arith.muli %93, %c44_i32_83 : i32
      %c3_i32_84 = arith.constant 3 : i32
      %95 = arith.addi %94, %c3_i32_84 : i32
      %96 = arith.index_cast %95 : i32 to index
      %c0_85 = arith.constant 0 : index
      %97 = vector.load %arg13[%96, %c0_85] : memref<1944x16xf32, #tpu.memory_space<vmem>>, vector<44x16xf32>
      %c8 = arith.constant 8 : index
      %c0_86 = arith.constant 0 : index
      %c0_87 = arith.constant 0 : index
      %98 = vector.load %arg4[%c8, %c0_86, %c0_87] : memref<25x16x32xf32, #tpu.memory_space<vmem>>, vector<1x16x32xf32>
      %99 = vector.shape_cast %98 : vector<1x16x32xf32> to vector<16x32xf32>
      %cst_88 = arith.constant dense<0.000000e+00> : vector<44x32xf32>
      %100 = tpu.matmul %97, %99, %cst_88 {dimension_numbers = #tpu.dot_dimension_numbers<[1], [0], [0], [1], [0, 0, 1, 1], [], []>} : vector<44x16xf32>, vector<16x32xf32>, vector<44x32xf32> -> vector<44x32xf32>
      %101 = arith.addf %92, %100 : vector<44x32xf32>
      %c1_i32_89 = arith.constant 1 : i32
      %102 = arith.addi %arg20, %c1_i32_89 : i32
      %c44_i32_90 = arith.constant 44 : i32
      %103 = arith.muli %102, %c44_i32_90 : i32
      %c4_i32_91 = arith.constant 4 : i32
      %104 = arith.addi %103, %c4_i32_91 : i32
      %105 = arith.index_cast %104 : i32 to index
      %c0_92 = arith.constant 0 : index
      %106 = vector.load %arg13[%105, %c0_92] : memref<1944x16xf32, #tpu.memory_space<vmem>>, vector<44x16xf32>
      %c9 = arith.constant 9 : index
      %c0_93 = arith.constant 0 : index
      %c0_94 = arith.constant 0 : index
      %107 = vector.load %arg4[%c9, %c0_93, %c0_94] : memref<25x16x32xf32, #tpu.memory_space<vmem>>, vector<1x16x32xf32>
      %108 = vector.shape_cast %107 : vector<1x16x32xf32> to vector<16x32xf32>
      %cst_95 = arith.constant dense<0.000000e+00> : vector<44x32xf32>
      %109 = tpu.matmul %106, %108, %cst_95 {dimension_numbers = #tpu.dot_dimension_numbers<[1], [0], [0], [1], [0, 0, 1, 1], [], []>} : vector<44x16xf32>, vector<16x32xf32>, vector<44x32xf32> -> vector<44x32xf32>
      %110 = arith.addf %101, %109 : vector<44x32xf32>
      %c2_i32_96 = arith.constant 2 : i32
      %111 = arith.addi %arg20, %c2_i32_96 : i32
      %c44_i32_97 = arith.constant 44 : i32
      %112 = arith.muli %111, %c44_i32_97 : i32
      %c0_i32_98 = arith.constant 0 : i32
      %113 = arith.addi %112, %c0_i32_98 : i32
      %114 = arith.index_cast %113 : i32 to index
      %c0_99 = arith.constant 0 : index
      %115 = vector.load %arg13[%114, %c0_99] : memref<1944x16xf32, #tpu.memory_space<vmem>>, vector<44x16xf32>
      %c10 = arith.constant 10 : index
      %c0_100 = arith.constant 0 : index
      %c0_101 = arith.constant 0 : index
      %116 = vector.load %arg4[%c10, %c0_100, %c0_101] : memref<25x16x32xf32, #tpu.memory_space<vmem>>, vector<1x16x32xf32>
      %117 = vector.shape_cast %116 : vector<1x16x32xf32> to vector<16x32xf32>
      %cst_102 = arith.constant dense<0.000000e+00> : vector<44x32xf32>
      %118 = tpu.matmul %115, %117, %cst_102 {dimension_numbers = #tpu.dot_dimension_numbers<[1], [0], [0], [1], [0, 0, 1, 1], [], []>} : vector<44x16xf32>, vector<16x32xf32>, vector<44x32xf32> -> vector<44x32xf32>
      %119 = arith.addf %110, %118 : vector<44x32xf32>
      %c2_i32_103 = arith.constant 2 : i32
      %120 = arith.addi %arg20, %c2_i32_103 : i32
      %c44_i32_104 = arith.constant 44 : i32
      %121 = arith.muli %120, %c44_i32_104 : i32
      %c1_i32_105 = arith.constant 1 : i32
      %122 = arith.addi %121, %c1_i32_105 : i32
      %123 = arith.index_cast %122 : i32 to index
      %c0_106 = arith.constant 0 : index
      %124 = vector.load %arg13[%123, %c0_106] : memref<1944x16xf32, #tpu.memory_space<vmem>>, vector<44x16xf32>
      %c11 = arith.constant 11 : index
      %c0_107 = arith.constant 0 : index
      %c0_108 = arith.constant 0 : index
      %125 = vector.load %arg4[%c11, %c0_107, %c0_108] : memref<25x16x32xf32, #tpu.memory_space<vmem>>, vector<1x16x32xf32>
      %126 = vector.shape_cast %125 : vector<1x16x32xf32> to vector<16x32xf32>
      %cst_109 = arith.constant dense<0.000000e+00> : vector<44x32xf32>
      %127 = tpu.matmul %124, %126, %cst_109 {dimension_numbers = #tpu.dot_dimension_numbers<[1], [0], [0], [1], [0, 0, 1, 1], [], []>} : vector<44x16xf32>, vector<16x32xf32>, vector<44x32xf32> -> vector<44x32xf32>
      %128 = arith.addf %119, %127 : vector<44x32xf32>
      %c2_i32_110 = arith.constant 2 : i32
      %129 = arith.addi %arg20, %c2_i32_110 : i32
      %c44_i32_111 = arith.constant 44 : i32
      %130 = arith.muli %129, %c44_i32_111 : i32
      %c2_i32_112 = arith.constant 2 : i32
      %131 = arith.addi %130, %c2_i32_112 : i32
      %132 = arith.index_cast %131 : i32 to index
      %c0_113 = arith.constant 0 : index
      %133 = vector.load %arg13[%132, %c0_113] : memref<1944x16xf32, #tpu.memory_space<vmem>>, vector<44x16xf32>
      %c12 = arith.constant 12 : index
      %c0_114 = arith.constant 0 : index
      %c0_115 = arith.constant 0 : index
      %134 = vector.load %arg4[%c12, %c0_114, %c0_115] : memref<25x16x32xf32, #tpu.memory_space<vmem>>, vector<1x16x32xf32>
      %135 = vector.shape_cast %134 : vector<1x16x32xf32> to vector<16x32xf32>
      %cst_116 = arith.constant dense<0.000000e+00> : vector<44x32xf32>
      %136 = tpu.matmul %133, %135, %cst_116 {dimension_numbers = #tpu.dot_dimension_numbers<[1], [0], [0], [1], [0, 0, 1, 1], [], []>} : vector<44x16xf32>, vector<16x32xf32>, vector<44x32xf32> -> vector<44x32xf32>
      %137 = arith.addf %128, %136 : vector<44x32xf32>
      %c2_i32_117 = arith.constant 2 : i32
      %138 = arith.addi %arg20, %c2_i32_117 : i32
      %c44_i32_118 = arith.constant 44 : i32
      %139 = arith.muli %138, %c44_i32_118 : i32
      %c3_i32_119 = arith.constant 3 : i32
      %140 = arith.addi %139, %c3_i32_119 : i32
      %141 = arith.index_cast %140 : i32 to index
      %c0_120 = arith.constant 0 : index
      %142 = vector.load %arg13[%141, %c0_120] : memref<1944x16xf32, #tpu.memory_space<vmem>>, vector<44x16xf32>
      %c13 = arith.constant 13 : index
      %c0_121 = arith.constant 0 : index
      %c0_122 = arith.constant 0 : index
      %143 = vector.load %arg4[%c13, %c0_121, %c0_122] : memref<25x16x32xf32, #tpu.memory_space<vmem>>, vector<1x16x32xf32>
      %144 = vector.shape_cast %143 : vector<1x16x32xf32> to vector<16x32xf32>
      %cst_123 = arith.constant dense<0.000000e+00> : vector<44x32xf32>
      %145 = tpu.matmul %142, %144, %cst_123 {dimension_numbers = #tpu.dot_dimension_numbers<[1], [0], [0], [1], [0, 0, 1, 1], [], []>} : vector<44x16xf32>, vector<16x32xf32>, vector<44x32xf32> -> vector<44x32xf32>
      %146 = arith.addf %137, %145 : vector<44x32xf32>
      %c2_i32_124 = arith.constant 2 : i32
      %147 = arith.addi %arg20, %c2_i32_124 : i32
      %c44_i32_125 = arith.constant 44 : i32
      %148 = arith.muli %147, %c44_i32_125 : i32
      %c4_i32_126 = arith.constant 4 : i32
      %149 = arith.addi %148, %c4_i32_126 : i32
      %150 = arith.index_cast %149 : i32 to index
      %c0_127 = arith.constant 0 : index
      %151 = vector.load %arg13[%150, %c0_127] : memref<1944x16xf32, #tpu.memory_space<vmem>>, vector<44x16xf32>
      %c14 = arith.constant 14 : index
      %c0_128 = arith.constant 0 : index
      %c0_129 = arith.constant 0 : index
      %152 = vector.load %arg4[%c14, %c0_128, %c0_129] : memref<25x16x32xf32, #tpu.memory_space<vmem>>, vector<1x16x32xf32>
      %153 = vector.shape_cast %152 : vector<1x16x32xf32> to vector<16x32xf32>
      %cst_130 = arith.constant dense<0.000000e+00> : vector<44x32xf32>
      %154 = tpu.matmul %151, %153, %cst_130 {dimension_numbers = #tpu.dot_dimension_numbers<[1], [0], [0], [1], [0, 0, 1, 1], [], []>} : vector<44x16xf32>, vector<16x32xf32>, vector<44x32xf32> -> vector<44x32xf32>
      %155 = arith.addf %146, %154 : vector<44x32xf32>
      %c3_i32_131 = arith.constant 3 : i32
      %156 = arith.addi %arg20, %c3_i32_131 : i32
      %c44_i32_132 = arith.constant 44 : i32
      %157 = arith.muli %156, %c44_i32_132 : i32
      %c0_i32_133 = arith.constant 0 : i32
      %158 = arith.addi %157, %c0_i32_133 : i32
      %159 = arith.index_cast %158 : i32 to index
      %c0_134 = arith.constant 0 : index
      %160 = vector.load %arg13[%159, %c0_134] : memref<1944x16xf32, #tpu.memory_space<vmem>>, vector<44x16xf32>
      %c15 = arith.constant 15 : index
      %c0_135 = arith.constant 0 : index
      %c0_136 = arith.constant 0 : index
      %161 = vector.load %arg4[%c15, %c0_135, %c0_136] : memref<25x16x32xf32, #tpu.memory_space<vmem>>, vector<1x16x32xf32>
      %162 = vector.shape_cast %161 : vector<1x16x32xf32> to vector<16x32xf32>
      %cst_137 = arith.constant dense<0.000000e+00> : vector<44x32xf32>
      %163 = tpu.matmul %160, %162, %cst_137 {dimension_numbers = #tpu.dot_dimension_numbers<[1], [0], [0], [1], [0, 0, 1, 1], [], []>} : vector<44x16xf32>, vector<16x32xf32>, vector<44x32xf32> -> vector<44x32xf32>
      %164 = arith.addf %155, %163 : vector<44x32xf32>
      %c3_i32_138 = arith.constant 3 : i32
      %165 = arith.addi %arg20, %c3_i32_138 : i32
      %c44_i32_139 = arith.constant 44 : i32
      %166 = arith.muli %165, %c44_i32_139 : i32
      %c1_i32_140 = arith.constant 1 : i32
      %167 = arith.addi %166, %c1_i32_140 : i32
      %168 = arith.index_cast %167 : i32 to index
      %c0_141 = arith.constant 0 : index
      %169 = vector.load %arg13[%168, %c0_141] : memref<1944x16xf32, #tpu.memory_space<vmem>>, vector<44x16xf32>
      %c16 = arith.constant 16 : index
      %c0_142 = arith.constant 0 : index
      %c0_143 = arith.constant 0 : index
      %170 = vector.load %arg4[%c16, %c0_142, %c0_143] : memref<25x16x32xf32, #tpu.memory_space<vmem>>, vector<1x16x32xf32>
      %171 = vector.shape_cast %170 : vector<1x16x32xf32> to vector<16x32xf32>
      %cst_144 = arith.constant dense<0.000000e+00> : vector<44x32xf32>
      %172 = tpu.matmul %169, %171, %cst_144 {dimension_numbers = #tpu.dot_dimension_numbers<[1], [0], [0], [1], [0, 0, 1, 1], [], []>} : vector<44x16xf32>, vector<16x32xf32>, vector<44x32xf32> -> vector<44x32xf32>
      %173 = arith.addf %164, %172 : vector<44x32xf32>
      %c3_i32_145 = arith.constant 3 : i32
      %174 = arith.addi %arg20, %c3_i32_145 : i32
      %c44_i32_146 = arith.constant 44 : i32
      %175 = arith.muli %174, %c44_i32_146 : i32
      %c2_i32_147 = arith.constant 2 : i32
      %176 = arith.addi %175, %c2_i32_147 : i32
      %177 = arith.index_cast %176 : i32 to index
      %c0_148 = arith.constant 0 : index
      %178 = vector.load %arg13[%177, %c0_148] : memref<1944x16xf32, #tpu.memory_space<vmem>>, vector<44x16xf32>
      %c17 = arith.constant 17 : index
      %c0_149 = arith.constant 0 : index
      %c0_150 = arith.constant 0 : index
      %179 = vector.load %arg4[%c17, %c0_149, %c0_150] : memref<25x16x32xf32, #tpu.memory_space<vmem>>, vector<1x16x32xf32>
      %180 = vector.shape_cast %179 : vector<1x16x32xf32> to vector<16x32xf32>
      %cst_151 = arith.constant dense<0.000000e+00> : vector<44x32xf32>
      %181 = tpu.matmul %178, %180, %cst_151 {dimension_numbers = #tpu.dot_dimension_numbers<[1], [0], [0], [1], [0, 0, 1, 1], [], []>} : vector<44x16xf32>, vector<16x32xf32>, vector<44x32xf32> -> vector<44x32xf32>
      %182 = arith.addf %173, %181 : vector<44x32xf32>
      %c3_i32_152 = arith.constant 3 : i32
      %183 = arith.addi %arg20, %c3_i32_152 : i32
      %c44_i32_153 = arith.constant 44 : i32
      %184 = arith.muli %183, %c44_i32_153 : i32
      %c3_i32_154 = arith.constant 3 : i32
      %185 = arith.addi %184, %c3_i32_154 : i32
      %186 = arith.index_cast %185 : i32 to index
      %c0_155 = arith.constant 0 : index
      %187 = vector.load %arg13[%186, %c0_155] : memref<1944x16xf32, #tpu.memory_space<vmem>>, vector<44x16xf32>
      %c18 = arith.constant 18 : index
      %c0_156 = arith.constant 0 : index
      %c0_157 = arith.constant 0 : index
      %188 = vector.load %arg4[%c18, %c0_156, %c0_157] : memref<25x16x32xf32, #tpu.memory_space<vmem>>, vector<1x16x32xf32>
      %189 = vector.shape_cast %188 : vector<1x16x32xf32> to vector<16x32xf32>
      %cst_158 = arith.constant dense<0.000000e+00> : vector<44x32xf32>
      %190 = tpu.matmul %187, %189, %cst_158 {dimension_numbers = #tpu.dot_dimension_numbers<[1], [0], [0], [1], [0, 0, 1, 1], [], []>} : vector<44x16xf32>, vector<16x32xf32>, vector<44x32xf32> -> vector<44x32xf32>
      %191 = arith.addf %182, %190 : vector<44x32xf32>
      %c3_i32_159 = arith.constant 3 : i32
      %192 = arith.addi %arg20, %c3_i32_159 : i32
      %c44_i32_160 = arith.constant 44 : i32
      %193 = arith.muli %192, %c44_i32_160 : i32
      %c4_i32_161 = arith.constant 4 : i32
      %194 = arith.addi %193, %c4_i32_161 : i32
      %195 = arith.index_cast %194 : i32 to index
      %c0_162 = arith.constant 0 : index
      %196 = vector.load %arg13[%195, %c0_162] : memref<1944x16xf32, #tpu.memory_space<vmem>>, vector<44x16xf32>
      %c19 = arith.constant 19 : index
      %c0_163 = arith.constant 0 : index
      %c0_164 = arith.constant 0 : index
      %197 = vector.load %arg4[%c19, %c0_163, %c0_164] : memref<25x16x32xf32, #tpu.memory_space<vmem>>, vector<1x16x32xf32>
      %198 = vector.shape_cast %197 : vector<1x16x32xf32> to vector<16x32xf32>
      %cst_165 = arith.constant dense<0.000000e+00> : vector<44x32xf32>
      %199 = tpu.matmul %196, %198, %cst_165 {dimension_numbers = #tpu.dot_dimension_numbers<[1], [0], [0], [1], [0, 0, 1, 1], [], []>} : vector<44x16xf32>, vector<16x32xf32>, vector<44x32xf32> -> vector<44x32xf32>
      %200 = arith.addf %191, %199 : vector<44x32xf32>
      %c4_i32_166 = arith.constant 4 : i32
      %201 = arith.addi %arg20, %c4_i32_166 : i32
      %c44_i32_167 = arith.constant 44 : i32
      %202 = arith.muli %201, %c44_i32_167 : i32
      %c0_i32_168 = arith.constant 0 : i32
      %203 = arith.addi %202, %c0_i32_168 : i32
      %204 = arith.index_cast %203 : i32 to index
      %c0_169 = arith.constant 0 : index
      %205 = vector.load %arg13[%204, %c0_169] : memref<1944x16xf32, #tpu.memory_space<vmem>>, vector<44x16xf32>
      %c20 = arith.constant 20 : index
      %c0_170 = arith.constant 0 : index
      %c0_171 = arith.constant 0 : index
      %206 = vector.load %arg4[%c20, %c0_170, %c0_171] : memref<25x16x32xf32, #tpu.memory_space<vmem>>, vector<1x16x32xf32>
      %207 = vector.shape_cast %206 : vector<1x16x32xf32> to vector<16x32xf32>
      %cst_172 = arith.constant dense<0.000000e+00> : vector<44x32xf32>
      %208 = tpu.matmul %205, %207, %cst_172 {dimension_numbers = #tpu.dot_dimension_numbers<[1], [0], [0], [1], [0, 0, 1, 1], [], []>} : vector<44x16xf32>, vector<16x32xf32>, vector<44x32xf32> -> vector<44x32xf32>
      %209 = arith.addf %200, %208 : vector<44x32xf32>
      %c4_i32_173 = arith.constant 4 : i32
      %210 = arith.addi %arg20, %c4_i32_173 : i32
      %c44_i32_174 = arith.constant 44 : i32
      %211 = arith.muli %210, %c44_i32_174 : i32
      %c1_i32_175 = arith.constant 1 : i32
      %212 = arith.addi %211, %c1_i32_175 : i32
      %213 = arith.index_cast %212 : i32 to index
      %c0_176 = arith.constant 0 : index
      %214 = vector.load %arg13[%213, %c0_176] : memref<1944x16xf32, #tpu.memory_space<vmem>>, vector<44x16xf32>
      %c21 = arith.constant 21 : index
      %c0_177 = arith.constant 0 : index
      %c0_178 = arith.constant 0 : index
      %215 = vector.load %arg4[%c21, %c0_177, %c0_178] : memref<25x16x32xf32, #tpu.memory_space<vmem>>, vector<1x16x32xf32>
      %216 = vector.shape_cast %215 : vector<1x16x32xf32> to vector<16x32xf32>
      %cst_179 = arith.constant dense<0.000000e+00> : vector<44x32xf32>
      %217 = tpu.matmul %214, %216, %cst_179 {dimension_numbers = #tpu.dot_dimension_numbers<[1], [0], [0], [1], [0, 0, 1, 1], [], []>} : vector<44x16xf32>, vector<16x32xf32>, vector<44x32xf32> -> vector<44x32xf32>
      %218 = arith.addf %209, %217 : vector<44x32xf32>
      %c4_i32_180 = arith.constant 4 : i32
      %219 = arith.addi %arg20, %c4_i32_180 : i32
      %c44_i32_181 = arith.constant 44 : i32
      %220 = arith.muli %219, %c44_i32_181 : i32
      %c2_i32_182 = arith.constant 2 : i32
      %221 = arith.addi %220, %c2_i32_182 : i32
      %222 = arith.index_cast %221 : i32 to index
      %c0_183 = arith.constant 0 : index
      %223 = vector.load %arg13[%222, %c0_183] : memref<1944x16xf32, #tpu.memory_space<vmem>>, vector<44x16xf32>
      %c22 = arith.constant 22 : index
      %c0_184 = arith.constant 0 : index
      %c0_185 = arith.constant 0 : index
      %224 = vector.load %arg4[%c22, %c0_184, %c0_185] : memref<25x16x32xf32, #tpu.memory_space<vmem>>, vector<1x16x32xf32>
      %225 = vector.shape_cast %224 : vector<1x16x32xf32> to vector<16x32xf32>
      %cst_186 = arith.constant dense<0.000000e+00> : vector<44x32xf32>
      %226 = tpu.matmul %223, %225, %cst_186 {dimension_numbers = #tpu.dot_dimension_numbers<[1], [0], [0], [1], [0, 0, 1, 1], [], []>} : vector<44x16xf32>, vector<16x32xf32>, vector<44x32xf32> -> vector<44x32xf32>
      %227 = arith.addf %218, %226 : vector<44x32xf32>
      %c4_i32_187 = arith.constant 4 : i32
      %228 = arith.addi %arg20, %c4_i32_187 : i32
      %c44_i32_188 = arith.constant 44 : i32
      %229 = arith.muli %228, %c44_i32_188 : i32
      %c3_i32_189 = arith.constant 3 : i32
      %230 = arith.addi %229, %c3_i32_189 : i32
      %231 = arith.index_cast %230 : i32 to index
      %c0_190 = arith.constant 0 : index
      %232 = vector.load %arg13[%231, %c0_190] : memref<1944x16xf32, #tpu.memory_space<vmem>>, vector<44x16xf32>
      %c23 = arith.constant 23 : index
      %c0_191 = arith.constant 0 : index
      %c0_192 = arith.constant 0 : index
      %233 = vector.load %arg4[%c23, %c0_191, %c0_192] : memref<25x16x32xf32, #tpu.memory_space<vmem>>, vector<1x16x32xf32>
      %234 = vector.shape_cast %233 : vector<1x16x32xf32> to vector<16x32xf32>
      %cst_193 = arith.constant dense<0.000000e+00> : vector<44x32xf32>
      %235 = tpu.matmul %232, %234, %cst_193 {dimension_numbers = #tpu.dot_dimension_numbers<[1], [0], [0], [1], [0, 0, 1, 1], [], []>} : vector<44x16xf32>, vector<16x32xf32>, vector<44x32xf32> -> vector<44x32xf32>
      %236 = arith.addf %227, %235 : vector<44x32xf32>
      %c4_i32_194 = arith.constant 4 : i32
      %237 = arith.addi %arg20, %c4_i32_194 : i32
      %c44_i32_195 = arith.constant 44 : i32
      %238 = arith.muli %237, %c44_i32_195 : i32
      %c4_i32_196 = arith.constant 4 : i32
      %239 = arith.addi %238, %c4_i32_196 : i32
      %240 = arith.index_cast %239 : i32 to index
      %c0_197 = arith.constant 0 : index
      %241 = vector.load %arg13[%240, %c0_197] : memref<1944x16xf32, #tpu.memory_space<vmem>>, vector<44x16xf32>
      %c24 = arith.constant 24 : index
      %c0_198 = arith.constant 0 : index
      %c0_199 = arith.constant 0 : index
      %242 = vector.load %arg4[%c24, %c0_198, %c0_199] : memref<25x16x32xf32, #tpu.memory_space<vmem>>, vector<1x16x32xf32>
      %243 = vector.shape_cast %242 : vector<1x16x32xf32> to vector<16x32xf32>
      %cst_200 = arith.constant dense<0.000000e+00> : vector<44x32xf32>
      %244 = tpu.matmul %241, %243, %cst_200 {dimension_numbers = #tpu.dot_dimension_numbers<[1], [0], [0], [1], [0, 0, 1, 1], [], []>} : vector<44x16xf32>, vector<16x32xf32>, vector<44x32xf32> -> vector<44x32xf32>
      %245 = arith.addf %236, %244 : vector<44x32xf32>
      %c0_201 = arith.constant 0 : index
      %c0_202 = arith.constant 0 : index
      %246 = vector.load %arg5[%c0_201, %c0_202] : memref<1x32xf32, #tpu.memory_space<vmem>>, vector<1x32xf32>
      %247 = vector.broadcast %246 : vector<1x32xf32> to vector<44x32xf32>
      %248 = arith.addf %245, %247 : vector<44x32xf32>
      %cst_203 = arith.constant 0.000000e+00 : f32
      %249 = vector.broadcast %cst_203 : f32 to vector<44x32xf32>
      %250 = arith.maximumf %248, %249 : vector<44x32xf32>
      %251 = vector.extract_strided_slice %250 {offsets = [0, 0], sizes = [40, 32], strides = [1, 1]} : vector<44x32xf32> to vector<40x32xf32>
      %c2_i32_204 = arith.constant 2 : i32
      %252 = arith.addi %arg20, %c2_i32_204 : i32
      %c44_i32_205 = arith.constant 44 : i32
      %253 = arith.muli %252, %c44_i32_205 : i32
      %c2_i32_206 = arith.constant 2 : i32
      %254 = arith.addi %253, %c2_i32_206 : i32
      %255 = arith.index_cast %254 : i32 to index
      %c0_207 = arith.constant 0 : index
      %256 = vector.load %arg14[%255, %c0_207] : memref<1944x32xf32, #tpu.memory_space<vmem>>, vector<40x32xf32>
      tpu.vector_store %arg14[%255, %c0_207], %251 {strides = array<i32>} : memref<1944x32xf32, #tpu.memory_space<vmem>>, vector<40x32xf32>,
    }
    %c40_i32_11 = arith.constant 40 : i32
    %c0_i32_12 = arith.constant 0 : i32
    %c20_i32 = arith.constant 20 : i32
    %8 = arith.addi %c0_i32_12, %c20_i32 : i32
    %c1_i32_13 = arith.constant 1 : i32
    scf.for %arg20 = %c0_i32_12 to %8 step %c1_i32_13  : i32 {
      %cst_28 = arith.constant 0.000000e+00 : f32
      %20 = vector.broadcast %cst_28 : f32 to vector<88x32xf32>
      %c2_i32 = arith.constant 2 : i32
      %21 = arith.muli %c2_i32, %arg20 : i32
      %c0_i32_29 = arith.constant 0 : i32
      %22 = arith.addi %21, %c0_i32_29 : i32
      %c44_i32 = arith.constant 44 : i32
      %23 = arith.muli %22, %c44_i32 : i32
      %c0_i32_30 = arith.constant 0 : i32
      %24 = arith.addi %23, %c0_i32_30 : i32
      %25 = arith.index_cast %24 : i32 to index
      %c0_31 = arith.constant 0 : index
      %26 = vector.load %arg14[%25, %c0_31] : memref<1944x32xf32, #tpu.memory_space<vmem>>, vector<88x32xf32>
      %c0_32 = arith.constant 0 : index
      %c0_33 = arith.constant 0 : index
      %c0_34 = arith.constant 0 : index
      %27 = vector.load %arg6[%c0_32, %c0_33, %c0_34] : memref<25x32x32xf32, #tpu.memory_space<vmem>>, vector<1x32x32xf32>
      %28 = vector.shape_cast %27 : vector<1x32x32xf32> to vector<32x32xf32>
      %cst_35 = arith.constant dense<0.000000e+00> : vector<88x32xf32>
      %29 = tpu.matmul %26, %28, %cst_35 {dimension_numbers = #tpu.dot_dimension_numbers<[1], [0], [0], [1], [0, 0, 1, 1], [], []>} : vector<88x32xf32>, vector<32x32xf32>, vector<88x32xf32> -> vector<88x32xf32>
      %30 = arith.addf %20, %29 : vector<88x32xf32>
      %c2_i32_36 = arith.constant 2 : i32
      %31 = arith.muli %c2_i32_36, %arg20 : i32
      %c0_i32_37 = arith.constant 0 : i32
      %32 = arith.addi %31, %c0_i32_37 : i32
      %c44_i32_38 = arith.constant 44 : i32
      %33 = arith.muli %32, %c44_i32_38 : i32
      %c1_i32_39 = arith.constant 1 : i32
      %34 = arith.addi %33, %c1_i32_39 : i32
      %35 = arith.index_cast %34 : i32 to index
      %c0_40 = arith.constant 0 : index
      %36 = vector.load %arg14[%35, %c0_40] : memref<1944x32xf32, #tpu.memory_space<vmem>>, vector<88x32xf32>
      %c1 = arith.constant 1 : index
      %c0_41 = arith.constant 0 : index
      %c0_42 = arith.constant 0 : index
      %37 = vector.load %arg6[%c1, %c0_41, %c0_42] : memref<25x32x32xf32, #tpu.memory_space<vmem>>, vector<1x32x32xf32>
      %38 = vector.shape_cast %37 : vector<1x32x32xf32> to vector<32x32xf32>
      %cst_43 = arith.constant dense<0.000000e+00> : vector<88x32xf32>
      %39 = tpu.matmul %36, %38, %cst_43 {dimension_numbers = #tpu.dot_dimension_numbers<[1], [0], [0], [1], [0, 0, 1, 1], [], []>} : vector<88x32xf32>, vector<32x32xf32>, vector<88x32xf32> -> vector<88x32xf32>
      %40 = arith.addf %30, %39 : vector<88x32xf32>
      %c2_i32_44 = arith.constant 2 : i32
      %41 = arith.muli %c2_i32_44, %arg20 : i32
      %c0_i32_45 = arith.constant 0 : i32
      %42 = arith.addi %41, %c0_i32_45 : i32
      %c44_i32_46 = arith.constant 44 : i32
      %43 = arith.muli %42, %c44_i32_46 : i32
      %c2_i32_47 = arith.constant 2 : i32
      %44 = arith.addi %43, %c2_i32_47 : i32
      %45 = arith.index_cast %44 : i32 to index
      %c0_48 = arith.constant 0 : index
      %46 = vector.load %arg14[%45, %c0_48] : memref<1944x32xf32, #tpu.memory_space<vmem>>, vector<88x32xf32>
      %c2 = arith.constant 2 : index
      %c0_49 = arith.constant 0 : index
      %c0_50 = arith.constant 0 : index
      %47 = vector.load %arg6[%c2, %c0_49, %c0_50] : memref<25x32x32xf32, #tpu.memory_space<vmem>>, vector<1x32x32xf32>
      %48 = vector.shape_cast %47 : vector<1x32x32xf32> to vector<32x32xf32>
      %cst_51 = arith.constant dense<0.000000e+00> : vector<88x32xf32>
      %49 = tpu.matmul %46, %48, %cst_51 {dimension_numbers = #tpu.dot_dimension_numbers<[1], [0], [0], [1], [0, 0, 1, 1], [], []>} : vector<88x32xf32>, vector<32x32xf32>, vector<88x32xf32> -> vector<88x32xf32>
      %50 = arith.addf %40, %49 : vector<88x32xf32>
      %c2_i32_52 = arith.constant 2 : i32
      %51 = arith.muli %c2_i32_52, %arg20 : i32
      %c0_i32_53 = arith.constant 0 : i32
      %52 = arith.addi %51, %c0_i32_53 : i32
      %c44_i32_54 = arith.constant 44 : i32
      %53 = arith.muli %52, %c44_i32_54 : i32
      %c3_i32 = arith.constant 3 : i32
      %54 = arith.addi %53, %c3_i32 : i32
      %55 = arith.index_cast %54 : i32 to index
      %c0_55 = arith.constant 0 : index
      %56 = vector.load %arg14[%55, %c0_55] : memref<1944x32xf32, #tpu.memory_space<vmem>>, vector<88x32xf32>
      %c3 = arith.constant 3 : index
      %c0_56 = arith.constant 0 : index
      %c0_57 = arith.constant 0 : index
      %57 = vector.load %arg6[%c3, %c0_56, %c0_57] : memref<25x32x32xf32, #tpu.memory_space<vmem>>, vector<1x32x32xf32>
      %58 = vector.shape_cast %57 : vector<1x32x32xf32> to vector<32x32xf32>
      %cst_58 = arith.constant dense<0.000000e+00> : vector<88x32xf32>
      %59 = tpu.matmul %56, %58, %cst_58 {dimension_numbers = #tpu.dot_dimension_numbers<[1], [0], [0], [1], [0, 0, 1, 1], [], []>} : vector<88x32xf32>, vector<32x32xf32>, vector<88x32xf32> -> vector<88x32xf32>
      %60 = arith.addf %50, %59 : vector<88x32xf32>
      %c2_i32_59 = arith.constant 2 : i32
      %61 = arith.muli %c2_i32_59, %arg20 : i32
      %c0_i32_60 = arith.constant 0 : i32
      %62 = arith.addi %61, %c0_i32_60 : i32
      %c44_i32_61 = arith.constant 44 : i32
      %63 = arith.muli %62, %c44_i32_61 : i32
      %c4_i32 = arith.constant 4 : i32
      %64 = arith.addi %63, %c4_i32 : i32
      %65 = arith.index_cast %64 : i32 to index
      %c0_62 = arith.constant 0 : index
      %66 = vector.load %arg14[%65, %c0_62] : memref<1944x32xf32, #tpu.memory_space<vmem>>, vector<88x32xf32>
      %c4 = arith.constant 4 : index
      %c0_63 = arith.constant 0 : index
      %c0_64 = arith.constant 0 : index
      %67 = vector.load %arg6[%c4, %c0_63, %c0_64] : memref<25x32x32xf32, #tpu.memory_space<vmem>>, vector<1x32x32xf32>
      %68 = vector.shape_cast %67 : vector<1x32x32xf32> to vector<32x32xf32>
      %cst_65 = arith.constant dense<0.000000e+00> : vector<88x32xf32>
      %69 = tpu.matmul %66, %68, %cst_65 {dimension_numbers = #tpu.dot_dimension_numbers<[1], [0], [0], [1], [0, 0, 1, 1], [], []>} : vector<88x32xf32>, vector<32x32xf32>, vector<88x32xf32> -> vector<88x32xf32>
      %70 = arith.addf %60, %69 : vector<88x32xf32>
      %c2_i32_66 = arith.constant 2 : i32
      %71 = arith.muli %c2_i32_66, %arg20 : i32
      %c1_i32_67 = arith.constant 1 : i32
      %72 = arith.addi %71, %c1_i32_67 : i32
      %c44_i32_68 = arith.constant 44 : i32
      %73 = arith.muli %72, %c44_i32_68 : i32
      %c0_i32_69 = arith.constant 0 : i32
      %74 = arith.addi %73, %c0_i32_69 : i32
      %75 = arith.index_cast %74 : i32 to index
      %c0_70 = arith.constant 0 : index
      %76 = vector.load %arg14[%75, %c0_70] : memref<1944x32xf32, #tpu.memory_space<vmem>>, vector<88x32xf32>
      %c5 = arith.constant 5 : index
      %c0_71 = arith.constant 0 : index
      %c0_72 = arith.constant 0 : index
      %77 = vector.load %arg6[%c5, %c0_71, %c0_72] : memref<25x32x32xf32, #tpu.memory_space<vmem>>, vector<1x32x32xf32>
      %78 = vector.shape_cast %77 : vector<1x32x32xf32> to vector<32x32xf32>
      %cst_73 = arith.constant dense<0.000000e+00> : vector<88x32xf32>
      %79 = tpu.matmul %76, %78, %cst_73 {dimension_numbers = #tpu.dot_dimension_numbers<[1], [0], [0], [1], [0, 0, 1, 1], [], []>} : vector<88x32xf32>, vector<32x32xf32>, vector<88x32xf32> -> vector<88x32xf32>
      %80 = arith.addf %70, %79 : vector<88x32xf32>
      %c2_i32_74 = arith.constant 2 : i32
      %81 = arith.muli %c2_i32_74, %arg20 : i32
      %c1_i32_75 = arith.constant 1 : i32
      %82 = arith.addi %81, %c1_i32_75 : i32
      %c44_i32_76 = arith.constant 44 : i32
      %83 = arith.muli %82, %c44_i32_76 : i32
      %c1_i32_77 = arith.constant 1 : i32
      %84 = arith.addi %83, %c1_i32_77 : i32
      %85 = arith.index_cast %84 : i32 to index
      %c0_78 = arith.constant 0 : index
      %86 = vector.load %arg14[%85, %c0_78] : memref<1944x32xf32, #tpu.memory_space<vmem>>, vector<88x32xf32>
      %c6 = arith.constant 6 : index
      %c0_79 = arith.constant 0 : index
      %c0_80 = arith.constant 0 : index
      %87 = vector.load %arg6[%c6, %c0_79, %c0_80] : memref<25x32x32xf32, #tpu.memory_space<vmem>>, vector<1x32x32xf32>
      %88 = vector.shape_cast %87 : vector<1x32x32xf32> to vector<32x32xf32>
      %cst_81 = arith.constant dense<0.000000e+00> : vector<88x32xf32>
      %89 = tpu.matmul %86, %88, %cst_81 {dimension_numbers = #tpu.dot_dimension_numbers<[1], [0], [0], [1], [0, 0, 1, 1], [], []>} : vector<88x32xf32>, vector<32x32xf32>, vector<88x32xf32> -> vector<88x32xf32>
      %90 = arith.addf %80, %89 : vector<88x32xf32>
      %c2_i32_82 = arith.constant 2 : i32
      %91 = arith.muli %c2_i32_82, %arg20 : i32
      %c1_i32_83 = arith.constant 1 : i32
      %92 = arith.addi %91, %c1_i32_83 : i32
      %c44_i32_84 = arith.constant 44 : i32
      %93 = arith.muli %92, %c44_i32_84 : i32
      %c2_i32_85 = arith.constant 2 : i32
      %94 = arith.addi %93, %c2_i32_85 : i32
      %95 = arith.index_cast %94 : i32 to index
      %c0_86 = arith.constant 0 : index
      %96 = vector.load %arg14[%95, %c0_86] : memref<1944x32xf32, #tpu.memory_space<vmem>>, vector<88x32xf32>
      %c7 = arith.constant 7 : index
      %c0_87 = arith.constant 0 : index
      %c0_88 = arith.constant 0 : index
      %97 = vector.load %arg6[%c7, %c0_87, %c0_88] : memref<25x32x32xf32, #tpu.memory_space<vmem>>, vector<1x32x32xf32>
      %98 = vector.shape_cast %97 : vector<1x32x32xf32> to vector<32x32xf32>
      %cst_89 = arith.constant dense<0.000000e+00> : vector<88x32xf32>
      %99 = tpu.matmul %96, %98, %cst_89 {dimension_numbers = #tpu.dot_dimension_numbers<[1], [0], [0], [1], [0, 0, 1, 1], [], []>} : vector<88x32xf32>, vector<32x32xf32>, vector<88x32xf32> -> vector<88x32xf32>
      %100 = arith.addf %90, %99 : vector<88x32xf32>
      %c2_i32_90 = arith.constant 2 : i32
      %101 = arith.muli %c2_i32_90, %arg20 : i32
      %c1_i32_91 = arith.constant 1 : i32
      %102 = arith.addi %101, %c1_i32_91 : i32
      %c44_i32_92 = arith.constant 44 : i32
      %103 = arith.muli %102, %c44_i32_92 : i32
      %c3_i32_93 = arith.constant 3 : i32
      %104 = arith.addi %103, %c3_i32_93 : i32
      %105 = arith.index_cast %104 : i32 to index
      %c0_94 = arith.constant 0 : index
      %106 = vector.load %arg14[%105, %c0_94] : memref<1944x32xf32, #tpu.memory_space<vmem>>, vector<88x32xf32>
      %c8 = arith.constant 8 : index
      %c0_95 = arith.constant 0 : index
      %c0_96 = arith.constant 0 : index
      %107 = vector.load %arg6[%c8, %c0_95, %c0_96] : memref<25x32x32xf32, #tpu.memory_space<vmem>>, vector<1x32x32xf32>
      %108 = vector.shape_cast %107 : vector<1x32x32xf32> to vector<32x32xf32>
      %cst_97 = arith.constant dense<0.000000e+00> : vector<88x32xf32>
      %109 = tpu.matmul %106, %108, %cst_97 {dimension_numbers = #tpu.dot_dimension_numbers<[1], [0], [0], [1], [0, 0, 1, 1], [], []>} : vector<88x32xf32>, vector<32x32xf32>, vector<88x32xf32> -> vector<88x32xf32>
      %110 = arith.addf %100, %109 : vector<88x32xf32>
      %c2_i32_98 = arith.constant 2 : i32
      %111 = arith.muli %c2_i32_98, %arg20 : i32
      %c1_i32_99 = arith.constant 1 : i32
      %112 = arith.addi %111, %c1_i32_99 : i32
      %c44_i32_100 = arith.constant 44 : i32
      %113 = arith.muli %112, %c44_i32_100 : i32
      %c4_i32_101 = arith.constant 4 : i32
      %114 = arith.addi %113, %c4_i32_101 : i32
      %115 = arith.index_cast %114 : i32 to index
      %c0_102 = arith.constant 0 : index
      %116 = vector.load %arg14[%115, %c0_102] : memref<1944x32xf32, #tpu.memory_space<vmem>>, vector<88x32xf32>
      %c9 = arith.constant 9 : index
      %c0_103 = arith.constant 0 : index
      %c0_104 = arith.constant 0 : index
      %117 = vector.load %arg6[%c9, %c0_103, %c0_104] : memref<25x32x32xf32, #tpu.memory_space<vmem>>, vector<1x32x32xf32>
      %118 = vector.shape_cast %117 : vector<1x32x32xf32> to vector<32x32xf32>
      %cst_105 = arith.constant dense<0.000000e+00> : vector<88x32xf32>
      %119 = tpu.matmul %116, %118, %cst_105 {dimension_numbers = #tpu.dot_dimension_numbers<[1], [0], [0], [1], [0, 0, 1, 1], [], []>} : vector<88x32xf32>, vector<32x32xf32>, vector<88x32xf32> -> vector<88x32xf32>
      %120 = arith.addf %110, %119 : vector<88x32xf32>
      %c2_i32_106 = arith.constant 2 : i32
      %121 = arith.muli %c2_i32_106, %arg20 : i32
      %c2_i32_107 = arith.constant 2 : i32
      %122 = arith.addi %121, %c2_i32_107 : i32
      %c44_i32_108 = arith.constant 44 : i32
      %123 = arith.muli %122, %c44_i32_108 : i32
      %c0_i32_109 = arith.constant 0 : i32
      %124 = arith.addi %123, %c0_i32_109 : i32
      %125 = arith.index_cast %124 : i32 to index
      %c0_110 = arith.constant 0 : index
      %126 = vector.load %arg14[%125, %c0_110] : memref<1944x32xf32, #tpu.memory_space<vmem>>, vector<88x32xf32>
      %c10 = arith.constant 10 : index
      %c0_111 = arith.constant 0 : index
      %c0_112 = arith.constant 0 : index
      %127 = vector.load %arg6[%c10, %c0_111, %c0_112] : memref<25x32x32xf32, #tpu.memory_space<vmem>>, vector<1x32x32xf32>
      %128 = vector.shape_cast %127 : vector<1x32x32xf32> to vector<32x32xf32>
      %cst_113 = arith.constant dense<0.000000e+00> : vector<88x32xf32>
      %129 = tpu.matmul %126, %128, %cst_113 {dimension_numbers = #tpu.dot_dimension_numbers<[1], [0], [0], [1], [0, 0, 1, 1], [], []>} : vector<88x32xf32>, vector<32x32xf32>, vector<88x32xf32> -> vector<88x32xf32>
      %130 = arith.addf %120, %129 : vector<88x32xf32>
      %c2_i32_114 = arith.constant 2 : i32
      %131 = arith.muli %c2_i32_114, %arg20 : i32
      %c2_i32_115 = arith.constant 2 : i32
      %132 = arith.addi %131, %c2_i32_115 : i32
      %c44_i32_116 = arith.constant 44 : i32
      %133 = arith.muli %132, %c44_i32_116 : i32
      %c1_i32_117 = arith.constant 1 : i32
      %134 = arith.addi %133, %c1_i32_117 : i32
      %135 = arith.index_cast %134 : i32 to index
      %c0_118 = arith.constant 0 : index
      %136 = vector.load %arg14[%135, %c0_118] : memref<1944x32xf32, #tpu.memory_space<vmem>>, vector<88x32xf32>
      %c11 = arith.constant 11 : index
      %c0_119 = arith.constant 0 : index
      %c0_120 = arith.constant 0 : index
      %137 = vector.load %arg6[%c11, %c0_119, %c0_120] : memref<25x32x32xf32, #tpu.memory_space<vmem>>, vector<1x32x32xf32>
      %138 = vector.shape_cast %137 : vector<1x32x32xf32> to vector<32x32xf32>
      %cst_121 = arith.constant dense<0.000000e+00> : vector<88x32xf32>
      %139 = tpu.matmul %136, %138, %cst_121 {dimension_numbers = #tpu.dot_dimension_numbers<[1], [0], [0], [1], [0, 0, 1, 1], [], []>} : vector<88x32xf32>, vector<32x32xf32>, vector<88x32xf32> -> vector<88x32xf32>
      %140 = arith.addf %130, %139 : vector<88x32xf32>
      %c2_i32_122 = arith.constant 2 : i32
      %141 = arith.muli %c2_i32_122, %arg20 : i32
      %c2_i32_123 = arith.constant 2 : i32
      %142 = arith.addi %141, %c2_i32_123 : i32
      %c44_i32_124 = arith.constant 44 : i32
      %143 = arith.muli %142, %c44_i32_124 : i32
      %c2_i32_125 = arith.constant 2 : i32
      %144 = arith.addi %143, %c2_i32_125 : i32
      %145 = arith.index_cast %144 : i32 to index
      %c0_126 = arith.constant 0 : index
      %146 = vector.load %arg14[%145, %c0_126] : memref<1944x32xf32, #tpu.memory_space<vmem>>, vector<88x32xf32>
      %c12 = arith.constant 12 : index
      %c0_127 = arith.constant 0 : index
      %c0_128 = arith.constant 0 : index
      %147 = vector.load %arg6[%c12, %c0_127, %c0_128] : memref<25x32x32xf32, #tpu.memory_space<vmem>>, vector<1x32x32xf32>
      %148 = vector.shape_cast %147 : vector<1x32x32xf32> to vector<32x32xf32>
      %cst_129 = arith.constant dense<0.000000e+00> : vector<88x32xf32>
      %149 = tpu.matmul %146, %148, %cst_129 {dimension_numbers = #tpu.dot_dimension_numbers<[1], [0], [0], [1], [0, 0, 1, 1], [], []>} : vector<88x32xf32>, vector<32x32xf32>, vector<88x32xf32> -> vector<88x32xf32>
      %150 = arith.addf %140, %149 : vector<88x32xf32>
      %c2_i32_130 = arith.constant 2 : i32
      %151 = arith.muli %c2_i32_130, %arg20 : i32
      %c2_i32_131 = arith.constant 2 : i32
      %152 = arith.addi %151, %c2_i32_131 : i32
      %c44_i32_132 = arith.constant 44 : i32
      %153 = arith.muli %152, %c44_i32_132 : i32
      %c3_i32_133 = arith.constant 3 : i32
      %154 = arith.addi %153, %c3_i32_133 : i32
      %155 = arith.index_cast %154 : i32 to index
      %c0_134 = arith.constant 0 : index
      %156 = vector.load %arg14[%155, %c0_134] : memref<1944x32xf32, #tpu.memory_space<vmem>>, vector<88x32xf32>
      %c13 = arith.constant 13 : index
      %c0_135 = arith.constant 0 : index
      %c0_136 = arith.constant 0 : index
      %157 = vector.load %arg6[%c13, %c0_135, %c0_136] : memref<25x32x32xf32, #tpu.memory_space<vmem>>, vector<1x32x32xf32>
      %158 = vector.shape_cast %157 : vector<1x32x32xf32> to vector<32x32xf32>
      %cst_137 = arith.constant dense<0.000000e+00> : vector<88x32xf32>
      %159 = tpu.matmul %156, %158, %cst_137 {dimension_numbers = #tpu.dot_dimension_numbers<[1], [0], [0], [1], [0, 0, 1, 1], [], []>} : vector<88x32xf32>, vector<32x32xf32>, vector<88x32xf32> -> vector<88x32xf32>
      %160 = arith.addf %150, %159 : vector<88x32xf32>
      %c2_i32_138 = arith.constant 2 : i32
      %161 = arith.muli %c2_i32_138, %arg20 : i32
      %c2_i32_139 = arith.constant 2 : i32
      %162 = arith.addi %161, %c2_i32_139 : i32
      %c44_i32_140 = arith.constant 44 : i32
      %163 = arith.muli %162, %c44_i32_140 : i32
      %c4_i32_141 = arith.constant 4 : i32
      %164 = arith.addi %163, %c4_i32_141 : i32
      %165 = arith.index_cast %164 : i32 to index
      %c0_142 = arith.constant 0 : index
      %166 = vector.load %arg14[%165, %c0_142] : memref<1944x32xf32, #tpu.memory_space<vmem>>, vector<88x32xf32>
      %c14 = arith.constant 14 : index
      %c0_143 = arith.constant 0 : index
      %c0_144 = arith.constant 0 : index
      %167 = vector.load %arg6[%c14, %c0_143, %c0_144] : memref<25x32x32xf32, #tpu.memory_space<vmem>>, vector<1x32x32xf32>
      %168 = vector.shape_cast %167 : vector<1x32x32xf32> to vector<32x32xf32>
      %cst_145 = arith.constant dense<0.000000e+00> : vector<88x32xf32>
      %169 = tpu.matmul %166, %168, %cst_145 {dimension_numbers = #tpu.dot_dimension_numbers<[1], [0], [0], [1], [0, 0, 1, 1], [], []>} : vector<88x32xf32>, vector<32x32xf32>, vector<88x32xf32> -> vector<88x32xf32>
      %170 = arith.addf %160, %169 : vector<88x32xf32>
      %c2_i32_146 = arith.constant 2 : i32
      %171 = arith.muli %c2_i32_146, %arg20 : i32
      %c3_i32_147 = arith.constant 3 : i32
      %172 = arith.addi %171, %c3_i32_147 : i32
      %c44_i32_148 = arith.constant 44 : i32
      %173 = arith.muli %172, %c44_i32_148 : i32
      %c0_i32_149 = arith.constant 0 : i32
      %174 = arith.addi %173, %c0_i32_149 : i32
      %175 = arith.index_cast %174 : i32 to index
      %c0_150 = arith.constant 0 : index
      %176 = vector.load %arg14[%175, %c0_150] : memref<1944x32xf32, #tpu.memory_space<vmem>>, vector<88x32xf32>
      %c15 = arith.constant 15 : index
      %c0_151 = arith.constant 0 : index
      %c0_152 = arith.constant 0 : index
      %177 = vector.load %arg6[%c15, %c0_151, %c0_152] : memref<25x32x32xf32, #tpu.memory_space<vmem>>, vector<1x32x32xf32>
      %178 = vector.shape_cast %177 : vector<1x32x32xf32> to vector<32x32xf32>
      %cst_153 = arith.constant dense<0.000000e+00> : vector<88x32xf32>
      %179 = tpu.matmul %176, %178, %cst_153 {dimension_numbers = #tpu.dot_dimension_numbers<[1], [0], [0], [1], [0, 0, 1, 1], [], []>} : vector<88x32xf32>, vector<32x32xf32>, vector<88x32xf32> -> vector<88x32xf32>
      %180 = arith.addf %170, %179 : vector<88x32xf32>
      %c2_i32_154 = arith.constant 2 : i32
      %181 = arith.muli %c2_i32_154, %arg20 : i32
      %c3_i32_155 = arith.constant 3 : i32
      %182 = arith.addi %181, %c3_i32_155 : i32
      %c44_i32_156 = arith.constant 44 : i32
      %183 = arith.muli %182, %c44_i32_156 : i32
      %c1_i32_157 = arith.constant 1 : i32
      %184 = arith.addi %183, %c1_i32_157 : i32
      %185 = arith.index_cast %184 : i32 to index
      %c0_158 = arith.constant 0 : index
      %186 = vector.load %arg14[%185, %c0_158] : memref<1944x32xf32, #tpu.memory_space<vmem>>, vector<88x32xf32>
      %c16 = arith.constant 16 : index
      %c0_159 = arith.constant 0 : index
      %c0_160 = arith.constant 0 : index
      %187 = vector.load %arg6[%c16, %c0_159, %c0_160] : memref<25x32x32xf32, #tpu.memory_space<vmem>>, vector<1x32x32xf32>
      %188 = vector.shape_cast %187 : vector<1x32x32xf32> to vector<32x32xf32>
      %cst_161 = arith.constant dense<0.000000e+00> : vector<88x32xf32>
      %189 = tpu.matmul %186, %188, %cst_161 {dimension_numbers = #tpu.dot_dimension_numbers<[1], [0], [0], [1], [0, 0, 1, 1], [], []>} : vector<88x32xf32>, vector<32x32xf32>, vector<88x32xf32> -> vector<88x32xf32>
      %190 = arith.addf %180, %189 : vector<88x32xf32>
      %c2_i32_162 = arith.constant 2 : i32
      %191 = arith.muli %c2_i32_162, %arg20 : i32
      %c3_i32_163 = arith.constant 3 : i32
      %192 = arith.addi %191, %c3_i32_163 : i32
      %c44_i32_164 = arith.constant 44 : i32
      %193 = arith.muli %192, %c44_i32_164 : i32
      %c2_i32_165 = arith.constant 2 : i32
      %194 = arith.addi %193, %c2_i32_165 : i32
      %195 = arith.index_cast %194 : i32 to index
      %c0_166 = arith.constant 0 : index
      %196 = vector.load %arg14[%195, %c0_166] : memref<1944x32xf32, #tpu.memory_space<vmem>>, vector<88x32xf32>
      %c17 = arith.constant 17 : index
      %c0_167 = arith.constant 0 : index
      %c0_168 = arith.constant 0 : index
      %197 = vector.load %arg6[%c17, %c0_167, %c0_168] : memref<25x32x32xf32, #tpu.memory_space<vmem>>, vector<1x32x32xf32>
      %198 = vector.shape_cast %197 : vector<1x32x32xf32> to vector<32x32xf32>
      %cst_169 = arith.constant dense<0.000000e+00> : vector<88x32xf32>
      %199 = tpu.matmul %196, %198, %cst_169 {dimension_numbers = #tpu.dot_dimension_numbers<[1], [0], [0], [1], [0, 0, 1, 1], [], []>} : vector<88x32xf32>, vector<32x32xf32>, vector<88x32xf32> -> vector<88x32xf32>
      %200 = arith.addf %190, %199 : vector<88x32xf32>
      %c2_i32_170 = arith.constant 2 : i32
      %201 = arith.muli %c2_i32_170, %arg20 : i32
      %c3_i32_171 = arith.constant 3 : i32
      %202 = arith.addi %201, %c3_i32_171 : i32
      %c44_i32_172 = arith.constant 44 : i32
      %203 = arith.muli %202, %c44_i32_172 : i32
      %c3_i32_173 = arith.constant 3 : i32
      %204 = arith.addi %203, %c3_i32_173 : i32
      %205 = arith.index_cast %204 : i32 to index
      %c0_174 = arith.constant 0 : index
      %206 = vector.load %arg14[%205, %c0_174] : memref<1944x32xf32, #tpu.memory_space<vmem>>, vector<88x32xf32>
      %c18 = arith.constant 18 : index
      %c0_175 = arith.constant 0 : index
      %c0_176 = arith.constant 0 : index
      %207 = vector.load %arg6[%c18, %c0_175, %c0_176] : memref<25x32x32xf32, #tpu.memory_space<vmem>>, vector<1x32x32xf32>
      %208 = vector.shape_cast %207 : vector<1x32x32xf32> to vector<32x32xf32>
      %cst_177 = arith.constant dense<0.000000e+00> : vector<88x32xf32>
      %209 = tpu.matmul %206, %208, %cst_177 {dimension_numbers = #tpu.dot_dimension_numbers<[1], [0], [0], [1], [0, 0, 1, 1], [], []>} : vector<88x32xf32>, vector<32x32xf32>, vector<88x32xf32> -> vector<88x32xf32>
      %210 = arith.addf %200, %209 : vector<88x32xf32>
      %c2_i32_178 = arith.constant 2 : i32
      %211 = arith.muli %c2_i32_178, %arg20 : i32
      %c3_i32_179 = arith.constant 3 : i32
      %212 = arith.addi %211, %c3_i32_179 : i32
      %c44_i32_180 = arith.constant 44 : i32
      %213 = arith.muli %212, %c44_i32_180 : i32
      %c4_i32_181 = arith.constant 4 : i32
      %214 = arith.addi %213, %c4_i32_181 : i32
      %215 = arith.index_cast %214 : i32 to index
      %c0_182 = arith.constant 0 : index
      %216 = vector.load %arg14[%215, %c0_182] : memref<1944x32xf32, #tpu.memory_space<vmem>>, vector<88x32xf32>
      %c19 = arith.constant 19 : index
      %c0_183 = arith.constant 0 : index
      %c0_184 = arith.constant 0 : index
      %217 = vector.load %arg6[%c19, %c0_183, %c0_184] : memref<25x32x32xf32, #tpu.memory_space<vmem>>, vector<1x32x32xf32>
      %218 = vector.shape_cast %217 : vector<1x32x32xf32> to vector<32x32xf32>
      %cst_185 = arith.constant dense<0.000000e+00> : vector<88x32xf32>
      %219 = tpu.matmul %216, %218, %cst_185 {dimension_numbers = #tpu.dot_dimension_numbers<[1], [0], [0], [1], [0, 0, 1, 1], [], []>} : vector<88x32xf32>, vector<32x32xf32>, vector<88x32xf32> -> vector<88x32xf32>
      %220 = arith.addf %210, %219 : vector<88x32xf32>
      %c2_i32_186 = arith.constant 2 : i32
      %221 = arith.muli %c2_i32_186, %arg20 : i32
      %c4_i32_187 = arith.constant 4 : i32
      %222 = arith.addi %221, %c4_i32_187 : i32
      %c44_i32_188 = arith.constant 44 : i32
      %223 = arith.muli %222, %c44_i32_188 : i32
      %c0_i32_189 = arith.constant 0 : i32
      %224 = arith.addi %223, %c0_i32_189 : i32
      %225 = arith.index_cast %224 : i32 to index
      %c0_190 = arith.constant 0 : index
      %226 = vector.load %arg14[%225, %c0_190] : memref<1944x32xf32, #tpu.memory_space<vmem>>, vector<88x32xf32>
      %c20 = arith.constant 20 : index
      %c0_191 = arith.constant 0 : index
      %c0_192 = arith.constant 0 : index
      %227 = vector.load %arg6[%c20, %c0_191, %c0_192] : memref<25x32x32xf32, #tpu.memory_space<vmem>>, vector<1x32x32xf32>
      %228 = vector.shape_cast %227 : vector<1x32x32xf32> to vector<32x32xf32>
      %cst_193 = arith.constant dense<0.000000e+00> : vector<88x32xf32>
      %229 = tpu.matmul %226, %228, %cst_193 {dimension_numbers = #tpu.dot_dimension_numbers<[1], [0], [0], [1], [0, 0, 1, 1], [], []>} : vector<88x32xf32>, vector<32x32xf32>, vector<88x32xf32> -> vector<88x32xf32>
      %230 = arith.addf %220, %229 : vector<88x32xf32>
      %c2_i32_194 = arith.constant 2 : i32
      %231 = arith.muli %c2_i32_194, %arg20 : i32
      %c4_i32_195 = arith.constant 4 : i32
      %232 = arith.addi %231, %c4_i32_195 : i32
      %c44_i32_196 = arith.constant 44 : i32
      %233 = arith.muli %232, %c44_i32_196 : i32
      %c1_i32_197 = arith.constant 1 : i32
      %234 = arith.addi %233, %c1_i32_197 : i32
      %235 = arith.index_cast %234 : i32 to index
      %c0_198 = arith.constant 0 : index
      %236 = vector.load %arg14[%235, %c0_198] : memref<1944x32xf32, #tpu.memory_space<vmem>>, vector<88x32xf32>
      %c21 = arith.constant 21 : index
      %c0_199 = arith.constant 0 : index
      %c0_200 = arith.constant 0 : index
      %237 = vector.load %arg6[%c21, %c0_199, %c0_200] : memref<25x32x32xf32, #tpu.memory_space<vmem>>, vector<1x32x32xf32>
      %238 = vector.shape_cast %237 : vector<1x32x32xf32> to vector<32x32xf32>
      %cst_201 = arith.constant dense<0.000000e+00> : vector<88x32xf32>
      %239 = tpu.matmul %236, %238, %cst_201 {dimension_numbers = #tpu.dot_dimension_numbers<[1], [0], [0], [1], [0, 0, 1, 1], [], []>} : vector<88x32xf32>, vector<32x32xf32>, vector<88x32xf32> -> vector<88x32xf32>
      %240 = arith.addf %230, %239 : vector<88x32xf32>
      %c2_i32_202 = arith.constant 2 : i32
      %241 = arith.muli %c2_i32_202, %arg20 : i32
      %c4_i32_203 = arith.constant 4 : i32
      %242 = arith.addi %241, %c4_i32_203 : i32
      %c44_i32_204 = arith.constant 44 : i32
      %243 = arith.muli %242, %c44_i32_204 : i32
      %c2_i32_205 = arith.constant 2 : i32
      %244 = arith.addi %243, %c2_i32_205 : i32
      %245 = arith.index_cast %244 : i32 to index
      %c0_206 = arith.constant 0 : index
      %246 = vector.load %arg14[%245, %c0_206] : memref<1944x32xf32, #tpu.memory_space<vmem>>, vector<88x32xf32>
      %c22 = arith.constant 22 : index
      %c0_207 = arith.constant 0 : index
      %c0_208 = arith.constant 0 : index
      %247 = vector.load %arg6[%c22, %c0_207, %c0_208] : memref<25x32x32xf32, #tpu.memory_space<vmem>>, vector<1x32x32xf32>
      %248 = vector.shape_cast %247 : vector<1x32x32xf32> to vector<32x32xf32>
      %cst_209 = arith.constant dense<0.000000e+00> : vector<88x32xf32>
      %249 = tpu.matmul %246, %248, %cst_209 {dimension_numbers = #tpu.dot_dimension_numbers<[1], [0], [0], [1], [0, 0, 1, 1], [], []>} : vector<88x32xf32>, vector<32x32xf32>, vector<88x32xf32> -> vector<88x32xf32>
      %250 = arith.addf %240, %249 : vector<88x32xf32>
      %c2_i32_210 = arith.constant 2 : i32
      %251 = arith.muli %c2_i32_210, %arg20 : i32
      %c4_i32_211 = arith.constant 4 : i32
      %252 = arith.addi %251, %c4_i32_211 : i32
      %c44_i32_212 = arith.constant 44 : i32
      %253 = arith.muli %252, %c44_i32_212 : i32
      %c3_i32_213 = arith.constant 3 : i32
      %254 = arith.addi %253, %c3_i32_213 : i32
      %255 = arith.index_cast %254 : i32 to index
      %c0_214 = arith.constant 0 : index
      %256 = vector.load %arg14[%255, %c0_214] : memref<1944x32xf32, #tpu.memory_space<vmem>>, vector<88x32xf32>
      %c23 = arith.constant 23 : index
      %c0_215 = arith.constant 0 : index
      %c0_216 = arith.constant 0 : index
      %257 = vector.load %arg6[%c23, %c0_215, %c0_216] : memref<25x32x32xf32, #tpu.memory_space<vmem>>, vector<1x32x32xf32>
      %258 = vector.shape_cast %257 : vector<1x32x32xf32> to vector<32x32xf32>
      %cst_217 = arith.constant dense<0.000000e+00> : vector<88x32xf32>
      %259 = tpu.matmul %256, %258, %cst_217 {dimension_numbers = #tpu.dot_dimension_numbers<[1], [0], [0], [1], [0, 0, 1, 1], [], []>} : vector<88x32xf32>, vector<32x32xf32>, vector<88x32xf32> -> vector<88x32xf32>
      %260 = arith.addf %250, %259 : vector<88x32xf32>
      %c2_i32_218 = arith.constant 2 : i32
      %261 = arith.muli %c2_i32_218, %arg20 : i32
      %c4_i32_219 = arith.constant 4 : i32
      %262 = arith.addi %261, %c4_i32_219 : i32
      %c44_i32_220 = arith.constant 44 : i32
      %263 = arith.muli %262, %c44_i32_220 : i32
      %c4_i32_221 = arith.constant 4 : i32
      %264 = arith.addi %263, %c4_i32_221 : i32
      %265 = arith.index_cast %264 : i32 to index
      %c0_222 = arith.constant 0 : index
      %266 = vector.load %arg14[%265, %c0_222] : memref<1944x32xf32, #tpu.memory_space<vmem>>, vector<88x32xf32>
      %c24 = arith.constant 24 : index
      %c0_223 = arith.constant 0 : index
      %c0_224 = arith.constant 0 : index
      %267 = vector.load %arg6[%c24, %c0_223, %c0_224] : memref<25x32x32xf32, #tpu.memory_space<vmem>>, vector<1x32x32xf32>
      %268 = vector.shape_cast %267 : vector<1x32x32xf32> to vector<32x32xf32>
      %cst_225 = arith.constant dense<0.000000e+00> : vector<88x32xf32>
      %269 = tpu.matmul %266, %268, %cst_225 {dimension_numbers = #tpu.dot_dimension_numbers<[1], [0], [0], [1], [0, 0, 1, 1], [], []>} : vector<88x32xf32>, vector<32x32xf32>, vector<88x32xf32> -> vector<88x32xf32>
      %270 = arith.addf %260, %269 : vector<88x32xf32>
      %c0_226 = arith.constant 0 : index
      %c0_227 = arith.constant 0 : index
      %271 = vector.load %arg7[%c0_226, %c0_227] : memref<1x32xf32, #tpu.memory_space<vmem>>, vector<1x32xf32>
      %272 = vector.broadcast %271 : vector<1x32xf32> to vector<88x32xf32>
      %273 = arith.addf %270, %272 : vector<88x32xf32>
      %cst_228 = arith.constant 0.000000e+00 : f32
      %274 = vector.broadcast %cst_228 : f32 to vector<88x32xf32>
      %275 = arith.maximumf %273, %274 : vector<88x32xf32>
      %276 = vector.extract_strided_slice %275 {offsets = [0, 0], sizes = [44, 32], strides = [1, 1]} : vector<88x32xf32> to vector<44x32xf32>
      %277 = vector.extract_strided_slice %275 {offsets = [44, 0], sizes = [44, 32], strides = [1, 1]} : vector<88x32xf32> to vector<44x32xf32>
      %278 = arith.maximumf %276, %277 : vector<44x32xf32>
      %c0_229 = arith.constant 0 : index
      %c0_230 = arith.constant 0 : index
      %279 = vector.load %arg18[%c0_229, %c0_230] : memref<44x32xf32, #tpu.memory_space<vmem>>, vector<44x32xf32>
      tpu.vector_store %arg18[%c0_229, %c0_230], %278 {strides = array<i32>} : memref<44x32xf32, #tpu.memory_space<vmem>>, vector<44x32xf32>,
      %c0_231 = arith.constant 0 : index
      %c0_232 = arith.constant 0 : index
      %280 = tpu.strided_load %arg18[%c0_231, %c0_232] {strides = array<i32: 2, 1>} : memref<44x32xf32, #tpu.memory_space<vmem>>, vector<20x32xf32>
      %c1_233 = arith.constant 1 : index
      %c0_234 = arith.constant 0 : index
      %281 = tpu.strided_load %arg18[%c1_233, %c0_234] {strides = array<i32: 2, 1>} : memref<44x32xf32, #tpu.memory_space<vmem>>, vector<20x32xf32>
      %282 = arith.maximumf %280, %281 : vector<20x32xf32>
      %c2_i32_235 = arith.constant 2 : i32
      %283 = arith.addi %arg20, %c2_i32_235 : i32
      %c24_i32 = arith.constant 24 : i32
      %284 = arith.muli %283, %c24_i32 : i32
      %c2_i32_236 = arith.constant 2 : i32
      %285 = arith.addi %284, %c2_i32_236 : i32
      %286 = arith.index_cast %285 : i32 to index
      %c0_237 = arith.constant 0 : index
      %287 = vector.load %arg15[%286, %c0_237] : memref<584x32xf32, #tpu.memory_space<vmem>>, vector<20x32xf32>
      tpu.vector_store %arg15[%286, %c0_237], %282 {strides = array<i32>} : memref<584x32xf32, #tpu.memory_space<vmem>>, vector<20x32xf32>,
    }
    %c20_i32_14 = arith.constant 20 : i32
    %c0_i32_15 = arith.constant 0 : i32
    %c10_i32 = arith.constant 10 : i32
    %9 = arith.addi %c0_i32_15, %c10_i32 : i32
    %c1_i32_16 = arith.constant 1 : i32
    scf.for %arg20 = %c0_i32_15 to %9 step %c1_i32_16  : i32 {
      %cst_28 = arith.constant 0.000000e+00 : f32
      %20 = vector.broadcast %cst_28 : f32 to vector<48x1xf32>
      %c2_i32 = arith.constant 2 : i32
      %21 = arith.muli %c2_i32, %arg20 : i32
      %c0_i32_29 = arith.constant 0 : i32
      %22 = arith.addi %21, %c0_i32_29 : i32
      %c24_i32 = arith.constant 24 : i32
      %23 = arith.muli %22, %c24_i32 : i32
      %c0_i32_30 = arith.constant 0 : i32
      %24 = arith.addi %23, %c0_i32_30 : i32
      %25 = arith.index_cast %24 : i32 to index
      %c0_31 = arith.constant 0 : index
      %26 = vector.load %arg15[%25, %c0_31] : memref<584x32xf32, #tpu.memory_space<vmem>>, vector<48x32xf32>
      %c0_32 = arith.constant 0 : index
      %c0_33 = arith.constant 0 : index
      %c0_34 = arith.constant 0 : index
      %27 = vector.load %arg8[%c0_32, %c0_33, %c0_34] : memref<25x32x1xf32, #tpu.memory_space<vmem>>, vector<1x32x1xf32>
      %28 = vector.shape_cast %27 : vector<1x32x1xf32> to vector<32x1xf32>
      %cst_35 = arith.constant dense<0.000000e+00> : vector<48x1xf32>
      %29 = tpu.matmul %26, %28, %cst_35 {dimension_numbers = #tpu.dot_dimension_numbers<[1], [0], [0], [1], [0, 0, 1, 1], [], []>} : vector<48x32xf32>, vector<32x1xf32>, vector<48x1xf32> -> vector<48x1xf32>
      %30 = arith.addf %20, %29 : vector<48x1xf32>
      %c2_i32_36 = arith.constant 2 : i32
      %31 = arith.muli %c2_i32_36, %arg20 : i32
      %c0_i32_37 = arith.constant 0 : i32
      %32 = arith.addi %31, %c0_i32_37 : i32
      %c24_i32_38 = arith.constant 24 : i32
      %33 = arith.muli %32, %c24_i32_38 : i32
      %c1_i32_39 = arith.constant 1 : i32
      %34 = arith.addi %33, %c1_i32_39 : i32
      %35 = arith.index_cast %34 : i32 to index
      %c0_40 = arith.constant 0 : index
      %36 = vector.load %arg15[%35, %c0_40] : memref<584x32xf32, #tpu.memory_space<vmem>>, vector<48x32xf32>
      %c1 = arith.constant 1 : index
      %c0_41 = arith.constant 0 : index
      %c0_42 = arith.constant 0 : index
      %37 = vector.load %arg8[%c1, %c0_41, %c0_42] : memref<25x32x1xf32, #tpu.memory_space<vmem>>, vector<1x32x1xf32>
      %38 = vector.shape_cast %37 : vector<1x32x1xf32> to vector<32x1xf32>
      %cst_43 = arith.constant dense<0.000000e+00> : vector<48x1xf32>
      %39 = tpu.matmul %36, %38, %cst_43 {dimension_numbers = #tpu.dot_dimension_numbers<[1], [0], [0], [1], [0, 0, 1, 1], [], []>} : vector<48x32xf32>, vector<32x1xf32>, vector<48x1xf32> -> vector<48x1xf32>
      %40 = arith.addf %30, %39 : vector<48x1xf32>
      %c2_i32_44 = arith.constant 2 : i32
      %41 = arith.muli %c2_i32_44, %arg20 : i32
      %c0_i32_45 = arith.constant 0 : i32
      %42 = arith.addi %41, %c0_i32_45 : i32
      %c24_i32_46 = arith.constant 24 : i32
      %43 = arith.muli %42, %c24_i32_46 : i32
      %c2_i32_47 = arith.constant 2 : i32
      %44 = arith.addi %43, %c2_i32_47 : i32
      %45 = arith.index_cast %44 : i32 to index
      %c0_48 = arith.constant 0 : index
      %46 = vector.load %arg15[%45, %c0_48] : memref<584x32xf32, #tpu.memory_space<vmem>>, vector<48x32xf32>
      %c2 = arith.constant 2 : index
      %c0_49 = arith.constant 0 : index
      %c0_50 = arith.constant 0 : index
      %47 = vector.load %arg8[%c2, %c0_49, %c0_50] : memref<25x32x1xf32, #tpu.memory_space<vmem>>, vector<1x32x1xf32>
      %48 = vector.shape_cast %47 : vector<1x32x1xf32> to vector<32x1xf32>
      %cst_51 = arith.constant dense<0.000000e+00> : vector<48x1xf32>
      %49 = tpu.matmul %46, %48, %cst_51 {dimension_numbers = #tpu.dot_dimension_numbers<[1], [0], [0], [1], [0, 0, 1, 1], [], []>} : vector<48x32xf32>, vector<32x1xf32>, vector<48x1xf32> -> vector<48x1xf32>
      %50 = arith.addf %40, %49 : vector<48x1xf32>
      %c2_i32_52 = arith.constant 2 : i32
      %51 = arith.muli %c2_i32_52, %arg20 : i32
      %c0_i32_53 = arith.constant 0 : i32
      %52 = arith.addi %51, %c0_i32_53 : i32
      %c24_i32_54 = arith.constant 24 : i32
      %53 = arith.muli %52, %c24_i32_54 : i32
      %c3_i32 = arith.constant 3 : i32
      %54 = arith.addi %53, %c3_i32 : i32
      %55 = arith.index_cast %54 : i32 to index
      %c0_55 = arith.constant 0 : index
      %56 = vector.load %arg15[%55, %c0_55] : memref<584x32xf32, #tpu.memory_space<vmem>>, vector<48x32xf32>
      %c3 = arith.constant 3 : index
      %c0_56 = arith.constant 0 : index
      %c0_57 = arith.constant 0 : index
      %57 = vector.load %arg8[%c3, %c0_56, %c0_57] : memref<25x32x1xf32, #tpu.memory_space<vmem>>, vector<1x32x1xf32>
      %58 = vector.shape_cast %57 : vector<1x32x1xf32> to vector<32x1xf32>
      %cst_58 = arith.constant dense<0.000000e+00> : vector<48x1xf32>
      %59 = tpu.matmul %56, %58, %cst_58 {dimension_numbers = #tpu.dot_dimension_numbers<[1], [0], [0], [1], [0, 0, 1, 1], [], []>} : vector<48x32xf32>, vector<32x1xf32>, vector<48x1xf32> -> vector<48x1xf32>
      %60 = arith.addf %50, %59 : vector<48x1xf32>
      %c2_i32_59 = arith.constant 2 : i32
      %61 = arith.muli %c2_i32_59, %arg20 : i32
      %c0_i32_60 = arith.constant 0 : i32
      %62 = arith.addi %61, %c0_i32_60 : i32
      %c24_i32_61 = arith.constant 24 : i32
      %63 = arith.muli %62, %c24_i32_61 : i32
      %c4_i32 = arith.constant 4 : i32
      %64 = arith.addi %63, %c4_i32 : i32
      %65 = arith.index_cast %64 : i32 to index
      %c0_62 = arith.constant 0 : index
      %66 = vector.load %arg15[%65, %c0_62] : memref<584x32xf32, #tpu.memory_space<vmem>>, vector<48x32xf32>
      %c4 = arith.constant 4 : index
      %c0_63 = arith.constant 0 : index
      %c0_64 = arith.constant 0 : index
      %67 = vector.load %arg8[%c4, %c0_63, %c0_64] : memref<25x32x1xf32, #tpu.memory_space<vmem>>, vector<1x32x1xf32>
      %68 = vector.shape_cast %67 : vector<1x32x1xf32> to vector<32x1xf32>
      %cst_65 = arith.constant dense<0.000000e+00> : vector<48x1xf32>
      %69 = tpu.matmul %66, %68, %cst_65 {dimension_numbers = #tpu.dot_dimension_numbers<[1], [0], [0], [1], [0, 0, 1, 1], [], []>} : vector<48x32xf32>, vector<32x1xf32>, vector<48x1xf32> -> vector<48x1xf32>
      %70 = arith.addf %60, %69 : vector<48x1xf32>
      %c2_i32_66 = arith.constant 2 : i32
      %71 = arith.muli %c2_i32_66, %arg20 : i32
      %c1_i32_67 = arith.constant 1 : i32
      %72 = arith.addi %71, %c1_i32_67 : i32
      %c24_i32_68 = arith.constant 24 : i32
      %73 = arith.muli %72, %c24_i32_68 : i32
      %c0_i32_69 = arith.constant 0 : i32
      %74 = arith.addi %73, %c0_i32_69 : i32
      %75 = arith.index_cast %74 : i32 to index
      %c0_70 = arith.constant 0 : index
      %76 = vector.load %arg15[%75, %c0_70] : memref<584x32xf32, #tpu.memory_space<vmem>>, vector<48x32xf32>
      %c5 = arith.constant 5 : index
      %c0_71 = arith.constant 0 : index
      %c0_72 = arith.constant 0 : index
      %77 = vector.load %arg8[%c5, %c0_71, %c0_72] : memref<25x32x1xf32, #tpu.memory_space<vmem>>, vector<1x32x1xf32>
      %78 = vector.shape_cast %77 : vector<1x32x1xf32> to vector<32x1xf32>
      %cst_73 = arith.constant dense<0.000000e+00> : vector<48x1xf32>
      %79 = tpu.matmul %76, %78, %cst_73 {dimension_numbers = #tpu.dot_dimension_numbers<[1], [0], [0], [1], [0, 0, 1, 1], [], []>} : vector<48x32xf32>, vector<32x1xf32>, vector<48x1xf32> -> vector<48x1xf32>
      %80 = arith.addf %70, %79 : vector<48x1xf32>
      %c2_i32_74 = arith.constant 2 : i32
      %81 = arith.muli %c2_i32_74, %arg20 : i32
      %c1_i32_75 = arith.constant 1 : i32
      %82 = arith.addi %81, %c1_i32_75 : i32
      %c24_i32_76 = arith.constant 24 : i32
      %83 = arith.muli %82, %c24_i32_76 : i32
      %c1_i32_77 = arith.constant 1 : i32
      %84 = arith.addi %83, %c1_i32_77 : i32
      %85 = arith.index_cast %84 : i32 to index
      %c0_78 = arith.constant 0 : index
      %86 = vector.load %arg15[%85, %c0_78] : memref<584x32xf32, #tpu.memory_space<vmem>>, vector<48x32xf32>
      %c6 = arith.constant 6 : index
      %c0_79 = arith.constant 0 : index
      %c0_80 = arith.constant 0 : index
      %87 = vector.load %arg8[%c6, %c0_79, %c0_80] : memref<25x32x1xf32, #tpu.memory_space<vmem>>, vector<1x32x1xf32>
      %88 = vector.shape_cast %87 : vector<1x32x1xf32> to vector<32x1xf32>
      %cst_81 = arith.constant dense<0.000000e+00> : vector<48x1xf32>
      %89 = tpu.matmul %86, %88, %cst_81 {dimension_numbers = #tpu.dot_dimension_numbers<[1], [0], [0], [1], [0, 0, 1, 1], [], []>} : vector<48x32xf32>, vector<32x1xf32>, vector<48x1xf32> -> vector<48x1xf32>
      %90 = arith.addf %80, %89 : vector<48x1xf32>
      %c2_i32_82 = arith.constant 2 : i32
      %91 = arith.muli %c2_i32_82, %arg20 : i32
      %c1_i32_83 = arith.constant 1 : i32
      %92 = arith.addi %91, %c1_i32_83 : i32
      %c24_i32_84 = arith.constant 24 : i32
      %93 = arith.muli %92, %c24_i32_84 : i32
      %c2_i32_85 = arith.constant 2 : i32
      %94 = arith.addi %93, %c2_i32_85 : i32
      %95 = arith.index_cast %94 : i32 to index
      %c0_86 = arith.constant 0 : index
      %96 = vector.load %arg15[%95, %c0_86] : memref<584x32xf32, #tpu.memory_space<vmem>>, vector<48x32xf32>
      %c7 = arith.constant 7 : index
      %c0_87 = arith.constant 0 : index
      %c0_88 = arith.constant 0 : index
      %97 = vector.load %arg8[%c7, %c0_87, %c0_88] : memref<25x32x1xf32, #tpu.memory_space<vmem>>, vector<1x32x1xf32>
      %98 = vector.shape_cast %97 : vector<1x32x1xf32> to vector<32x1xf32>
      %cst_89 = arith.constant dense<0.000000e+00> : vector<48x1xf32>
      %99 = tpu.matmul %96, %98, %cst_89 {dimension_numbers = #tpu.dot_dimension_numbers<[1], [0], [0], [1], [0, 0, 1, 1], [], []>} : vector<48x32xf32>, vector<32x1xf32>, vector<48x1xf32> -> vector<48x1xf32>
      %100 = arith.addf %90, %99 : vector<48x1xf32>
      %c2_i32_90 = arith.constant 2 : i32
      %101 = arith.muli %c2_i32_90, %arg20 : i32
      %c1_i32_91 = arith.constant 1 : i32
      %102 = arith.addi %101, %c1_i32_91 : i32
      %c24_i32_92 = arith.constant 24 : i32
      %103 = arith.muli %102, %c24_i32_92 : i32
      %c3_i32_93 = arith.constant 3 : i32
      %104 = arith.addi %103, %c3_i32_93 : i32
      %105 = arith.index_cast %104 : i32 to index
      %c0_94 = arith.constant 0 : index
      %106 = vector.load %arg15[%105, %c0_94] : memref<584x32xf32, #tpu.memory_space<vmem>>, vector<48x32xf32>
      %c8 = arith.constant 8 : index
      %c0_95 = arith.constant 0 : index
      %c0_96 = arith.constant 0 : index
      %107 = vector.load %arg8[%c8, %c0_95, %c0_96] : memref<25x32x1xf32, #tpu.memory_space<vmem>>, vector<1x32x1xf32>
      %108 = vector.shape_cast %107 : vector<1x32x1xf32> to vector<32x1xf32>
      %cst_97 = arith.constant dense<0.000000e+00> : vector<48x1xf32>
      %109 = tpu.matmul %106, %108, %cst_97 {dimension_numbers = #tpu.dot_dimension_numbers<[1], [0], [0], [1], [0, 0, 1, 1], [], []>} : vector<48x32xf32>, vector<32x1xf32>, vector<48x1xf32> -> vector<48x1xf32>
      %110 = arith.addf %100, %109 : vector<48x1xf32>
      %c2_i32_98 = arith.constant 2 : i32
      %111 = arith.muli %c2_i32_98, %arg20 : i32
      %c1_i32_99 = arith.constant 1 : i32
      %112 = arith.addi %111, %c1_i32_99 : i32
      %c24_i32_100 = arith.constant 24 : i32
      %113 = arith.muli %112, %c24_i32_100 : i32
      %c4_i32_101 = arith.constant 4 : i32
      %114 = arith.addi %113, %c4_i32_101 : i32
      %115 = arith.index_cast %114 : i32 to index
      %c0_102 = arith.constant 0 : index
      %116 = vector.load %arg15[%115, %c0_102] : memref<584x32xf32, #tpu.memory_space<vmem>>, vector<48x32xf32>
      %c9 = arith.constant 9 : index
      %c0_103 = arith.constant 0 : index
      %c0_104 = arith.constant 0 : index
      %117 = vector.load %arg8[%c9, %c0_103, %c0_104] : memref<25x32x1xf32, #tpu.memory_space<vmem>>, vector<1x32x1xf32>
      %118 = vector.shape_cast %117 : vector<1x32x1xf32> to vector<32x1xf32>
      %cst_105 = arith.constant dense<0.000000e+00> : vector<48x1xf32>
      %119 = tpu.matmul %116, %118, %cst_105 {dimension_numbers = #tpu.dot_dimension_numbers<[1], [0], [0], [1], [0, 0, 1, 1], [], []>} : vector<48x32xf32>, vector<32x1xf32>, vector<48x1xf32> -> vector<48x1xf32>
      %120 = arith.addf %110, %119 : vector<48x1xf32>
      %c2_i32_106 = arith.constant 2 : i32
      %121 = arith.muli %c2_i32_106, %arg20 : i32
      %c2_i32_107 = arith.constant 2 : i32
      %122 = arith.addi %121, %c2_i32_107 : i32
      %c24_i32_108 = arith.constant 24 : i32
      %123 = arith.muli %122, %c24_i32_108 : i32
      %c0_i32_109 = arith.constant 0 : i32
      %124 = arith.addi %123, %c0_i32_109 : i32
      %125 = arith.index_cast %124 : i32 to index
      %c0_110 = arith.constant 0 : index
      %126 = vector.load %arg15[%125, %c0_110] : memref<584x32xf32, #tpu.memory_space<vmem>>, vector<48x32xf32>
      %c10 = arith.constant 10 : index
      %c0_111 = arith.constant 0 : index
      %c0_112 = arith.constant 0 : index
      %127 = vector.load %arg8[%c10, %c0_111, %c0_112] : memref<25x32x1xf32, #tpu.memory_space<vmem>>, vector<1x32x1xf32>
      %128 = vector.shape_cast %127 : vector<1x32x1xf32> to vector<32x1xf32>
      %cst_113 = arith.constant dense<0.000000e+00> : vector<48x1xf32>
      %129 = tpu.matmul %126, %128, %cst_113 {dimension_numbers = #tpu.dot_dimension_numbers<[1], [0], [0], [1], [0, 0, 1, 1], [], []>} : vector<48x32xf32>, vector<32x1xf32>, vector<48x1xf32> -> vector<48x1xf32>
      %130 = arith.addf %120, %129 : vector<48x1xf32>
      %c2_i32_114 = arith.constant 2 : i32
      %131 = arith.muli %c2_i32_114, %arg20 : i32
      %c2_i32_115 = arith.constant 2 : i32
      %132 = arith.addi %131, %c2_i32_115 : i32
      %c24_i32_116 = arith.constant 24 : i32
      %133 = arith.muli %132, %c24_i32_116 : i32
      %c1_i32_117 = arith.constant 1 : i32
      %134 = arith.addi %133, %c1_i32_117 : i32
      %135 = arith.index_cast %134 : i32 to index
      %c0_118 = arith.constant 0 : index
      %136 = vector.load %arg15[%135, %c0_118] : memref<584x32xf32, #tpu.memory_space<vmem>>, vector<48x32xf32>
      %c11 = arith.constant 11 : index
      %c0_119 = arith.constant 0 : index
      %c0_120 = arith.constant 0 : index
      %137 = vector.load %arg8[%c11, %c0_119, %c0_120] : memref<25x32x1xf32, #tpu.memory_space<vmem>>, vector<1x32x1xf32>
      %138 = vector.shape_cast %137 : vector<1x32x1xf32> to vector<32x1xf32>
      %cst_121 = arith.constant dense<0.000000e+00> : vector<48x1xf32>
      %139 = tpu.matmul %136, %138, %cst_121 {dimension_numbers = #tpu.dot_dimension_numbers<[1], [0], [0], [1], [0, 0, 1, 1], [], []>} : vector<48x32xf32>, vector<32x1xf32>, vector<48x1xf32> -> vector<48x1xf32>
      %140 = arith.addf %130, %139 : vector<48x1xf32>
      %c2_i32_122 = arith.constant 2 : i32
      %141 = arith.muli %c2_i32_122, %arg20 : i32
      %c2_i32_123 = arith.constant 2 : i32
      %142 = arith.addi %141, %c2_i32_123 : i32
      %c24_i32_124 = arith.constant 24 : i32
      %143 = arith.muli %142, %c24_i32_124 : i32
      %c2_i32_125 = arith.constant 2 : i32
      %144 = arith.addi %143, %c2_i32_125 : i32
      %145 = arith.index_cast %144 : i32 to index
      %c0_126 = arith.constant 0 : index
      %146 = vector.load %arg15[%145, %c0_126] : memref<584x32xf32, #tpu.memory_space<vmem>>, vector<48x32xf32>
      %c12 = arith.constant 12 : index
      %c0_127 = arith.constant 0 : index
      %c0_128 = arith.constant 0 : index
      %147 = vector.load %arg8[%c12, %c0_127, %c0_128] : memref<25x32x1xf32, #tpu.memory_space<vmem>>, vector<1x32x1xf32>
      %148 = vector.shape_cast %147 : vector<1x32x1xf32> to vector<32x1xf32>
      %cst_129 = arith.constant dense<0.000000e+00> : vector<48x1xf32>
      %149 = tpu.matmul %146, %148, %cst_129 {dimension_numbers = #tpu.dot_dimension_numbers<[1], [0], [0], [1], [0, 0, 1, 1], [], []>} : vector<48x32xf32>, vector<32x1xf32>, vector<48x1xf32> -> vector<48x1xf32>
      %150 = arith.addf %140, %149 : vector<48x1xf32>
      %c2_i32_130 = arith.constant 2 : i32
      %151 = arith.muli %c2_i32_130, %arg20 : i32
      %c2_i32_131 = arith.constant 2 : i32
      %152 = arith.addi %151, %c2_i32_131 : i32
      %c24_i32_132 = arith.constant 24 : i32
      %153 = arith.muli %152, %c24_i32_132 : i32
      %c3_i32_133 = arith.constant 3 : i32
      %154 = arith.addi %153, %c3_i32_133 : i32
      %155 = arith.index_cast %154 : i32 to index
      %c0_134 = arith.constant 0 : index
      %156 = vector.load %arg15[%155, %c0_134] : memref<584x32xf32, #tpu.memory_space<vmem>>, vector<48x32xf32>
      %c13 = arith.constant 13 : index
      %c0_135 = arith.constant 0 : index
      %c0_136 = arith.constant 0 : index
      %157 = vector.load %arg8[%c13, %c0_135, %c0_136] : memref<25x32x1xf32, #tpu.memory_space<vmem>>, vector<1x32x1xf32>
      %158 = vector.shape_cast %157 : vector<1x32x1xf32> to vector<32x1xf32>
      %cst_137 = arith.constant dense<0.000000e+00> : vector<48x1xf32>
      %159 = tpu.matmul %156, %158, %cst_137 {dimension_numbers = #tpu.dot_dimension_numbers<[1], [0], [0], [1], [0, 0, 1, 1], [], []>} : vector<48x32xf32>, vector<32x1xf32>, vector<48x1xf32> -> vector<48x1xf32>
      %160 = arith.addf %150, %159 : vector<48x1xf32>
      %c2_i32_138 = arith.constant 2 : i32
      %161 = arith.muli %c2_i32_138, %arg20 : i32
      %c2_i32_139 = arith.constant 2 : i32
      %162 = arith.addi %161, %c2_i32_139 : i32
      %c24_i32_140 = arith.constant 24 : i32
      %163 = arith.muli %162, %c24_i32_140 : i32
      %c4_i32_141 = arith.constant 4 : i32
      %164 = arith.addi %163, %c4_i32_141 : i32
      %165 = arith.index_cast %164 : i32 to index
      %c0_142 = arith.constant 0 : index
      %166 = vector.load %arg15[%165, %c0_142] : memref<584x32xf32, #tpu.memory_space<vmem>>, vector<48x32xf32>
      %c14 = arith.constant 14 : index
      %c0_143 = arith.constant 0 : index
      %c0_144 = arith.constant 0 : index
      %167 = vector.load %arg8[%c14, %c0_143, %c0_144] : memref<25x32x1xf32, #tpu.memory_space<vmem>>, vector<1x32x1xf32>
      %168 = vector.shape_cast %167 : vector<1x32x1xf32> to vector<32x1xf32>
      %cst_145 = arith.constant dense<0.000000e+00> : vector<48x1xf32>
      %169 = tpu.matmul %166, %168, %cst_145 {dimension_numbers = #tpu.dot_dimension_numbers<[1], [0], [0], [1], [0, 0, 1, 1], [], []>} : vector<48x32xf32>, vector<32x1xf32>, vector<48x1xf32> -> vector<48x1xf32>
      %170 = arith.addf %160, %169 : vector<48x1xf32>
      %c2_i32_146 = arith.constant 2 : i32
      %171 = arith.muli %c2_i32_146, %arg20 : i32
      %c3_i32_147 = arith.constant 3 : i32
      %172 = arith.addi %171, %c3_i32_147 : i32
      %c24_i32_148 = arith.constant 24 : i32
      %173 = arith.muli %172, %c24_i32_148 : i32
      %c0_i32_149 = arith.constant 0 : i32
      %174 = arith.addi %173, %c0_i32_149 : i32
      %175 = arith.index_cast %174 : i32 to index
      %c0_150 = arith.constant 0 : index
      %176 = vector.load %arg15[%175, %c0_150] : memref<584x32xf32, #tpu.memory_space<vmem>>, vector<48x32xf32>
      %c15 = arith.constant 15 : index
      %c0_151 = arith.constant 0 : index
      %c0_152 = arith.constant 0 : index
      %177 = vector.load %arg8[%c15, %c0_151, %c0_152] : memref<25x32x1xf32, #tpu.memory_space<vmem>>, vector<1x32x1xf32>
      %178 = vector.shape_cast %177 : vector<1x32x1xf32> to vector<32x1xf32>
      %cst_153 = arith.constant dense<0.000000e+00> : vector<48x1xf32>
      %179 = tpu.matmul %176, %178, %cst_153 {dimension_numbers = #tpu.dot_dimension_numbers<[1], [0], [0], [1], [0, 0, 1, 1], [], []>} : vector<48x32xf32>, vector<32x1xf32>, vector<48x1xf32> -> vector<48x1xf32>
      %180 = arith.addf %170, %179 : vector<48x1xf32>
      %c2_i32_154 = arith.constant 2 : i32
      %181 = arith.muli %c2_i32_154, %arg20 : i32
      %c3_i32_155 = arith.constant 3 : i32
      %182 = arith.addi %181, %c3_i32_155 : i32
      %c24_i32_156 = arith.constant 24 : i32
      %183 = arith.muli %182, %c24_i32_156 : i32
      %c1_i32_157 = arith.constant 1 : i32
      %184 = arith.addi %183, %c1_i32_157 : i32
      %185 = arith.index_cast %184 : i32 to index
      %c0_158 = arith.constant 0 : index
      %186 = vector.load %arg15[%185, %c0_158] : memref<584x32xf32, #tpu.memory_space<vmem>>, vector<48x32xf32>
      %c16 = arith.constant 16 : index
      %c0_159 = arith.constant 0 : index
      %c0_160 = arith.constant 0 : index
      %187 = vector.load %arg8[%c16, %c0_159, %c0_160] : memref<25x32x1xf32, #tpu.memory_space<vmem>>, vector<1x32x1xf32>
      %188 = vector.shape_cast %187 : vector<1x32x1xf32> to vector<32x1xf32>
      %cst_161 = arith.constant dense<0.000000e+00> : vector<48x1xf32>
      %189 = tpu.matmul %186, %188, %cst_161 {dimension_numbers = #tpu.dot_dimension_numbers<[1], [0], [0], [1], [0, 0, 1, 1], [], []>} : vector<48x32xf32>, vector<32x1xf32>, vector<48x1xf32> -> vector<48x1xf32>
      %190 = arith.addf %180, %189 : vector<48x1xf32>
      %c2_i32_162 = arith.constant 2 : i32
      %191 = arith.muli %c2_i32_162, %arg20 : i32
      %c3_i32_163 = arith.constant 3 : i32
      %192 = arith.addi %191, %c3_i32_163 : i32
      %c24_i32_164 = arith.constant 24 : i32
      %193 = arith.muli %192, %c24_i32_164 : i32
      %c2_i32_165 = arith.constant 2 : i32
      %194 = arith.addi %193, %c2_i32_165 : i32
      %195 = arith.index_cast %194 : i32 to index
      %c0_166 = arith.constant 0 : index
      %196 = vector.load %arg15[%195, %c0_166] : memref<584x32xf32, #tpu.memory_space<vmem>>, vector<48x32xf32>
      %c17 = arith.constant 17 : index
      %c0_167 = arith.constant 0 : index
      %c0_168 = arith.constant 0 : index
      %197 = vector.load %arg8[%c17, %c0_167, %c0_168] : memref<25x32x1xf32, #tpu.memory_space<vmem>>, vector<1x32x1xf32>
      %198 = vector.shape_cast %197 : vector<1x32x1xf32> to vector<32x1xf32>
      %cst_169 = arith.constant dense<0.000000e+00> : vector<48x1xf32>
      %199 = tpu.matmul %196, %198, %cst_169 {dimension_numbers = #tpu.dot_dimension_numbers<[1], [0], [0], [1], [0, 0, 1, 1], [], []>} : vector<48x32xf32>, vector<32x1xf32>, vector<48x1xf32> -> vector<48x1xf32>
      %200 = arith.addf %190, %199 : vector<48x1xf32>
      %c2_i32_170 = arith.constant 2 : i32
      %201 = arith.muli %c2_i32_170, %arg20 : i32
      %c3_i32_171 = arith.constant 3 : i32
      %202 = arith.addi %201, %c3_i32_171 : i32
      %c24_i32_172 = arith.constant 24 : i32
      %203 = arith.muli %202, %c24_i32_172 : i32
      %c3_i32_173 = arith.constant 3 : i32
      %204 = arith.addi %203, %c3_i32_173 : i32
      %205 = arith.index_cast %204 : i32 to index
      %c0_174 = arith.constant 0 : index
      %206 = vector.load %arg15[%205, %c0_174] : memref<584x32xf32, #tpu.memory_space<vmem>>, vector<48x32xf32>
      %c18 = arith.constant 18 : index
      %c0_175 = arith.constant 0 : index
      %c0_176 = arith.constant 0 : index
      %207 = vector.load %arg8[%c18, %c0_175, %c0_176] : memref<25x32x1xf32, #tpu.memory_space<vmem>>, vector<1x32x1xf32>
      %208 = vector.shape_cast %207 : vector<1x32x1xf32> to vector<32x1xf32>
      %cst_177 = arith.constant dense<0.000000e+00> : vector<48x1xf32>
      %209 = tpu.matmul %206, %208, %cst_177 {dimension_numbers = #tpu.dot_dimension_numbers<[1], [0], [0], [1], [0, 0, 1, 1], [], []>} : vector<48x32xf32>, vector<32x1xf32>, vector<48x1xf32> -> vector<48x1xf32>
      %210 = arith.addf %200, %209 : vector<48x1xf32>
      %c2_i32_178 = arith.constant 2 : i32
      %211 = arith.muli %c2_i32_178, %arg20 : i32
      %c3_i32_179 = arith.constant 3 : i32
      %212 = arith.addi %211, %c3_i32_179 : i32
      %c24_i32_180 = arith.constant 24 : i32
      %213 = arith.muli %212, %c24_i32_180 : i32
      %c4_i32_181 = arith.constant 4 : i32
      %214 = arith.addi %213, %c4_i32_181 : i32
      %215 = arith.index_cast %214 : i32 to index
      %c0_182 = arith.constant 0 : index
      %216 = vector.load %arg15[%215, %c0_182] : memref<584x32xf32, #tpu.memory_space<vmem>>, vector<48x32xf32>
      %c19 = arith.constant 19 : index
      %c0_183 = arith.constant 0 : index
      %c0_184 = arith.constant 0 : index
      %217 = vector.load %arg8[%c19, %c0_183, %c0_184] : memref<25x32x1xf32, #tpu.memory_space<vmem>>, vector<1x32x1xf32>
      %218 = vector.shape_cast %217 : vector<1x32x1xf32> to vector<32x1xf32>
      %cst_185 = arith.constant dense<0.000000e+00> : vector<48x1xf32>
      %219 = tpu.matmul %216, %218, %cst_185 {dimension_numbers = #tpu.dot_dimension_numbers<[1], [0], [0], [1], [0, 0, 1, 1], [], []>} : vector<48x32xf32>, vector<32x1xf32>, vector<48x1xf32> -> vector<48x1xf32>
      %220 = arith.addf %210, %219 : vector<48x1xf32>
      %c2_i32_186 = arith.constant 2 : i32
      %221 = arith.muli %c2_i32_186, %arg20 : i32
      %c4_i32_187 = arith.constant 4 : i32
      %222 = arith.addi %221, %c4_i32_187 : i32
      %c24_i32_188 = arith.constant 24 : i32
      %223 = arith.muli %222, %c24_i32_188 : i32
      %c0_i32_189 = arith.constant 0 : i32
      %224 = arith.addi %223, %c0_i32_189 : i32
      %225 = arith.index_cast %224 : i32 to index
      %c0_190 = arith.constant 0 : index
      %226 = vector.load %arg15[%225, %c0_190] : memref<584x32xf32, #tpu.memory_space<vmem>>, vector<48x32xf32>
      %c20 = arith.constant 20 : index
      %c0_191 = arith.constant 0 : index
      %c0_192 = arith.constant 0 : index
      %227 = vector.load %arg8[%c20, %c0_191, %c0_192] : memref<25x32x1xf32, #tpu.memory_space<vmem>>, vector<1x32x1xf32>
      %228 = vector.shape_cast %227 : vector<1x32x1xf32> to vector<32x1xf32>
      %cst_193 = arith.constant dense<0.000000e+00> : vector<48x1xf32>
      %229 = tpu.matmul %226, %228, %cst_193 {dimension_numbers = #tpu.dot_dimension_numbers<[1], [0], [0], [1], [0, 0, 1, 1], [], []>} : vector<48x32xf32>, vector<32x1xf32>, vector<48x1xf32> -> vector<48x1xf32>
      %230 = arith.addf %220, %229 : vector<48x1xf32>
      %c2_i32_194 = arith.constant 2 : i32
      %231 = arith.muli %c2_i32_194, %arg20 : i32
      %c4_i32_195 = arith.constant 4 : i32
      %232 = arith.addi %231, %c4_i32_195 : i32
      %c24_i32_196 = arith.constant 24 : i32
      %233 = arith.muli %232, %c24_i32_196 : i32
      %c1_i32_197 = arith.constant 1 : i32
      %234 = arith.addi %233, %c1_i32_197 : i32
      %235 = arith.index_cast %234 : i32 to index
      %c0_198 = arith.constant 0 : index
      %236 = vector.load %arg15[%235, %c0_198] : memref<584x32xf32, #tpu.memory_space<vmem>>, vector<48x32xf32>
      %c21 = arith.constant 21 : index
      %c0_199 = arith.constant 0 : index
      %c0_200 = arith.constant 0 : index
      %237 = vector.load %arg8[%c21, %c0_199, %c0_200] : memref<25x32x1xf32, #tpu.memory_space<vmem>>, vector<1x32x1xf32>
      %238 = vector.shape_cast %237 : vector<1x32x1xf32> to vector<32x1xf32>
      %cst_201 = arith.constant dense<0.000000e+00> : vector<48x1xf32>
      %239 = tpu.matmul %236, %238, %cst_201 {dimension_numbers = #tpu.dot_dimension_numbers<[1], [0], [0], [1], [0, 0, 1, 1], [], []>} : vector<48x32xf32>, vector<32x1xf32>, vector<48x1xf32> -> vector<48x1xf32>
      %240 = arith.addf %230, %239 : vector<48x1xf32>
      %c2_i32_202 = arith.constant 2 : i32
      %241 = arith.muli %c2_i32_202, %arg20 : i32
      %c4_i32_203 = arith.constant 4 : i32
      %242 = arith.addi %241, %c4_i32_203 : i32
      %c24_i32_204 = arith.constant 24 : i32
      %243 = arith.muli %242, %c24_i32_204 : i32
      %c2_i32_205 = arith.constant 2 : i32
      %244 = arith.addi %243, %c2_i32_205 : i32
      %245 = arith.index_cast %244 : i32 to index
      %c0_206 = arith.constant 0 : index
      %246 = vector.load %arg15[%245, %c0_206] : memref<584x32xf32, #tpu.memory_space<vmem>>, vector<48x32xf32>
      %c22 = arith.constant 22 : index
      %c0_207 = arith.constant 0 : index
      %c0_208 = arith.constant 0 : index
      %247 = vector.load %arg8[%c22, %c0_207, %c0_208] : memref<25x32x1xf32, #tpu.memory_space<vmem>>, vector<1x32x1xf32>
      %248 = vector.shape_cast %247 : vector<1x32x1xf32> to vector<32x1xf32>
      %cst_209 = arith.constant dense<0.000000e+00> : vector<48x1xf32>
      %249 = tpu.matmul %246, %248, %cst_209 {dimension_numbers = #tpu.dot_dimension_numbers<[1], [0], [0], [1], [0, 0, 1, 1], [], []>} : vector<48x32xf32>, vector<32x1xf32>, vector<48x1xf32> -> vector<48x1xf32>
      %250 = arith.addf %240, %249 : vector<48x1xf32>
      %c2_i32_210 = arith.constant 2 : i32
      %251 = arith.muli %c2_i32_210, %arg20 : i32
      %c4_i32_211 = arith.constant 4 : i32
      %252 = arith.addi %251, %c4_i32_211 : i32
      %c24_i32_212 = arith.constant 24 : i32
      %253 = arith.muli %252, %c24_i32_212 : i32
      %c3_i32_213 = arith.constant 3 : i32
      %254 = arith.addi %253, %c3_i32_213 : i32
      %255 = arith.index_cast %254 : i32 to index
      %c0_214 = arith.constant 0 : index
      %256 = vector.load %arg15[%255, %c0_214] : memref<584x32xf32, #tpu.memory_space<vmem>>, vector<48x32xf32>
      %c23 = arith.constant 23 : index
      %c0_215 = arith.constant 0 : index
      %c0_216 = arith.constant 0 : index
      %257 = vector.load %arg8[%c23, %c0_215, %c0_216] : memref<25x32x1xf32, #tpu.memory_space<vmem>>, vector<1x32x1xf32>
      %258 = vector.shape_cast %257 : vector<1x32x1xf32> to vector<32x1xf32>
      %cst_217 = arith.constant dense<0.000000e+00> : vector<48x1xf32>
      %259 = tpu.matmul %256, %258, %cst_217 {dimension_numbers = #tpu.dot_dimension_numbers<[1], [0], [0], [1], [0, 0, 1, 1], [], []>} : vector<48x32xf32>, vector<32x1xf32>, vector<48x1xf32> -> vector<48x1xf32>
      %260 = arith.addf %250, %259 : vector<48x1xf32>
      %c2_i32_218 = arith.constant 2 : i32
      %261 = arith.muli %c2_i32_218, %arg20 : i32
      %c4_i32_219 = arith.constant 4 : i32
      %262 = arith.addi %261, %c4_i32_219 : i32
      %c24_i32_220 = arith.constant 24 : i32
      %263 = arith.muli %262, %c24_i32_220 : i32
      %c4_i32_221 = arith.constant 4 : i32
      %264 = arith.addi %263, %c4_i32_221 : i32
      %265 = arith.index_cast %264 : i32 to index
      %c0_222 = arith.constant 0 : index
      %266 = vector.load %arg15[%265, %c0_222] : memref<584x32xf32, #tpu.memory_space<vmem>>, vector<48x32xf32>
      %c24 = arith.constant 24 : index
      %c0_223 = arith.constant 0 : index
      %c0_224 = arith.constant 0 : index
      %267 = vector.load %arg8[%c24, %c0_223, %c0_224] : memref<25x32x1xf32, #tpu.memory_space<vmem>>, vector<1x32x1xf32>
      %268 = vector.shape_cast %267 : vector<1x32x1xf32> to vector<32x1xf32>
      %cst_225 = arith.constant dense<0.000000e+00> : vector<48x1xf32>
      %269 = tpu.matmul %266, %268, %cst_225 {dimension_numbers = #tpu.dot_dimension_numbers<[1], [0], [0], [1], [0, 0, 1, 1], [], []>} : vector<48x32xf32>, vector<32x1xf32>, vector<48x1xf32> -> vector<48x1xf32>
      %270 = arith.addf %260, %269 : vector<48x1xf32>
      %c0_226 = arith.constant 0 : index
      %c0_227 = arith.constant 0 : index
      %271 = vector.load %arg9[%c0_226, %c0_227] : memref<1x1xf32, #tpu.memory_space<vmem>>, vector<1x1xf32>
      %272 = vector.broadcast %271 : vector<1x1xf32> to vector<48x1xf32>
      %273 = arith.addf %270, %272 : vector<48x1xf32>
      %cst_228 = arith.constant 0.000000e+00 : f32
      %274 = vector.broadcast %cst_228 : f32 to vector<48x1xf32>
      %275 = arith.maximumf %273, %274 : vector<48x1xf32>
      %276 = vector.extract_strided_slice %275 {offsets = [0, 0], sizes = [24, 1], strides = [1, 1]} : vector<48x1xf32> to vector<24x1xf32>
      %277 = vector.extract_strided_slice %275 {offsets = [24, 0], sizes = [24, 1], strides = [1, 1]} : vector<48x1xf32> to vector<24x1xf32>
      %278 = arith.maximumf %276, %277 : vector<24x1xf32>
      %c0_229 = arith.constant 0 : index
      %c0_230 = arith.constant 0 : index
      %279 = vector.load %arg19[%c0_229, %c0_230] : memref<24x1xf32, #tpu.memory_space<vmem>>, vector<24x1xf32>
      tpu.vector_store %arg19[%c0_229, %c0_230], %278 {strides = array<i32>} : memref<24x1xf32, #tpu.memory_space<vmem>>, vector<24x1xf32>,
      %c0_231 = arith.constant 0 : index
      %c0_232 = arith.constant 0 : index
      %280 = tpu.strided_load %arg19[%c0_231, %c0_232] {strides = array<i32: 2, 1>} : memref<24x1xf32, #tpu.memory_space<vmem>>, vector<10x1xf32>
      %c1_233 = arith.constant 1 : index
      %c0_234 = arith.constant 0 : index
      %281 = tpu.strided_load %arg19[%c1_233, %c0_234] {strides = array<i32: 2, 1>} : memref<24x1xf32, #tpu.memory_space<vmem>>, vector<10x1xf32>
      %282 = arith.maximumf %280, %281 : vector<10x1xf32>
      %c10_i32_235 = arith.constant 10 : i32
      %283 = arith.muli %arg20, %c10_i32_235 : i32
      %284 = arith.index_cast %283 : i32 to index
      %c0_236 = arith.constant 0 : index
      %285 = vector.load %arg16[%284, %c0_236] : memref<100x1xf32, #tpu.memory_space<vmem>>, vector<10x1xf32>
      tpu.vector_store %arg16[%284, %c0_236], %282 {strides = array<i32>} : memref<100x1xf32, #tpu.memory_space<vmem>>, vector<10x1xf32>,
    }
    %c10_i32_17 = arith.constant 10 : i32
    %c0_18 = arith.constant 0 : index
    %c0_19 = arith.constant 0 : index
    %10 = vector.load %arg16[%c0_18, %c0_19] : memref<100x1xf32, #tpu.memory_space<vmem>>, vector<100x1xf32>
    %c0_20 = arith.constant 0 : index
    %c0_21 = arith.constant 0 : index
    %11 = vector.load %arg10[%c0_20, %c0_21] : memref<100x4xf32, #tpu.memory_space<vmem>>, vector<100x4xf32>
    %12 = vector.broadcast %10 : vector<100x1xf32> to vector<100x4xf32>
    %13 = arith.mulf %12, %11 : vector<100x4xf32>
    %cst_22 = arith.constant dense<0.000000e+00> : vector<4xf32>
    %14 = vector.multi_reduction <add>, %13, %cst_22 [0] : vector<100x4xf32> to vector<4xf32>
    %15 = vector.shape_cast %14 : vector<4xf32> to vector<1x4xf32>
    %c0_23 = arith.constant 0 : index
    %c0_24 = arith.constant 0 : index
    %16 = vector.load %arg11[%c0_23, %c0_24] : memref<1x4xf32, #tpu.memory_space<vmem>>, vector<1x4xf32>
    %17 = arith.addf %15, %16 : vector<1x4xf32>
    %18 = vector.shape_cast %17 : vector<1x4xf32> to vector<1x1x4xf32>
    %c0_25 = arith.constant 0 : index
    %c0_26 = arith.constant 0 : index
    %c0_27 = arith.constant 0 : index
    %19 = vector.load %arg12[%c0_25, %c0_26, %c0_27] : memref<1x1x4xf32, #tpu.memory_space<vmem>>, vector<1x1x4xf32>
    tpu.vector_store %arg12[%c0_25, %c0_26, %c0_27], %18 {strides = array<i32>} : memref<1x1x4xf32, #tpu.memory_space<vmem>>, vector<1x1x4xf32>,
    return
  }
  func.func @transform_0(%arg0: i32) -> (i32, i32) {
    %c0_i32 = arith.constant 0 : i32
    %c0_i32_0 = arith.constant 0 : i32
    return %arg0, %c0_i32 : i32, i32
  }
  func.func @transform_1(%arg0: i32) -> (i32, i32) {
    %c0_i32 = arith.constant 0 : i32
    %c0_i32_0 = arith.constant 0 : i32
    %c0_i32_1 = arith.constant 0 : i32
    return %c0_i32, %c0_i32_0 : i32, i32
  }
  func.func @transform_2(%arg0: i32) -> (i32, i32) {
    %c0_i32 = arith.constant 0 : i32
    %c0_i32_0 = arith.constant 0 : i32
    %c0_i32_1 = arith.constant 0 : i32
    return %c0_i32, %c0_i32_0 : i32, i32
  }
  func.func @transform_3(%arg0: i32) -> (i32, i32, i32) {
    %c0_i32 = arith.constant 0 : i32
    %c0_i32_0 = arith.constant 0 : i32
    %c0_i32_1 = arith.constant 0 : i32
    %c0_i32_2 = arith.constant 0 : i32
    return %c0_i32, %c0_i32_0, %c0_i32_1 : i32, i32, i32
  }
  func.func @transform_4(%arg0: i32) -> (i32, i32) {
    %c0_i32 = arith.constant 0 : i32
    %c0_i32_0 = arith.constant 0 : i32
    %c0_i32_1 = arith.constant 0 : i32
    return %c0_i32, %c0_i32_0 : i32, i32
  }
  func.func @transform_5(%arg0: i32) -> (i32, i32, i32) {
    %c0_i32 = arith.constant 0 : i32
    %c0_i32_0 = arith.constant 0 : i32
    %c0_i32_1 = arith.constant 0 : i32
    %c0_i32_2 = arith.constant 0 : i32
    return %c0_i32, %c0_i32_0, %c0_i32_1 : i32, i32, i32
  }
  func.func @transform_6(%arg0: i32) -> (i32, i32) {
    %c0_i32 = arith.constant 0 : i32
    %c0_i32_0 = arith.constant 0 : i32
    %c0_i32_1 = arith.constant 0 : i32
    return %c0_i32, %c0_i32_0 : i32, i32
  }
  func.func @transform_7(%arg0: i32) -> (i32, i32, i32) {
    %c0_i32 = arith.constant 0 : i32
    %c0_i32_0 = arith.constant 0 : i32
    %c0_i32_1 = arith.constant 0 : i32
    %c0_i32_2 = arith.constant 0 : i32
    return %c0_i32, %c0_i32_0, %c0_i32_1 : i32, i32, i32
  }
  func.func @transform_8(%arg0: i32) -> (i32, i32) {
    %c0_i32 = arith.constant 0 : i32
    %c0_i32_0 = arith.constant 0 : i32
    %c0_i32_1 = arith.constant 0 : i32
    return %c0_i32, %c0_i32_0 : i32, i32
  }
  func.func @transform_9(%arg0: i32) -> (i32, i32) {
    %c0_i32 = arith.constant 0 : i32
    %c0_i32_0 = arith.constant 0 : i32
    %c0_i32_1 = arith.constant 0 : i32
    return %c0_i32, %c0_i32_0 : i32, i32
  }
  func.func @transform_10(%arg0: i32) -> (i32, i32) {
    %c0_i32 = arith.constant 0 : i32
    %c0_i32_0 = arith.constant 0 : i32
    %c0_i32_1 = arith.constant 0 : i32
    return %c0_i32, %c0_i32_0 : i32, i32
  }
  func.func @transform_11(%arg0: i32) -> (i32, i32, i32) {
    %c0_i32 = arith.constant 0 : i32
    %c0_i32_0 = arith.constant 0 : i32
    %c0_i32_1 = arith.constant 0 : i32
    return %arg0, %c0_i32, %c0_i32_0 : i32, i32, i32
  }
}

</mosaic_0001>

<bundles_post_ra>
// kernel: dqn_forward.1
= control target key start
LH: loop header
LB: loop body
LE: loop exit
PB: predicated region body
PF: predicated region fallthrough
CT: control target
= control target key end

     0   :  { %s22145_s0 = inlined_call_operand.vmem [shape: f32[12800,25], index: 0, kind: input, shape index: {}]   ;;  %s22146_s1 = inlined_call_operand.vmem [shape: f32[25,16], index: 1, kind: input, shape index: {}]   ;;  %s22147_s2 = inlined_call_operand.vmem [shape: f32[1,16], index: 2, kind: input, shape index: {}]   ;;  %s22148_s3 = inlined_call_operand.vmem [shape: f32[25,16,32], index: 3, kind: input, shape index: {}]   ;;  %s22149_s4 = inlined_call_operand.vmem [shape: f32[1,32], index: 4, kind: input, shape index: {}]   ;;  %s22150_s5 = inlined_call_operand.vmem [shape: f32[25,32,32], index: 5, kind: input, shape index: {}]   ;;  %s22151_s6 = inlined_call_operand.vmem [shape: f32[1,32], index: 6, kind: input, shape index: {}]   ;;  %s22152_s7 = inlined_call_operand.vmem [shape: f32[25,32,1], index: 7, kind: input, shape index: {}]   ;;  %s22153_s8 = inlined_call_operand.<no memory space> [shape: f32[1,1], index: 8, kind: input, shape index: {}]   ;;  %s22154_s9 = inlined_call_operand.vmem [shape: f32[100,4], index: 9, kind: input, shape index: {}]   ;;  %s22155_s10 = inlined_call_operand.vmem [shape: f32[1,4], index: 10, kind: input, shape index: {}]   ;;  %s22156_s11 = inlined_call_operand.hbm [shape: f32[2,1,4], index: 11, kind: output, shape index: {}]  }
   0x1   :  { %22158 = sst [smem:[#allocation19_spill]] %s22145_s0  ;;  %v16_v0 = vstv %s22153_s8 }
   0x2   :  { %17 = vst [vmem:[#allocation9] sm:$0x1] %v16_v0 }
   0x3   :  { %18 = vsyncpa [#allocation11], 0 }
   0x4   :  { %20 = vsyncpa [#allocation11 + $0x1], 0  ;;  %s17402_s19 = smov 0   ;;  %s17404_s20 = smov 0  }
   0x5   :  { %s17406_s21 = smov 0   ;;  %s17408_s22 = smov 0  }
   0x6 LB: > { %s17423_s8 = sadd.s32 4294967295, %s17316_s22   ;;  %s12980_s23 = sadd.s32 4294967294, %s17316_s22   ;;  %s17316_s22 = sphi %s17408_s22, %s22178_s22   ;;  %s17312_s21 = sphi %s17406_s21, %s22177_s21   ;;  %s17308_s20 = sphi %s17404_s20, %s22176_s20   ;;  %s17304_s19 = sphi %s17402_s19, %s22175_s19  }
   0x7   : > { %s17427_s24 = sadd.s32 1, %s17316_s22   ;;  %s269_s25 = sadd.s32 1, %s17312_s21 }
   0x8   : > { %s266_s26 = ssub.s32 %s17316_s22, %s17427_s24  ;;  %p279_p0 = scmp.ne.s32.totalorder %s17312_s21, %s17308_s20 }
   0x9   : > { %p267_p1 = scmp.eq.s32.totalorder %s266_s26, 0  ;;  %p280_p2 = scmp.eq.s32.totalorder %s17423_s8, 1 }
   0xa   : > { %p285_p3 = scmp.ne.s32.totalorder %s17308_s20, %s17304_s19  ;;  %p286_p4 = scmp.eq.s32.totalorder %s12980_s23, 1 }
   0xb   : > { %s17438_s27 = scalar_select %p267_p1, %s17312_s21, %s269_s25  }
   0xc   : > { %p17440_p5 = por %p280_p2, %p279_p0  ;;  %p17444_p6 = por %p286_p4, %p285_p3 }
   0xd   : > { %p12983_p7 = scmp.ge.s32.totalorder %s17316_s22, 1  ;;  %p343_p8 = scmp.lt.s32.totalorder %s17316_s22, 3 }
   0xf   : > { %p344_p9 = pnand %p12983_p7, %p343_p8 }
  0x10   : > { %s22157_s30 = sand.u32 (!%p344_p9), 1, %s17308_s20   ;;  %s382_s12 = smul.u32 (!%p344_p9), 800, %s17423_s8 }
  0x11   : > { %347 = sbr.rel (%p344_p9) target bundleno = 2261 (0x8d5), region = 64  ;;  %s22161_s0 = sld [smem:[#allocation19_spill]] (!%p344_p9) }
  0x12   : > { %p383_p10 = scmp.lt.s32.totalorder (!%p344_p9), %s382_s12, 1599  ;;  %s18581_s17 = scalar_lea.vmem (!%p344_p9), [#allocation10], %s22157_s30 }
  0x13   : > { %s18583_s18 = smov (!%p344_p9), 0  }
  0x16   : > { %vm388_vm0 = vcmask 130048   ;;  %vm632_vm1 = vcmask 261120   ;;  %v17334_v1 = vmov 0.0   ;;  %s22180_s12 = smov (!%p383_p10, %s382_s12), 1599 }
  0x17   : > { %389 = vst.msk [vmem:[#allocation2] sm:$0xff] %vm388_vm0, %v17334_v1  ;;  %390 = vst.msk [vmem:[#allocation2 + $0x8] sm:$0xff] %vm388_vm0, %v17334_v1  ;;  %s12984_s13 = sshll.u32 %s22180_s12, 3 }
  0x18   : > { %391 = vst.msk [vmem:[#allocation2 + $0x10] sm:$0xff] %vm388_vm0, %v17334_v1  ;;  %392 = vst.msk [vmem:[#allocation2 + $0x18] sm:$0xff] %vm388_vm0, %v17334_v1  ;;  %s18577_s16 = scalar_lea.vmem %s22161_s0, %s12984_s13 }
  0x19   : > { %393 = vst.msk [vmem:[#allocation2 + $0x20] sm:$0xff] %vm388_vm0, %v17334_v1  ;;  %394 = vst.msk [vmem:[#allocation2 + $0x28] sm:$0xff] %vm388_vm0, %v17334_v1 }
  0x1a   : > { %395 = vst.msk [vmem:[#allocation2 + $0x30] sm:$0xff] %vm388_vm0, %v17334_v1  ;;  %396 = vst.msk [vmem:[#allocation2 + $0x38] sm:$0xff] %vm388_vm0, %v17334_v1 }
  0x1b   : > { %397 = vst.msk [vmem:[#allocation2 + $0x40] sm:$0xff] %vm388_vm0, %v17334_v1  ;;  %398 = vst.msk [vmem:[#allocation2 + $0x48] sm:$0xff] %vm388_vm0, %v17334_v1 }
  0x1c   : > { %399 = vst.msk [vmem:[#allocation2 + $0x50] sm:$0xff] %vm388_vm0, %v17334_v1  ;;  %400 = vst.msk [vmem:[#allocation2 + $0x58] sm:$0xff] %vm388_vm0, %v17334_v1 }
  0x1d   : > { %401 = vst.msk [vmem:[#allocation2 + $0x60] sm:$0xff] %vm388_vm0, %v17334_v1  ;;  %402 = vst.msk [vmem:[#allocation2 + $0x68] sm:$0xff] %vm388_vm0, %v17334_v1 }
  0x1e   : > { %403 = vst.msk [vmem:[#allocation2 + $0x70] sm:$0xff] %vm388_vm0, %v17334_v1  ;;  %404 = vst.msk [vmem:[#allocation2 + $0x78] sm:$0xff] %vm388_vm0, %v17334_v1 }
  0x1f   : > { %405 = vst.msk [vmem:[#allocation2 + $0x80] sm:$0xff] %vm388_vm0, %v17334_v1  ;;  %406 = vst.msk [vmem:[#allocation2 + $0x88] sm:$0xff] %vm388_vm0, %v17334_v1 }
  0x20   : > { %407 = vst.msk [vmem:[#allocation2 + $0x90] sm:$0xff] %vm388_vm0, %v17334_v1  ;;  %408 = vst.msk [vmem:[#allocation2 + $0x98] sm:$0xff] %vm388_vm0, %v17334_v1 }
  0x21   : > { %409 = vst.msk [vmem:[#allocation2 + $0xa0] sm:$0xff] %vm388_vm0, %v17334_v1  ;;  %410 = vst.msk [vmem:[#allocation2 + $0xa8] sm:$0xff] %vm388_vm0, %v17334_v1 }
  0x22   : > { %411 = vst.msk [vmem:[#allocation2 + $0xb0] sm:$0xff] %vm388_vm0, %v17334_v1  ;;  %412 = vst.msk [vmem:[#allocation2 + $0xb8] sm:$0xff] %vm388_vm0, %v17334_v1 }
  0x23   : > { %413 = vst.msk [vmem:[#allocation2 + $0xc0] sm:$0xff] %vm388_vm0, %v17334_v1  ;;  %414 = vst.msk [vmem:[#allocation2 + $0xc8] sm:$0xff] %vm388_vm0, %v17334_v1 }
  0x24   : > { %415 = vst.msk [vmem:[#allocation2 + $0xd0] sm:$0xff] %vm388_vm0, %v17334_v1  ;;  %416 = vst.msk [vmem:[#allocation2 + $0xd8] sm:$0xff] %vm388_vm0, %v17334_v1 }
  0x25   : > { %417 = vst.msk [vmem:[#allocation2 + $0xe0] sm:$0xff] %vm388_vm0, %v17334_v1  ;;  %418 = vst.msk [vmem:[#allocation2 + $0xe8] sm:$0xff] %vm388_vm0, %v17334_v1 }
  0x26   : > { %419 = vst.msk [vmem:[#allocation2 + $0xf0] sm:$0xff] %vm388_vm0, %v17334_v1  ;;  %420 = vst.msk [vmem:[#allocation2 + $0xf8] sm:$0xff] %vm388_vm0, %v17334_v1 }
  0x27   : > { %421 = vst.msk [vmem:[#allocation2 + $0x100] sm:$0xff] %vm388_vm0, %v17334_v1  ;;  %422 = vst.msk [vmem:[#allocation2 + $0x108] sm:$0xff] %vm388_vm0, %v17334_v1 }
  0x28   : > { %423 = vst.msk [vmem:[#allocation2 + $0x110] sm:$0xff] %vm388_vm0, %v17334_v1  ;;  %424 = vst.msk [vmem:[#allocation2 + $0x118] sm:$0xff] %vm388_vm0, %v17334_v1 }
  0x29   : > { %425 = vst.msk [vmem:[#allocation2 + $0x120] sm:$0xff] %vm388_vm0, %v17334_v1  ;;  %426 = vst.msk [vmem:[#allocation2 + $0x128] sm:$0xff] %vm388_vm0, %v17334_v1 }
  0x2a   : > { %427 = vst.msk [vmem:[#allocation2 + $0x130] sm:$0xff] %vm388_vm0, %v17334_v1  ;;  %428 = vst.msk [vmem:[#allocation2 + $0x138] sm:$0xff] %vm388_vm0, %v17334_v1 }
  0x2b   : > { %429 = vst.msk [vmem:[#allocation2 + $0x140] sm:$0xff] %vm388_vm0, %v17334_v1  ;;  %430 = vst.msk [vmem:[#allocation2 + $0x148] sm:$0xff] %vm388_vm0, %v17334_v1 }
  0x2c   : > { %431 = vst.msk [vmem:[#allocation2 + $0x150] sm:$0xff] %vm388_vm0, %v17334_v1  ;;  %432 = vst.msk [vmem:[#allocation2 + $0x158] sm:$0xff] %vm388_vm0, %v17334_v1 }
  0x2d   : > { %433 = vst.msk [vmem:[#allocation2 + $0x160] sm:$0xff] %vm388_vm0, %v17334_v1  ;;  %434 = vst.msk [vmem:[#allocation2 + $0x168] sm:$0xff] %vm388_vm0, %v17334_v1 }
  0x2e   : > { %435 = vst.msk [vmem:[#allocation2 + $0x170] sm:$0xff] %vm388_vm0, %v17334_v1  ;;  %436 = vst.msk [vmem:[#allocation2 + $0x178] sm:$0xff] %vm388_vm0, %v17334_v1 }
  0x2f   : > { %437 = vst.msk [vmem:[#allocation2 + $0x180] sm:$0xff] %vm388_vm0, %v17334_v1  ;;  %438 = vst.msk [vmem:[#allocation2 + $0x188] sm:$0xff] %vm388_vm0, %v17334_v1 }
  0x30   : > { %439 = vst.msk [vmem:[#allocation2 + $0x190] sm:$0xff] %vm388_vm0, %v17334_v1  ;;  %440 = vst.msk [vmem:[#allocation2 + $0x198] sm:$0xff] %vm388_vm0, %v17334_v1 }
  0x31   : > { %441 = vst.msk [vmem:[#allocation2 + $0x1a0] sm:$0xff] %vm388_vm0, %v17334_v1  ;;  %442 = vst.msk [vmem:[#allocation2 + $0x1a8] sm:$0xff] %vm388_vm0, %v17334_v1 }
  0x32   : > { %443 = vst.msk [vmem:[#allocation2 + $0x1b0] sm:$0xff] %vm388_vm0, %v17334_v1  ;;  %444 = vst.msk [vmem:[#allocation2 + $0x1b8] sm:$0xff] %vm388_vm0, %v17334_v1 }
  0x33   : > { %445 = vst.msk [vmem:[#allocation2 + $0x1c0] sm:$0xff] %vm388_vm0, %v17334_v1  ;;  %446 = vst.msk [vmem:[#allocation2 + $0x1c8] sm:$0xff] %vm388_vm0, %v17334_v1 }
  0x34   : > { %447 = vst.msk [vmem:[#allocation2 + $0x1d0] sm:$0xff] %vm388_vm0, %v17334_v1  ;;  %448 = vst.msk [vmem:[#allocation2 + $0x1d8] sm:$0xff] %vm388_vm0, %v17334_v1 }
  0x35   : > { %449 = vst.msk [vmem:[#allocation2 + $0x1e0] sm:$0xff] %vm388_vm0, %v17334_v1  ;;  %450 = vst.msk [vmem:[#allocation2 + $0x1e8] sm:$0xff] %vm388_vm0, %v17334_v1 }
  0x36   : > { %451 = vst.msk [vmem:[#allocation2 + $0x1f0] sm:$0xff] %vm388_vm0, %v17334_v1  ;;  %452 = vst.msk [vmem:[#allocation2 + $0x1f8] sm:$0xff] %vm388_vm0, %v17334_v1 }
  0x37   : > { %453 = vst.msk [vmem:[#allocation2 + $0x200] sm:$0xff] %vm388_vm0, %v17334_v1  ;;  %454 = vst.msk [vmem:[#allocation2 + $0x208] sm:$0xff] %vm388_vm0, %v17334_v1 }
  0x38   : > { %455 = vst.msk [vmem:[#allocation2 + $0x210] sm:$0xff] %vm388_vm0, %v17334_v1  ;;  %456 = vst.msk [vmem:[#allocation2 + $0x218] sm:$0xff] %vm388_vm0, %v17334_v1 }
  0x39   : > { %457 = vst.msk [vmem:[#allocation2 + $0x220] sm:$0xff] %vm388_vm0, %v17334_v1  ;;  %458 = vst.msk [vmem:[#allocation2 + $0x228] sm:$0xff] %vm388_vm0, %v17334_v1 }
  0x3a   : > { %459 = vst.msk [vmem:[#allocation2 + $0x230] sm:$0xff] %vm388_vm0, %v17334_v1  ;;  %460 = vst.msk [vmem:[#allocation2 + $0x238] sm:$0xff] %vm388_vm0, %v17334_v1 }
  0x3b   : > { %461 = vst.msk [vmem:[#allocation2 + $0x240] sm:$0xff] %vm388_vm0, %v17334_v1  ;;  %462 = vst.msk [vmem:[#allocation2 + $0x248] sm:$0xff] %vm388_vm0, %v17334_v1 }
  0x3c   : > { %463 = vst.msk [vmem:[#allocation2 + $0x250] sm:$0xff] %vm388_vm0, %v17334_v1  ;;  %464 = vst.msk [vmem:[#allocation2 + $0x258] sm:$0xff] %vm388_vm0, %v17334_v1 }
  0x3d   : > { %465 = vst.msk [vmem:[#allocation2 + $0x260] sm:$0xff] %vm388_vm0, %v17334_v1  ;;  %466 = vst.msk [vmem:[#allocation2 + $0x268] sm:$0xff] %vm388_vm0, %v17334_v1 }
  0x3e   : > { %467 = vst.msk [vmem:[#allocation2 + $0x270] sm:$0xff] %vm388_vm0, %v17334_v1  ;;  %468 = vst.msk [vmem:[#allocation2 + $0x278] sm:$0xff] %vm388_vm0, %v17334_v1 }
  0x3f   : > { %469 = vst.msk [vmem:[#allocation2 + $0x280] sm:$0xff] %vm388_vm0, %v17334_v1  ;;  %470 = vst.msk [vmem:[#allocation2 + $0x288] sm:$0xff] %vm388_vm0, %v17334_v1 }
  0x40   : > { %471 = vst.msk [vmem:[#allocation2 + $0x290] sm:$0xff] %vm388_vm0, %v17334_v1  ;;  %472 = vst.msk [vmem:[#allocation2 + $0x298] sm:$0xff] %vm388_vm0, %v17334_v1 }
  0x41   : > { %473 = vst.msk [vmem:[#allocation2 + $0x2a0] sm:$0xff] %vm388_vm0, %v17334_v1  ;;  %474 = vst.msk [vmem:[#allocation2 + $0x2a8] sm:$0xff] %vm388_vm0, %v17334_v1 }
  0x42   : > { %475 = vst.msk [vmem:[#allocation2 + $0x2b0] sm:$0xff] %vm388_vm0, %v17334_v1  ;;  %476 = vst.msk [vmem:[#allocation2 + $0x2b8] sm:$0xff] %vm388_vm0, %v17334_v1 }
  0x43   : > { %477 = vst.msk [vmem:[#allocation2 + $0x2c0] sm:$0xff] %vm388_vm0, %v17334_v1  ;;  %478 = vst.msk [vmem:[#allocation2 + $0x2c8] sm:$0xff] %vm388_vm0, %v17334_v1 }
  0x44   : > { %479 = vst.msk [vmem:[#allocation2 + $0x2d0] sm:$0xff] %vm388_vm0, %v17334_v1  ;;  %480 = vst.msk [vmem:[#allocation2 + $0x2d8] sm:$0xff] %vm388_vm0, %v17334_v1 }
  0x45   : > { %481 = vst.msk [vmem:[#allocation2 + $0x2e0] sm:$0xff] %vm388_vm0, %v17334_v1  ;;  %482 = vst.msk [vmem:[#allocation2 + $0x2e8] sm:$0xff] %vm388_vm0, %v17334_v1 }
  0x46   : > { %483 = vst.msk [vmem:[#allocation2 + $0x2f0] sm:$0xff] %vm388_vm0, %v17334_v1  ;;  %484 = vst.msk [vmem:[#allocation2 + $0x2f8] sm:$0xff] %vm388_vm0, %v17334_v1 }
  0x47   : > { %485 = vst.msk [vmem:[#allocation2 + $0x300] sm:$0xff] %vm388_vm0, %v17334_v1  ;;  %486 = vst.msk [vmem:[#allocation2 + $0x308] sm:$0xff] %vm388_vm0, %v17334_v1 }
  0x48   : > { %487 = vst.msk [vmem:[#allocation2 + $0x310] sm:$0xff] %vm388_vm0, %v17334_v1  ;;  %488 = vst.msk [vmem:[#allocation2 + $0x318] sm:$0xff] %vm388_vm0, %v17334_v1 }
  0x49   : > { %489 = vst.msk [vmem:[#allocation2 + $0x320] sm:$0xff] %vm388_vm0, %v17334_v1  ;;  %490 = vst.msk [vmem:[#allocation2 + $0x328] sm:$0xff] %vm388_vm0, %v17334_v1 }
  0x4a   : > { %491 = vst.msk [vmem:[#allocation2 + $0x330] sm:$0xff] %vm388_vm0, %v17334_v1  ;;  %492 = vst.msk [vmem:[#allocation2 + $0x338] sm:$0xff] %vm388_vm0, %v17334_v1 }
  0x4b   : > { %493 = vst.msk [vmem:[#allocation2 + $0x340] sm:$0xff] %vm388_vm0, %v17334_v1  ;;  %494 = vst.msk [vmem:[#allocation2 + $0x348] sm:$0xff] %vm388_vm0, %v17334_v1 }
  0x4c   : > { %495 = vst.msk [vmem:[#allocation2 + $0x350] sm:$0xff] %vm388_vm0, %v17334_v1  ;;  %496 = vst.msk [vmem:[#allocation2 + $0x358] sm:$0xff] %vm388_vm0, %v17334_v1 }
  0x4d   : > { %497 = vst.msk [vmem:[#allocation2 + $0x360] sm:$0xff] %vm388_vm0, %v17334_v1  ;;  %498 = vst.msk [vmem:[#allocation2 + $0x368] sm:$0xff] %vm388_vm0, %v17334_v1 }
  0x4e   : > { %499 = vst.msk [vmem:[#allocation2 + $0x370] sm:$0xff] %vm388_vm0, %v17334_v1  ;;  %500 = vst.msk [vmem:[#allocation2 + $0x378] sm:$0xff] %vm388_vm0, %v17334_v1 }
  0x4f   : > { %501 = vst.msk [vmem:[#allocation2 + $0x380] sm:$0xff] %vm388_vm0, %v17334_v1  ;;  %502 = vst.msk [vmem:[#allocation2 + $0x388] sm:$0xff] %vm388_vm0, %v17334_v1 }
  0x50   : > { %503 = vst.msk [vmem:[#allocation2 + $0x390] sm:$0xff] %vm388_vm0, %v17334_v1  ;;  %504 = vst.msk [vmem:[#allocation2 + $0x398] sm:$0xff] %vm388_vm0, %v17334_v1 }
  0x51   : > { %505 = vst.msk [vmem:[#allocation2 + $0x3a0] sm:$0xff] %vm388_vm0, %v17334_v1  ;;  %506 = vst.msk [vmem:[#allocation2 + $0x3a8] sm:$0xff] %vm388_vm0, %v17334_v1 }
  0x52   : > { %507 = vst.msk [vmem:[#allocation2 + $0x3b0] sm:$0xff] %vm388_vm0, %v17334_v1  ;;  %508 = vst.msk [vmem:[#allocation2 + $0x3b8] sm:$0xff] %vm388_vm0, %v17334_v1 }
  0x53   : > { %509 = vst.msk [vmem:[#allocation2 + $0x3c0] sm:$0xff] %vm388_vm0, %v17334_v1  ;;  %510 = vst.msk [vmem:[#allocation2 + $0x3c8] sm:$0xff] %vm388_vm0, %v17334_v1 }
  0x54   : > { %511 = vst.msk [vmem:[#allocation2 + $0x3d0] sm:$0xff] %vm388_vm0, %v17334_v1  ;;  %512 = vst.msk [vmem:[#allocation2 + $0x3d8] sm:$0xff] %vm388_vm0, %v17334_v1 }
  0x55   : > { %513 = vst.msk [vmem:[#allocation2 + $0x3e0] sm:$0xff] %vm388_vm0, %v17334_v1  ;;  %514 = vst.msk [vmem:[#allocation2 + $0x3e8] sm:$0xff] %vm388_vm0, %v17334_v1 }
  0x56   : > { %515 = vst.msk [vmem:[#allocation2 + $0x3f0] sm:$0xff] %vm388_vm0, %v17334_v1  ;;  %516 = vst.msk [vmem:[#allocation2 + $0x3f8] sm:$0xff] %vm388_vm0, %v17334_v1 }
  0x57   : > { %517 = vst.msk [vmem:[#allocation2 + $0x400] sm:$0xff] %vm388_vm0, %v17334_v1  ;;  %518 = vst.msk [vmem:[#allocation2 + $0x408] sm:$0xff] %vm388_vm0, %v17334_v1 }
  0x58   : > { %519 = vst.msk [vmem:[#allocation2 + $0x410] sm:$0xff] %vm388_vm0, %v17334_v1  ;;  %520 = vst.msk [vmem:[#allocation2 + $0x418] sm:$0xff] %vm388_vm0, %v17334_v1 }
  0x59   : > { %521 = vst.msk [vmem:[#allocation2 + $0x420] sm:$0xff] %vm388_vm0, %v17334_v1  ;;  %522 = vst.msk [vmem:[#allocation2 + $0x428] sm:$0xff] %vm388_vm0, %v17334_v1 }
  0x5a   : > { %523 = vst.msk [vmem:[#allocation2 + $0x430] sm:$0xff] %vm388_vm0, %v17334_v1  ;;  %524 = vst.msk [vmem:[#allocation2 + $0x438] sm:$0xff] %vm388_vm0, %v17334_v1 }
  0x5b   : > { %525 = vst.msk [vmem:[#allocation2 + $0x440] sm:$0xff] %vm388_vm0, %v17334_v1  ;;  %526 = vst.msk [vmem:[#allocation2 + $0x448] sm:$0xff] %vm388_vm0, %v17334_v1 }
  0x5c   : > { %527 = vst.msk [vmem:[#allocation2 + $0x450] sm:$0xff] %vm388_vm0, %v17334_v1  ;;  %528 = vst.msk [vmem:[#allocation2 + $0x458] sm:$0xff] %vm388_vm0, %v17334_v1 }
  0x5d   : > { %529 = vst.msk [vmem:[#allocation2 + $0x460] sm:$0xff] %vm388_vm0, %v17334_v1  ;;  %530 = vst.msk [vmem:[#allocation2 + $0x468] sm:$0xff] %vm388_vm0, %v17334_v1 }
  0x5e   : > { %531 = vst.msk [vmem:[#allocation2 + $0x470] sm:$0xff] %vm388_vm0, %v17334_v1  ;;  %532 = vst.msk [vmem:[#allocation2 + $0x478] sm:$0xff] %vm388_vm0, %v17334_v1 }
  0x5f   : > { %533 = vst.msk [vmem:[#allocation2 + $0x480] sm:$0xff] %vm388_vm0, %v17334_v1  ;;  %534 = vst.msk [vmem:[#allocation2 + $0x488] sm:$0xff] %vm388_vm0, %v17334_v1 }
  0x60   : > { %535 = vst.msk [vmem:[#allocation2 + $0x490] sm:$0xff] %vm388_vm0, %v17334_v1  ;;  %536 = vst.msk [vmem:[#allocation2 + $0x498] sm:$0xff] %vm388_vm0, %v17334_v1 }
  0x61   : > { %537 = vst.msk [vmem:[#allocation2 + $0x4a0] sm:$0xff] %vm388_vm0, %v17334_v1  ;;  %538 = vst.msk [vmem:[#allocation2 + $0x4a8] sm:$0xff] %vm388_vm0, %v17334_v1 }
  0x62   : > { %539 = vst.msk [vmem:[#allocation2 + $0x4b0] sm:$0xff] %vm388_vm0, %v17334_v1  ;;  %540 = vst.msk [vmem:[#allocation2 + $0x4b8] sm:$0xff] %vm388_vm0, %v17334_v1 }
  0x63   : > { %541 = vst.msk [vmem:[#allocation2 + $0x4c0] sm:$0xff] %vm388_vm0, %v17334_v1  ;;  %542 = vst.msk [vmem:[#allocation2 + $0x4c8] sm:$0xff] %vm388_vm0, %v17334_v1 }
  0x64   : > { %543 = vst.msk [vmem:[#allocation2 + $0x4d0] sm:$0xff] %vm388_vm0, %v17334_v1  ;;  %544 = vst.msk [vmem:[#allocation2 + $0x4d8] sm:$0xff] %vm388_vm0, %v17334_v1 }
  0x65   : > { %545 = vst.msk [vmem:[#allocation2 + $0x4e0] sm:$0xff] %vm388_vm0, %v17334_v1  ;;  %546 = vst.msk [vmem:[#allocation2 + $0x4e8] sm:$0xff] %vm388_vm0, %v17334_v1 }
  0x66   : > { %547 = vst.msk [vmem:[#allocation2 + $0x4f0] sm:$0xff] %vm388_vm0, %v17334_v1  ;;  %548 = vst.msk [vmem:[#allocation2 + $0x4f8] sm:$0xff] %vm388_vm0, %v17334_v1 }
  0x67   : > { %549 = vst.msk [vmem:[#allocation2 + $0x500] sm:$0xff] %vm388_vm0, %v17334_v1  ;;  %550 = vst.msk [vmem:[#allocation2 + $0x508] sm:$0xff] %vm388_vm0, %v17334_v1 }
  0x68   : > { %551 = vst.msk [vmem:[#allocation2 + $0x510] sm:$0xff] %vm388_vm0, %v17334_v1  ;;  %552 = vst.msk [vmem:[#allocation2 + $0x518] sm:$0xff] %vm388_vm0, %v17334_v1 }
  0x69   : > { %553 = vst.msk [vmem:[#allocation2 + $0x520] sm:$0xff] %vm388_vm0, %v17334_v1  ;;  %554 = vst.msk [vmem:[#allocation2 + $0x528] sm:$0xff] %vm388_vm0, %v17334_v1 }
  0x6a   : > { %555 = vst.msk [vmem:[#allocation2 + $0x530] sm:$0xff] %vm388_vm0, %v17334_v1  ;;  %556 = vst.msk [vmem:[#allocation2 + $0x538] sm:$0xff] %vm388_vm0, %v17334_v1 }
  0x6b   : > { %557 = vst.msk [vmem:[#allocation2 + $0x540] sm:$0xff] %vm388_vm0, %v17334_v1  ;;  %558 = vst.msk [vmem:[#allocation2 + $0x548] sm:$0xff] %vm388_vm0, %v17334_v1 }
  0x6c   : > { %559 = vst.msk [vmem:[#allocation2 + $0x550] sm:$0xff] %vm388_vm0, %v17334_v1  ;;  %560 = vst.msk [vmem:[#allocation2 + $0x558] sm:$0xff] %vm388_vm0, %v17334_v1 }
  0x6d   : > { %561 = vst.msk [vmem:[#allocation2 + $0x560] sm:$0xff] %vm388_vm0, %v17334_v1  ;;  %562 = vst.msk [vmem:[#allocation2 + $0x568] sm:$0xff] %vm388_vm0, %v17334_v1 }
  0x6e   : > { %563 = vst.msk [vmem:[#allocation2 + $0x570] sm:$0xff] %vm388_vm0, %v17334_v1  ;;  %564 = vst.msk [vmem:[#allocation2 + $0x578] sm:$0xff] %vm388_vm0, %v17334_v1 }
  0x6f   : > { %565 = vst.msk [vmem:[#allocation2 + $0x580] sm:$0xff] %vm388_vm0, %v17334_v1  ;;  %566 = vst.msk [vmem:[#allocation2 + $0x588] sm:$0xff] %vm388_vm0, %v17334_v1 }
  0x70   : > { %567 = vst.msk [vmem:[#allocation2 + $0x590] sm:$0xff] %vm388_vm0, %v17334_v1  ;;  %568 = vst.msk [vmem:[#allocation2 + $0x598] sm:$0xff] %vm388_vm0, %v17334_v1 }
  0x71   : > { %569 = vst.msk [vmem:[#allocation2 + $0x5a0] sm:$0xff] %vm388_vm0, %v17334_v1  ;;  %570 = vst.msk [vmem:[#allocation2 + $0x5a8] sm:$0xff] %vm388_vm0, %v17334_v1 }
  0x72   : > { %571 = vst.msk [vmem:[#allocation2 + $0x5b0] sm:$0xff] %vm388_vm0, %v17334_v1  ;;  %572 = vst.msk [vmem:[#allocation2 + $0x5b8] sm:$0xff] %vm388_vm0, %v17334_v1 }
  0x73   : > { %573 = vst.msk [vmem:[#allocation2 + $0x5c0] sm:$0xff] %vm388_vm0, %v17334_v1  ;;  %574 = vst.msk [vmem:[#allocation2 + $0x5c8] sm:$0xff] %vm388_vm0, %v17334_v1 }
  0x74   : > { %575 = vst.msk [vmem:[#allocation2 + $0x5d0] sm:$0xff] %vm388_vm0, %v17334_v1  ;;  %576 = vst.msk [vmem:[#allocation2 + $0x5d8] sm:$0xff] %vm388_vm0, %v17334_v1 }
  0x75   : > { %577 = vst.msk [vmem:[#allocation2 + $0x5e0] sm:$0xff] %vm388_vm0, %v17334_v1  ;;  %578 = vst.msk [vmem:[#allocation2 + $0x5e8] sm:$0xff] %vm388_vm0, %v17334_v1 }
  0x76   : > { %579 = vst.msk [vmem:[#allocation2 + $0x5f0] sm:$0xff] %vm388_vm0, %v17334_v1  ;;  %580 = vst.msk [vmem:[#allocation2 + $0x5f8] sm:$0xff] %vm388_vm0, %v17334_v1 }
  0x77   : > { %581 = vst.msk [vmem:[#allocation2 + $0x600] sm:$0xff] %vm388_vm0, %v17334_v1  ;;  %582 = vst.msk [vmem:[#allocation2 + $0x608] sm:$0xff] %vm388_vm0, %v17334_v1 }
  0x78   : > { %583 = vst.msk [vmem:[#allocation2 + $0x610] sm:$0xff] %vm388_vm0, %v17334_v1  ;;  %584 = vst.msk [vmem:[#allocation2 + $0x618] sm:$0xff] %vm388_vm0, %v17334_v1 }
  0x79   : > { %585 = vst.msk [vmem:[#allocation2 + $0x620] sm:$0xff] %vm388_vm0, %v17334_v1  ;;  %586 = vst.msk [vmem:[#allocation2 + $0x628] sm:$0xff] %vm388_vm0, %v17334_v1 }
  0x7a   : > { %587 = vst.msk [vmem:[#allocation2 + $0x630] sm:$0xff] %vm388_vm0, %v17334_v1  ;;  %588 = vst.msk [vmem:[#allocation2 + $0x638] sm:$0xff] %vm388_vm0, %v17334_v1 }
  0x7b   : > { %589 = vst.msk [vmem:[#allocation2 + $0x640] sm:$0xff] %vm388_vm0, %v17334_v1  ;;  %590 = vst.msk [vmem:[#allocation2 + $0x648] sm:$0xff] %vm388_vm0, %v17334_v1 }
  0x7c   : > { %591 = vst.msk [vmem:[#allocation2 + $0x650] sm:$0xff] %vm388_vm0, %v17334_v1  ;;  %592 = vst.msk [vmem:[#allocation2 + $0x658] sm:$0xff] %vm388_vm0, %v17334_v1 }
  0x7d   : > { %593 = vst.msk [vmem:[#allocation2 + $0x660] sm:$0xff] %vm388_vm0, %v17334_v1  ;;  %594 = vst.msk [vmem:[#allocation2 + $0x668] sm:$0xff] %vm388_vm0, %v17334_v1 }
  0x7e   : > { %595 = vst.msk [vmem:[#allocation2 + $0x670] sm:$0xff] %vm388_vm0, %v17334_v1  ;;  %596 = vst.msk [vmem:[#allocation2 + $0x678] sm:$0xff] %vm388_vm0, %v17334_v1 }
  0x7f   : > { %597 = vst.msk [vmem:[#allocation2 + $0x680] sm:$0xff] %vm388_vm0, %v17334_v1  ;;  %598 = vst.msk [vmem:[#allocation2 + $0x688] sm:$0xff] %vm388_vm0, %v17334_v1 }
  0x80   : > { %599 = vst.msk [vmem:[#allocation2 + $0x690] sm:$0xff] %vm388_vm0, %v17334_v1  ;;  %600 = vst.msk [vmem:[#allocation2 + $0x698] sm:$0xff] %vm388_vm0, %v17334_v1 }
  0x81   : > { %601 = vst.msk [vmem:[#allocation2 + $0x6a0] sm:$0xff] %vm388_vm0, %v17334_v1  ;;  %602 = vst.msk [vmem:[#allocation2 + $0x6a8] sm:$0xff] %vm388_vm0, %v17334_v1 }
  0x82   : > { %603 = vst.msk [vmem:[#allocation2 + $0x6b0] sm:$0xff] %vm388_vm0, %v17334_v1  ;;  %604 = vst.msk [vmem:[#allocation2 + $0x6b8] sm:$0xff] %vm388_vm0, %v17334_v1 }
  0x83   : > { %605 = vst.msk [vmem:[#allocation2 + $0x6c0] sm:$0xff] %vm388_vm0, %v17334_v1  ;;  %606 = vst.msk [vmem:[#allocation2 + $0x6c8] sm:$0xff] %vm388_vm0, %v17334_v1 }
  0x84   : > { %607 = vst.msk [vmem:[#allocation2 + $0x6d0] sm:$0xff] %vm388_vm0, %v17334_v1  ;;  %608 = vst.msk [vmem:[#allocation2 + $0x6d8] sm:$0xff] %vm388_vm0, %v17334_v1 }
  0x85   : > { %609 = vst.msk [vmem:[#allocation2 + $0x6e0] sm:$0xff] %vm388_vm0, %v17334_v1  ;;  %610 = vst.msk [vmem:[#allocation2 + $0x6e8] sm:$0xff] %vm388_vm0, %v17334_v1 }
  0x86   : > { %611 = vst.msk [vmem:[#allocation2 + $0x6f0] sm:$0xff] %vm388_vm0, %v17334_v1  ;;  %612 = vst.msk [vmem:[#allocation2 + $0x6f8] sm:$0xff] %vm388_vm0, %v17334_v1 }
  0x87   : > { %613 = vst.msk [vmem:[#allocation2 + $0x700] sm:$0xff] %vm388_vm0, %v17334_v1  ;;  %614 = vst.msk [vmem:[#allocation2 + $0x708] sm:$0xff] %vm388_vm0, %v17334_v1 }
  0x88   : > { %615 = vst.msk [vmem:[#allocation2 + $0x710] sm:$0xff] %vm388_vm0, %v17334_v1  ;;  %616 = vst.msk [vmem:[#allocation2 + $0x718] sm:$0xff] %vm388_vm0, %v17334_v1 }
  0x89   : > { %617 = vst.msk [vmem:[#allocation2 + $0x720] sm:$0xff] %vm388_vm0, %v17334_v1  ;;  %618 = vst.msk [vmem:[#allocation2 + $0x728] sm:$0xff] %vm388_vm0, %v17334_v1 }
  0x8a   : > { %619 = vst.msk [vmem:[#allocation2 + $0x730] sm:$0xff] %vm388_vm0, %v17334_v1  ;;  %620 = vst.msk [vmem:[#allocation2 + $0x738] sm:$0xff] %vm388_vm0, %v17334_v1 }
  0x8b   : > { %621 = vst.msk [vmem:[#allocation2 + $0x740] sm:$0xff] %vm388_vm0, %v17334_v1  ;;  %622 = vst.msk [vmem:[#allocation2 + $0x748] sm:$0xff] %vm388_vm0, %v17334_v1 }
  0x8c   : > { %623 = vst.msk [vmem:[#allocation2 + $0x750] sm:$0xff] %vm388_vm0, %v17334_v1  ;;  %624 = vst.msk [vmem:[#allocation2 + $0x758] sm:$0xff] %vm388_vm0, %v17334_v1 }
  0x8d   : > { %625 = vst.msk [vmem:[#allocation2 + $0x760] sm:$0xff] %vm388_vm0, %v17334_v1  ;;  %626 = vst.msk [vmem:[#allocation2 + $0x768] sm:$0xff] %vm388_vm0, %v17334_v1 }
  0x8e   : > { %627 = vst.msk [vmem:[#allocation2 + $0x770] sm:$0xff] %vm388_vm0, %v17334_v1  ;;  %628 = vst.msk [vmem:[#allocation2 + $0x778] sm:$0xff] %vm388_vm0, %v17334_v1 }
  0x8f   : > { %629 = vst.msk [vmem:[#allocation2 + $0x780] sm:$0xff] %vm388_vm0, %v17334_v1  ;;  %630 = vst.msk [vmem:[#allocation2 + $0x788] sm:$0xff] %vm388_vm0, %v17334_v1 }
  0x90   : > { %631 = vst.msk [vmem:[#allocation2 + $0x790] sm:$0xff] %vm388_vm0, %v17334_v1 }
  0x91   : > { %633 = vst.msk [vmem:[#allocation3] sm:$0xff] %vm632_vm1, %v17334_v1  ;;  %634 = vst.msk [vmem:[#allocation3 + $0x8] sm:$0xff] %vm632_vm1, %v17334_v1 }
  0x92   : > { %635 = vst.msk [vmem:[#allocation3 + $0x10] sm:$0xff] %vm632_vm1, %v17334_v1  ;;  %636 = vst.msk [vmem:[#allocation3 + $0x18] sm:$0xff] %vm632_vm1, %v17334_v1 }
  0x93   : > { %637 = vst.msk [vmem:[#allocation3 + $0x20] sm:$0xff] %vm632_vm1, %v17334_v1  ;;  %638 = vst.msk [vmem:[#allocation3 + $0x28] sm:$0xff] %vm632_vm1, %v17334_v1 }
  0x94   : > { %639 = vst.msk [vmem:[#allocation3 + $0x30] sm:$0xff] %vm632_vm1, %v17334_v1  ;;  %640 = vst.msk [vmem:[#allocation3 + $0x38] sm:$0xff] %vm632_vm1, %v17334_v1 }
  0x95   : > { %641 = vst.msk [vmem:[#allocation3 + $0x40] sm:$0xff] %vm632_vm1, %v17334_v1  ;;  %642 = vst.msk [vmem:[#allocation3 + $0x48] sm:$0xff] %vm632_vm1, %v17334_v1 }
  0x96   : > { %643 = vst.msk [vmem:[#allocation3 + $0x50] sm:$0xff] %vm632_vm1, %v17334_v1  ;;  %644 = vst.msk [vmem:[#allocation3 + $0x58] sm:$0xff] %vm632_vm1, %v17334_v1 }
  0x97   : > { %645 = vst.msk [vmem:[#allocation3 + $0x60] sm:$0xff] %vm632_vm1, %v17334_v1  ;;  %646 = vst.msk [vmem:[#allocation3 + $0x68] sm:$0xff] %vm632_vm1, %v17334_v1 }
  0x98   : > { %647 = vst.msk [vmem:[#allocation3 + $0x70] sm:$0xff] %vm632_vm1, %v17334_v1  ;;  %648 = vst.msk [vmem:[#allocation3 + $0x78] sm:$0xff] %vm632_vm1, %v17334_v1 }
  0x99   : > { %649 = vst.msk [vmem:[#allocation3 + $0x80] sm:$0xff] %vm632_vm1, %v17334_v1  ;;  %650 = vst.msk [vmem:[#allocation3 + $0x88] sm:$0xff] %vm632_vm1, %v17334_v1 }
  0x9a   : > { %651 = vst.msk [vmem:[#allocation3 + $0x90] sm:$0xff] %vm632_vm1, %v17334_v1  ;;  %652 = vst.msk [vmem:[#allocation3 + $0x98] sm:$0xff] %vm632_vm1, %v17334_v1 }
  0x9b   : > { %653 = vst.msk [vmem:[#allocation3 + $0xa0] sm:$0xff] %vm632_vm1, %v17334_v1  ;;  %654 = vst.msk [vmem:[#allocation3 + $0xa8] sm:$0xff] %vm632_vm1, %v17334_v1 }
  0x9c   : > { %655 = vst.msk [vmem:[#allocation3 + $0xb0] sm:$0xff] %vm632_vm1, %v17334_v1  ;;  %656 = vst.msk [vmem:[#allocation3 + $0xb8] sm:$0xff] %vm632_vm1, %v17334_v1 }
  0x9d   : > { %657 = vst.msk [vmem:[#allocation3 + $0xc0] sm:$0xff] %vm632_vm1, %v17334_v1  ;;  %658 = vst.msk [vmem:[#allocation3 + $0xc8] sm:$0xff] %vm632_vm1, %v17334_v1 }
  0x9e   : > { %659 = vst.msk [vmem:[#allocation3 + $0xd0] sm:$0xff] %vm632_vm1, %v17334_v1  ;;  %660 = vst.msk [vmem:[#allocation3 + $0xd8] sm:$0xff] %vm632_vm1, %v17334_v1 }
  0x9f   : > { %661 = vst.msk [vmem:[#allocation3 + $0xe0] sm:$0xff] %vm632_vm1, %v17334_v1  ;;  %662 = vst.msk [vmem:[#allocation3 + $0xe8] sm:$0xff] %vm632_vm1, %v17334_v1 }
  0xa0   : > { %663 = vst.msk [vmem:[#allocation3 + $0xf0] sm:$0xff] %vm632_vm1, %v17334_v1  ;;  %664 = vst.msk [vmem:[#allocation3 + $0xf8] sm:$0xff] %vm632_vm1, %v17334_v1 }
  0xa1   : > { %665 = vst.msk [vmem:[#allocation3 + $0x100] sm:$0xff] %vm632_vm1, %v17334_v1  ;;  %666 = vst.msk [vmem:[#allocation3 + $0x108] sm:$0xff] %vm632_vm1, %v17334_v1 }
  0xa2   : > { %667 = vst.msk [vmem:[#allocation3 + $0x110] sm:$0xff] %vm632_vm1, %v17334_v1  ;;  %668 = vst.msk [vmem:[#allocation3 + $0x118] sm:$0xff] %vm632_vm1, %v17334_v1 }
  0xa3   : > { %669 = vst.msk [vmem:[#allocation3 + $0x120] sm:$0xff] %vm632_vm1, %v17334_v1  ;;  %670 = vst.msk [vmem:[#allocation3 + $0x128] sm:$0xff] %vm632_vm1, %v17334_v1 }
  0xa4   : > { %671 = vst.msk [vmem:[#allocation3 + $0x130] sm:$0xff] %vm632_vm1, %v17334_v1  ;;  %672 = vst.msk [vmem:[#allocation3 + $0x138] sm:$0xff] %vm632_vm1, %v17334_v1 }
  0xa5   : > { %673 = vst.msk [vmem:[#allocation3 + $0x140] sm:$0xff] %vm632_vm1, %v17334_v1  ;;  %674 = vst.msk [vmem:[#allocation3 + $0x148] sm:$0xff] %vm632_vm1, %v17334_v1 }
  0xa6   : > { %675 = vst.msk [vmem:[#allocation3 + $0x150] sm:$0xff] %vm632_vm1, %v17334_v1  ;;  %676 = vst.msk [vmem:[#allocation3 + $0x158] sm:$0xff] %vm632_vm1, %v17334_v1 }
  0xa7   : > { %677 = vst.msk [vmem:[#allocation3 + $0x160] sm:$0xff] %vm632_vm1, %v17334_v1  ;;  %678 = vst.msk [vmem:[#allocation3 + $0x168] sm:$0xff] %vm632_vm1, %v17334_v1 }
  0xa8   : > { %679 = vst.msk [vmem:[#allocation3 + $0x170] sm:$0xff] %vm632_vm1, %v17334_v1  ;;  %680 = vst.msk [vmem:[#allocation3 + $0x178] sm:$0xff] %vm632_vm1, %v17334_v1 }
  0xa9   : > { %681 = vst.msk [vmem:[#allocation3 + $0x180] sm:$0xff] %vm632_vm1, %v17334_v1  ;;  %682 = vst.msk [vmem:[#allocation3 + $0x188] sm:$0xff] %vm632_vm1, %v17334_v1 }
  0xaa   : > { %683 = vst.msk [vmem:[#allocation3 + $0x190] sm:$0xff] %vm632_vm1, %v17334_v1  ;;  %684 = vst.msk [vmem:[#allocation3 + $0x198] sm:$0xff] %vm632_vm1, %v17334_v1 }
  0xab   : > { %685 = vst.msk [vmem:[#allocation3 + $0x1a0] sm:$0xff] %vm632_vm1, %v17334_v1  ;;  %686 = vst.msk [vmem:[#allocation3 + $0x1a8] sm:$0xff] %vm632_vm1, %v17334_v1 }
  0xac   : > { %687 = vst.msk [vmem:[#allocation3 + $0x1b0] sm:$0xff] %vm632_vm1, %v17334_v1  ;;  %688 = vst.msk [vmem:[#allocation3 + $0x1b8] sm:$0xff] %vm632_vm1, %v17334_v1 }
  0xad   : > { %689 = vst.msk [vmem:[#allocation3 + $0x1c0] sm:$0xff] %vm632_vm1, %v17334_v1  ;;  %690 = vst.msk [vmem:[#allocation3 + $0x1c8] sm:$0xff] %vm632_vm1, %v17334_v1 }
  0xae   : > { %691 = vst.msk [vmem:[#allocation3 + $0x1d0] sm:$0xff] %vm632_vm1, %v17334_v1  ;;  %692 = vst.msk [vmem:[#allocation3 + $0x1d8] sm:$0xff] %vm632_vm1, %v17334_v1 }
  0xaf   : > { %693 = vst.msk [vmem:[#allocation3 + $0x1e0] sm:$0xff] %vm632_vm1, %v17334_v1  ;;  %694 = vst.msk [vmem:[#allocation3 + $0x1e8] sm:$0xff] %vm632_vm1, %v17334_v1 }
  0xb0   : > { %695 = vst.msk [vmem:[#allocation3 + $0x1f0] sm:$0xff] %vm632_vm1, %v17334_v1  ;;  %696 = vst.msk [vmem:[#allocation3 + $0x1f8] sm:$0xff] %vm632_vm1, %v17334_v1 }
  0xb1   : > { %697 = vst.msk [vmem:[#allocation3 + $0x200] sm:$0xff] %vm632_vm1, %v17334_v1  ;;  %698 = vst.msk [vmem:[#allocation3 + $0x208] sm:$0xff] %vm632_vm1, %v17334_v1 }
  0xb2   : > { %699 = vst.msk [vmem:[#allocation3 + $0x210] sm:$0xff] %vm632_vm1, %v17334_v1  ;;  %700 = vst.msk [vmem:[#allocation3 + $0x218] sm:$0xff] %vm632_vm1, %v17334_v1 }
  0xb3   : > { %701 = vst.msk [vmem:[#allocation3 + $0x220] sm:$0xff] %vm632_vm1, %v17334_v1  ;;  %702 = vst.msk [vmem:[#allocation3 + $0x228] sm:$0xff] %vm632_vm1, %v17334_v1 }
  0xb4   : > { %703 = vst.msk [vmem:[#allocation3 + $0x230] sm:$0xff] %vm632_vm1, %v17334_v1  ;;  %704 = vst.msk [vmem:[#allocation3 + $0x238] sm:$0xff] %vm632_vm1, %v17334_v1 }
  0xb5   : > { %705 = vst.msk [vmem:[#allocation3 + $0x240] sm:$0xff] %vm632_vm1, %v17334_v1  ;;  %706 = vst.msk [vmem:[#allocation3 + $0x248] sm:$0xff] %vm632_vm1, %v17334_v1 }
  0xb6   : > { %707 = vst.msk [vmem:[#allocation3 + $0x250] sm:$0xff] %vm632_vm1, %v17334_v1  ;;  %708 = vst.msk [vmem:[#allocation3 + $0x258] sm:$0xff] %vm632_vm1, %v17334_v1 }
  0xb7   : > { %709 = vst.msk [vmem:[#allocation3 + $0x260] sm:$0xff] %vm632_vm1, %v17334_v1  ;;  %710 = vst.msk [vmem:[#allocation3 + $0x268] sm:$0xff] %vm632_vm1, %v17334_v1 }
  0xb8   : > { %711 = vst.msk [vmem:[#allocation3 + $0x270] sm:$0xff] %vm632_vm1, %v17334_v1  ;;  %712 = vst.msk [vmem:[#allocation3 + $0x278] sm:$0xff] %vm632_vm1, %v17334_v1 }
  0xb9   : > { %713 = vst.msk [vmem:[#allocation3 + $0x280] sm:$0xff] %vm632_vm1, %v17334_v1  ;;  %714 = vst.msk [vmem:[#allocation3 + $0x288] sm:$0xff] %vm632_vm1, %v17334_v1 }
  0xba   : > { %715 = vst.msk [vmem:[#allocation3 + $0x290] sm:$0xff] %vm632_vm1, %v17334_v1  ;;  %716 = vst.msk [vmem:[#allocation3 + $0x298] sm:$0xff] %vm632_vm1, %v17334_v1 }
  0xbb   : > { %717 = vst.msk [vmem:[#allocation3 + $0x2a0] sm:$0xff] %vm632_vm1, %v17334_v1  ;;  %718 = vst.msk [vmem:[#allocation3 + $0x2a8] sm:$0xff] %vm632_vm1, %v17334_v1 }
  0xbc   : > { %719 = vst.msk [vmem:[#allocation3 + $0x2b0] sm:$0xff] %vm632_vm1, %v17334_v1  ;;  %720 = vst.msk [vmem:[#allocation3 + $0x2b8] sm:$0xff] %vm632_vm1, %v17334_v1 }
  0xbd   : > { %721 = vst.msk [vmem:[#allocation3 + $0x2c0] sm:$0xff] %vm632_vm1, %v17334_v1  ;;  %722 = vst.msk [vmem:[#allocation3 + $0x2c8] sm:$0xff] %vm632_vm1, %v17334_v1 }
  0xbe   : > { %723 = vst.msk [vmem:[#allocation3 + $0x2d0] sm:$0xff] %vm632_vm1, %v17334_v1  ;;  %724 = vst.msk [vmem:[#allocation3 + $0x2d8] sm:$0xff] %vm632_vm1, %v17334_v1 }
  0xbf   : > { %725 = vst.msk [vmem:[#allocation3 + $0x2e0] sm:$0xff] %vm632_vm1, %v17334_v1  ;;  %726 = vst.msk [vmem:[#allocation3 + $0x2e8] sm:$0xff] %vm632_vm1, %v17334_v1 }
  0xc0   : > { %727 = vst.msk [vmem:[#allocation3 + $0x2f0] sm:$0xff] %vm632_vm1, %v17334_v1  ;;  %728 = vst.msk [vmem:[#allocation3 + $0x2f8] sm:$0xff] %vm632_vm1, %v17334_v1 }
  0xc1   : > { %729 = vst.msk [vmem:[#allocation3 + $0x300] sm:$0xff] %vm632_vm1, %v17334_v1  ;;  %730 = vst.msk [vmem:[#allocation3 + $0x308] sm:$0xff] %vm632_vm1, %v17334_v1 }
  0xc2   : > { %731 = vst.msk [vmem:[#allocation3 + $0x310] sm:$0xff] %vm632_vm1, %v17334_v1  ;;  %732 = vst.msk [vmem:[#allocation3 + $0x318] sm:$0xff] %vm632_vm1, %v17334_v1 }
  0xc3   : > { %733 = vst.msk [vmem:[#allocation3 + $0x320] sm:$0xff] %vm632_vm1, %v17334_v1  ;;  %734 = vst.msk [vmem:[#allocation3 + $0x328] sm:$0xff] %vm632_vm1, %v17334_v1 }
  0xc4   : > { %735 = vst.msk [vmem:[#allocation3 + $0x330] sm:$0xff] %vm632_vm1, %v17334_v1  ;;  %736 = vst.msk [vmem:[#allocation3 + $0x338] sm:$0xff] %vm632_vm1, %v17334_v1 }
  0xc5   : > { %737 = vst.msk [vmem:[#allocation3 + $0x340] sm:$0xff] %vm632_vm1, %v17334_v1  ;;  %738 = vst.msk [vmem:[#allocation3 + $0x348] sm:$0xff] %vm632_vm1, %v17334_v1 }
  0xc6   : > { %739 = vst.msk [vmem:[#allocation3 + $0x350] sm:$0xff] %vm632_vm1, %v17334_v1  ;;  %740 = vst.msk [vmem:[#allocation3 + $0x358] sm:$0xff] %vm632_vm1, %v17334_v1 }
  0xc7   : > { %741 = vst.msk [vmem:[#allocation3 + $0x360] sm:$0xff] %vm632_vm1, %v17334_v1  ;;  %742 = vst.msk [vmem:[#allocation3 + $0x368] sm:$0xff] %vm632_vm1, %v17334_v1 }
  0xc8   : > { %743 = vst.msk [vmem:[#allocation3 + $0x370] sm:$0xff] %vm632_vm1, %v17334_v1  ;;  %744 = vst.msk [vmem:[#allocation3 + $0x378] sm:$0xff] %vm632_vm1, %v17334_v1 }
  0xc9   : > { %745 = vst.msk [vmem:[#allocation3 + $0x380] sm:$0xff] %vm632_vm1, %v17334_v1  ;;  %746 = vst.msk [vmem:[#allocation3 + $0x388] sm:$0xff] %vm632_vm1, %v17334_v1 }
  0xca   : > { %747 = vst.msk [vmem:[#allocation3 + $0x390] sm:$0xff] %vm632_vm1, %v17334_v1  ;;  %748 = vst.msk [vmem:[#allocation3 + $0x398] sm:$0xff] %vm632_vm1, %v17334_v1 }
  0xcb   : > { %749 = vst.msk [vmem:[#allocation3 + $0x3a0] sm:$0xff] %vm632_vm1, %v17334_v1  ;;  %750 = vst.msk [vmem:[#allocation3 + $0x3a8] sm:$0xff] %vm632_vm1, %v17334_v1 }
  0xcc   : > { %751 = vst.msk [vmem:[#allocation3 + $0x3b0] sm:$0xff] %vm632_vm1, %v17334_v1  ;;  %752 = vst.msk [vmem:[#allocation3 + $0x3b8] sm:$0xff] %vm632_vm1, %v17334_v1 }
  0xcd   : > { %753 = vst.msk [vmem:[#allocation3 + $0x3c0] sm:$0xff] %vm632_vm1, %v17334_v1  ;;  %754 = vst.msk [vmem:[#allocation3 + $0x3c8] sm:$0xff] %vm632_vm1, %v17334_v1 }
  0xce   : > { %755 = vst.msk [vmem:[#allocation3 + $0x3d0] sm:$0xff] %vm632_vm1, %v17334_v1  ;;  %756 = vst.msk [vmem:[#allocation3 + $0x3d8] sm:$0xff] %vm632_vm1, %v17334_v1 }
  0xcf   : > { %757 = vst.msk [vmem:[#allocation3 + $0x3e0] sm:$0xff] %vm632_vm1, %v17334_v1  ;;  %758 = vst.msk [vmem:[#allocation3 + $0x3e8] sm:$0xff] %vm632_vm1, %v17334_v1 }
  0xd0   : > { %759 = vst.msk [vmem:[#allocation3 + $0x3f0] sm:$0xff] %vm632_vm1, %v17334_v1  ;;  %760 = vst.msk [vmem:[#allocation3 + $0x3f8] sm:$0xff] %vm632_vm1, %v17334_v1 }
  0xd1   : > { %761 = vst.msk [vmem:[#allocation3 + $0x400] sm:$0xff] %vm632_vm1, %v17334_v1  ;;  %762 = vst.msk [vmem:[#allocation3 + $0x408] sm:$0xff] %vm632_vm1, %v17334_v1 }
  0xd2   : > { %763 = vst.msk [vmem:[#allocation3 + $0x410] sm:$0xff] %vm632_vm1, %v17334_v1  ;;  %764 = vst.msk [vmem:[#allocation3 + $0x418] sm:$0xff] %vm632_vm1, %v17334_v1 }
  0xd3   : > { %765 = vst.msk [vmem:[#allocation3 + $0x420] sm:$0xff] %vm632_vm1, %v17334_v1  ;;  %766 = vst.msk [vmem:[#allocation3 + $0x428] sm:$0xff] %vm632_vm1, %v17334_v1 }
  0xd4   : > { %767 = vst.msk [vmem:[#allocation3 + $0x430] sm:$0xff] %vm632_vm1, %v17334_v1  ;;  %768 = vst.msk [vmem:[#allocation3 + $0x438] sm:$0xff] %vm632_vm1, %v17334_v1 }
  0xd5   : > { %769 = vst.msk [vmem:[#allocation3 + $0x440] sm:$0xff] %vm632_vm1, %v17334_v1  ;;  %770 = vst.msk [vmem:[#allocation3 + $0x448] sm:$0xff] %vm632_vm1, %v17334_v1 }
  0xd6   : > { %771 = vst.msk [vmem:[#allocation3 + $0x450] sm:$0xff] %vm632_vm1, %v17334_v1  ;;  %772 = vst.msk [vmem:[#allocation3 + $0x458] sm:$0xff] %vm632_vm1, %v17334_v1 }
  0xd7   : > { %773 = vst.msk [vmem:[#allocation3 + $0x460] sm:$0xff] %vm632_vm1, %v17334_v1  ;;  %774 = vst.msk [vmem:[#allocation3 + $0x468] sm:$0xff] %vm632_vm1, %v17334_v1 }
  0xd8   : > { %775 = vst.msk [vmem:[#allocation3 + $0x470] sm:$0xff] %vm632_vm1, %v17334_v1  ;;  %776 = vst.msk [vmem:[#allocation3 + $0x478] sm:$0xff] %vm632_vm1, %v17334_v1 }
  0xd9   : > { %777 = vst.msk [vmem:[#allocation3 + $0x480] sm:$0xff] %vm632_vm1, %v17334_v1  ;;  %778 = vst.msk [vmem:[#allocation3 + $0x488] sm:$0xff] %vm632_vm1, %v17334_v1 }
  0xda   : > { %779 = vst.msk [vmem:[#allocation3 + $0x490] sm:$0xff] %vm632_vm1, %v17334_v1  ;;  %780 = vst.msk [vmem:[#allocation3 + $0x498] sm:$0xff] %vm632_vm1, %v17334_v1 }
  0xdb   : > { %781 = vst.msk [vmem:[#allocation3 + $0x4a0] sm:$0xff] %vm632_vm1, %v17334_v1  ;;  %782 = vst.msk [vmem:[#allocation3 + $0x4a8] sm:$0xff] %vm632_vm1, %v17334_v1 }
  0xdc   : > { %783 = vst.msk [vmem:[#allocation3 + $0x4b0] sm:$0xff] %vm632_vm1, %v17334_v1  ;;  %784 = vst.msk [vmem:[#allocation3 + $0x4b8] sm:$0xff] %vm632_vm1, %v17334_v1 }
  0xdd   : > { %785 = vst.msk [vmem:[#allocation3 + $0x4c0] sm:$0xff] %vm632_vm1, %v17334_v1  ;;  %786 = vst.msk [vmem:[#allocation3 + $0x4c8] sm:$0xff] %vm632_vm1, %v17334_v1 }
  0xde   : > { %787 = vst.msk [vmem:[#allocation3 + $0x4d0] sm:$0xff] %vm632_vm1, %v17334_v1  ;;  %788 = vst.msk [vmem:[#allocation3 + $0x4d8] sm:$0xff] %vm632_vm1, %v17334_v1 }
  0xdf   : > { %789 = vst.msk [vmem:[#allocation3 + $0x4e0] sm:$0xff] %vm632_vm1, %v17334_v1  ;;  %790 = vst.msk [vmem:[#allocation3 + $0x4e8] sm:$0xff] %vm632_vm1, %v17334_v1 }
  0xe0   : > { %791 = vst.msk [vmem:[#allocation3 + $0x4f0] sm:$0xff] %vm632_vm1, %v17334_v1  ;;  %792 = vst.msk [vmem:[#allocation3 + $0x4f8] sm:$0xff] %vm632_vm1, %v17334_v1 }
  0xe1   : > { %793 = vst.msk [vmem:[#allocation3 + $0x500] sm:$0xff] %vm632_vm1, %v17334_v1  ;;  %794 = vst.msk [vmem:[#allocation3 + $0x508] sm:$0xff] %vm632_vm1, %v17334_v1 }
  0xe2   : > { %795 = vst.msk [vmem:[#allocation3 + $0x510] sm:$0xff] %vm632_vm1, %v17334_v1  ;;  %796 = vst.msk [vmem:[#allocation3 + $0x518] sm:$0xff] %vm632_vm1, %v17334_v1 }
  0xe3   : > { %797 = vst.msk [vmem:[#allocation3 + $0x520] sm:$0xff] %vm632_vm1, %v17334_v1  ;;  %798 = vst.msk [vmem:[#allocation3 + $0x528] sm:$0xff] %vm632_vm1, %v17334_v1 }
  0xe4   : > { %799 = vst.msk [vmem:[#allocation3 + $0x530] sm:$0xff] %vm632_vm1, %v17334_v1  ;;  %800 = vst.msk [vmem:[#allocation3 + $0x538] sm:$0xff] %vm632_vm1, %v17334_v1 }
  0xe5   : > { %801 = vst.msk [vmem:[#allocation3 + $0x540] sm:$0xff] %vm632_vm1, %v17334_v1  ;;  %802 = vst.msk [vmem:[#allocation3 + $0x548] sm:$0xff] %vm632_vm1, %v17334_v1 }
  0xe6   : > { %803 = vst.msk [vmem:[#allocation3 + $0x550] sm:$0xff] %vm632_vm1, %v17334_v1  ;;  %804 = vst.msk [vmem:[#allocation3 + $0x558] sm:$0xff] %vm632_vm1, %v17334_v1 }
  0xe7   : > { %805 = vst.msk [vmem:[#allocation3 + $0x560] sm:$0xff] %vm632_vm1, %v17334_v1  ;;  %806 = vst.msk [vmem:[#allocation3 + $0x568] sm:$0xff] %vm632_vm1, %v17334_v1 }
  0xe8   : > { %807 = vst.msk [vmem:[#allocation3 + $0x570] sm:$0xff] %vm632_vm1, %v17334_v1  ;;  %808 = vst.msk [vmem:[#allocation3 + $0x578] sm:$0xff] %vm632_vm1, %v17334_v1 }
  0xe9   : > { %809 = vst.msk [vmem:[#allocation3 + $0x580] sm:$0xff] %vm632_vm1, %v17334_v1  ;;  %810 = vst.msk [vmem:[#allocation3 + $0x588] sm:$0xff] %vm632_vm1, %v17334_v1 }
  0xea   : > { %811 = vst.msk [vmem:[#allocation3 + $0x590] sm:$0xff] %vm632_vm1, %v17334_v1  ;;  %812 = vst.msk [vmem:[#allocation3 + $0x598] sm:$0xff] %vm632_vm1, %v17334_v1 }
  0xeb   : > { %813 = vst.msk [vmem:[#allocation3 + $0x5a0] sm:$0xff] %vm632_vm1, %v17334_v1  ;;  %814 = vst.msk [vmem:[#allocation3 + $0x5a8] sm:$0xff] %vm632_vm1, %v17334_v1 }
  0xec   : > { %815 = vst.msk [vmem:[#allocation3 + $0x5b0] sm:$0xff] %vm632_vm1, %v17334_v1  ;;  %816 = vst.msk [vmem:[#allocation3 + $0x5b8] sm:$0xff] %vm632_vm1, %v17334_v1 }
  0xed   : > { %817 = vst.msk [vmem:[#allocation3 + $0x5c0] sm:$0xff] %vm632_vm1, %v17334_v1  ;;  %818 = vst.msk [vmem:[#allocation3 + $0x5c8] sm:$0xff] %vm632_vm1, %v17334_v1 }
  0xee   : > { %819 = vst.msk [vmem:[#allocation3 + $0x5d0] sm:$0xff] %vm632_vm1, %v17334_v1  ;;  %820 = vst.msk [vmem:[#allocation3 + $0x5d8] sm:$0xff] %vm632_vm1, %v17334_v1 }
  0xef   : > { %821 = vst.msk [vmem:[#allocation3 + $0x5e0] sm:$0xff] %vm632_vm1, %v17334_v1  ;;  %822 = vst.msk [vmem:[#allocation3 + $0x5e8] sm:$0xff] %vm632_vm1, %v17334_v1 }
  0xf0   : > { %823 = vst.msk [vmem:[#allocation3 + $0x5f0] sm:$0xff] %vm632_vm1, %v17334_v1  ;;  %824 = vst.msk [vmem:[#allocation3 + $0x5f8] sm:$0xff] %vm632_vm1, %v17334_v1 }
  0xf1   : > { %825 = vst.msk [vmem:[#allocation3 + $0x600] sm:$0xff] %vm632_vm1, %v17334_v1  ;;  %826 = vst.msk [vmem:[#allocation3 + $0x608] sm:$0xff] %vm632_vm1, %v17334_v1 }
  0xf2   : > { %827 = vst.msk [vmem:[#allocation3 + $0x610] sm:$0xff] %vm632_vm1, %v17334_v1  ;;  %828 = vst.msk [vmem:[#allocation3 + $0x618] sm:$0xff] %vm632_vm1, %v17334_v1 }
  0xf3   : > { %829 = vst.msk [vmem:[#allocation3 + $0x620] sm:$0xff] %vm632_vm1, %v17334_v1  ;;  %830 = vst.msk [vmem:[#allocation3 + $0x628] sm:$0xff] %vm632_vm1, %v17334_v1 }
  0xf4   : > { %831 = vst.msk [vmem:[#allocation3 + $0x630] sm:$0xff] %vm632_vm1, %v17334_v1  ;;  %832 = vst.msk [vmem:[#allocation3 + $0x638] sm:$0xff] %vm632_vm1, %v17334_v1 }
  0xf5   : > { %833 = vst.msk [vmem:[#allocation3 + $0x640] sm:$0xff] %vm632_vm1, %v17334_v1  ;;  %834 = vst.msk [vmem:[#allocation3 + $0x648] sm:$0xff] %vm632_vm1, %v17334_v1 }
  0xf6   : > { %835 = vst.msk [vmem:[#allocation3 + $0x650] sm:$0xff] %vm632_vm1, %v17334_v1  ;;  %836 = vst.msk [vmem:[#allocation3 + $0x658] sm:$0xff] %vm632_vm1, %v17334_v1 }
  0xf7   : > { %837 = vst.msk [vmem:[#allocation3 + $0x660] sm:$0xff] %vm632_vm1, %v17334_v1  ;;  %838 = vst.msk [vmem:[#allocation3 + $0x668] sm:$0xff] %vm632_vm1, %v17334_v1 }
  0xf8   : > { %839 = vst.msk [vmem:[#allocation3 + $0x670] sm:$0xff] %vm632_vm1, %v17334_v1  ;;  %840 = vst.msk [vmem:[#allocation3 + $0x678] sm:$0xff] %vm632_vm1, %v17334_v1 }
  0xf9   : > { %841 = vst.msk [vmem:[#allocation3 + $0x680] sm:$0xff] %vm632_vm1, %v17334_v1  ;;  %842 = vst.msk [vmem:[#allocation3 + $0x688] sm:$0xff] %vm632_vm1, %v17334_v1 }
  0xfa   : > { %843 = vst.msk [vmem:[#allocation3 + $0x690] sm:$0xff] %vm632_vm1, %v17334_v1  ;;  %844 = vst.msk [vmem:[#allocation3 + $0x698] sm:$0xff] %vm632_vm1, %v17334_v1 }
  0xfb   : > { %845 = vst.msk [vmem:[#allocation3 + $0x6a0] sm:$0xff] %vm632_vm1, %v17334_v1  ;;  %846 = vst.msk [vmem:[#allocation3 + $0x6a8] sm:$0xff] %vm632_vm1, %v17334_v1 }
  0xfc   : > { %847 = vst.msk [vmem:[#allocation3 + $0x6b0] sm:$0xff] %vm632_vm1, %v17334_v1  ;;  %848 = vst.msk [vmem:[#allocation3 + $0x6b8] sm:$0xff] %vm632_vm1, %v17334_v1 }
  0xfd   : > { %849 = vst.msk [vmem:[#allocation3 + $0x6c0] sm:$0xff] %vm632_vm1, %v17334_v1  ;;  %850 = vst.msk [vmem:[#allocation3 + $0x6c8] sm:$0xff] %vm632_vm1, %v17334_v1 }
  0xfe   : > { %851 = vst.msk [vmem:[#allocation3 + $0x6d0] sm:$0xff] %vm632_vm1, %v17334_v1  ;;  %852 = vst.msk [vmem:[#allocation3 + $0x6d8] sm:$0xff] %vm632_vm1, %v17334_v1 }
  0xff   : > { %853 = vst.msk [vmem:[#allocation3 + $0x6e0] sm:$0xff] %vm632_vm1, %v17334_v1  ;;  %854 = vst.msk [vmem:[#allocation3 + $0x6e8] sm:$0xff] %vm632_vm1, %v17334_v1 }
 0x100   : > { %855 = vst.msk [vmem:[#allocation3 + $0x6f0] sm:$0xff] %vm632_vm1, %v17334_v1  ;;  %856 = vst.msk [vmem:[#allocation3 + $0x6f8] sm:$0xff] %vm632_vm1, %v17334_v1 }
 0x101   : > { %857 = vst.msk [vmem:[#allocation3 + $0x700] sm:$0xff] %vm632_vm1, %v17334_v1  ;;  %858 = vst.msk [vmem:[#allocation3 + $0x708] sm:$0xff] %vm632_vm1, %v17334_v1 }
 0x102   : > { %859 = vst.msk [vmem:[#allocation3 + $0x710] sm:$0xff] %vm632_vm1, %v17334_v1  ;;  %860 = vst.msk [vmem:[#allocation3 + $0x718] sm:$0xff] %vm632_vm1, %v17334_v1 }
 0x103   : > { %861 = vst.msk [vmem:[#allocation3 + $0x720] sm:$0xff] %vm632_vm1, %v17334_v1  ;;  %862 = vst.msk [vmem:[#allocation3 + $0x728] sm:$0xff] %vm632_vm1, %v17334_v1 }
 0x104   : > { %863 = vst.msk [vmem:[#allocation3 + $0x730] sm:$0xff] %vm632_vm1, %v17334_v1  ;;  %864 = vst.msk [vmem:[#allocation3 + $0x738] sm:$0xff] %vm632_vm1, %v17334_v1 }
 0x105   : > { %865 = vst.msk [vmem:[#allocation3 + $0x740] sm:$0xff] %vm632_vm1, %v17334_v1  ;;  %866 = vst.msk [vmem:[#allocation3 + $0x748] sm:$0xff] %vm632_vm1, %v17334_v1 }
 0x106   : > { %867 = vst.msk [vmem:[#allocation3 + $0x750] sm:$0xff] %vm632_vm1, %v17334_v1  ;;  %868 = vst.msk [vmem:[#allocation3 + $0x758] sm:$0xff] %vm632_vm1, %v17334_v1 }
 0x107   : > { %869 = vst.msk [vmem:[#allocation3 + $0x760] sm:$0xff] %vm632_vm1, %v17334_v1  ;;  %870 = vst.msk [vmem:[#allocation3 + $0x768] sm:$0xff] %vm632_vm1, %v17334_v1 }
 0x108   : > { %871 = vst.msk [vmem:[#allocation3 + $0x770] sm:$0xff] %vm632_vm1, %v17334_v1  ;;  %872 = vst.msk [vmem:[#allocation3 + $0x778] sm:$0xff] %vm632_vm1, %v17334_v1 }
 0x109   : > { %873 = vst.msk [vmem:[#allocation3 + $0x780] sm:$0xff] %vm632_vm1, %v17334_v1  ;;  %874 = vst.msk [vmem:[#allocation3 + $0x788] sm:$0xff] %vm632_vm1, %v17334_v1 }
 0x10a   : > { %875 = vst.msk [vmem:[#allocation3 + $0x790] sm:$0xff] %vm632_vm1, %v17334_v1  ;;  %876 = vst.msk [vmem:[#allocation4] sm:$0xff] %vm632_vm1, %v17334_v1 }
 0x10b   : > { %877 = vst.msk [vmem:[#allocation4 + $0x8] sm:$0xff] %vm632_vm1, %v17334_v1  ;;  %878 = vst.msk [vmem:[#allocation4 + $0x10] sm:$0xff] %vm632_vm1, %v17334_v1 }
 0x10c   : > { %879 = vst.msk [vmem:[#allocation4 + $0x18] sm:$0xff] %vm632_vm1, %v17334_v1  ;;  %880 = vst.msk [vmem:[#allocation4 + $0x20] sm:$0xff] %vm632_vm1, %v17334_v1 }
 0x10d   : > { %881 = vst.msk [vmem:[#allocation4 + $0x28] sm:$0xff] %vm632_vm1, %v17334_v1  ;;  %882 = vst.msk [vmem:[#allocation4 + $0x30] sm:$0xff] %vm632_vm1, %v17334_v1 }
 0x10e   : > { %883 = vst.msk [vmem:[#allocation4 + $0x38] sm:$0xff] %vm632_vm1, %v17334_v1  ;;  %884 = vst.msk [vmem:[#allocation4 + $0x40] sm:$0xff] %vm632_vm1, %v17334_v1 }
 0x10f   : > { %885 = vst.msk [vmem:[#allocation4 + $0x48] sm:$0xff] %vm632_vm1, %v17334_v1  ;;  %886 = vst.msk [vmem:[#allocation4 + $0x50] sm:$0xff] %vm632_vm1, %v17334_v1 }
 0x110   : > { %887 = vst.msk [vmem:[#allocation4 + $0x58] sm:$0xff] %vm632_vm1, %v17334_v1  ;;  %888 = vst.msk [vmem:[#allocation4 + $0x60] sm:$0xff] %vm632_vm1, %v17334_v1 }
 0x111   : > { %889 = vst.msk [vmem:[#allocation4 + $0x68] sm:$0xff] %vm632_vm1, %v17334_v1  ;;  %890 = vst.msk [vmem:[#allocation4 + $0x70] sm:$0xff] %vm632_vm1, %v17334_v1 }
 0x112   : > { %891 = vst.msk [vmem:[#allocation4 + $0x78] sm:$0xff] %vm632_vm1, %v17334_v1  ;;  %892 = vst.msk [vmem:[#allocation4 + $0x80] sm:$0xff] %vm632_vm1, %v17334_v1 }
 0x113   : > { %893 = vst.msk [vmem:[#allocation4 + $0x88] sm:$0xff] %vm632_vm1, %v17334_v1  ;;  %894 = vst.msk [vmem:[#allocation4 + $0x90] sm:$0xff] %vm632_vm1, %v17334_v1 }
 0x114   : > { %895 = vst.msk [vmem:[#allocation4 + $0x98] sm:$0xff] %vm632_vm1, %v17334_v1  ;;  %896 = vst.msk [vmem:[#allocation4 + $0xa0] sm:$0xff] %vm632_vm1, %v17334_v1 }
 0x115   : > { %897 = vst.msk [vmem:[#allocation4 + $0xa8] sm:$0xff] %vm632_vm1, %v17334_v1  ;;  %898 = vst.msk [vmem:[#allocation4 + $0xb0] sm:$0xff] %vm632_vm1, %v17334_v1 }
 0x116   : > { %899 = vst.msk [vmem:[#allocation4 + $0xb8] sm:$0xff] %vm632_vm1, %v17334_v1  ;;  %900 = vst.msk [vmem:[#allocation4 + $0xc0] sm:$0xff] %vm632_vm1, %v17334_v1 }
 0x117   : > { %901 = vst.msk [vmem:[#allocation4 + $0xc8] sm:$0xff] %vm632_vm1, %v17334_v1  ;;  %902 = vst.msk [vmem:[#allocation4 + $0xd0] sm:$0xff] %vm632_vm1, %v17334_v1 }
 0x118   : > { %903 = vst.msk [vmem:[#allocation4 + $0xd8] sm:$0xff] %vm632_vm1, %v17334_v1  ;;  %904 = vst.msk [vmem:[#allocation4 + $0xe0] sm:$0xff] %vm632_vm1, %v17334_v1 }
 0x119   : > { %905 = vst.msk [vmem:[#allocation4 + $0xe8] sm:$0xff] %vm632_vm1, %v17334_v1  ;;  %906 = vst.msk [vmem:[#allocation4 + $0xf0] sm:$0xff] %vm632_vm1, %v17334_v1 }
 0x11a   : > { %907 = vst.msk [vmem:[#allocation4 + $0xf8] sm:$0xff] %vm632_vm1, %v17334_v1  ;;  %908 = vst.msk [vmem:[#allocation4 + $0x100] sm:$0xff] %vm632_vm1, %v17334_v1 }
 0x11b   : > { %909 = vst.msk [vmem:[#allocation4 + $0x108] sm:$0xff] %vm632_vm1, %v17334_v1  ;;  %910 = vst.msk [vmem:[#allocation4 + $0x110] sm:$0xff] %vm632_vm1, %v17334_v1 }
 0x11c   : > { %911 = vst.msk [vmem:[#allocation4 + $0x118] sm:$0xff] %vm632_vm1, %v17334_v1  ;;  %912 = vst.msk [vmem:[#allocation4 + $0x120] sm:$0xff] %vm632_vm1, %v17334_v1 }
 0x11d   : > { %913 = vst.msk [vmem:[#allocation4 + $0x128] sm:$0xff] %vm632_vm1, %v17334_v1  ;;  %914 = vst.msk [vmem:[#allocation4 + $0x130] sm:$0xff] %vm632_vm1, %v17334_v1 }
 0x11e   : > { %915 = vst.msk [vmem:[#allocation4 + $0x138] sm:$0xff] %vm632_vm1, %v17334_v1  ;;  %916 = vst.msk [vmem:[#allocation4 + $0x140] sm:$0xff] %vm632_vm1, %v17334_v1 }
 0x11f   : > { %917 = vst.msk [vmem:[#allocation4 + $0x148] sm:$0xff] %vm632_vm1, %v17334_v1  ;;  %918 = vst.msk [vmem:[#allocation4 + $0x150] sm:$0xff] %vm632_vm1, %v17334_v1 }
 0x120   : > { %919 = vst.msk [vmem:[#allocation4 + $0x158] sm:$0xff] %vm632_vm1, %v17334_v1  ;;  %920 = vst.msk [vmem:[#allocation4 + $0x160] sm:$0xff] %vm632_vm1, %v17334_v1 }
 0x121   : > { %921 = vst.msk [vmem:[#allocation4 + $0x168] sm:$0xff] %vm632_vm1, %v17334_v1  ;;  %922 = vst.msk [vmem:[#allocation4 + $0x170] sm:$0xff] %vm632_vm1, %v17334_v1 }
 0x122   : > { %923 = vst.msk [vmem:[#allocation4 + $0x178] sm:$0xff] %vm632_vm1, %v17334_v1  ;;  %924 = vst.msk [vmem:[#allocation4 + $0x180] sm:$0xff] %vm632_vm1, %v17334_v1 }
 0x123   : > { %925 = vst.msk [vmem:[#allocation4 + $0x188] sm:$0xff] %vm632_vm1, %v17334_v1  ;;  %926 = vst.msk [vmem:[#allocation4 + $0x190] sm:$0xff] %vm632_vm1, %v17334_v1 }
 0x124   : > { %927 = vst.msk [vmem:[#allocation4 + $0x198] sm:$0xff] %vm632_vm1, %v17334_v1  ;;  %928 = vst.msk [vmem:[#allocation4 + $0x1a0] sm:$0xff] %vm632_vm1, %v17334_v1 }
 0x125   : > { %929 = vst.msk [vmem:[#allocation4 + $0x1a8] sm:$0xff] %vm632_vm1, %v17334_v1  ;;  %930 = vst.msk [vmem:[#allocation4 + $0x1b0] sm:$0xff] %vm632_vm1, %v17334_v1 }
 0x126   : > { %931 = vst.msk [vmem:[#allocation4 + $0x1b8] sm:$0xff] %vm632_vm1, %v17334_v1  ;;  %932 = vst.msk [vmem:[#allocation4 + $0x1c0] sm:$0xff] %vm632_vm1, %v17334_v1 }
 0x127   : > { %933 = vst.msk [vmem:[#allocation4 + $0x1c8] sm:$0xff] %vm632_vm1, %v17334_v1  ;;  %934 = vst.msk [vmem:[#allocation4 + $0x1d0] sm:$0xff] %vm632_vm1, %v17334_v1 }
 0x128   : > { %935 = vst.msk [vmem:[#allocation4 + $0x1d8] sm:$0xff] %vm632_vm1, %v17334_v1  ;;  %936 = vst.msk [vmem:[#allocation4 + $0x1e0] sm:$0xff] %vm632_vm1, %v17334_v1 }
 0x129   : > { %937 = vst.msk [vmem:[#allocation4 + $0x1e8] sm:$0xff] %vm632_vm1, %v17334_v1  ;;  %938 = vst.msk [vmem:[#allocation4 + $0x1f0] sm:$0xff] %vm632_vm1, %v17334_v1 }
 0x12a   : > { %939 = vst.msk [vmem:[#allocation4 + $0x1f8] sm:$0xff] %vm632_vm1, %v17334_v1  ;;  %940 = vst.msk [vmem:[#allocation4 + $0x200] sm:$0xff] %vm632_vm1, %v17334_v1 }
 0x12b   : > { %941 = vst.msk [vmem:[#allocation4 + $0x208] sm:$0xff] %vm632_vm1, %v17334_v1  ;;  %942 = vst.msk [vmem:[#allocation4 + $0x210] sm:$0xff] %vm632_vm1, %v17334_v1 }
 0x12c   : > { %943 = vst.msk [vmem:[#allocation4 + $0x218] sm:$0xff] %vm632_vm1, %v17334_v1  ;;  %944 = vst.msk [vmem:[#allocation4 + $0x220] sm:$0xff] %vm632_vm1, %v17334_v1 }
 0x12d   : > { %945 = vst.msk [vmem:[#allocation4 + $0x228] sm:$0xff] %vm632_vm1, %v17334_v1  ;;  %946 = vst.msk [vmem:[#allocation4 + $0x230] sm:$0xff] %vm632_vm1, %v17334_v1 }
 0x12e   : > { %947 = vst.msk [vmem:[#allocation4 + $0x238] sm:$0xff] %vm632_vm1, %v17334_v1  ;;  %948 = vst.msk [vmem:[#allocation4 + $0x240] sm:$0xff] %vm632_vm1, %v17334_v1 }
 0x12f LB: >> { %v980_v2 = vld [vmem:[%s22146_s1 + $0x18] sm:$0x1]  ;;  %vm1049_vm2 = vcmask 1040384   ;;  %v979_v3 = vld [vmem:[%s22146_s1 + $0x10] sm:$0xff]  ;;  %v978_v4 = vld [vmem:[%s22146_s1 + $0x8] sm:$0xff]  ;;  %s955_s15 = smul.u32 160, %s17320_s18  ;;  %s17320_s18 = sphi %s18583_s18, %s954_s18  }
 0x130   : >> { %15322 = vmatprep.subr.msk.mxu0 %vm1049_vm2, %v980_v2  ;;  %17135 = vmatprep.subr.msk.mxu1 %vm1049_vm2, %v980_v2  ;;  %v977_v5 = vld [vmem:[%s22146_s1] sm:$0xff]  ;;  %vm988_vm3 = vcmask 203776  }
 0x131   : >> { %15323 = vmatpush3.msk.msra.mxu0 %vm1049_vm2, %v980_v2  ;;  %17139 = vmatpush3.msk.msra.mxu1 %vm1049_vm2, %v980_v2  ;;  %s18602_s30 = scalar_lea.vmem %s18577_s16, %s955_s15  ;;  %v18647_v26 = vld [vmem:[%s22147_s2] ss:$0 sm:$0xff] }
 0x132   : >> { %15324 = vmatprep.subr.mxu0 %v979_v3  ;;  %17136 = vmatprep.subr.mxu1 %v979_v3  ;;  %v957_v6 = vld [vmem:[%s18602_s30] sm:$0xff]  ;;  %v967_v7 = vld [vmem:[%s18602_s30 + $0x50] sm:$0xff]  ;;  %v958_v8 = vld [vmem:[%s18602_s30 + $0x8] sm:$0xff] }
 0x133   : >> { %15325 = vmatpush3.msra.mxu0 %v979_v3  ;;  %17140 = vmatpush3.msra.mxu1 %v979_v3  ;;  %v968_v9 = vld [vmem:[%s18602_s30 + $0x58] sm:$0xff]  ;;  %v959_v10 = vld [vmem:[%s18602_s30 + $0x10] sm:$0xff]  ;;  %v969_v11 = vld [vmem:[%s18602_s30 + $0x60] sm:$0xff] }
 0x134   : >> { %15326 = vmatprep.subr.mxu0 %v978_v4  ;;  %17137 = vmatprep.subr.mxu1 %v978_v4  ;;  %v960_v12 = vld [vmem:[%s18602_s30 + $0x18] sm:$0xff]  ;;  %v970_v13 = vld [vmem:[%s18602_s30 + $0x68] sm:$0xff]  ;;  %v961_v14 = vld [vmem:[%s18602_s30 + $0x20] sm:$0xff] }
 0x135   : >> { %15327 = vmatpush3.msra.mxu0 %v978_v4  ;;  %17141 = vmatpush3.msra.mxu1 %v978_v4  ;;  %v971_v15 = vld [vmem:[%s18602_s30 + $0x70] sm:$0xff]  ;;  %v962_v16 = vld [vmem:[%s18602_s30 + $0x28] sm:$0xff]  ;;  %v972_v17 = vld [vmem:[%s18602_s30 + $0x78] sm:$0xff] }
 0x136   : >> { %15328 = vmatprep.subr.mxu0 %v977_v5  ;;  %17138 = vmatprep.subr.mxu1 %v977_v5  ;;  %v963_v18 = vld [vmem:[%s18602_s30 + $0x30] sm:$0xff]  ;;  %v973_v19 = vld [vmem:[%s18602_s30 + $0x80] sm:$0xff]  ;;  %v964_v20 = vld [vmem:[%s18602_s30 + $0x38] sm:$0xff] }
 0x137   : >> { %15329 = vmatpush3.msra.mxu0 %v977_v5  ;;  %17142 = vmatpush3.msra.mxu1 %v977_v5  ;;  %v974_v21 = vld [vmem:[%s18602_s30 + $0x88] sm:$0xff]  ;;  %v965_v22 = vld [vmem:[%s18602_s30 + $0x40] sm:$0xff]  ;;  %v975_v23 = vld [vmem:[%s18602_s30 + $0x90] sm:$0xff] }
 0x138   : >> { %15330 = vmatprep.mubr.msk.f32.mxu0 %vm988_vm3, %v957_v6  ;;  %15345 = vmatprep.mubr.msk.f32.mxu1 %vm988_vm3, %v967_v7  ;;  %v966_v24 = vld [vmem:[%s18602_s30 + $0x48] sm:$0xff]  ;;  %v976_v25 = vld [vmem:[%s18602_s30 + $0x98] sm:$0xff]  ;;  %s12660_s30 = smul.u32 44, %s17320_s18  ;;  %s954_s18 = sadd.s32 1, %s17320_s18  }
 0x139   : >> { %15331 = vmatmul.mubr.msk.f32.vlgmr.msra.gmra.mxu0 %vm988_vm3, %v958_v8  ;;  %15346 = vmatmul.mubr.msk.f32.vlgmr.msra.gmra.mxu1 %vm988_vm3, %v968_v9  ;;  %p951_p11 = scmp.ge.s32.totalorder %s954_s18, 40  }
 0x13a   : >> { %15333 = vmatprep.mubr.msk.f32.mxu0 %vm988_vm3, %v959_v10  ;;  %15348 = vmatprep.mubr.msk.f32.mxu1 %vm988_vm3, %v969_v11  ;;  %s12661_s13 = scalar_lea.vmem [#allocation2], %s12660_s30  ;;  %s18690_s14 = smov (%p951_p11), 0  }
 0x13d   : >> { %15334 = vmatmul.mubr.msk.f32.gmra.mxu0 %vm988_vm3, %v960_v12  ;;  %15349 = vmatmul.mubr.msk.f32.gmra.mxu1 %vm988_vm3, %v970_v13 }
 0x13e   : >> { %15336 = vmatprep.mubr.msk.f32.mxu0 %vm988_vm3, %v961_v14  ;;  %15351 = vmatprep.mubr.msk.f32.mxu1 %vm988_vm3, %v971_v15 }
 0x141   : >> { %15337 = vmatmul.mubr.msk.f32.gmra.mxu0 %vm988_vm3, %v962_v16  ;;  %15352 = vmatmul.mubr.msk.f32.gmra.mxu1 %vm988_vm3, %v972_v17 }
 0x142   : >> { %15339 = vmatprep.mubr.msk.f32.mxu0 %vm988_vm3, %v963_v18  ;;  %15354 = vmatprep.mubr.msk.f32.mxu1 %vm988_vm3, %v973_v19 }
 0x145   : >> { %15340 = vmatmul.mubr.msk.f32.gmra.mxu0 %vm988_vm3, %v964_v20  ;;  %15355 = vmatmul.mubr.msk.f32.gmra.mxu1 %vm988_vm3, %v974_v21 }
 0x146   : >> { %15342 = vmatprep.mubr.msk.f32.mxu0 %vm988_vm3, %v965_v22  ;;  %15357 = vmatprep.mubr.msk.f32.mxu1 %vm988_vm3, %v975_v23 }
 0x149   : >> { %15343 = vmatmul.mubr.msk.f32.gmra.mxu0 %vm988_vm3, %v966_v24  ;;  %15358 = vmatmul.mubr.msk.f32.gmra.mxu1 %vm988_vm3, %v976_v25 }
 0x1f9   : >> { %v15332_v27 = vpop.f32.mrf.mxu0  ;;  %v15347_v28 = vpop.f32.mrf.mxu1 }
 0x1fa   : >> { %v1125_v29 = vadd.f32 %v15332_v27, %v18647_v26  ;;  %v1175_v30 = vadd.f32 %v15347_v28, %v18647_v26 }
 0x1fb   : >> { %v1119_v31 = vpop.f32.mrf.mxu0  ;;  %v1169_v32 = vpop.f32.mrf.mxu1 }
 0x1fc   : >> { %v1219_v33 = vmax.f32 %v1125_v29, 0.0  ;;  %v1229_v34 = vmax.f32 %v1175_v30, 0.0  ;;  %v1120_v35 = vadd.f32 %v18647_v26, %v1119_v31  ;;  %v1170_v36 = vadd.f32 %v18647_v26, %v1169_v32 }
 0x1fd   : >> { %v15335_v37 = vpop.f32.mrf.mxu0  ;;  %v15350_v38 = vpop.f32.mrf.mxu1 }
 0x1fe   : >> { %v1239_v39 = vmax.f32 %v1219_v33, %v1229_v34  ;;  %v1218_v40 = vmax.f32 %v1120_v35, 0.0  ;;  %v1228_v41 = vmax.f32 %v1170_v36, 0.0  ;;  %v1135_v42 = vadd.f32 %v15335_v37, %v18647_v26 }
 0x1ff   : >> { %v1185_v43 = vadd.f32 %v15350_v38, %v18647_v26  ;;  %v1129_v44 = vpop.f32.mrf.mxu0  ;;  %v1179_v45 = vpop.f32.mrf.mxu1 }
 0x200   : >> { %1249 = vst.msk [vmem:[#allocation6 + $0x8] sm:$0xff] %vm388_vm0, %v1239_v39  ;;  %v1238_v46 = vmax.f32 %v1218_v40, %v1228_v41  ;;  %v1221_v47 = vmax.f32 %v1135_v42, 0.0  ;;  %v1130_v48 = vadd.f32 %v18647_v26, %v1129_v44  ;;  %v1180_v49 = vadd.f32 %v18647_v26, %v1179_v45 }
 0x201   : >> { %v1231_v50 = vmax.f32 %v1185_v43, 0.0  ;;  %v15338_v51 = vpop.f32.mrf.mxu0  ;;  %v15353_v52 = vpop.f32.mrf.mxu1 }
 0x202   : >> { %1248 = vst.msk [vmem:[#allocation6] sm:$0xff] %vm388_vm0, %v1238_v46  ;;  %v1220_v53 = vmax.f32 %v1130_v48, 0.0  ;;  %v1230_v54 = vmax.f32 %v1180_v49, 0.0  ;;  %v1145_v55 = vadd.f32 %v15338_v51, %v18647_v26  ;;  %v1195_v56 = vadd.f32 %v15353_v52, %v18647_v26 }
 0x203   : >> { %v1241_v57 = vmax.f32 %v1221_v47, %v1231_v50  ;;  %v1139_v58 = vpop.f32.mrf.mxu0  ;;  %v1189_v59 = vpop.f32.mrf.mxu1 }
 0x204   : >> { %v1240_v60 = vmax.f32 %v1220_v53, %v1230_v54  ;;  %v1223_v61 = vmax.f32 %v1145_v55, 0.0  ;;  %v1233_v62 = vmax.f32 %v1195_v56, 0.0  ;;  %v1140_v63 = vadd.f32 %v18647_v26, %v1139_v58 }
 0x205   : >> { %1251 = vst.msk [vmem:[#allocation6 + $0x18] sm:$0xff] %vm388_vm0, %v1241_v57  ;;  %v1190_v0 = vadd.f32 %v18647_v26, %v1189_v59  ;;  %v15341_v1 = vpop.f32.mrf.mxu0  ;;  %v15356_v2 = vpop.f32.mrf.mxu1 }
 0x206   : >> { %1250 = vst.msk [vmem:[#allocation6 + $0x10] sm:$0xff] %vm388_vm0, %v1240_v60  ;;  %v1243_v3 = vmax.f32 %v1223_v61, %v1233_v62  ;;  %v1222_v4 = vmax.f32 %v1140_v63, 0.0  ;;  %v1155_v5 = vadd.f32 %v15341_v1, %v18647_v26  ;;  %v1205_v6 = vadd.f32 %v15356_v2, %v18647_v26 }
 0x207   : >> { %v1232_v7 = vmax.f32 %v1190_v0, 0.0  ;;  %v1149_v8 = vpop.f32.mrf.mxu0  ;;  %v1199_v9 = vpop.f32.mrf.mxu1 }
 0x208   : >> { %1253 = vst.msk [vmem:[#allocation6 + $0x28] sm:$0xff] %vm388_vm0, %v1243_v3  ;;  %v1225_v10 = vmax.f32 %v1155_v5, 0.0  ;;  %v1235_v11 = vmax.f32 %v1205_v6, 0.0  ;;  %v1150_v12 = vadd.f32 %v18647_v26, %v1149_v8  ;;  %v1200_v13 = vadd.f32 %v18647_v26, %v1199_v9 }
 0x209   : >> { %v1258_v14 = vld [vmem:[#allocation6] ss:$2 sm:$0xff]  ;;  %v1268_v15 = vld [vmem:[#allocation6 + $0x1] ss:$2 sm:$0xff]  ;;  %v1242_v16 = vmax.f32 %v1222_v4, %v1232_v7  ;;  %v15344_v17 = vpop.f32.mrf.mxu0  ;;  %v15359_v18 = vpop.f32.mrf.mxu1 }
 0x20a   : >> { %v1277_v19 = vmax.f32 %v1258_v14, %v1268_v15  ;;  %v1245_v20 = vmax.f32 %v1225_v10, %v1235_v11  ;;  %v1224_v21 = vmax.f32 %v1150_v12, 0.0  ;;  %v1234_v22 = vmax.f32 %v1200_v13, 0.0 }
 0x20b   : >> { %1252 = vst.msk [vmem:[#allocation6 + $0x20] sm:$0xff] %vm388_vm0, %v1242_v16  ;;  %v1165_v23 = vadd.f32 %v15344_v17, %v18647_v26  ;;  %v1215_v24 = vadd.f32 %v15359_v18, %v18647_v26  ;;  %v1159_v25 = vpop.f32.mrf.mxu0  ;;  %v1209_v27 = vpop.f32.mrf.mxu1 }
 0x20c   : >> { %13007 = vst.msk [vmem:[%s12661_s13 + $0x5a] sm:$0xff] %vm388_vm0, %v1277_v19  ;;  %1255 = vst.msk [vmem:[#allocation6 + $0x38] sm:$0xff] %vm388_vm0, %v1245_v20  ;;  %v1244_v28 = vmax.f32 %v1224_v21, %v1234_v22  ;;  %v1160_v29 = vadd.f32 %v18647_v26, %v1159_v25  ;;  %v1210_v30 = vadd.f32 %v18647_v26, %v1209_v27 }
 0x20d   : >> { %v1260_v31 = vld [vmem:[#allocation6 + $0x10] ss:$2 sm:$0xff]  ;;  %v1270_v32 = vld [vmem:[#allocation6 + $0x11] ss:$2 sm:$0xff]  ;;  %v1227_v33 = vmax.f32 %v1165_v23, 0.0  ;;  %v1237_v34 = vmax.f32 %v1215_v24, 0.0 }
 0x20e   : >> { %v1278_v35 = vmax.f32 %v1260_v31, %v1270_v32  ;;  %1254 = vst.msk [vmem:[#allocation6 + $0x30] sm:$0xff] %vm388_vm0, %v1244_v28  ;;  %v1226_v36 = vmax.f32 %v1160_v29, 0.0  ;;  %v1236_v37 = vmax.f32 %v1210_v30, 0.0 }
 0x20f   : >> { %v1247_v38 = vmax.f32 %v1227_v33, %v1237_v34 }
 0x210   : >> { %13008 = vst.msk [vmem:[%s12661_s13 + $0x62] sm:$0xff] %vm388_vm0, %v1278_v35  ;;  %v1246_v39 = vmax.f32 %v1226_v36, %v1236_v37 }
 0x211   : >> { %1257 = vst.msk [vmem:[#allocation6 + $0x48] sm:$0xff] %vm388_vm0, %v1247_v38 }
 0x212   : >> { %v1262_v40 = vld [vmem:[#allocation6 + $0x20] ss:$2 sm:$0xff]  ;;  %v1272_v41 = vld [vmem:[#allocation6 + $0x21] ss:$2 sm:$0xff]  ;;  %1256 = vst.msk [vmem:[#allocation6 + $0x40] sm:$0xff] %vm388_vm0, %v1246_v39 }
 0x213   : >> { %v1279_v26 = vmax.f32 %v1262_v40, %v1272_v41 }
 0x215   : >> { %13009 = vst.msk [vmem:[%s12661_s13 + $0x6a] sm:$0xff] %vm388_vm0, %v1279_v26  ;;  %v1264_v42 = vld [vmem:[#allocation6 + $0x30] ss:$2 sm:$0xff]  ;;  %v1274_v43 = vld [vmem:[#allocation6 + $0x31] ss:$2 sm:$0xff] }
 0x216   : >> { %v1280_v44 = vmax.f32 %v1264_v42, %v1274_v43 }
 0x218   : >> { %13010 = vst.msk [vmem:[%s12661_s13 + $0x72] sm:$0xff] %vm388_vm0, %v1280_v44  ;;  %953 = sbr.rel (!%p951_p11) target bundleno = 303 (0x12f), region = 296 }
 0x219   : >> { %v1266_v45 = vld [vmem:[#allocation6 + $0x40] ss:$2 sm:$0xff]  ;;  %v1276_v46 = vld [vmem:[#allocation6 + $0x41] ss:$2 sm:$0xff] }
 0x21a   : >> { %v1281_v47 = vmax.f32 %v1266_v45, %v1276_v46 }
 0x21c   : >> { %13011 = vst.msk [vmem:[%s12661_s13 + $0x7a] sm:$0xff] %vm388_vm0, %v1281_v47 }
 0x21d LB: >> { %v13019_v48 = vld [vmem:[%s22148_s3 + $0x18] sm:$0xff]  ;;  %v13018_v49 = vld [vmem:[%s22148_s3 + $0x10] sm:$0xff]  ;;  %s1297_s16 = smul.u32 44, %s17324_s14  ;;  %v1306_v50 = vld [vmem:[%s22148_s3 + $0x8] sm:$0xff]  ;;  %s1296_s14 = sadd.s32 1, %s17324_s14   ;;  %s17324_s14 = sphi %s18690_s14, %s1296_s14  }
 0x21e   : >> { %17143 = vmatprep.subr.mxu1 %v13019_v48  ;;  %15360 = vmatprep.subr.mxu0 %v13019_v48  ;;  %v13039_v51 = vld [vmem:[%s22148_s3 + $0x28] sm:$0xff]  ;;  %v1305_v56 = vld [vmem:[%s22148_s3] sm:$0xff]  ;;  %v13053_v62 = vld [vmem:[%s22148_s3 + $0x38] sm:$0xff]  ;;  %p1293_p12 = scmp.ge.s32.totalorder %s1296_s14, 40  }
 0x21f   : >> { %17145 = vmatpush3.msra.mxu1 %v13019_v48  ;;  %15361 = vmatpush3.msra.mxu0 %v13019_v48  ;;  %s18710_s15 = scalar_lea.vmem [#allocation2], %s1297_s16  ;;  %v13038_v58 = vld [vmem:[%s22148_s3 + $0x20] sm:$0xff]  ;;  %v13067_v0 = vld [vmem:[%s22148_s3 + $0x48] sm:$0xff]  ;;  %v13052_v5 = vld [vmem:[%s22148_s3 + $0x30] sm:$0xff]  ;;  %s12738_s26 = scalar_lea.vmem [#allocation3], %s1297_s16 }
 0x220   : >> { %17144 = vmatprep.subr.mxu1 %v13018_v49  ;;  %15362 = vmatprep.subr.mxu0 %v13018_v49  ;;  %v13066_v8 = vld [vmem:[%s22148_s3 + $0x40] sm:$0xff]  ;;  %v13081_v11 = vld [vmem:[%s22148_s3 + $0x58] sm:$0xff]  ;;  %v13095_v13 = vld [vmem:[%s22148_s3 + $0x68] sm:$0xff]  ;;  %s19208_s16 = smov (%p1293_p12), 0  }
 0x221   : >> { %17146 = vmatpush3.msra.mxu1 %v13018_v49  ;;  %15363 = vmatpush3.msra.mxu0 %v13018_v49  ;;  %v13094_v19 = vld [vmem:[%s22148_s3 + $0x60] sm:$0xff]  ;;  %v13080_v22 = vld [vmem:[%s22148_s3 + $0x50] sm:$0xff]  ;;  %v13109_v27 = vld [vmem:[%s22148_s3 + $0x78] sm:$0xff] }
 0x222   : >> { %15373 = vmatprep.subr.mxu1 %v1306_v50  ;;  %15386 = vmatprep.subr.mxu0 %v13039_v51  ;;  %v13123_v29 = vld [vmem:[%s22148_s3 + $0x88] sm:$0xff]  ;;  %v13122_v36 = vld [vmem:[%s22148_s3 + $0x80] sm:$0xff]  ;;  %v13108_v39 = vld [vmem:[%s22148_s3 + $0x70] sm:$0xff] }
 0x223   : >> { %v13014_v52 = vld [vmem:[%s18710_s15 + $0x11] sm:$0xff]  ;;  %v13015_v53 = vld [vmem:[%s18710_s15 + $0x19] sm:$0xff]  ;;  %v13012_v54 = vld [vmem:[%s18710_s15 + $0x1] sm:$0xff] }
 0x224   : >> { %15367 = vmatprep.mubr.msk.f32.mxu1 %vm388_vm0, %v13014_v52  ;;  %15364 = vmatprep.mubr.msk.f32.mxu0 %vm388_vm0, %v13012_v54  ;;  %v13016_v55 = vld [vmem:[%s18710_s15 + $0x21] sm:$0xff]  ;;  %v13013_v57 = vld [vmem:[%s18710_s15 + $0x9] sm:$0xff]  ;;  %v13034_v1 = vld [vmem:[%s18710_s15 + $0x12] sm:$0xff] }
 0x225   : >> { %15368 = vmatmul.mubr.msk.f32.vlgmr.msra.gmra.mxu1 %vm388_vm0, %v13015_v53  ;;  %15365 = vmatmul.mubr.msk.f32.vlgmr.msra.gmra.mxu0 %vm388_vm0, %v13013_v57  ;;  %v13017_v59 = vld [vmem:[%s18710_s15 + $0x29] sm:$0xf]  ;;  %v1299_v60 = vld [vmem:[%s18710_s15] sm:$0xff]  ;;  %v1301_v3 = vld [vmem:[%s18710_s15 + $0x10] sm:$0xff] }
 0x226   : >> { %15374 = vmatpush3.msra.mxu1 %v1306_v50  ;;  %15370 = vmatprep.mubr.msk.f32.mxu1 %vm388_vm0, %v13016_v55  ;;  %v13032_v61 = vld [vmem:[%s18710_s15 + $0x2] sm:$0xff]  ;;  %v13033_v63 = vld [vmem:[%s18710_s15 + $0xa] sm:$0xff]  ;;  %v13035_v4 = vld [vmem:[%s18710_s15 + $0x1a] sm:$0xff] }
 0x227   : >> { %15375 = vmatprep.subr.mxu1 %v1305_v56  ;;  %15387 = vmatpush3.msra.mxu0 %v13039_v51  ;;  %v1300_v2 = vld [vmem:[%s18710_s15 + $0x8] sm:$0xff]  ;;  %v1302_v7 = vld [vmem:[%s18710_s15 + $0x18] sm:$0xff]  ;;  %v1303_v9 = vld [vmem:[%s18710_s15 + $0x20] sm:$0xff] }
 0x228   : >> { %15376 = vmatpush3.msra.mxu1 %v1305_v56  ;;  %15388 = vmatprep.subr.mxu0 %v13038_v58  ;;  %v13036_v6 = vld [vmem:[%s18710_s15 + $0x22] sm:$0xff]  ;;  %v13037_v10 = vld [vmem:[%s18710_s15 + $0x2a] sm:$0xf]  ;;  %v13062_v17 = vld [vmem:[%s18710_s15 + $0x14] sm:$0xff] }
 0x229   : >> { %15371 = vmatmul.mubr.msk.f32.gmra.mxu1 %vm388_vm0, %v13017_v59  ;;  %15389 = vmatpush3.msra.mxu0 %v13038_v58  ;;  %v13060_v12 = vld [vmem:[%s18710_s15 + $0x4] sm:$0xff]  ;;  %v13061_v16 = vld [vmem:[%s18710_s15 + $0xc] sm:$0xff]  ;;  %v13063_v21 = vld [vmem:[%s18710_s15 + $0x1c] sm:$0xff] }
 0x22a   : >> { %15377 = vmatprep.mubr.msk.f32.mxu1 %vm388_vm0, %v1299_v60  ;;  %15390 = vmatprep.mubr.msk.f32.mxu0 %vm388_vm0, %v13032_v61  ;;  %v1304_v14 = vld [vmem:[%s18710_s15 + $0x28] sm:$0xf]  ;;  %v13048_v20 = vld [vmem:[%s18710_s15 + $0x13] sm:$0xff]  ;;  %v13049_v24 = vld [vmem:[%s18710_s15 + $0x1b] sm:$0xff] }
 0x22b   : >> { %15399 = vmatprep.subr.mxu1 %v13053_v62  ;;  %15391 = vmatmul.mubr.msk.f32.vlgmr.msra.gmra.mxu0 %vm388_vm0, %v13033_v63  ;;  %v13046_v15 = vld [vmem:[%s18710_s15 + $0x3] sm:$0xff]  ;;  %v13047_v18 = vld [vmem:[%s18710_s15 + $0xb] sm:$0xff]  ;;  %v13089_v33 = vld [vmem:[%s18710_s15 + $0x35] sm:$0xff] }
 0x22c   : >> { %15412 = vmatprep.subr.mxu0 %v13067_v0  ;;  %15393 = vmatprep.mubr.msk.f32.mxu0 %vm388_vm0, %v13034_v1  ;;  %v13064_v23 = vld [vmem:[%s18710_s15 + $0x24] sm:$0xff]  ;;  %v13065_v28 = vld [vmem:[%s18710_s15 + $0x2c] sm:$0xf]  ;;  %v13075_v35 = vld [vmem:[%s18710_s15 + $0x34] sm:$0xff] }
 0x22d   : >> { %15378 = vmatmul.mubr.msk.f32.vlgmr.msra.gmra.mxu1 %vm388_vm0, %v1300_v2  ;;  %15413 = vmatpush3.msra.mxu0 %v13067_v0  ;;  %v13050_v25 = vld [vmem:[%s18710_s15 + $0x23] sm:$0xff]  ;;  %v13088_v30 = vld [vmem:[%s18710_s15 + $0x2d] sm:$0xff]  ;;  %v13137_v42 = vld [vmem:[%s22148_s3 + $0x98] sm:$0xff] }
 0x22e   : >> { %15400 = vmatpush3.msra.mxu1 %v13053_v62  ;;  %15380 = vmatprep.mubr.msk.f32.mxu1 %vm388_vm0, %v1301_v3  ;;  %v13051_v31 = vld [vmem:[%s18710_s15 + $0x2b] sm:$0xf]  ;;  %v13090_v34 = vld [vmem:[%s18710_s15 + $0x3d] sm:$0xff]  ;;  %v13093_v43 = vld [vmem:[%s18710_s15 + $0x55] sm:$0xf] }
 0x22f   : >> { %15394 = vmatmul.mubr.msk.f32.gmra.mxu0 %vm388_vm0, %v13035_v4  ;;  %15401 = vmatprep.subr.mxu1 %v13052_v5  ;;  %v13074_v32 = vld [vmem:[%s18710_s15 + $0x2c] sm:$0xff]  ;;  %v13076_v37 = vld [vmem:[%s18710_s15 + $0x3c] sm:$0xff]  ;;  %v13077_v41 = vld [vmem:[%s18710_s15 + $0x44] sm:$0xff] }
 0x230   : >> { %15402 = vmatpush3.msra.mxu1 %v13052_v5  ;;  %15396 = vmatprep.mubr.msk.f32.mxu0 %vm388_vm0, %v13036_v6  ;;  %v13091_v38 = vld [vmem:[%s18710_s15 + $0x45] sm:$0xff]  ;;  %v13092_v40 = vld [vmem:[%s18710_s15 + $0x4d] sm:$0xff]  ;;  %v13117_v48 = vld [vmem:[%s18710_s15 + $0x37] sm:$0xff] }
 0x231   : >> { %15381 = vmatmul.mubr.msk.f32.gmra.mxu1 %vm388_vm0, %v1302_v7  ;;  %15414 = vmatprep.subr.mxu0 %v13066_v8  ;;  %v13078_v26 = vld [vmem:[%s18710_s15 + $0x4c] sm:$0xff]  ;;  %v13079_v46 = vld [vmem:[%s18710_s15 + $0x54] sm:$0xf]  ;;  %v13118_v49 = vld [vmem:[%s18710_s15 + $0x3f] sm:$0xff] }
 0x232   : >> { %15383 = vmatprep.mubr.msk.f32.mxu1 %vm388_vm0, %v1303_v9  ;;  %15415 = vmatpush3.msra.mxu0 %v13066_v8  ;;  %v13151_v44 = vld [vmem:[%s22148_s3 + $0xa8] sm:$0xff]  ;;  %v13103_v50 = vld [vmem:[%s18710_s15 + $0x36] sm:$0xff]  ;;  %v13150_v51 = vld [vmem:[%s22148_s3 + $0xa0] sm:$0xff] }
 0x233   : >> { %15397 = vmatmul.mubr.msk.f32.gmra.mxu0 %vm388_vm0, %v13037_v10  ;;  %15425 = vmatprep.subr.mxu1 %v13081_v11  ;;  %v13116_v45 = vld [vmem:[%s18710_s15 + $0x2f] sm:$0xff]  ;;  %v13104_v52 = vld [vmem:[%s18710_s15 + $0x3e] sm:$0xff]  ;;  %v13119_v53 = vld [vmem:[%s18710_s15 + $0x47] sm:$0xff] }
 0x234   : >> { %15416 = vmatprep.mubr.msk.f32.mxu0 %vm388_vm0, %v13060_v12  ;;  %15438 = vmatprep.subr.mxu0 %v13095_v13  ;;  %v13102_v47 = vld [vmem:[%s18710_s15 + $0x2e] sm:$0xff]  ;;  %v13105_v56 = vld [vmem:[%s18710_s15 + $0x46] sm:$0xff]  ;;  %v13165_v58 = vld [vmem:[%s22148_s3 + $0xb8] sm:$0xff] }
 0x235   : >> { %15384 = vmatmul.mubr.msk.f32.gmra.mxu1 %vm388_vm0, %v1304_v14  ;;  %v13136_v54 = vld [vmem:[%s22148_s3 + $0x90] sm:$0xff]  ;;  %v13179_v60 = vld [vmem:[%s22148_s3 + $0xc8] sm:$0xff]  ;;  %v13144_v61 = vld [vmem:[%s18710_s15 + $0x58] sm:$0xff] }
 0x236   : >> { %15403 = vmatprep.mubr.msk.f32.mxu1 %vm388_vm0, %v13046_v15  ;;  %v13120_v55 = vld [vmem:[%s18710_s15 + $0x4f] sm:$0xff]  ;;  %v13121_v59 = vld [vmem:[%s18710_s15 + $0x57] sm:$0xf]  ;;  %v13145_v0 = vld [vmem:[%s18710_s15 + $0x60] sm:$0xff] }
 0x237   : >> { %15417 = vmatmul.mubr.msk.f32.vlgmr.msra.gmra.mxu0 %vm388_vm0, %v13061_v16  ;;  %v13106_v57 = vld [vmem:[%s18710_s15 + $0x4e] sm:$0xff]  ;;  %v13107_v62 = vld [vmem:[%s18710_s15 + $0x56] sm:$0xf]  ;;  %v13178_v3 = vld [vmem:[%s22148_s3 + $0xc0] sm:$0xff] }
 0x238   : >> { %15439 = vmatpush3.msra.mxu0 %v13095_v13  ;;  %15419 = vmatprep.mubr.msk.f32.mxu0 %vm388_vm0, %v13062_v17  ;;  %v13130_v63 = vld [vmem:[%s18710_s15 + $0x30] sm:$0xff]  ;;  %v13146_v1 = vld [vmem:[%s18710_s15 + $0x68] sm:$0xff]  ;;  %v13131_v2 = vld [vmem:[%s18710_s15 + $0x38] sm:$0xff] }
 0x239   : >> { %15404 = vmatmul.mubr.msk.f32.vlgmr.msra.gmra.mxu1 %vm388_vm0, %v13047_v18  ;;  %15440 = vmatprep.subr.mxu0 %v13094_v19  ;;  %v13132_v4 = vld [vmem:[%s18710_s15 + $0x40] sm:$0xff]  ;;  %v13147_v5 = vld [vmem:[%s18710_s15 + $0x70] sm:$0xff]  ;;  %v13148_v7 = vld [vmem:[%s18710_s15 + $0x78] sm:$0xff] }
 0x23a   : >> { %15426 = vmatpush3.msra.mxu1 %v13081_v11  ;;  %15406 = vmatprep.mubr.msk.f32.mxu1 %vm388_vm0, %v13048_v20  ;;  %v13164_v6 = vld [vmem:[%s22148_s3 + $0xb0] sm:$0xff]  ;;  %v13133_v8 = vld [vmem:[%s18710_s15 + $0x48] sm:$0xff]  ;;  %v13193_v10 = vld [vmem:[%s22148_s3 + $0xd8] sm:$0xff] }
 0x23b   : >> { %15420 = vmatmul.mubr.msk.f32.gmra.mxu0 %vm388_vm0, %v13063_v21  ;;  %15427 = vmatprep.subr.mxu1 %v13080_v22  ;;  %v13134_v9 = vld [vmem:[%s18710_s15 + $0x50] sm:$0xff]  ;;  %v13149_v11 = vld [vmem:[%s18710_s15 + $0x80] sm:$0xf]  ;;  %v13207_v12 = vld [vmem:[%s22148_s3 + $0xe8] sm:$0xff] }
 0x23c   : >> { %15428 = vmatpush3.msra.mxu1 %v13080_v22  ;;  %15422 = vmatprep.mubr.msk.f32.mxu0 %vm388_vm0, %v13064_v23  ;;  %v13172_v13 = vld [vmem:[%s18710_s15 + $0x5a] sm:$0xff]  ;;  %v13173_v16 = vld [vmem:[%s18710_s15 + $0x62] sm:$0xff]  ;;  %v13174_v17 = vld [vmem:[%s18710_s15 + $0x6a] sm:$0xff] }
 0x23d   : >> { %15407 = vmatmul.mubr.msk.f32.gmra.mxu1 %vm388_vm0, %v13049_v24  ;;  %15441 = vmatpush3.msra.mxu0 %v13094_v19  ;;  %v13135_v14 = vld [vmem:[%s18710_s15 + $0x58] sm:$0xf]  ;;  %v13159_v18 = vld [vmem:[%s18710_s15 + $0x61] sm:$0xff]  ;;  %v13160_v20 = vld [vmem:[%s18710_s15 + $0x69] sm:$0xff] }
 0x23e   : >> { %15409 = vmatprep.mubr.msk.f32.mxu1 %vm388_vm0, %v13050_v25  ;;  %15451 = vmatprep.subr.mxu1 %v13109_v27  ;;  %v13158_v15 = vld [vmem:[%s18710_s15 + $0x59] sm:$0xff]  ;;  %v13192_v22 = vld [vmem:[%s22148_s3 + $0xd0] sm:$0xff] }
 0x23f   : >> { %15423 = vmatmul.mubr.msk.f32.gmra.mxu0 %vm388_vm0, %v13065_v28  ;;  %15464 = vmatprep.subr.mxu0 %v13123_v29  ;;  %v13206_v19 = vld [vmem:[%s22148_s3 + $0xe0] sm:$0xff]  ;;  %v13175_v21 = vld [vmem:[%s18710_s15 + $0x72] sm:$0xff] }
 0x240   : >> { %15442 = vmatprep.mubr.msk.f32.mxu0 %vm388_vm0, %v13088_v30  ;;  %v13176_v23 = vld [vmem:[%s18710_s15 + $0x7a] sm:$0xff]  ;;  %v13161_v24 = vld [vmem:[%s18710_s15 + $0x71] sm:$0xff]  ;;  %v13177_v28 = vld [vmem:[%s18710_s15 + $0x82] sm:$0xf] }
 0x241   : >> { %15410 = vmatmul.mubr.msk.f32.gmra.mxu1 %vm388_vm0, %v13051_v31  ;;  %v13162_v25 = vld [vmem:[%s18710_s15 + $0x79] sm:$0xff]  ;;  %v13163_v31 = vld [vmem:[%s18710_s15 + $0x81] sm:$0xf] }
 0x242   : >> { %15429 = vmatprep.mubr.msk.f32.mxu1 %vm388_vm0, %v13074_v32  ;;  %v13200_v30 = vld [vmem:[%s18710_s15 + $0x5c] sm:$0xff] }
 0x243   : >> { %15443 = vmatmul.mubr.msk.f32.vlgmr.msra.gmra.mxu0 %vm388_vm0, %v13089_v33  ;;  %v13186_v32 = vld [vmem:[%s18710_s15 + $0x5b] sm:$0xff]  ;;  %v13201_v33 = vld [vmem:[%s18710_s15 + $0x64] sm:$0xff] }
 0x244   : >> { %15465 = vmatpush3.msra.mxu0 %v13123_v29  ;;  %15445 = vmatprep.mubr.msk.f32.mxu0 %vm388_vm0, %v13090_v34  ;;  %v13235_v29 = vld [vmem:[%s22148_s3 + $0x108] sm:$0xff] }
 0x245   : >> { %15430 = vmatmul.mubr.msk.f32.vlgmr.msra.gmra.mxu1 %vm388_vm0, %v13075_v35  ;;  %15466 = vmatprep.subr.mxu0 %v13122_v36  ;;  %v13202_v34 = vld [vmem:[%s18710_s15 + $0x6c] sm:$0xff]  ;;  %v13187_v35 = vld [vmem:[%s18710_s15 + $0x63] sm:$0xff] }
 0x246   : >> { %15452 = vmatpush3.msra.mxu1 %v13109_v27  ;;  %15432 = vmatprep.mubr.msk.f32.mxu1 %vm388_vm0, %v13076_v37  ;;  %v13221_v27 = vld [vmem:[%s22148_s3 + $0xf8] sm:$0xff]  ;;  %v13188_v37 = vld [vmem:[%s18710_s15 + $0x6b] sm:$0xff] }
 0x247   : >> { %15446 = vmatmul.mubr.msk.f32.gmra.mxu0 %vm388_vm0, %v13091_v38  ;;  %15453 = vmatprep.subr.mxu1 %v13108_v39  ;;  %v13203_v38 = vld [vmem:[%s18710_s15 + $0x74] sm:$0xff] }
 0x248   : >> { %15454 = vmatpush3.msra.mxu1 %v13108_v39  ;;  %15448 = vmatprep.mubr.msk.f32.mxu0 %vm388_vm0, %v13092_v40  ;;  %v13220_v39 = vld [vmem:[%s22148_s3 + $0xf0] sm:$0xff]  ;;  %v13204_v40 = vld [vmem:[%s18710_s15 + $0x7c] sm:$0xff] }
 0x249   : >> { %15433 = vmatmul.mubr.msk.f32.gmra.mxu1 %vm388_vm0, %v13077_v41  ;;  %15467 = vmatpush3.msra.mxu0 %v13122_v36  ;;  %v13234_v36 = vld [vmem:[%s22148_s3 + $0x100] sm:$0xff]  ;;  %v13189_v41 = vld [vmem:[%s18710_s15 + $0x73] sm:$0xff] }
 0x24a   : >> { %15435 = vmatprep.mubr.msk.f32.mxu1 %vm388_vm0, %v13078_v26  ;;  %15477 = vmatprep.subr.mxu1 %v13137_v42  ;;  %v13190_v26 = vld [vmem:[%s18710_s15 + $0x7b] sm:$0xff] }
 0x24b   : >> { %15449 = vmatmul.mubr.msk.f32.gmra.mxu0 %vm388_vm0, %v13093_v43  ;;  %15490 = vmatprep.subr.mxu0 %v13151_v44  ;;  %v13205_v43 = vld [vmem:[%s18710_s15 + $0x84] sm:$0xf] }
 0x24c   : >> { %15468 = vmatprep.mubr.msk.f32.mxu0 %vm388_vm0, %v13116_v45  ;;  %v13228_v45 = vld [vmem:[%s18710_s15 + $0x85] sm:$0xff] }
 0x24d   : >> { %15436 = vmatmul.mubr.msk.f32.gmra.mxu1 %vm388_vm0, %v13079_v46  ;;  %v13191_v46 = vld [vmem:[%s18710_s15 + $0x83] sm:$0xf] }
 0x24e   : >> { %15455 = vmatprep.mubr.msk.f32.mxu1 %vm388_vm0, %v13102_v47  ;;  %v13214_v47 = vld [vmem:[%s18710_s15 + $0x84] sm:$0xff] }
 0x24f   : >> { %15469 = vmatmul.mubr.msk.f32.vlgmr.msra.gmra.mxu0 %vm388_vm0, %v13117_v48  ;;  %v13229_v48 = vld [vmem:[%s18710_s15 + $0x8d] sm:$0xff] }
 0x250   : >> { %15491 = vmatpush3.msra.mxu0 %v13151_v44  ;;  %15471 = vmatprep.mubr.msk.f32.mxu0 %vm388_vm0, %v13118_v49  ;;  %v13263_v44 = vld [vmem:[%s22148_s3 + $0x128] sm:$0xff]  ;;  %v13230_v49 = vld [vmem:[%s18710_s15 + $0x95] sm:$0xff] }
 0x251   : >> { %15456 = vmatmul.mubr.msk.f32.vlgmr.msra.gmra.mxu1 %vm388_vm0, %v13103_v50  ;;  %15492 = vmatprep.subr.mxu0 %v13150_v51  ;;  %v13215_v50 = vld [vmem:[%s18710_s15 + $0x8c] sm:$0xff] }
 0x252   : >> { %15478 = vmatpush3.msra.mxu1 %v13137_v42  ;;  %15458 = vmatprep.mubr.msk.f32.mxu1 %vm388_vm0, %v13104_v52  ;;  %v13249_v42 = vld [vmem:[%s22148_s3 + $0x118] sm:$0xff] }
 0x253   : >> { %15472 = vmatmul.mubr.msk.f32.gmra.mxu0 %vm388_vm0, %v13119_v53  ;;  %15479 = vmatprep.subr.mxu1 %v13136_v54  ;;  %v13216_v52 = vld [vmem:[%s18710_s15 + $0x94] sm:$0xff]  ;;  %v13231_v53 = vld [vmem:[%s18710_s15 + $0x9d] sm:$0xff] }
 0x254   : >> { %15480 = vmatpush3.msra.mxu1 %v13136_v54  ;;  %15474 = vmatprep.mubr.msk.f32.mxu0 %vm388_vm0, %v13120_v55  ;;  %v13248_v54 = vld [vmem:[%s22148_s3 + $0x110] sm:$0xff]  ;;  %v13232_v55 = vld [vmem:[%s18710_s15 + $0xa5] sm:$0xff] }
 0x255   : >> { %15459 = vmatmul.mubr.msk.f32.gmra.mxu1 %vm388_vm0, %v13105_v56  ;;  %15493 = vmatpush3.msra.mxu0 %v13150_v51  ;;  %v13262_v51 = vld [vmem:[%s22148_s3 + $0x120] sm:$0xff] }
 0x256   : >> { %15461 = vmatprep.mubr.msk.f32.mxu1 %vm388_vm0, %v13106_v57  ;;  %15503 = vmatprep.subr.mxu1 %v13165_v58  ;;  %v13217_v56 = vld [vmem:[%s18710_s15 + $0x9c] sm:$0xff]  ;;  %v13218_v57 = vld [vmem:[%s18710_s15 + $0xa4] sm:$0xff] }
 0x257   : >> { %15475 = vmatmul.mubr.msk.f32.gmra.mxu0 %vm388_vm0, %v13121_v59  ;;  %15516 = vmatprep.subr.mxu0 %v13179_v60  ;;  %v13233_v59 = vld [vmem:[%s18710_s15 + $0xad] sm:$0xf] }
 0x258   : >> { %15494 = vmatprep.mubr.msk.f32.mxu0 %vm388_vm0, %v13144_v61  ;;  %v13256_v61 = vld [vmem:[%s18710_s15 + $0x87] sm:$0xff] }
 0x259   : >> { %15462 = vmatmul.mubr.msk.f32.gmra.mxu1 %vm388_vm0, %v13107_v62  ;;  %v13219_v62 = vld [vmem:[%s18710_s15 + $0xac] sm:$0xf] }
 0x25a   : >> { %15481 = vmatprep.mubr.msk.f32.mxu1 %vm388_vm0, %v13130_v63  ;;  %v13242_v63 = vld [vmem:[%s18710_s15 + $0x86] sm:$0xff] }
 0x25b   : >> { %15495 = vmatmul.mubr.msk.f32.vlgmr.msra.gmra.mxu0 %vm388_vm0, %v13145_v0  ;;  %v13257_v0 = vld [vmem:[%s18710_s15 + $0x8f] sm:$0xff] }
 0x25c   : >> { %15517 = vmatpush3.msra.mxu0 %v13179_v60  ;;  %15497 = vmatprep.mubr.msk.f32.mxu0 %vm388_vm0, %v13146_v1  ;;  %v13291_v60 = vld [vmem:[%s22148_s3 + $0x148] sm:$0xff]  ;;  %v13258_v1 = vld [vmem:[%s18710_s15 + $0x97] sm:$0xff] }
 0x25d   : >> { %15482 = vmatmul.mubr.msk.f32.vlgmr.msra.gmra.mxu1 %vm388_vm0, %v13131_v2  ;;  %15518 = vmatprep.subr.mxu0 %v13178_v3  ;;  %v13243_v2 = vld [vmem:[%s18710_s15 + $0x8e] sm:$0xff] }
 0x25e   : >> { %15504 = vmatpush3.msra.mxu1 %v13165_v58  ;;  %15484 = vmatprep.mubr.msk.f32.mxu1 %vm388_vm0, %v13132_v4  ;;  %v13277_v58 = vld [vmem:[%s22148_s3 + $0x138] sm:$0xff] }
 0x25f   : >> { %15498 = vmatmul.mubr.msk.f32.gmra.mxu0 %vm388_vm0, %v13147_v5  ;;  %15505 = vmatprep.subr.mxu1 %v13164_v6  ;;  %v13244_v4 = vld [vmem:[%s18710_s15 + $0x96] sm:$0xff]  ;;  %v13259_v5 = vld [vmem:[%s18710_s15 + $0x9f] sm:$0xff] }
 0x260   : >> { %15506 = vmatpush3.msra.mxu1 %v13164_v6  ;;  %15500 = vmatprep.mubr.msk.f32.mxu0 %vm388_vm0, %v13148_v7  ;;  %v13276_v6 = vld [vmem:[%s22148_s3 + $0x130] sm:$0xff]  ;;  %v13260_v7 = vld [vmem:[%s18710_s15 + $0xa7] sm:$0xff] }
 0x261   : >> { %15485 = vmatmul.mubr.msk.f32.gmra.mxu1 %vm388_vm0, %v13133_v8  ;;  %15519 = vmatpush3.msra.mxu0 %v13178_v3  ;;  %v13290_v3 = vld [vmem:[%s22148_s3 + $0x140] sm:$0xff] }
 0x262   : >> { %15487 = vmatprep.mubr.msk.f32.mxu1 %vm388_vm0, %v13134_v9  ;;  %15529 = vmatprep.subr.mxu1 %v13193_v10  ;;  %v13245_v8 = vld [vmem:[%s18710_s15 + $0x9e] sm:$0xff]  ;;  %v13246_v9 = vld [vmem:[%s18710_s15 + $0xa6] sm:$0xff] }
 0x263   : >> { %15501 = vmatmul.mubr.msk.f32.gmra.mxu0 %vm388_vm0, %v13149_v11  ;;  %15542 = vmatprep.subr.mxu0 %v13207_v12  ;;  %v13261_v11 = vld [vmem:[%s18710_s15 + $0xaf] sm:$0xf] }
 0x264   : >> { %15520 = vmatprep.mubr.msk.f32.mxu0 %vm388_vm0, %v13172_v13  ;;  %v13284_v13 = vld [vmem:[%s18710_s15 + $0xb0] sm:$0xff] }
 0x265   : >> { %15488 = vmatmul.mubr.msk.f32.gmra.mxu1 %vm388_vm0, %v13135_v14  ;;  %v13247_v14 = vld [vmem:[%s18710_s15 + $0xae] sm:$0xf] }
 0x266   : >> { %15507 = vmatprep.mubr.msk.f32.mxu1 %vm388_vm0, %v13158_v15  ;;  %v13270_v15 = vld [vmem:[%s18710_s15 + $0x88] sm:$0xff] }
 0x267   : >> { %15521 = vmatmul.mubr.msk.f32.vlgmr.msra.gmra.mxu0 %vm388_vm0, %v13173_v16  ;;  %v13285_v16 = vld [vmem:[%s18710_s15 + $0xb8] sm:$0xff] }
 0x268   : >> { %15543 = vmatpush3.msra.mxu0 %v13207_v12  ;;  %15523 = vmatprep.mubr.msk.f32.mxu0 %vm388_vm0, %v13174_v17  ;;  %v13319_v12 = vld [vmem:[%s22148_s3 + $0x168] sm:$0xff]  ;;  %v13286_v17 = vld [vmem:[%s18710_s15 + $0xc0] sm:$0xff] }
 0x269   : >> { %15508 = vmatmul.mubr.msk.f32.vlgmr.msra.gmra.mxu1 %vm388_vm0, %v13159_v18  ;;  %15544 = vmatprep.subr.mxu0 %v13206_v19  ;;  %v13271_v18 = vld [vmem:[%s18710_s15 + $0x90] sm:$0xff] }
 0x26a   : >> { %15530 = vmatpush3.msra.mxu1 %v13193_v10  ;;  %15510 = vmatprep.mubr.msk.f32.mxu1 %vm388_vm0, %v13160_v20  ;;  %v13305_v10 = vld [vmem:[%s22148_s3 + $0x158] sm:$0xff] }
 0x26b   : >> { %15524 = vmatmul.mubr.msk.f32.gmra.mxu0 %vm388_vm0, %v13175_v21  ;;  %15531 = vmatprep.subr.mxu1 %v13192_v22  ;;  %v13272_v20 = vld [vmem:[%s18710_s15 + $0x98] sm:$0xff]  ;;  %v13287_v21 = vld [vmem:[%s18710_s15 + $0xc8] sm:$0xff] }
 0x26c   : >> { %15532 = vmatpush3.msra.mxu1 %v13192_v22  ;;  %15526 = vmatprep.mubr.msk.f32.mxu0 %vm388_vm0, %v13176_v23  ;;  %v13304_v22 = vld [vmem:[%s22148_s3 + $0x150] sm:$0xff] }
 0x26d   : >> { %15511 = vmatmul.mubr.msk.f32.gmra.mxu1 %vm388_vm0, %v13161_v24  ;;  %15545 = vmatpush3.msra.mxu0 %v13206_v19  ;;  %v13318_v19 = vld [vmem:[%s22148_s3 + $0x160] sm:$0xff]  ;;  %v13288_v23 = vld [vmem:[%s18710_s15 + $0xd0] sm:$0xff] }
 0x26e   : >> { %15513 = vmatprep.mubr.msk.f32.mxu1 %vm388_vm0, %v13162_v25  ;;  %15555 = vmatprep.subr.mxu1 %v13221_v27  ;;  %v13273_v24 = vld [vmem:[%s18710_s15 + $0xa0] sm:$0xff]  ;;  %v13274_v25 = vld [vmem:[%s18710_s15 + $0xa8] sm:$0xff] }
 0x26f   : >> { %15527 = vmatmul.mubr.msk.f32.gmra.mxu0 %vm388_vm0, %v13177_v28  ;;  %15568 = vmatprep.subr.mxu0 %v13235_v29  ;;  %v13289_v28 = vld [vmem:[%s18710_s15 + $0xd8] sm:$0xf] }
 0x270   : >> { %15546 = vmatprep.mubr.msk.f32.mxu0 %vm388_vm0, %v13200_v30  ;;  %v13312_v30 = vld [vmem:[%s18710_s15 + $0xb2] sm:$0xff] }
 0x271   : >> { %15514 = vmatmul.mubr.msk.f32.gmra.mxu1 %vm388_vm0, %v13163_v31  ;;  %v13275_v31 = vld [vmem:[%s18710_s15 + $0xb0] sm:$0xf] }
 0x272   : >> { %15533 = vmatprep.mubr.msk.f32.mxu1 %vm388_vm0, %v13186_v32  ;;  %v13298_v32 = vld [vmem:[%s18710_s15 + $0xb1] sm:$0xff] }
 0x273   : >> { %15547 = vmatmul.mubr.msk.f32.vlgmr.msra.gmra.mxu0 %vm388_vm0, %v13201_v33  ;;  %v13313_v33 = vld [vmem:[%s18710_s15 + $0xba] sm:$0xff] }
 0x274   : >> { %15569 = vmatpush3.msra.mxu0 %v13235_v29  ;;  %15549 = vmatprep.mubr.msk.f32.mxu0 %vm388_vm0, %v13202_v34  ;;  %v13347_v29 = vld [vmem:[%s22148_s3 + $0x188] sm:$0xff] }
 0x275   : >> { %15534 = vmatmul.mubr.msk.f32.vlgmr.msra.gmra.mxu1 %vm388_vm0, %v13187_v35  ;;  %15570 = vmatprep.subr.mxu0 %v13234_v36  ;;  %v13314_v34 = vld [vmem:[%s18710_s15 + $0xc2] sm:$0xff]  ;;  %v13299_v35 = vld [vmem:[%s18710_s15 + $0xb9] sm:$0xff] }
 0x276   : >> { %15556 = vmatpush3.msra.mxu1 %v13221_v27  ;;  %15536 = vmatprep.mubr.msk.f32.mxu1 %vm388_vm0, %v13188_v37  ;;  %v13333_v27 = vld [vmem:[%s22148_s3 + $0x178] sm:$0xff]  ;;  %v13300_v37 = vld [vmem:[%s18710_s15 + $0xc1] sm:$0xff] }
 0x277   : >> { %15550 = vmatmul.mubr.msk.f32.gmra.mxu0 %vm388_vm0, %v13203_v38  ;;  %15557 = vmatprep.subr.mxu1 %v13220_v39  ;;  %v13315_v38 = vld [vmem:[%s18710_s15 + $0xca] sm:$0xff] }
 0x278   : >> { %15558 = vmatpush3.msra.mxu1 %v13220_v39  ;;  %15552 = vmatprep.mubr.msk.f32.mxu0 %vm388_vm0, %v13204_v40  ;;  %v13332_v39 = vld [vmem:[%s22148_s3 + $0x170] sm:$0xff] }
 0x279   : >> { %15537 = vmatmul.mubr.msk.f32.gmra.mxu1 %vm388_vm0, %v13189_v41  ;;  %15571 = vmatpush3.msra.mxu0 %v13234_v36  ;;  %v13346_v36 = vld [vmem:[%s22148_s3 + $0x180] sm:$0xff]  ;;  %v13316_v40 = vld [vmem:[%s18710_s15 + $0xd2] sm:$0xff]  ;;  %v13301_v41 = vld [vmem:[%s18710_s15 + $0xc9] sm:$0xff] }
 0x27a   : >> { %15539 = vmatprep.mubr.msk.f32.mxu1 %vm388_vm0, %v13190_v26  ;;  %15581 = vmatprep.subr.mxu1 %v13249_v42  ;;  %v13302_v26 = vld [vmem:[%s18710_s15 + $0xd1] sm:$0xff] }
 0x27b   : >> { %15553 = vmatmul.mubr.msk.f32.gmra.mxu0 %vm388_vm0, %v13205_v43  ;;  %15594 = vmatprep.subr.mxu0 %v13263_v44  ;;  %v13340_v43 = vld [vmem:[%s18710_s15 + $0xb4] sm:$0xff] }
 0x27c   : >> { %15572 = vmatprep.mubr.msk.f32.mxu0 %vm388_vm0, %v13228_v45  ;;  %v13326_v45 = vld [vmem:[%s18710_s15 + $0xb3] sm:$0xff] }
 0x27d   : >> { %15540 = vmatmul.mubr.msk.f32.gmra.mxu1 %vm388_vm0, %v13191_v46  ;;  %v13341_v46 = vld [vmem:[%s18710_s15 + $0xbc] sm:$0xff] }
 0x27e   : >> { %15559 = vmatprep.mubr.msk.f32.mxu1 %vm388_vm0, %v13214_v47  ;;  %v13342_v47 = vld [vmem:[%s18710_s15 + $0xc4] sm:$0xff] }
 0x27f   : >> { %15573 = vmatmul.mubr.msk.f32.vlgmr.msra.gmra.mxu0 %vm388_vm0, %v13229_v48  ;;  %v13327_v48 = vld [vmem:[%s18710_s15 + $0xbb] sm:$0xff] }
 0x280   : >> { %15595 = vmatpush3.msra.mxu0 %v13263_v44  ;;  %15575 = vmatprep.mubr.msk.f32.mxu0 %vm388_vm0, %v13230_v49  ;;  %v13303_v44 = vld [vmem:[%s18710_s15 + $0xd9] sm:$0xf]  ;;  %v13328_v49 = vld [vmem:[%s18710_s15 + $0xc3] sm:$0xff] }
 0x281   : >> { %15560 = vmatmul.mubr.msk.f32.vlgmr.msra.gmra.mxu1 %vm388_vm0, %v13215_v50  ;;  %15596 = vmatprep.subr.mxu0 %v13262_v51  ;;  %v13343_v50 = vld [vmem:[%s18710_s15 + $0xcc] sm:$0xff] }
 0x282   : >> { %15582 = vmatpush3.msra.mxu1 %v13249_v42  ;;  %15562 = vmatprep.mubr.msk.f32.mxu1 %vm388_vm0, %v13216_v52  ;;  %v13317_v42 = vld [vmem:[%s18710_s15 + $0xda] sm:$0xf]  ;;  %v13329_v52 = vld [vmem:[%s18710_s15 + $0xcb] sm:$0xff] }
 0x283   : >> { %15576 = vmatmul.mubr.msk.f32.gmra.mxu0 %vm388_vm0, %v13231_v53  ;;  %15583 = vmatprep.subr.mxu1 %v13248_v54  ;;  %v13330_v53 = vld [vmem:[%s18710_s15 + $0xd3] sm:$0xff] }
 0x284   : >> { %15584 = vmatpush3.msra.mxu1 %v13248_v54  ;;  %15578 = vmatprep.mubr.msk.f32.mxu0 %vm388_vm0, %v13232_v55  ;;  %v13345_v54 = vld [vmem:[%s18710_s15 + $0xdc] sm:$0xf] }
 0x285   : >> { %15563 = vmatmul.mubr.msk.f32.gmra.mxu1 %vm388_vm0, %v13217_v56  ;;  %15597 = vmatpush3.msra.mxu0 %v13262_v51  ;;  %v13344_v51 = vld [vmem:[%s18710_s15 + $0xd4] sm:$0xff] }
 0x286   : >> { %15565 = vmatprep.mubr.msk.f32.mxu1 %vm388_vm0, %v13218_v57  ;;  %15607 = vmatprep.subr.mxu1 %v13277_v58  ;;  %v13331_v55 = vld [vmem:[%s18710_s15 + $0xdb] sm:$0xf] }
 0x287   : >> { %15579 = vmatmul.mubr.msk.f32.gmra.mxu0 %vm388_vm0, %v13233_v59  ;;  %15620 = vmatprep.subr.mxu0 %v13291_v60 }
 0x288   : >> { %15598 = vmatprep.mubr.msk.f32.mxu0 %vm388_vm0, %v13256_v61 }
 0x289   : >> { %15566 = vmatmul.mubr.msk.f32.gmra.mxu1 %vm388_vm0, %v13219_v62 }
 0x28a   : >> { %15585 = vmatprep.mubr.msk.f32.mxu1 %vm388_vm0, %v13242_v63 }
 0x28b   : >> { %15599 = vmatmul.mubr.msk.f32.vlgmr.msra.gmra.mxu0 %vm388_vm0, %v13257_v0 }
 0x28c   : >> { %15621 = vmatpush3.msra.mxu0 %v13291_v60  ;;  %15601 = vmatprep.mubr.msk.f32.mxu0 %vm388_vm0, %v13258_v1 }
 0x28d   : >> { %15586 = vmatmul.mubr.msk.f32.vlgmr.msra.gmra.mxu1 %vm388_vm0, %v13243_v2  ;;  %15622 = vmatprep.subr.mxu0 %v13290_v3 }
 0x28e   : >> { %15608 = vmatpush3.msra.mxu1 %v13277_v58  ;;  %15588 = vmatprep.mubr.msk.f32.mxu1 %vm388_vm0, %v13244_v4 }
 0x28f   : >> { %15602 = vmatmul.mubr.msk.f32.gmra.mxu0 %vm388_vm0, %v13259_v5  ;;  %15609 = vmatprep.subr.mxu1 %v13276_v6 }
 0x290   : >> { %15610 = vmatpush3.msra.mxu1 %v13276_v6  ;;  %15604 = vmatprep.mubr.msk.f32.mxu0 %vm388_vm0, %v13260_v7 }
 0x291   : >> { %15589 = vmatmul.mubr.msk.f32.gmra.mxu1 %vm388_vm0, %v13245_v8  ;;  %15623 = vmatpush3.msra.mxu0 %v13290_v3 }
 0x292   : >> { %15591 = vmatprep.mubr.msk.f32.mxu1 %vm388_vm0, %v13246_v9  ;;  %15633 = vmatprep.subr.mxu1 %v13305_v10 }
 0x293   : >> { %15605 = vmatmul.mubr.msk.f32.gmra.mxu0 %vm388_vm0, %v13261_v11  ;;  %15646 = vmatprep.subr.mxu0 %v13319_v12 }
 0x294   : >> { %15624 = vmatprep.mubr.msk.f32.mxu0 %vm388_vm0, %v13284_v13 }
 0x295   : >> { %15592 = vmatmul.mubr.msk.f32.gmra.mxu1 %vm388_vm0, %v13247_v14 }
 0x296   : >> { %15611 = vmatprep.mubr.msk.f32.mxu1 %vm388_vm0, %v13270_v15 }
 0x297   : >> { %15625 = vmatmul.mubr.msk.f32.vlgmr.msra.gmra.mxu0 %vm388_vm0, %v13285_v16 }
 0x298   : >> { %15647 = vmatpush3.msra.mxu0 %v13319_v12  ;;  %15627 = vmatprep.mubr.msk.f32.mxu0 %vm388_vm0, %v13286_v17 }
 0x299   : >> { %15612 = vmatmul.mubr.msk.f32.vlgmr.msra.gmra.mxu1 %vm388_vm0, %v13271_v18  ;;  %15648 = vmatprep.subr.mxu0 %v13318_v19 }
 0x29a   : >> { %15634 = vmatpush3.msra.mxu1 %v13305_v10  ;;  %15614 = vmatprep.mubr.msk.f32.mxu1 %vm388_vm0, %v13272_v20 }
 0x29b   : >> { %15628 = vmatmul.mubr.msk.f32.gmra.mxu0 %vm388_vm0, %v13287_v21  ;;  %15635 = vmatprep.subr.mxu1 %v13304_v22 }
 0x29c   : >> { %15636 = vmatpush3.msra.mxu1 %v13304_v22  ;;  %15630 = vmatprep.mubr.msk.f32.mxu0 %vm388_vm0, %v13288_v23 }
 0x29d   : >> { %15615 = vmatmul.mubr.msk.f32.gmra.mxu1 %vm388_vm0, %v13273_v24  ;;  %15649 = vmatpush3.msra.mxu0 %v13318_v19 }
 0x29e   : >> { %15617 = vmatprep.mubr.msk.f32.mxu1 %vm388_vm0, %v13274_v25  ;;  %15659 = vmatprep.subr.mxu1 %v13333_v27 }
 0x29f   : >> { %15631 = vmatmul.mubr.msk.f32.gmra.mxu0 %vm388_vm0, %v13289_v28  ;;  %15672 = vmatprep.subr.mxu0 %v13347_v29 }
 0x2a0   : >> { %15650 = vmatprep.mubr.msk.f32.mxu0 %vm388_vm0, %v13312_v30 }
 0x2a1   : >> { %15618 = vmatmul.mubr.msk.f32.gmra.mxu1 %vm388_vm0, %v13275_v31 }
 0x2a2   : >> { %15637 = vmatprep.mubr.msk.f32.mxu1 %vm388_vm0, %v13298_v32 }
 0x2a3   : >> { %15651 = vmatmul.mubr.msk.f32.vlgmr.msra.gmra.mxu0 %vm388_vm0, %v13313_v33 }
 0x2a4   : >> { %15673 = vmatpush3.msra.mxu0 %v13347_v29  ;;  %15653 = vmatprep.mubr.msk.f32.mxu0 %vm388_vm0, %v13314_v34 }
 0x2a5   : >> { %15638 = vmatmul.mubr.msk.f32.vlgmr.msra.gmra.mxu1 %vm388_vm0, %v13299_v35  ;;  %15674 = vmatprep.subr.mxu0 %v13346_v36 }
 0x2a6   : >> { %15660 = vmatpush3.msra.mxu1 %v13333_v27  ;;  %15640 = vmatprep.mubr.msk.f32.mxu1 %vm388_vm0, %v13300_v37 }
 0x2a7   : >> { %15654 = vmatmul.mubr.msk.f32.gmra.mxu0 %vm388_vm0, %v13315_v38  ;;  %15661 = vmatprep.subr.mxu1 %v13332_v39 }
 0x2a8   : >> { %15662 = vmatpush3.msra.mxu1 %v13332_v39  ;;  %15656 = vmatprep.mubr.msk.f32.mxu0 %vm388_vm0, %v13316_v40 }
 0x2a9   : >> { %15641 = vmatmul.mubr.msk.f32.gmra.mxu1 %vm388_vm0, %v13301_v41  ;;  %15675 = vmatpush3.msra.mxu0 %v13346_v36 }
 0x2aa   : >> { %15643 = vmatprep.mubr.msk.f32.mxu1 %vm388_vm0, %v13302_v26 }
 0x2ab   : >> { %15657 = vmatmul.mubr.msk.f32.gmra.mxu0 %vm388_vm0, %v13317_v42 }
 0x2ac   : >> { %15676 = vmatprep.mubr.msk.f32.mxu0 %vm388_vm0, %v13340_v43 }
 0x2ad   : >> { %15644 = vmatmul.mubr.msk.f32.gmra.mxu1 %vm388_vm0, %v13303_v44 }
 0x2ae   : >> { %15663 = vmatprep.mubr.msk.f32.mxu1 %vm388_vm0, %v13326_v45 }
 0x2af   : >> { %15677 = vmatmul.mubr.msk.f32.vlgmr.msra.gmra.mxu0 %vm388_vm0, %v13341_v46 }
 0x2b0   : >> { %15679 = vmatprep.mubr.msk.f32.mxu0 %vm388_vm0, %v13342_v47 }
 0x2b1   : >> { %15664 = vmatmul.mubr.msk.f32.vlgmr.msra.gmra.mxu1 %vm388_vm0, %v13327_v48 }
 0x2b2   : >> { %15666 = vmatprep.mubr.msk.f32.mxu1 %vm388_vm0, %v13328_v49 }
 0x2b3   : >> { %15680 = vmatmul.mubr.msk.f32.gmra.mxu0 %vm388_vm0, %v13343_v50 }
 0x2b4   : >> { %15682 = vmatprep.mubr.msk.f32.mxu0 %vm388_vm0, %v13344_v51 }
 0x2b5   : >> { %15667 = vmatmul.mubr.msk.f32.gmra.mxu1 %vm388_vm0, %v13329_v52 }
 0x2b6   : >> { %15669 = vmatprep.mubr.msk.f32.mxu1 %vm388_vm0, %v13330_v53 }
 0x2b7   : >> { %15683 = vmatmul.mubr.msk.f32.gmra.mxu0 %vm388_vm0, %v13345_v54 }
 0x2b9   : >> { %15670 = vmatmul.mubr.msk.f32.gmra.mxu1 %vm388_vm0, %v13331_v55 }
 0x2e5   : >> { %v15369_v56 = vpop.f32.mrf.mxu1  ;;  %v15366_v57 = vpop.f32.mrf.mxu0 }
 0x2e7   : >> { %v1412_v58 = vpop.f32.mrf.mxu1  ;;  %v1402_v59 = vpop.f32.mrf.mxu0 }
 0x2e9   : >> { %v15372_v60 = vpop.f32.mrf.mxu1 }
 0x2eb   : >> { %v1422_v61 = vpop.f32.mrf.mxu1  ;;  %v15392_v62 = vpop.f32.mrf.mxu0 }
 0x2ed   : >> { %v15379_v63 = vpop.f32.mrf.mxu1  ;;  %v1637_v0 = vpop.f32.mrf.mxu0 }
 0x2ee   : >> { %v1520_v1 = vadd.f32 %v15379_v63, %v15366_v57 }
 0x2ef   : >> { %v1514_v2 = vpop.f32.mrf.mxu1  ;;  %v15395_v3 = vpop.f32.mrf.mxu0 }
 0x2f0   : >> { %v1666_v4 = vadd.f32 %v15392_v62, %v1520_v1  ;;  %v1515_v5 = vadd.f32 %v1514_v2, %v1402_v59 }
 0x2f1   : >> { %v15382_v6 = vpop.f32.mrf.mxu1  ;;  %v1647_v7 = vpop.f32.mrf.mxu0 }
 0x2f2   : >> { %v1665_v8 = vadd.f32 %v1637_v0, %v1515_v5  ;;  %v1530_v9 = vadd.f32 %v15382_v6, %v15369_v56 }
 0x2f3   : >> { %v1524_v10 = vpop.f32.mrf.mxu1  ;;  %v15398_v11 = vpop.f32.mrf.mxu0 }
 0x2f4   : >> { %v1668_v12 = vadd.f32 %v15395_v3, %v1530_v9  ;;  %v1525_v13 = vadd.f32 %v1524_v10, %v1412_v58 }
 0x2f5   : >> { %v15385_v14 = vpop.f32.mrf.mxu1  ;;  %v1657_v15 = vpop.f32.mrf.mxu0 }
 0x2f6   : >> { %v1667_v16 = vadd.f32 %v1647_v7, %v1525_v13 }
 0x2f7   : >> { %v1534_v17 = vpop.f32.mrf.mxu1  ;;  %v15418_v18 = vpop.f32.mrf.mxu0 }
 0x2f8   : >> { %v1535_v19 = vadd.f32 %v1534_v17, %v1422_v61 }
 0x2f9   : >> { %v15405_v20 = vpop.f32.mrf.mxu1  ;;  %v1893_v21 = vpop.f32.mrf.mxu0 }
 0x2fa   : >> { %v1669_v22 = vadd.f32 %v1657_v15, %v1535_v19  ;;  %v1794_v23 = vadd.f32 %v15405_v20, %v1666_v4 }
 0x2fb   : >> { %v1765_v24 = vpop.f32.mrf.mxu1  ;;  %v15421_v25 = vpop.f32.mrf.mxu0 }
 0x2fc   : >> { %v1922_v27 = vadd.f32 %v15418_v18, %v1794_v23  ;;  %v1793_v28 = vadd.f32 %v1765_v24, %v1665_v8 }
 0x2fd   : >> { %v15408_v29 = vpop.f32.mrf.mxu1  ;;  %v1903_v30 = vpop.f32.mrf.mxu0 }
 0x2fe   : >> { %v1921_v31 = vadd.f32 %v1893_v21, %v1793_v28  ;;  %v1796_v32 = vadd.f32 %v15408_v29, %v1668_v12 }
 0x2ff   : >> { %v1775_v33 = vpop.f32.mrf.mxu1  ;;  %v15424_v34 = vpop.f32.mrf.mxu0 }
 0x300   : >> { %v1924_v35 = vadd.f32 %v15421_v25, %v1796_v32  ;;  %v1795_v36 = vadd.f32 %v1775_v33, %v1667_v16 }
 0x301   : >> { %v15411_v37 = vpop.f32.mrf.mxu1  ;;  %v1913_v38 = vpop.f32.mrf.mxu0 }
 0x302   : >> { %v1923_v39 = vadd.f32 %v1903_v30, %v1795_v36 }
 0x303   : >> { %v1785_v40 = vpop.f32.mrf.mxu1  ;;  %v15444_v41 = vpop.f32.mrf.mxu0 }
 0x304   : >> { %v1797_v26 = vadd.f32 %v1785_v40, %v1669_v22 }
 0x305   : >> { %v15431_v42 = vpop.f32.mrf.mxu1  ;;  %v2150_v43 = vpop.f32.mrf.mxu0 }
 0x306   : >> { %v1925_v44 = vadd.f32 %v1913_v38, %v1797_v26  ;;  %v2051_v45 = vadd.f32 %v15431_v42, %v1922_v27 }
 0x307   : >> { %v2022_v46 = vpop.f32.mrf.mxu1  ;;  %v15447_v47 = vpop.f32.mrf.mxu0 }
 0x308   : >> { %v2179_v48 = vadd.f32 %v15444_v41, %v2051_v45  ;;  %v2050_v49 = vadd.f32 %v2022_v46, %v1921_v31 }
 0x309   : >> { %v15434_v50 = vpop.f32.mrf.mxu1  ;;  %v2160_v51 = vpop.f32.mrf.mxu0 }
 0x30a   : >> { %v2178_v52 = vadd.f32 %v2150_v43, %v2050_v49  ;;  %v2053_v53 = vadd.f32 %v15434_v50, %v1924_v35 }
 0x30b   : >> { %v2032_v54 = vpop.f32.mrf.mxu1  ;;  %v15450_v55 = vpop.f32.mrf.mxu0 }
 0x30c   : >> { %v2181_v56 = vadd.f32 %v15447_v47, %v2053_v53  ;;  %v2052_v57 = vadd.f32 %v2032_v54, %v1923_v39 }
 0x30d   : >> { %v15437_v58 = vpop.f32.mrf.mxu1  ;;  %v2170_v59 = vpop.f32.mrf.mxu0 }
 0x30e   : >> { %v2180_v60 = vadd.f32 %v2160_v51, %v2052_v57 }
 0x30f   : >> { %v2042_v61 = vpop.f32.mrf.mxu1  ;;  %v15470_v62 = vpop.f32.mrf.mxu0 }
 0x310   : >> { %v2054_v63 = vadd.f32 %v2042_v61, %v1925_v44 }
 0x311   : >> { %v15457_v0 = vpop.f32.mrf.mxu1  ;;  %v2406_v1 = vpop.f32.mrf.mxu0 }
 0x312   : >> { %v2182_v2 = vadd.f32 %v2170_v59, %v2054_v63  ;;  %v2307_v3 = vadd.f32 %v15457_v0, %v2179_v48 }
 0x313   : >> { %v2278_v4 = vpop.f32.mrf.mxu1  ;;  %v15473_v5 = vpop.f32.mrf.mxu0 }
 0x314   : >> { %v2435_v6 = vadd.f32 %v15470_v62, %v2307_v3  ;;  %v2306_v7 = vadd.f32 %v2278_v4, %v2178_v52 }
 0x315   : >> { %v15460_v8 = vpop.f32.mrf.mxu1  ;;  %v2416_v9 = vpop.f32.mrf.mxu0 }
 0x316   : >> { %v2434_v10 = vadd.f32 %v2406_v1, %v2306_v7  ;;  %v2309_v11 = vadd.f32 %v15460_v8, %v2181_v56 }
 0x317   : >> { %v2288_v12 = vpop.f32.mrf.mxu1  ;;  %v15476_v13 = vpop.f32.mrf.mxu0 }
 0x318   : >> { %v2437_v14 = vadd.f32 %v15473_v5, %v2309_v11  ;;  %v2308_v15 = vadd.f32 %v2288_v12, %v2180_v60 }
 0x319   : >> { %v15463_v16 = vpop.f32.mrf.mxu1  ;;  %v2426_v17 = vpop.f32.mrf.mxu0 }
 0x31a   : >> { %v2436_v18 = vadd.f32 %v2416_v9, %v2308_v15 }
 0x31b   : >> { %v2298_v19 = vpop.f32.mrf.mxu1  ;;  %v15496_v20 = vpop.f32.mrf.mxu0 }
 0x31c   : >> { %v2310_v21 = vadd.f32 %v2298_v19, %v2182_v2 }
 0x31d   : >> { %v15483_v22 = vpop.f32.mrf.mxu1  ;;  %v2663_v23 = vpop.f32.mrf.mxu0 }
 0x31e   : >> { %v19150_v24 = vadd.f32 %v2426_v17, %v2310_v21  ;;  %v2563_v3 = vadd.f32 %v15483_v22, %v2435_v6 }
 0x31f   : >> { %v2534_v25 = vpop.f32.mrf.mxu1  ;;  %v15499_v27 = vpop.f32.mrf.mxu0 }
 0x320   : >> { %v2562_v7 = vadd.f32 %v2534_v25, %v2434_v10  ;;  %v2692_v11 = vadd.f32 %v15496_v20, %v2563_v3 }
 0x321   : >> { %v15486_v28 = vpop.f32.mrf.mxu1  ;;  %v2673_v29 = vpop.f32.mrf.mxu0 }
 0x322   : >> { %v2565_v12 = vadd.f32 %v15486_v28, %v2437_v14  ;;  %v2691_v17 = vadd.f32 %v2663_v23, %v2562_v7 }
 0x323   : >> { %v2544_v30 = vpop.f32.mrf.mxu1  ;;  %v15502_v31 = vpop.f32.mrf.mxu0 }
 0x324   : >> { %v2564_v13 = vadd.f32 %v2544_v30, %v2436_v18  ;;  %v2694_v6 = vadd.f32 %v15499_v27, %v2565_v12 }
 0x325   : >> { %v15489_v32 = vpop.f32.mrf.mxu1  ;;  %v19152_v33 = vpop.f32.mrf.mxu0 }
 0x326   : >> { %v2693_v32 = vadd.f32 %v2673_v29, %v2564_v13 }
 0x327   : >> { %v2554_v34 = vpop.f32.mrf.mxu1  ;;  %v15522_v35 = vpop.f32.mrf.mxu0 }
 0x328   : >> { %v2566_v25 = vadd.f32 %v2554_v34, %v19150_v24 }
 0x329   : >> { %v15509_v36 = vpop.f32.mrf.mxu1  ;;  %v2919_v37 = vpop.f32.mrf.mxu0 }
 0x32a   : >> { %v2820_v19 = vadd.f32 %v15509_v36, %v2692_v11  ;;  %v2695_v36 = vadd.f32 %v19152_v33, %v2566_v25 }
 0x32b   : >> { %v2791_v38 = vpop.f32.mrf.mxu1  ;;  %v15525_v39 = vpop.f32.mrf.mxu0 }
 0x32c   : >> { %v2819_v22 = vadd.f32 %v2791_v38, %v2691_v17 }
 0x32d   : >> { %v15512_v40 = vpop.f32.mrf.mxu1  ;;  %v2929_v41 = vpop.f32.mrf.mxu0 }
 0x32e   : >> { %v2947_v28 = vadd.f32 %v2919_v37, %v2819_v22 }
 0x32f   : >> { %v2801_v26 = vpop.f32.mrf.mxu1  ;;  %v15528_v42 = vpop.f32.mrf.mxu0 }
 0x330   : >> { %v2821_v20 = vadd.f32 %v2801_v26, %v2693_v32 }
 0x331   : >> { %v15515_v43 = vpop.f32.mrf.mxu1  ;;  %v19154_v44 = vpop.f32.mrf.mxu0 }
 0x332   : >> { %v2948_v43 = vadd.f32 %v15522_v35, %v2820_v19  ;;  %v2949_v38 = vadd.f32 %v2929_v41, %v2821_v20 }
 0x333   : >> { %v2811_v45 = vpop.f32.mrf.mxu1  ;;  %v15548_v46 = vpop.f32.mrf.mxu0 }
 0x335   : >> { %v15535_v47 = vpop.f32.mrf.mxu1  ;;  %v3175_v48 = vpop.f32.mrf.mxu0 }
 0x336   : >> { %v3076_v30 = vadd.f32 %v15535_v47, %v2948_v43 }
 0x337   : >> { %v3047_v49 = vpop.f32.mrf.mxu1  ;;  %v19156_v50 = vpop.f32.mrf.mxu0 }
 0x338   : >> { %v3075_v27 = vadd.f32 %v3047_v49, %v2947_v28  ;;  %v3204_v7 = vadd.f32 %v15548_v46, %v3076_v30 }
 0x339   : >> { %v15538_v51 = vpop.f32.mrf.mxu1  ;;  %v19158_v52 = vpop.f32.mrf.mxu0 }
 0x33a   : >> { %v3203_v26 = vadd.f32 %v3175_v48, %v3075_v27 }
 0x33b   : >> { %v3057_v53 = vpop.f32.mrf.mxu1  ;;  %v15554_v54 = vpop.f32.mrf.mxu0 }
 0x33c   : >> { %v2822_v54 = vadd.f32 %v15512_v40, %v2694_v6  ;;  %v3077_v34 = vadd.f32 %v3057_v53, %v2949_v38 }
 0x33d   : >> { %v15541_v55 = vpop.f32.mrf.mxu1  ;;  %v19160_v56 = vpop.f32.mrf.mxu0 }
 0x33f   : >> { %v3067_v57 = vpop.f32.mrf.mxu1  ;;  %v15574_v58 = vpop.f32.mrf.mxu0 }
 0x341   : >> { %v15561_v59 = vpop.f32.mrf.mxu1  ;;  %v19162_v60 = vpop.f32.mrf.mxu0 }
 0x342   : >> { %v3333_v11 = vadd.f32 %v15561_v59, %v3204_v7 }
 0x343   : >> { %v3304_v61 = vpop.f32.mrf.mxu1  ;;  %v19164_v62 = vpop.f32.mrf.mxu0 }
 0x344   : >> { %v3332_v33 = vadd.f32 %v3304_v61, %v3203_v26 }
 0x345   : >> { %v15564_v63 = vpop.f32.mrf.mxu1  ;;  %v19166_v0 = vpop.f32.mrf.mxu0 }
 0x346   : >> { %v3460_v48 = vadd.f32 %v19162_v60, %v3332_v33 }
 0x347   : >> { %v3314_v1 = vpop.f32.mrf.mxu1  ;;  %v15580_v2 = vpop.f32.mrf.mxu0 }
 0x348   : >> { %v2950_v2 = vadd.f32 %v15525_v39, %v2822_v54  ;;  %v3205_v39 = vadd.f32 %v19158_v52, %v3077_v34 }
 0x349   : >> { %v15567_v4 = vpop.f32.mrf.mxu1  ;;  %v19168_v5 = vpop.f32.mrf.mxu0 }
 0x34a   : >> { %v2823_v4 = vadd.f32 %v2811_v45, %v2695_v36  ;;  %v3078_v24 = vadd.f32 %v15538_v51, %v2950_v2  ;;  %v3461_v45 = vadd.f32 %v15574_v58, %v3333_v11  ;;  %v3334_v51 = vadd.f32 %v3314_v1, %v3205_v39 }
 0x34b   : >> { %v19170_v8 = vpop.f32.mrf.mxu1  ;;  %v19172_v9 = vpop.f32.mrf.mxu0 }
 0x34c   : >> { %v2951_v12 = vadd.f32 %v19154_v44, %v2823_v4  ;;  %v3206_v13 = vadd.f32 %v19156_v50, %v3078_v24  ;;  %v3462_v52 = vadd.f32 %v19166_v0, %v3334_v51 }
 0x34d   : >> { %v15587_v15 = vpop.f32.mrf.mxu1  ;;  %v19174_v16 = vpop.f32.mrf.mxu0 }
 0x34e   : >> { %v3079_v17 = vadd.f32 %v3067_v57, %v2951_v12  ;;  %v3335_v46 = vadd.f32 %v15564_v63, %v3206_v13  ;;  %v3589_v59 = vadd.f32 %v15587_v15, %v3461_v45 }
 0x34f   : >> { %v3560_v21 = vpop.f32.mrf.mxu1  ;;  %v19176_v31 = vpop.f32.mrf.mxu0 }
 0x350   : >> { %v3207_v44 = vadd.f32 %v19160_v56, %v3079_v17  ;;  %v3463_v50 = vadd.f32 %v19164_v62, %v3335_v46  ;;  %v3588_v61 = vadd.f32 %v3560_v21, %v3460_v48  ;;  %v3717_v58 = vadd.f32 %v19172_v9, %v3589_v59 }
 0x351   : >> { %v15590_v42 = vpop.f32.mrf.mxu1  ;;  %v3698_v10 = vpop.f32.mrf.mxu0 }
 0x352   : >> { %v3336_v57 = vadd.f32 %v19170_v8, %v3207_v44  ;;  %v3591_v63 = vadd.f32 %v15590_v42, %v3463_v50  ;;  %v3716_v15 = vadd.f32 %v19174_v16, %v3588_v61 }
 0x353   : >> { %v3570_v14 = vpop.f32.mrf.mxu1  ;;  %v15606_v18 = vpop.f32.mrf.mxu0 }
 0x354   : >> { %v3590_v1 = vadd.f32 %v3570_v14, %v3462_v52  ;;  %v3464_v62 = vadd.f32 %v19168_v5, %v3336_v57  ;;  %v3719_v21 = vadd.f32 %v19176_v31, %v3591_v63 }
 0x355   : >> { %v15593_v55 = vpop.f32.mrf.mxu1  ;;  %v19179_v23 = vpop.f32.mrf.mxu0 }
 0x356   : >> { %v3718_v18 = vadd.f32 %v3698_v10, %v3590_v1 }
 0x357   : >> { %v3580_v29 = vpop.f32.mrf.mxu1  ;;  %v15626_v3 = vpop.f32.mrf.mxu0 }
 0x358   : >> { %v3592_v8 = vadd.f32 %v3580_v29, %v3464_v62 }
 0x359   : >> { %v15613_v35 = vpop.f32.mrf.mxu1  ;;  %v3945_v40 = vpop.f32.mrf.mxu0 }
 0x35a   : >> { %v3845_v54 = vadd.f32 %v15613_v35, %v3717_v58  ;;  %v3720_v4 = vadd.f32 %v19179_v23, %v3592_v8 }
 0x35b   : >> { %v3816_v37 = vpop.f32.mrf.mxu1  ;;  %v15629_v47 = vpop.f32.mrf.mxu0 }
 0x35c   : >> { %v3844_v0 = vadd.f32 %v3816_v37, %v3716_v15  ;;  %v3974_v55 = vadd.f32 %v15626_v3, %v3845_v54 }
 0x35d   : >> { %v15616_v41 = vpop.f32.mrf.mxu1  ;;  %v3955_v49 = vpop.f32.mrf.mxu0 }
 0x35e   : >> { %v3847_v9 = vadd.f32 %v15616_v41, %v3719_v21  ;;  %v3973_v2 = vadd.f32 %v3945_v40, %v3844_v0  ;;  %v13354_v40 = vld [vmem:[%s22149_s4] ss:$0 sm:$0xff] }
 0x35f   : >> { %v3826_v53 = vpop.f32.mrf.mxu1  ;;  %v15632_v19 = vpop.f32.mrf.mxu0 }
 0x360   : >> { %v3846_v42 = vadd.f32 %v3826_v53, %v3718_v18  ;;  %v3976_v7 = vadd.f32 %v15629_v47, %v3847_v9 }
 0x361   : >> { %v15619_v6 = vpop.f32.mrf.mxu1  ;;  %v3965_v22 = vpop.f32.mrf.mxu0 }
 0x362   : >> { %v3975_v24 = vadd.f32 %v3955_v49, %v3846_v42 }
 0x363   : >> { %v3836_v32 = vpop.f32.mrf.mxu1  ;;  %v15652_v25 = vpop.f32.mrf.mxu0 }
 0x364   : >> { %v3848_v10 = vadd.f32 %v3836_v32, %v3720_v4 }
 0x365   : >> { %v15639_v43 = vpop.f32.mrf.mxu1  ;;  %v4201_v60 = vpop.f32.mrf.mxu0 }
 0x366   : >> { %v4102_v27 = vadd.f32 %v15639_v43, %v3974_v55  ;;  %v3977_v23 = vadd.f32 %v3965_v22, %v3848_v10 }
 0x367   : >> { %v4073_v20 = vpop.f32.mrf.mxu1  ;;  %v15655_v56 = vpop.f32.mrf.mxu0 }
 0x368   : >> { %v4101_v5 = vadd.f32 %v4073_v20, %v3973_v2  ;;  %v4230_v35 = vadd.f32 %v15652_v25, %v4102_v27 }
 0x369   : >> { %v15642_v28 = vpop.f32.mrf.mxu1  ;;  %v4211_v30 = vpop.f32.mrf.mxu0 }
 0x36a   : >> { %v4104_v26 = vadd.f32 %v15642_v28, %v3976_v7  ;;  %v4229_v37 = vadd.f32 %v4201_v60, %v4101_v5 }
 0x36b   : >> { %v4083_v14 = vpop.f32.mrf.mxu1  ;;  %v15658_v36 = vpop.f32.mrf.mxu0 }
 0x36c   : >> { %v4103_v29 = vadd.f32 %v4083_v14, %v3975_v24  ;;  %v4232_v47 = vadd.f32 %v15655_v56, %v4104_v26 }
 0x36d   : >> { %v15645_v16 = vpop.f32.mrf.mxu1  ;;  %v4221_v38 = vpop.f32.mrf.mxu0 }
 0x36e   : >> { %v4231_v49 = vadd.f32 %v4211_v30, %v4103_v29 }
 0x36f   : >> { %v4093_v31 = vpop.f32.mrf.mxu1  ;;  %v15678_v34 = vpop.f32.mrf.mxu0 }
 0x370   : >> { %v4105_v46 = vadd.f32 %v4093_v31, %v3977_v23 }
 0x371   : >> { %v15665_v3 = vpop.f32.mrf.mxu1  ;;  %v4457_v11 = vpop.f32.mrf.mxu0 }
 0x372   : >> { %v4358_v12 = vadd.f32 %v15665_v3, %v4230_v35  ;;  %v4233_v32 = vadd.f32 %v4221_v38, %v4105_v46 }
 0x373   : >> { %v4329_v13 = vpop.f32.mrf.mxu1  ;;  %v15681_v33 = vpop.f32.mrf.mxu0 }
 0x374   : >> { %v4486_v39 = vadd.f32 %v15678_v34, %v4358_v12  ;;  %v4357_v41 = vadd.f32 %v4329_v13, %v4229_v37 }
 0x375   : >> { %v15668_v17 = vpop.f32.mrf.mxu1  ;;  %v4467_v45 = vpop.f32.mrf.mxu0 }
 0x376   : >> { %v4498_v51 = vadd.f32 %v13354_v40, %v4486_v39  ;;  %v4485_v53 = vadd.f32 %v4457_v11, %v4357_v41  ;;  %v4360_v19 = vadd.f32 %v15668_v17, %v4232_v47 }
 0x377   : >> { %v4339_v48 = vpop.f32.mrf.mxu1  ;;  %v15684_v59 = vpop.f32.mrf.mxu0 }
 0x378   : >> { %v4503_v6 = vmax.f32 %v4498_v51, 0.0  ;;  %v4497_v44 = vadd.f32 %v13354_v40, %v4485_v53  ;;  %v4488_v50 = vadd.f32 %v15681_v33, %v4360_v19  ;;  %v4359_v61 = vadd.f32 %v4339_v48, %v4231_v49 }
 0x379   : >> { %v15671_v52 = vpop.f32.mrf.mxu1  ;;  %v4477_v60 = vpop.f32.mrf.mxu0 }
 0x37a   : >> { %13356 = vst.msk [vmem:[%s12738_s26 + $0x62] sm:$0xff] %vm632_vm1, %v4503_v6  ;;  %v4502_v22 = vmax.f32 %v4497_v44, 0.0  ;;  %v4500_v25 = vadd.f32 %v13354_v40, %v4488_v50  ;;  %v4487_v57 = vadd.f32 %v4467_v45, %v4359_v61 }
 0x37b   : >> { %v4349_v58 = vpop.f32.mrf.mxu1 }
 0x37c   : >> { %13355 = vst.msk [vmem:[%s12738_s26 + $0x5a] sm:$0xff] %vm632_vm1, %v4502_v22  ;;  %v4505_v63 = vmax.f32 %v4500_v25, 0.0  ;;  %v4499_v1 = vadd.f32 %v13354_v40, %v4487_v57  ;;  %v4361_v43 = vadd.f32 %v4349_v58, %v4233_v32 }
 0x37e   : >> { %13358 = vst.msk [vmem:[%s12738_s26 + $0x72] sm:$0xff] %vm632_vm1, %v4505_v63  ;;  %v4504_v15 = vmax.f32 %v4499_v1, 0.0  ;;  %v4489_v54 = vadd.f32 %v4477_v60, %v4361_v43 }
 0x380   : >> { %13357 = vst.msk [vmem:[%s12738_s26 + $0x6a] sm:$0xff] %vm632_vm1, %v4504_v15  ;;  %v4501_v20 = vadd.f32 %v13354_v40, %v4489_v54  ;;  %1295 = sbr.rel (!%p1293_p12) target bundleno = 541 (0x21d), region = 307 }
 0x382   : >> { %v4506_v56 = vmax.f32 %v4501_v20, 0.0 }
 0x384   : >> { %13359 = vst.msk [vmem:[%s12738_s26 + $0x7a] sm:$0xff] %vm632_vm1, %v4506_v56 }
 0x385 LB: >> { %v13374_v62 = vld [vmem:[%s22150_s5 + $0x38] sm:$0xff]  ;;  %v17335_v21 = vmov 0.0   ;;  %v13373_v0 = vld [vmem:[%s22150_s5 + $0x30] sm:$0xff]  ;;  %s4519_s13 = smul.u32 88, %s17328_s16  ;;  %v13372_v18 = vld [vmem:[%s22150_s5 + $0x28] sm:$0xff]  ;;  %vm17336_vm4 = vmmov 0   ;;  %s17328_s16 = sphi %s19208_s16, %s4518_s16  }
 0x386   : >> { %15685 = vmatprep.subr.mxu0 %v17335_v21  ;;  %17147 = vmatprep.subr.mxu1 %v17335_v21  ;;  %v13371_v28 = vld [vmem:[%s22150_s5 + $0x20] sm:$0xff]  ;;  %v13411_v55 = vld [vmem:[%s22150_s5 + $0x58] sm:$0xff]  ;;  %v13410_v36 = vld [vmem:[%s22150_s5 + $0x50] sm:$0xff]  ;;  %vm9086_vm5 = vcmask 1043456   ;;  %s12834_s30 = smul.u32 24, %s17328_s16  ;;  %vm9115_vm6 = vcmask 257024  }
 0x387   : >> { %15686 = vmatpush3.msra.mxu0 %v13374_v62  ;;  %17151 = vmatpush3.msra.mxu1 %v13374_v62  ;;  %s19234_s18 = scalar_lea.vmem [#allocation3], %s4519_s13  ;;  %v4535_v9 = vld [vmem:[%s22150_s5 + $0x18] sm:$0xff]  ;;  %v4534_v2 = vld [vmem:[%s22150_s5 + $0x10] sm:$0xff]  ;;  %v4533_v38 = vld [vmem:[%s22150_s5 + $0x8] sm:$0xff]  ;;  %s4518_s16 = sadd.s32 1, %s17328_s16  }
 0x388   : >> { %15687 = vmatprep.subr.mxu0 %v17335_v21  ;;  %17148 = vmatprep.subr.mxu1 %v17335_v21  ;;  %v13409_v4 = vld [vmem:[%s22150_s5 + $0x48] sm:$0xff]  ;;  %v4532_v24 = vld [vmem:[%s22150_s5] sm:$0xff]  ;;  %v13437_v29 = vld [vmem:[%s22150_s5 + $0x78] sm:$0xff]  ;;  %s12835_s14 = scalar_lea.vmem [#allocation4], %s12834_s30  ;;  %p4515_p13 = scmp.ge.s32.totalorder %s4518_s16, 20  }
 0x389   : >> { %15688 = vmatpush3.msra.mxu0 %v13373_v0  ;;  %17152 = vmatpush3.msra.mxu1 %v13373_v0  ;;  %v13408_v31 = vld [vmem:[%s22150_s5 + $0x40] sm:$0xff]  ;;  %v13463_v37 = vld [vmem:[%s22150_s5 + $0x98] sm:$0xff]  ;;  %v13436_v12 = vld [vmem:[%s22150_s5 + $0x70] sm:$0xff]  ;;  %s21135_s13 = smov (%p4515_p13), 0  }
 0x38a   : >> { %15689 = vmatprep.subr.mxu0 %v17335_v21  ;;  %17149 = vmatprep.subr.mxu1 %v17335_v21  ;;  %v13462_v33 = vld [vmem:[%s22150_s5 + $0x90] sm:$0xff]  ;;  %v13435_v23 = vld [vmem:[%s22150_s5 + $0x68] sm:$0xff]  ;;  %v13434_v49 = vld [vmem:[%s22150_s5 + $0x60] sm:$0xff] }
 0x38b   : >> { %15690 = vmatpush3.msra.mxu0 %v13372_v18  ;;  %17153 = vmatpush3.msra.mxu1 %v13372_v18  ;;  %v13360_v30 = vld [vmem:[%s19234_s18 + $0x1] sm:$0xff]  ;;  %v13366_v8 = vld [vmem:[%s19234_s18 + $0x31] sm:$0xff]  ;;  %v13361_v42 = vld [vmem:[%s19234_s18 + $0x9] sm:$0xff] }
 0x38c   : >> { %15691 = vmatprep.subr.mxu0 %v17335_v21  ;;  %17150 = vmatprep.subr.mxu1 %v17335_v21  ;;  %v13367_v14 = vld [vmem:[%s19234_s18 + $0x39] sm:$0xff]  ;;  %v13362_v27 = vld [vmem:[%s19234_s18 + $0x11] sm:$0xff]  ;;  %v13368_v16 = vld [vmem:[%s19234_s18 + $0x41] sm:$0xff] }
 0x38d   : >> { %15692 = vmatpush3.msra.mxu0 %v13371_v28  ;;  %17154 = vmatpush3.msra.mxu1 %v13371_v28  ;;  %v13363_v7 = vld [vmem:[%s19234_s18 + $0x19] sm:$0xff]  ;;  %v13369_v5 = vld [vmem:[%s19234_s18 + $0x49] sm:$0xff]  ;;  %v13364_v34 = vld [vmem:[%s19234_s18 + $0x21] sm:$0xff] }
 0x38e   : >> { %15693 = vmatprep.mubr.msk.f32.mxu0 %vm17336_vm4, %v17335_v21  ;;  %15711 = vmatprep.mubr.msk.f32.mxu1 %vm17336_vm4, %v17335_v21  ;;  %v13370_v10 = vld [vmem:[%s19234_s18 + $0x51] sm:$0xff]  ;;  %v13365_v35 = vld [vmem:[%s19234_s18 + $0x29] sm:$0xff]  ;;  %v4521_v26 = vld [vmem:[%s19234_s18] sm:$0xff] }
 0x38f   : >> { %15694 = vmatmul.mubr.msk.f32.vlgmr.msra.gmra.mxu0 %vm632_vm1, %v13360_v30  ;;  %15712 = vmatmul.mubr.msk.f32.vlgmr.msra.gmra.mxu1 %vm632_vm1, %v13366_v8  ;;  %v4522_v3 = vld [vmem:[%s19234_s18 + $0x8] sm:$0xff]  ;;  %v4523_v40 = vld [vmem:[%s19234_s18 + $0x10] sm:$0xff]  ;;  %v4524_v47 = vld [vmem:[%s19234_s18 + $0x18] sm:$0xff] }
 0x390   : >> { %15767 = vmatprep.subr.mxu0 %v17335_v21  ;;  %15726 = vmatprep.subr.mxu1 %v17335_v21  ;;  %v13397_v11 = vld [vmem:[%s19234_s18 + $0x2] sm:$0xff]  ;;  %v13398_v13 = vld [vmem:[%s19234_s18 + $0xa] sm:$0xff]  ;;  %v13399_v39 = vld [vmem:[%s19234_s18 + $0x12] sm:$0xff] }
 0x391   : >> { %15768 = vmatpush3.msra.mxu0 %v13411_v55  ;;  %15696 = vmatprep.mubr.msk.f32.mxu0 %vm17336_vm4, %v17335_v21  ;;  %v13461_v41 = vld [vmem:[%s22150_s5 + $0x88] sm:$0xff]  ;;  %v4525_v17 = vld [vmem:[%s19234_s18 + $0x20] sm:$0xff]  ;;  %v19395_v19 = vld [vmem:[%s19234_s18 + $0x30] sm:$0xff] }
 0x392   : >> { %15714 = vmatprep.mubr.msk.f32.mxu1 %vm17336_vm4, %v17335_v21  ;;  %15727 = vmatpush3.msra.mxu1 %v4535_v9  ;;  %v13400_v45 = vld [vmem:[%s19234_s18 + $0x1a] sm:$0xff]  ;;  %v4526_v51 = vld [vmem:[%s19234_s18 + $0x28] sm:$0xff]  ;;  %v13403_v6 = vld [vmem:[%s19234_s18 + $0x32] sm:$0xff] }
 0x393   : >> { %15697 = vmatmul.mubr.msk.f32.gmra.mxu0 %vm632_vm1, %v13361_v42  ;;  %15715 = vmatmul.mubr.msk.f32.gmra.mxu1 %vm632_vm1, %v13367_v14  ;;  %v13460_v46 = vld [vmem:[%s22150_s5 + $0x80] sm:$0xff]  ;;  %v13402_v48 = vld [vmem:[%s19234_s18 + $0x2a] sm:$0xff]  ;;  %v19406_v59 = vld [vmem:[%s19234_s18 + $0x38] sm:$0xff] }
 0x394   : >> { %15769 = vmatprep.subr.mxu0 %v17335_v21  ;;  %15699 = vmatprep.mubr.msk.f32.mxu0 %vm17336_vm4, %v17335_v21  ;;  %v13401_v53 = vld [vmem:[%s19234_s18 + $0x22] sm:$0xff]  ;;  %v13404_v50 = vld [vmem:[%s19234_s18 + $0x3a] sm:$0xff]  ;;  %v19439_v32 = vld [vmem:[%s19234_s18 + $0x50] sm:$0xff] }
 0x395   : >> { %15717 = vmatprep.mubr.msk.f32.mxu1 %vm17336_vm4, %v17335_v21  ;;  %15728 = vmatprep.subr.mxu1 %v17335_v21  ;;  %v19417_v44 = vld [vmem:[%s19234_s18 + $0x40] sm:$0xff]  ;;  %v19428_v61 = vld [vmem:[%s19234_s18 + $0x48] sm:$0xff]  ;;  %v13407_v25 = vld [vmem:[%s19234_s18 + $0x52] sm:$0xff] }
 0x396   : >> { %15770 = vmatpush3.msra.mxu0 %v13410_v36  ;;  %15729 = vmatpush3.msra.mxu1 %v4534_v2  ;;  %v13405_v52 = vld [vmem:[%s19234_s18 + $0x42] sm:$0xff]  ;;  %v13406_v22 = vld [vmem:[%s19234_s18 + $0x4a] sm:$0xff]  ;;  %v13491_v58 = vld [vmem:[%s22150_s5 + $0xb8] sm:$0xff] }
 0x397   : >> { %15700 = vmatmul.mubr.msk.f32.gmra.mxu0 %vm632_vm1, %v13362_v27  ;;  %15718 = vmatmul.mubr.msk.f32.gmra.mxu1 %vm632_vm1, %v13368_v16  ;;  %v13423_v57 = vld [vmem:[%s19234_s18 + $0x3] sm:$0xff]  ;;  %v13424_v63 = vld [vmem:[%s19234_s18 + $0xb] sm:$0xff]  ;;  %v13519_v43 = vld [vmem:[%s22150_s5 + $0xd8] sm:$0xff] }
 0x398   : >> { %15702 = vmatprep.mubr.msk.f32.mxu0 %vm17336_vm4, %v17335_v21  ;;  %15720 = vmatprep.mubr.msk.f32.mxu1 %vm17336_vm4, %v17335_v21  ;;  %v13449_v1 = vld [vmem:[%s19234_s18 + $0x4] sm:$0xff]  ;;  %v13490_v60 = vld [vmem:[%s22150_s5 + $0xb0] sm:$0xff]  ;;  %v13426_v62 = vld [vmem:[%s19234_s18 + $0x1b] sm:$0xff] }
 0x399   : >> { %15730 = vmatprep.subr.mxu1 %v17335_v21  ;;  %15771 = vmatprep.subr.mxu0 %v17335_v21  ;;  %v13425_v15 = vld [vmem:[%s19234_s18 + $0x13] sm:$0xff]  ;;  %v13489_v56 = vld [vmem:[%s22150_s5 + $0xa8] sm:$0xff]  ;;  %v13488_v28 = vld [vmem:[%s22150_s5 + $0xa0] sm:$0xff] }
 0x39a   : >> { %15731 = vmatpush3.msra.mxu1 %v4533_v38  ;;  %15772 = vmatpush3.msra.mxu0 %v13409_v4  ;;  %v13450_v54 = vld [vmem:[%s19234_s18 + $0xc] sm:$0xff]  ;;  %v13451_v0 = vld [vmem:[%s19234_s18 + $0x14] sm:$0xff]  ;;  %v13427_v30 = vld [vmem:[%s19234_s18 + $0x23] sm:$0xff] }
 0x39b   : >> { %15703 = vmatmul.mubr.msk.f32.gmra.mxu0 %vm632_vm1, %v13363_v7  ;;  %15721 = vmatmul.mubr.msk.f32.gmra.mxu1 %vm632_vm1, %v13369_v5  ;;  %v13518_v20 = vld [vmem:[%s22150_s5 + $0xd0] sm:$0xff]  ;;  %v13517_v18 = vld [vmem:[%s22150_s5 + $0xc8] sm:$0xff]  ;;  %v13452_v8 = vld [vmem:[%s19234_s18 + $0x1c] sm:$0xff] }
 0x39c   : >> { %15705 = vmatprep.mubr.msk.f32.mxu0 %vm17336_vm4, %v17335_v21  ;;  %15723 = vmatprep.mubr.msk.f32.mxu1 %vm17336_vm4, %v17335_v21  ;;  %v13516_v55 = vld [vmem:[%s22150_s5 + $0xc0] sm:$0xff]  ;;  %v13428_v9 = vld [vmem:[%s19234_s18 + $0x2b] sm:$0xff]  ;;  %v13429_v14 = vld [vmem:[%s19234_s18 + $0x33] sm:$0xff] }
 0x39d   : >> { %15732 = vmatprep.subr.mxu1 %v17335_v21  ;;  %15773 = vmatprep.subr.mxu0 %v17335_v21  ;;  %v13453_v42 = vld [vmem:[%s19234_s18 + $0x24] sm:$0xff]  ;;  %v13454_v36 = vld [vmem:[%s19234_s18 + $0x2c] sm:$0xff]  ;;  %v13430_v2 = vld [vmem:[%s19234_s18 + $0x3b] sm:$0xff] }
 0x39e   : >> { %15733 = vmatpush3.msra.mxu1 %v4532_v24  ;;  %15774 = vmatpush3.msra.mxu0 %v13408_v31  ;;  %v13455_v27 = vld [vmem:[%s19234_s18 + $0x34] sm:$0xff]  ;;  %v13431_v16 = vld [vmem:[%s19234_s18 + $0x43] sm:$0xff]  ;;  %v13432_v4 = vld [vmem:[%s19234_s18 + $0x4b] sm:$0xff] }
 0x39f   : >> { %15706 = vmatmul.mubr.msk.f32.gmra.mxu0 %vm632_vm1, %v13364_v34  ;;  %15724 = vmatmul.mubr.msk.f32.gmra.mxu1 %vm632_vm1, %v13370_v10  ;;  %v13456_v38 = vld [vmem:[%s19234_s18 + $0x3c] sm:$0xff]  ;;  %v13457_v7 = vld [vmem:[%s19234_s18 + $0x44] sm:$0xff]  ;;  %v13433_v5 = vld [vmem:[%s19234_s18 + $0x53] sm:$0xff] }
 0x3a0   : >> { %15708 = vmatprep.mubr.msk.f32.mxu0 %vm17336_vm4, %v17335_v21  ;;  %15734 = vmatprep.mubr.msk.f32.mxu1 %vm17336_vm4, %v17335_v21  ;;  %v13458_v24 = vld [vmem:[%s19234_s18 + $0x4c] sm:$0xff]  ;;  %v13459_v31 = vld [vmem:[%s19234_s18 + $0x54] sm:$0xff] }
 0x3a1   : >> { %15808 = vmatprep.subr.mxu1 %v17335_v21  ;;  %15849 = vmatprep.subr.mxu0 %v17335_v21  ;;  %v13547_v34 = vld [vmem:[%s22150_s5 + $0xf8] sm:$0xff]  ;;  %v13505_v10 = vld [vmem:[%s19234_s18 + $0x2d] sm:$0xff] }
 0x3a3   : >> { %15709 = vmatmul.mubr.msk.f32.gmra.mxu0 %vm632_vm1, %v13365_v35  ;;  %15735 = vmatmul.mubr.msk.f32.vlgmr.msra.gmra.mxu1 %vm632_vm1, %v4521_v26  ;;  %v13575_v35 = vld [vmem:[%s22150_s5 + $0x118] sm:$0xff]  ;;  %v13546_v26 = vld [vmem:[%s22150_s5 + $0xf0] sm:$0xff] }
 0x3a4   : >> { %15737 = vmatprep.mubr.msk.f32.mxu1 %vm17336_vm4, %v17335_v21  ;;  %15775 = vmatprep.mubr.msk.f32.mxu0 %vm17336_vm4, %v17335_v21 }
 0x3a5   : >> { %15809 = vmatpush3.msra.mxu1 %v13437_v29  ;;  %v13506_v29 = vld [vmem:[%s19234_s18 + $0x35] sm:$0xff] }
 0x3a6   : >> { %15810 = vmatprep.subr.mxu1 %v17335_v21 }
 0x3a7   : >> { %15738 = vmatmul.mubr.msk.f32.gmra.mxu1 %vm632_vm1, %v4522_v3  ;;  %15776 = vmatmul.mubr.msk.f32.vlgmr.msra.gmra.mxu0 %vm632_vm1, %v13397_v11  ;;  %v13574_v3 = vld [vmem:[%s22150_s5 + $0x110] sm:$0xff]  ;;  %v13545_v11 = vld [vmem:[%s22150_s5 + $0xe8] sm:$0xff] }
 0x3a8   : >> { %15850 = vmatpush3.msra.mxu0 %v13463_v37  ;;  %15740 = vmatprep.mubr.msk.f32.mxu1 %vm17336_vm4, %v17335_v21  ;;  %v13507_v37 = vld [vmem:[%s19234_s18 + $0x3d] sm:$0xff] }
 0x3a9   : >> { %15778 = vmatprep.mubr.msk.f32.mxu0 %vm17336_vm4, %v17335_v21  ;;  %15811 = vmatpush3.msra.mxu1 %v13436_v12  ;;  %v13573_v12 = vld [vmem:[%s22150_s5 + $0x108] sm:$0xff] }
 0x3aa   : >> { %15851 = vmatprep.subr.mxu0 %v17335_v21  ;;  %15812 = vmatprep.subr.mxu1 %v17335_v21 }
 0x3ab   : >> { %15741 = vmatmul.mubr.msk.f32.gmra.mxu1 %vm632_vm1, %v4523_v40  ;;  %15779 = vmatmul.mubr.msk.f32.gmra.mxu0 %vm632_vm1, %v13398_v13  ;;  %v13544_v40 = vld [vmem:[%s22150_s5 + $0xe0] sm:$0xff] }
 0x3ac   : >> { %15743 = vmatprep.mubr.msk.f32.mxu1 %vm17336_vm4, %v17335_v21  ;;  %15781 = vmatprep.mubr.msk.f32.mxu0 %vm17336_vm4, %v17335_v21  ;;  %v13508_v13 = vld [vmem:[%s19234_s18 + $0x45] sm:$0xff] }
 0x3ad   : >> { %15852 = vmatpush3.msra.mxu0 %v13462_v33  ;;  %15813 = vmatpush3.msra.mxu1 %v13435_v23  ;;  %v13572_v33 = vld [vmem:[%s22150_s5 + $0x100] sm:$0xff]  ;;  %v13509_v23 = vld [vmem:[%s19234_s18 + $0x4d] sm:$0xff] }
 0x3ae   : >> { %15853 = vmatprep.subr.mxu0 %v17335_v21  ;;  %15814 = vmatprep.subr.mxu1 %v17335_v21 }
 0x3af   : >> { %15744 = vmatmul.mubr.msk.f32.gmra.mxu1 %vm632_vm1, %v4524_v47  ;;  %15782 = vmatmul.mubr.msk.f32.gmra.mxu0 %vm632_vm1, %v13399_v39  ;;  %v19644_v47 = vld [vmem:[%s19234_s18 + $0x5c] sm:$0xff] }
 0x3b0   : >> { %15746 = vmatprep.mubr.msk.f32.mxu1 %vm17336_vm4, %v17335_v21  ;;  %15784 = vmatprep.mubr.msk.f32.mxu0 %vm17336_vm4, %v17335_v21  ;;  %v13510_v39 = vld [vmem:[%s19234_s18 + $0x55] sm:$0xff] }
 0x3b1   : >> { %15854 = vmatpush3.msra.mxu0 %v13461_v41  ;;  %15815 = vmatpush3.msra.mxu1 %v13434_v49  ;;  %v19655_v41 = vld [vmem:[%s19234_s18 + $0x64] sm:$0xff] }
 0x3b2   : >> { %15855 = vmatprep.subr.mxu0 %v17335_v21  ;;  %15890 = vmatprep.subr.mxu1 %v17335_v21  ;;  %v13511_v49 = vld [vmem:[%s19234_s18 + $0x5d] sm:$0xff] }
 0x3b3   : >> { %15747 = vmatmul.mubr.msk.f32.gmra.mxu1 %vm632_vm1, %v4525_v17  ;;  %15785 = vmatmul.mubr.msk.f32.gmra.mxu0 %vm632_vm1, %v13400_v45  ;;  %v19666_v17 = vld [vmem:[%s19234_s18 + $0x6c] sm:$0xff] }
 0x3b4   : >> { %15749 = vmatprep.mubr.msk.f32.mxu1 %vm17336_vm4, %v17335_v21  ;;  %15787 = vmatprep.mubr.msk.f32.mxu0 %vm17336_vm4, %v17335_v21  ;;  %v13512_v45 = vld [vmem:[%s19234_s18 + $0x65] sm:$0xff] }
 0x3b5   : >> { %15856 = vmatpush3.msra.mxu0 %v13460_v46  ;;  %v19677_v46 = vld [vmem:[%s19234_s18 + $0x74] sm:$0xff] }
 0x3b6   : >> { %15931 = vmatprep.subr.mxu0 %v17335_v21 }
 0x3b7   : >> { %15750 = vmatmul.mubr.msk.f32.gmra.mxu1 %vm632_vm1, %v4526_v51  ;;  %15788 = vmatmul.mubr.msk.f32.gmra.mxu0 %vm632_vm1, %v13401_v53  ;;  %v13513_v51 = vld [vmem:[%s19234_s18 + $0x6d] sm:$0xff]  ;;  %v19688_v53 = vld [vmem:[%s19234_s18 + $0x7c] sm:$0xff] }
 0x3b8   : >> { %15752 = vmatprep.mubr.msk.f32.mxu1 %vm17336_vm4, %v17335_v21  ;;  %15790 = vmatprep.mubr.msk.f32.mxu0 %vm17336_vm4, %v17335_v21 }
 0x3bb   : >> { %15753 = vmatmul.mubr.msk.f32.gmra.mxu1 %vm632_vm1, %v19395_v19  ;;  %15791 = vmatmul.mubr.msk.f32.gmra.mxu0 %vm632_vm1, %v13402_v48  ;;  %v13514_v48 = vld [vmem:[%s19234_s18 + $0x75] sm:$0xff] }
 0x3bc   : >> { %15755 = vmatprep.mubr.msk.f32.mxu1 %vm17336_vm4, %v17335_v21  ;;  %15793 = vmatprep.mubr.msk.f32.mxu0 %vm17336_vm4, %v17335_v21 }
 0x3bf   : >> { %15756 = vmatmul.mubr.msk.f32.gmra.mxu1 %vm632_vm1, %v19406_v59  ;;  %15794 = vmatmul.mubr.msk.f32.gmra.mxu0 %vm632_vm1, %v13403_v6  ;;  %v13515_v6 = vld [vmem:[%s19234_s18 + $0x7d] sm:$0xff] }
 0x3c0   : >> { %15758 = vmatprep.mubr.msk.f32.mxu1 %vm17336_vm4, %v17335_v21  ;;  %15796 = vmatprep.mubr.msk.f32.mxu0 %vm17336_vm4, %v17335_v21 }
 0x3c3   : >> { %15759 = vmatmul.mubr.msk.f32.gmra.mxu1 %vm632_vm1, %v19417_v44  ;;  %15797 = vmatmul.mubr.msk.f32.gmra.mxu0 %vm632_vm1, %v13404_v50  ;;  %v13533_v50 = vld [vmem:[%s19234_s18 + $0x2e] sm:$0xff] }
 0x3c4   : >> { %15761 = vmatprep.mubr.msk.f32.mxu1 %vm17336_vm4, %v17335_v21  ;;  %15799 = vmatprep.mubr.msk.f32.mxu0 %vm17336_vm4, %v17335_v21 }
 0x3c7   : >> { %15762 = vmatmul.mubr.msk.f32.gmra.mxu1 %vm632_vm1, %v19428_v61  ;;  %15800 = vmatmul.mubr.msk.f32.gmra.mxu0 %vm632_vm1, %v13405_v52  ;;  %v13603_v52 = vld [vmem:[%s22150_s5 + $0x138] sm:$0xff] }
 0x3c8   : >> { %15764 = vmatprep.mubr.msk.f32.mxu1 %vm17336_vm4, %v17335_v21  ;;  %15802 = vmatprep.mubr.msk.f32.mxu0 %vm17336_vm4, %v17335_v21 }
 0x3cb   : >> { %15765 = vmatmul.mubr.msk.f32.gmra.mxu1 %vm632_vm1, %v19439_v32  ;;  %15803 = vmatmul.mubr.msk.f32.gmra.mxu0 %vm632_vm1, %v13406_v22  ;;  %v13534_v22 = vld [vmem:[%s19234_s18 + $0x36] sm:$0xff] }
 0x3cc   : >> { %15805 = vmatprep.mubr.msk.f32.mxu0 %vm17336_vm4, %v17335_v21  ;;  %15816 = vmatprep.mubr.msk.f32.mxu1 %vm17336_vm4, %v17335_v21 }
 0x3cf   : >> { %15806 = vmatmul.mubr.msk.f32.gmra.mxu0 %vm632_vm1, %v13407_v25  ;;  %15817 = vmatmul.mubr.msk.f32.vlgmr.msra.gmra.mxu1 %vm632_vm1, %v13423_v57  ;;  %v13561_v25 = vld [vmem:[%s19234_s18 + $0x2f] sm:$0xff]  ;;  %v13631_v57 = vld [vmem:[%s22150_s5 + $0x158] sm:$0xff] }
 0x3d0   : >> { %15819 = vmatprep.mubr.msk.f32.mxu1 %vm17336_vm4, %v17335_v21  ;;  %15857 = vmatprep.mubr.msk.f32.mxu0 %vm17336_vm4, %v17335_v21 }
 0x3d1   : >> { %15891 = vmatpush3.msra.mxu1 %v13491_v58  ;;  %v13602_v58 = vld [vmem:[%s22150_s5 + $0x130] sm:$0xff] }
 0x3d2   : >> { %15892 = vmatprep.subr.mxu1 %v17335_v21 }
 0x3d3   : >> { %15820 = vmatmul.mubr.msk.f32.gmra.mxu1 %vm632_vm1, %v13424_v63  ;;  %15858 = vmatmul.mubr.msk.f32.vlgmr.msra.gmra.mxu0 %vm632_vm1, %v13449_v1  ;;  %v13535_v63 = vld [vmem:[%s19234_s18 + $0x3e] sm:$0xff] }
 0x3d4   : >> { %15932 = vmatpush3.msra.mxu0 %v13519_v43  ;;  %15822 = vmatprep.mubr.msk.f32.mxu1 %vm17336_vm4, %v17335_v21  ;;  %v13562_v1 = vld [vmem:[%s19234_s18 + $0x37] sm:$0xff] }
 0x3d5   : >> { %15860 = vmatprep.mubr.msk.f32.mxu0 %vm17336_vm4, %v17335_v21  ;;  %15893 = vmatpush3.msra.mxu1 %v13490_v60  ;;  %v13630_v43 = vld [vmem:[%s22150_s5 + $0x150] sm:$0xff]  ;;  %v13601_v60 = vld [vmem:[%s22150_s5 + $0x128] sm:$0xff] }
 0x3d6   : >> { %15933 = vmatprep.subr.mxu0 %v17335_v21  ;;  %15894 = vmatprep.subr.mxu1 %v17335_v21 }
 0x3d7   : >> { %15823 = vmatmul.mubr.msk.f32.gmra.mxu1 %vm632_vm1, %v13425_v15  ;;  %15861 = vmatmul.mubr.msk.f32.gmra.mxu0 %vm632_vm1, %v13450_v54  ;;  %v13536_v15 = vld [vmem:[%s19234_s18 + $0x46] sm:$0xff] }
 0x3d8   : >> { %15825 = vmatprep.mubr.msk.f32.mxu1 %vm17336_vm4, %v17335_v21  ;;  %15863 = vmatprep.mubr.msk.f32.mxu0 %vm17336_vm4, %v17335_v21  ;;  %v13563_v54 = vld [vmem:[%s19234_s18 + $0x3f] sm:$0xff] }
 0x3d9   : >> { %15934 = vmatpush3.msra.mxu0 %v13518_v20  ;;  %15895 = vmatpush3.msra.mxu1 %v13489_v56  ;;  %v13629_v20 = vld [vmem:[%s22150_s5 + $0x148] sm:$0xff]  ;;  %v13600_v56 = vld [vmem:[%s22150_s5 + $0x120] sm:$0xff] }
 0x3da   : >> { %15935 = vmatprep.subr.mxu0 %v17335_v21  ;;  %15896 = vmatprep.subr.mxu1 %v17335_v21 }
 0x3db   : >> { %15826 = vmatmul.mubr.msk.f32.gmra.mxu1 %vm632_vm1, %v13426_v62  ;;  %15864 = vmatmul.mubr.msk.f32.gmra.mxu0 %vm632_vm1, %v13451_v0  ;;  %v13537_v62 = vld [vmem:[%s19234_s18 + $0x4e] sm:$0xff] }
 0x3dc   : >> { %15828 = vmatprep.mubr.msk.f32.mxu1 %vm17336_vm4, %v17335_v21  ;;  %15866 = vmatprep.mubr.msk.f32.mxu0 %vm17336_vm4, %v17335_v21  ;;  %v13564_v0 = vld [vmem:[%s19234_s18 + $0x47] sm:$0xff] }
 0x3dd   : >> { %15936 = vmatpush3.msra.mxu0 %v13517_v18  ;;  %15897 = vmatpush3.msra.mxu1 %v13488_v28  ;;  %v13628_v18 = vld [vmem:[%s22150_s5 + $0x140] sm:$0xff]  ;;  %v13538_v28 = vld [vmem:[%s19234_s18 + $0x56] sm:$0xff] }
 0x3de   : >> { %15937 = vmatprep.subr.mxu0 %v17335_v21  ;;  %15972 = vmatprep.subr.mxu1 %v17335_v21 }
 0x3df   : >> { %15829 = vmatmul.mubr.msk.f32.gmra.mxu1 %vm632_vm1, %v13427_v30  ;;  %15867 = vmatmul.mubr.msk.f32.gmra.mxu0 %vm632_vm1, %v13452_v8  ;;  %v13565_v30 = vld [vmem:[%s19234_s18 + $0x4f] sm:$0xff]  ;;  %v13539_v8 = vld [vmem:[%s19234_s18 + $0x5e] sm:$0xff] }
 0x3e0   : >> { %15831 = vmatprep.mubr.msk.f32.mxu1 %vm17336_vm4, %v17335_v21  ;;  %15869 = vmatprep.mubr.msk.f32.mxu0 %vm17336_vm4, %v17335_v21 }
 0x3e1   : >> { %15938 = vmatpush3.msra.mxu0 %v13516_v55  ;;  %v13566_v55 = vld [vmem:[%s19234_s18 + $0x57] sm:$0xff] }
 0x3e2   : >> { %16013 = vmatprep.subr.mxu0 %v17335_v21 }
 0x3e3   : >> { %15832 = vmatmul.mubr.msk.f32.gmra.mxu1 %vm632_vm1, %v13428_v9  ;;  %15870 = vmatmul.mubr.msk.f32.gmra.mxu0 %vm632_vm1, %v13453_v42  ;;  %v13540_v9 = vld [vmem:[%s19234_s18 + $0x66] sm:$0xff] }
 0x3e4   : >> { %15834 = vmatprep.mubr.msk.f32.mxu1 %vm17336_vm4, %v17335_v21  ;;  %15872 = vmatprep.mubr.msk.f32.mxu0 %vm17336_vm4, %v17335_v21  ;;  %v13567_v42 = vld [vmem:[%s19234_s18 + $0x5f] sm:$0xff] }
 0x3e7   : >> { %15835 = vmatmul.mubr.msk.f32.gmra.mxu1 %vm632_vm1, %v13429_v14  ;;  %15873 = vmatmul.mubr.msk.f32.gmra.mxu0 %vm632_vm1, %v13454_v36  ;;  %v13541_v14 = vld [vmem:[%s19234_s18 + $0x6e] sm:$0xff] }
 0x3e8   : >> { %15837 = vmatprep.mubr.msk.f32.mxu1 %vm17336_vm4, %v17335_v21  ;;  %15875 = vmatprep.mubr.msk.f32.mxu0 %vm17336_vm4, %v17335_v21 }
 0x3eb   : >> { %15838 = vmatmul.mubr.msk.f32.gmra.mxu1 %vm632_vm1, %v13430_v2  ;;  %15876 = vmatmul.mubr.msk.f32.gmra.mxu0 %vm632_vm1, %v13455_v27  ;;  %v13542_v2 = vld [vmem:[%s19234_s18 + $0x76] sm:$0xff] }
 0x3ec   : >> { %15840 = vmatprep.mubr.msk.f32.mxu1 %vm17336_vm4, %v17335_v21  ;;  %15878 = vmatprep.mubr.msk.f32.mxu0 %vm17336_vm4, %v17335_v21 }
 0x3ef   : >> { %15841 = vmatmul.mubr.msk.f32.gmra.mxu1 %vm632_vm1, %v13431_v16  ;;  %15879 = vmatmul.mubr.msk.f32.gmra.mxu0 %vm632_vm1, %v13456_v38  ;;  %v13543_v16 = vld [vmem:[%s19234_s18 + $0x7e] sm:$0xff] }
 0x3f0   : >> { %15843 = vmatprep.mubr.msk.f32.mxu1 %vm17336_vm4, %v17335_v21  ;;  %15881 = vmatprep.mubr.msk.f32.mxu0 %vm17336_vm4, %v17335_v21 }
 0x3f3   : >> { %15844 = vmatmul.mubr.msk.f32.gmra.mxu1 %vm632_vm1, %v13432_v4  ;;  %15882 = vmatmul.mubr.msk.f32.gmra.mxu0 %vm632_vm1, %v13457_v7 }
 0x3f4   : >> { %15846 = vmatprep.mubr.msk.f32.mxu1 %vm17336_vm4, %v17335_v21  ;;  %15884 = vmatprep.mubr.msk.f32.mxu0 %vm17336_vm4, %v17335_v21 }
 0x3f7   : >> { %15847 = vmatmul.mubr.msk.f32.gmra.mxu1 %vm632_vm1, %v13433_v5  ;;  %15885 = vmatmul.mubr.msk.f32.gmra.mxu0 %vm632_vm1, %v13458_v24  ;;  %v13571_v5 = vld [vmem:[%s19234_s18 + $0x7f] sm:$0xff] }
 0x3f8   : >> { %15887 = vmatprep.mubr.msk.f32.mxu0 %vm17336_vm4, %v17335_v21  ;;  %15898 = vmatprep.mubr.msk.f32.mxu1 %vm17336_vm4, %v17335_v21 }
 0x3fb   : >> { %15888 = vmatmul.mubr.msk.f32.gmra.mxu0 %vm632_vm1, %v13459_v31  ;;  %15899 = vmatmul.mubr.msk.f32.vlgmr.msra.gmra.mxu1 %vm632_vm1, %v13454_v36  ;;  %v13568_v36 = vld [vmem:[%s19234_s18 + $0x67] sm:$0xff] }
 0x3fc   : >> { %15901 = vmatprep.mubr.msk.f32.mxu1 %vm17336_vm4, %v17335_v21  ;;  %15939 = vmatprep.mubr.msk.f32.mxu0 %vm17336_vm4, %v17335_v21 }
 0x3fd   : >> { %15973 = vmatpush3.msra.mxu1 %v13547_v34  ;;  %v13659_v34 = vld [vmem:[%s22150_s5 + $0x178] sm:$0xff] }
 0x3fe   : >> { %15974 = vmatprep.subr.mxu1 %v17335_v21 }
 0x3ff   : >> { %15902 = vmatmul.mubr.msk.f32.gmra.mxu1 %vm632_vm1, %v13455_v27  ;;  %15940 = vmatmul.mubr.msk.f32.vlgmr.msra.gmra.mxu0 %vm632_vm1, %v13505_v10  ;;  %v13569_v27 = vld [vmem:[%s19234_s18 + $0x6f] sm:$0xff] }
 0x400   : >> { %16014 = vmatpush3.msra.mxu0 %v13575_v35  ;;  %15904 = vmatprep.mubr.msk.f32.mxu1 %vm17336_vm4, %v17335_v21 }
 0x401   : >> { %15942 = vmatprep.mubr.msk.f32.mxu0 %vm17336_vm4, %v17335_v21  ;;  %15975 = vmatpush3.msra.mxu1 %v13546_v26  ;;  %v19838_v26 = vld [vmem:[%s19234_s18 + $0x58] sm:$0xff] }
 0x402   : >> { %16015 = vmatprep.subr.mxu0 %v17335_v21  ;;  %15976 = vmatprep.subr.mxu1 %v17335_v21 }
 0x403   : >> { %15905 = vmatmul.mubr.msk.f32.gmra.mxu1 %vm632_vm1, %v13456_v38  ;;  %15943 = vmatmul.mubr.msk.f32.gmra.mxu0 %vm632_vm1, %v13506_v29  ;;  %v13570_v38 = vld [vmem:[%s19234_s18 + $0x77] sm:$0xff] }
 0x404   : >> { %15907 = vmatprep.mubr.msk.f32.mxu1 %vm17336_vm4, %v17335_v21  ;;  %15945 = vmatprep.mubr.msk.f32.mxu0 %vm17336_vm4, %v17335_v21 }
 0x405   : >> { %16016 = vmatpush3.msra.mxu0 %v13574_v3  ;;  %15977 = vmatpush3.msra.mxu1 %v13545_v11  ;;  %v13687_v11 = vld [vmem:[%s22150_s5 + $0x198] sm:$0xff] }
 0x406   : >> { %16017 = vmatprep.subr.mxu0 %v17335_v21  ;;  %15978 = vmatprep.subr.mxu1 %v17335_v21 }
 0x407   : >> { %15908 = vmatmul.mubr.msk.f32.gmra.mxu1 %vm632_vm1, %v13457_v7  ;;  %15946 = vmatmul.mubr.msk.f32.gmra.mxu0 %vm632_vm1, %v13507_v37 }
 0x408   : >> { %15910 = vmatprep.mubr.msk.f32.mxu1 %vm17336_vm4, %v17335_v21  ;;  %15948 = vmatprep.mubr.msk.f32.mxu0 %vm17336_vm4, %v17335_v21 }
 0x409   : >> { %16018 = vmatpush3.msra.mxu0 %v13573_v12  ;;  %15979 = vmatpush3.msra.mxu1 %v13544_v40  ;;  %v19858_v40 = vld [vmem:[%s19234_s18 + $0x60] sm:$0xff] }
 0x40a   : >> { %16019 = vmatprep.subr.mxu0 %v17335_v21  ;;  %16054 = vmatprep.subr.mxu1 %v17335_v21 }
 0x40b   : >> { %15911 = vmatmul.mubr.msk.f32.gmra.mxu1 %vm632_vm1, %v13458_v24  ;;  %15949 = vmatmul.mubr.msk.f32.gmra.mxu0 %vm632_vm1, %v13508_v13 }
 0x40c   : >> { %15913 = vmatprep.mubr.msk.f32.mxu1 %vm17336_vm4, %v17335_v21  ;;  %15951 = vmatprep.mubr.msk.f32.mxu0 %vm17336_vm4, %v17335_v21 }
 0x40d   : >> { %16020 = vmatpush3.msra.mxu0 %v13572_v33 }
 0x40e   : >> { %16095 = vmatprep.subr.mxu0 %v17335_v21 }
 0x40f   : >> { %15914 = vmatmul.mubr.msk.f32.gmra.mxu1 %vm632_vm1, %v13459_v31  ;;  %15952 = vmatmul.mubr.msk.f32.gmra.mxu0 %vm632_vm1, %v13509_v23  ;;  %v13657_v23 = vld [vmem:[%s22150_s5 + $0x168] sm:$0xff] }
 0x410   : >> { %15916 = vmatprep.mubr.msk.f32.mxu1 %vm17336_vm4, %v17335_v21  ;;  %15954 = vmatprep.mubr.msk.f32.mxu0 %vm17336_vm4, %v17335_v21 }
 0x413   : >> { %15917 = vmatmul.mubr.msk.f32.gmra.mxu1 %vm632_vm1, %v19644_v47  ;;  %15955 = vmatmul.mubr.msk.f32.gmra.mxu0 %vm632_vm1, %v13510_v39 }
 0x414   : >> { %15919 = vmatprep.mubr.msk.f32.mxu1 %vm17336_vm4, %v17335_v21  ;;  %15957 = vmatprep.mubr.msk.f32.mxu0 %vm17336_vm4, %v17335_v21 }
 0x417   : >> { %15920 = vmatmul.mubr.msk.f32.gmra.mxu1 %vm632_vm1, %v19655_v41  ;;  %15958 = vmatmul.mubr.msk.f32.gmra.mxu0 %vm632_vm1, %v13511_v49 }
 0x418   : >> { %15922 = vmatprep.mubr.msk.f32.mxu1 %vm17336_vm4, %v17335_v21  ;;  %15960 = vmatprep.mubr.msk.f32.mxu0 %vm17336_vm4, %v17335_v21 }
 0x41b   : >> { %15923 = vmatmul.mubr.msk.f32.gmra.mxu1 %vm632_vm1, %v19666_v17  ;;  %15961 = vmatmul.mubr.msk.f32.gmra.mxu0 %vm632_vm1, %v13512_v45  ;;  %v13619_v45 = vld [vmem:[%s19234_s18 + $0x68] sm:$0xff] }
 0x41c   : >> { %15925 = vmatprep.mubr.msk.f32.mxu1 %vm17336_vm4, %v17335_v21  ;;  %15963 = vmatprep.mubr.msk.f32.mxu0 %vm17336_vm4, %v17335_v21 }
 0x41f   : >> { %15926 = vmatmul.mubr.msk.f32.gmra.mxu1 %vm632_vm1, %v19677_v46  ;;  %15964 = vmatmul.mubr.msk.f32.gmra.mxu0 %vm632_vm1, %v13513_v51 }
 0x420   : >> { %15928 = vmatprep.mubr.msk.f32.mxu1 %vm17336_vm4, %v17335_v21  ;;  %15966 = vmatprep.mubr.msk.f32.mxu0 %vm17336_vm4, %v17335_v21 }
 0x423   : >> { %15929 = vmatmul.mubr.msk.f32.gmra.mxu1 %vm632_vm1, %v19688_v53  ;;  %15967 = vmatmul.mubr.msk.f32.gmra.mxu0 %vm632_vm1, %v13514_v48 }
 0x424   : >> { %15969 = vmatprep.mubr.msk.f32.mxu0 %vm17336_vm4, %v17335_v21  ;;  %15980 = vmatprep.mubr.msk.f32.mxu1 %vm17336_vm4, %v17335_v21 }
 0x427   : >> { %15970 = vmatmul.mubr.msk.f32.gmra.mxu0 %vm632_vm1, %v13515_v6  ;;  %15981 = vmatmul.mubr.msk.f32.vlgmr.msra.gmra.mxu1 %vm632_vm1, %v13533_v50  ;;  %v13656_v6 = vld [vmem:[%s22150_s5 + $0x160] sm:$0xff] }
 0x428   : >> { %15983 = vmatprep.mubr.msk.f32.mxu1 %vm17336_vm4, %v17335_v21  ;;  %16021 = vmatprep.mubr.msk.f32.mxu0 %vm17336_vm4, %v17335_v21 }
 0x429   : >> { %16055 = vmatpush3.msra.mxu1 %v13603_v52 }
 0x42a   : >> { %16056 = vmatprep.subr.mxu1 %v17335_v21 }
 0x42b   : >> { %15984 = vmatmul.mubr.msk.f32.gmra.mxu1 %vm632_vm1, %v13534_v22  ;;  %16022 = vmatmul.mubr.msk.f32.vlgmr.msra.gmra.mxu0 %vm632_vm1, %v13561_v25  ;;  %v13620_v22 = vld [vmem:[%s19234_s18 + $0x70] sm:$0xff] }
 0x42c   : >> { %16096 = vmatpush3.msra.mxu0 %v13631_v57  ;;  %15986 = vmatprep.mubr.msk.f32.mxu1 %vm17336_vm4, %v17335_v21 }
 0x42d   : >> { %16024 = vmatprep.mubr.msk.f32.mxu0 %vm17336_vm4, %v17335_v21  ;;  %16057 = vmatpush3.msra.mxu1 %v13602_v58 }
 0x42e   : >> { %16097 = vmatprep.subr.mxu0 %v17335_v21  ;;  %16058 = vmatprep.subr.mxu1 %v17335_v21 }
 0x42f   : >> { %15987 = vmatmul.mubr.msk.f32.gmra.mxu1 %vm632_vm1, %v13535_v63  ;;  %16025 = vmatmul.mubr.msk.f32.gmra.mxu0 %vm632_vm1, %v13562_v1 }
 0x430   : >> { %15989 = vmatprep.mubr.msk.f32.mxu1 %vm17336_vm4, %v17335_v21  ;;  %16027 = vmatprep.mubr.msk.f32.mxu0 %vm17336_vm4, %v17335_v21 }
 0x431   : >> { %16098 = vmatpush3.msra.mxu0 %v13630_v43  ;;  %16059 = vmatpush3.msra.mxu1 %v13601_v60  ;;  %v13621_v43 = vld [vmem:[%s19234_s18 + $0x78] sm:$0xff] }
 0x432   : >> { %16099 = vmatprep.subr.mxu0 %v17335_v21  ;;  %16060 = vmatprep.subr.mxu1 %v17335_v21 }
 0x433   : >> { %15990 = vmatmul.mubr.msk.f32.gmra.mxu1 %vm632_vm1, %v13536_v15  ;;  %16028 = vmatmul.mubr.msk.f32.gmra.mxu0 %vm632_vm1, %v13563_v54 }
 0x434   : >> { %15992 = vmatprep.mubr.msk.f32.mxu1 %vm17336_vm4, %v17335_v21  ;;  %16030 = vmatprep.mubr.msk.f32.mxu0 %vm17336_vm4, %v17335_v21 }
 0x435   : >> { %16100 = vmatpush3.msra.mxu0 %v13629_v20  ;;  %16061 = vmatpush3.msra.mxu1 %v13600_v56 }
 0x436   : >> { %16101 = vmatprep.subr.mxu0 %v17335_v21  ;;  %16136 = vmatprep.subr.mxu1 %v17335_v21 }
 0x437   : >> { %15993 = vmatmul.mubr.msk.f32.gmra.mxu1 %vm632_vm1, %v13537_v62  ;;  %16031 = vmatmul.mubr.msk.f32.gmra.mxu0 %vm632_vm1, %v13564_v0  ;;  %v13622_v62 = vld [vmem:[%s19234_s18 + $0x80] sm:$0xff] }
 0x438   : >> { %15995 = vmatprep.mubr.msk.f32.mxu1 %vm17336_vm4, %v17335_v21  ;;  %16033 = vmatprep.mubr.msk.f32.mxu0 %vm17336_vm4, %v17335_v21 }
 0x439   : >> { %16102 = vmatpush3.msra.mxu0 %v13628_v18 }
 0x43a   : >> { %16177 = vmatprep.subr.mxu0 %v17335_v21 }
 0x43b   : >> { %15996 = vmatmul.mubr.msk.f32.gmra.mxu1 %vm632_vm1, %v13538_v28  ;;  %16034 = vmatmul.mubr.msk.f32.gmra.mxu0 %vm632_vm1, %v13565_v30 }
 0x43c   : >> { %15998 = vmatprep.mubr.msk.f32.mxu1 %vm17336_vm4, %v17335_v21  ;;  %16036 = vmatprep.mubr.msk.f32.mxu0 %vm17336_vm4, %v17335_v21 }
 0x43f   : >> { %15999 = vmatmul.mubr.msk.f32.gmra.mxu1 %vm632_vm1, %v13539_v8  ;;  %16037 = vmatmul.mubr.msk.f32.gmra.mxu0 %vm632_vm1, %v13566_v55 }
 0x440   : >> { %16001 = vmatprep.mubr.msk.f32.mxu1 %vm17336_vm4, %v17335_v21  ;;  %16039 = vmatprep.mubr.msk.f32.mxu0 %vm17336_vm4, %v17335_v21 }
 0x443   : >> { %16002 = vmatmul.mubr.msk.f32.gmra.mxu1 %vm632_vm1, %v13540_v9  ;;  %16040 = vmatmul.mubr.msk.f32.gmra.mxu0 %vm632_vm1, %v13567_v42  ;;  %v13623_v9 = vld [vmem:[%s19234_s18 + $0x88] sm:$0xff] }
 0x444   : >> { %16004 = vmatprep.mubr.msk.f32.mxu1 %vm17336_vm4, %v17335_v21  ;;  %16042 = vmatprep.mubr.msk.f32.mxu0 %vm17336_vm4, %v17335_v21 }
 0x447   : >> { %16005 = vmatmul.mubr.msk.f32.gmra.mxu1 %vm632_vm1, %v13541_v14  ;;  %16043 = vmatmul.mubr.msk.f32.gmra.mxu0 %vm632_vm1, %v13568_v36 }
 0x448   : >> { %16007 = vmatprep.mubr.msk.f32.mxu1 %vm17336_vm4, %v17335_v21  ;;  %16045 = vmatprep.mubr.msk.f32.mxu0 %vm17336_vm4, %v17335_v21 }
 0x44b   : >> { %16008 = vmatmul.mubr.msk.f32.gmra.mxu1 %vm632_vm1, %v13542_v2  ;;  %16046 = vmatmul.mubr.msk.f32.gmra.mxu0 %vm632_vm1, %v13569_v27 }
 0x44c   : >> { %16010 = vmatprep.mubr.msk.f32.mxu1 %vm17336_vm4, %v17335_v21  ;;  %16048 = vmatprep.mubr.msk.f32.mxu0 %vm17336_vm4, %v17335_v21 }
 0x44f   : >> { %v19812_v4 = vpop.f32.mrf.mxu0  ;;  %v19814_v7 = vpop.f32.mrf.mxu1  ;;  %16011 = vmatmul.mubr.msk.f32.gmra.mxu1 %vm632_vm1, %v13543_v16  ;;  %16049 = vmatmul.mubr.msk.f32.gmra.mxu0 %vm632_vm1, %v13570_v38  ;;  %v13624_v38 = vld [vmem:[%s19234_s18 + $0x90] sm:$0xff] }
 0x450   : >> { %16051 = vmatprep.mubr.msk.f32.mxu0 %vm17336_vm4, %v17335_v21  ;;  %16062 = vmatprep.mubr.msk.f32.mxu1 %vm17336_vm4, %v17335_v21 }
 0x451   : >> { %v15695_v24 = vpop.f32.mrf.mxu0  ;;  %v15713_v31 = vpop.f32.mrf.mxu1 }
 0x453   : >> { %v19826_v10 = vpop.f32.mrf.mxu0  ;;  %v19828_v35 = vpop.f32.mrf.mxu1  ;;  %16052 = vmatmul.mubr.msk.f32.gmra.mxu0 %vm632_vm1, %v13571_v5  ;;  %16063 = vmatmul.mubr.msk.f32.vlgmr.msra.gmra.mxu1 %vm632_vm1, %v19395_v19  ;;  %v13658_v19 = vld [vmem:[%s22150_s5 + $0x170] sm:$0xff] }
 0x454   : >> { %16065 = vmatprep.mubr.msk.f32.mxu1 %vm17336_vm4, %v17335_v21  ;;  %16103 = vmatprep.mubr.msk.f32.mxu0 %vm17336_vm4, %v17335_v21 }
 0x455   : >> { %v15698_v29 = vpop.f32.mrf.mxu0  ;;  %v15716_v3 = vpop.f32.mrf.mxu1  ;;  %16137 = vmatpush3.msra.mxu1 %v13659_v34 }
 0x456   : >> { %16138 = vmatprep.subr.mxu1 %v17335_v21 }
 0x457   : >> { %v19847_v37 = vpop.f32.mrf.mxu0  ;;  %v19849_v12 = vpop.f32.mrf.mxu1  ;;  %16066 = vmatmul.mubr.msk.f32.gmra.mxu1 %vm632_vm1, %v19406_v59  ;;  %16104 = vmatmul.mubr.msk.f32.vlgmr.msra.gmra.mxu0 %vm632_vm1, %v19838_v26  ;;  %v13686_v59 = vld [vmem:[%s22150_s5 + $0x190] sm:$0xff] }
 0x458   : >> { %16178 = vmatpush3.msra.mxu0 %v13687_v11  ;;  %16068 = vmatprep.mubr.msk.f32.mxu1 %vm17336_vm4, %v17335_v21 }
 0x459   : >> { %v15701_v13 = vpop.f32.mrf.mxu0  ;;  %v15719_v33 = vpop.f32.mrf.mxu1  ;;  %16106 = vmatprep.mubr.msk.f32.mxu0 %vm17336_vm4, %v17335_v21  ;;  %16139 = vmatpush3.msra.mxu1 %v13658_v19 }
 0x45a   : >> { %16179 = vmatprep.subr.mxu0 %v17335_v21  ;;  %16140 = vmatprep.subr.mxu1 %v17335_v21  ;;  %v13626_v13 = vld [vmem:[%s19234_s18 + $0xa0] sm:$0xff] }
 0x45b   : >> { %v19870_v39 = vpop.f32.mrf.mxu0  ;;  %v19872_v49 = vpop.f32.mrf.mxu1  ;;  %16069 = vmatmul.mubr.msk.f32.gmra.mxu1 %vm632_vm1, %v19417_v44  ;;  %16107 = vmatmul.mubr.msk.f32.gmra.mxu0 %vm632_vm1, %v19858_v40  ;;  %v13685_v44 = vld [vmem:[%s22150_s5 + $0x188] sm:$0xff] }
 0x45c   : >> { %16071 = vmatprep.mubr.msk.f32.mxu1 %vm17336_vm4, %v17335_v21  ;;  %16109 = vmatprep.mubr.msk.f32.mxu0 %vm17336_vm4, %v17335_v21 }
 0x45d   : >> { %v15704_v51 = vpop.f32.mrf.mxu0  ;;  %v15722_v48 = vpop.f32.mrf.mxu1  ;;  %16180 = vmatpush3.msra.mxu0 %v13686_v59  ;;  %16141 = vmatpush3.msra.mxu1 %v13657_v23 }
 0x45e   : >> { %16181 = vmatprep.subr.mxu0 %v17335_v21  ;;  %16142 = vmatprep.subr.mxu1 %v17335_v21  ;;  %v13627_v48 = vld [vmem:[%s19234_s18 + $0xa8] sm:$0xff] }
 0x45f   : >> { %v19891_v50 = vpop.f32.mrf.mxu0  ;;  %v19893_v52 = vpop.f32.mrf.mxu1  ;;  %16072 = vmatmul.mubr.msk.f32.gmra.mxu1 %vm632_vm1, %v19428_v61  ;;  %16110 = vmatmul.mubr.msk.f32.gmra.mxu0 %vm632_vm1, %v13619_v45  ;;  %v13684_v61 = vld [vmem:[%s22150_s5 + $0x180] sm:$0xff] }
 0x460   : >> { %16074 = vmatprep.mubr.msk.f32.mxu1 %vm17336_vm4, %v17335_v21  ;;  %16112 = vmatprep.mubr.msk.f32.mxu0 %vm17336_vm4, %v17335_v21 }
 0x461   : >> { %v15707_v25 = vpop.f32.mrf.mxu0  ;;  %v15725_v57 = vpop.f32.mrf.mxu1  ;;  %16182 = vmatpush3.msra.mxu0 %v13685_v44  ;;  %16143 = vmatpush3.msra.mxu1 %v13656_v6  ;;  %v13645_v44 = vld [vmem:[%s19234_s18 + $0x59] sm:$0xff] }
 0x462   : >> { %16183 = vmatprep.subr.mxu0 %v17335_v21  ;;  %16218 = vmatprep.subr.mxu1 %v17335_v21 }
 0x463   : >> { %v4678_v58 = vpop.f32.mrf.mxu0  ;;  %v4806_v63 = vpop.f32.mrf.mxu1  ;;  %16075 = vmatmul.mubr.msk.f32.gmra.mxu1 %vm632_vm1, %v19439_v32  ;;  %16113 = vmatmul.mubr.msk.f32.gmra.mxu0 %vm632_vm1, %v13620_v22 }
 0x464   : >> { %v4807_v1 = vadd.f32 %v4806_v63, %v19812_v4  ;;  %16077 = vmatprep.mubr.msk.f32.mxu1 %vm17336_vm4, %v17335_v21  ;;  %16115 = vmatprep.mubr.msk.f32.mxu0 %vm17336_vm4, %v17335_v21  ;;  %v13673_v63 = vld [vmem:[%s19234_s18 + $0x5a] sm:$0xff] }
 0x465   : >> { %v15710_v60 = vpop.f32.mrf.mxu0  ;;  %v15736_v15 = vpop.f32.mrf.mxu1  ;;  %16184 = vmatpush3.msra.mxu0 %v13684_v61 }
 0x466   : >> { %16259 = vmatprep.subr.mxu0 %v17335_v21  ;;  %v13743_v60 = vld [vmem:[%s22150_s5 + $0x1d8] sm:$0xff] }
 0x467   : >> { %v4811_v54 = vpop.f32.mrf.mxu1  ;;  %v4977_v20 = vpop.f32.mrf.mxu0  ;;  %16078 = vmatmul.mubr.msk.f32.gmra.mxu1 %vm632_vm1, %v19838_v26  ;;  %16116 = vmatmul.mubr.msk.f32.gmra.mxu0 %vm632_vm1, %v13621_v43  ;;  %v13625_v26 = vld [vmem:[%s19234_s18 + $0x98] sm:$0xff] }
 0x468   : >> { %v4812_v32 = vadd.f32 %v4811_v54, %v19826_v10  ;;  %v19922_v56 = vadd.f32 %v4977_v20, %v4807_v1  ;;  %16080 = vmatprep.mubr.msk.f32.mxu1 %vm17336_vm4, %v17335_v21  ;;  %16118 = vmatprep.mubr.msk.f32.mxu0 %vm17336_vm4, %v17335_v21 }
 0x469   : >> { %v15739_v0 = vpop.f32.mrf.mxu1  ;;  %v15777_v18 = vpop.f32.mrf.mxu0 }
 0x46a   : >> { %v13674_v0 = vld [vmem:[%s19234_s18 + $0x62] sm:$0xff] }
 0x46b   : >> { %v4816_v28 = vpop.f32.mrf.mxu1  ;;  %v4982_v30 = vpop.f32.mrf.mxu0  ;;  %16081 = vmatmul.mubr.msk.f32.gmra.mxu1 %vm632_vm1, %v19858_v40  ;;  %16119 = vmatmul.mubr.msk.f32.gmra.mxu0 %vm632_vm1, %v13622_v62 }
 0x46c   : >> { %v4817_v8 = vadd.f32 %v4816_v28, %v19847_v37  ;;  %v19933_v55 = vadd.f32 %v4982_v30, %v4812_v32  ;;  %16083 = vmatprep.mubr.msk.f32.mxu1 %vm17336_vm4, %v17335_v21  ;;  %16121 = vmatprep.mubr.msk.f32.mxu0 %vm17336_vm4, %v17335_v21  ;;  %v13713_v30 = vld [vmem:[%s22150_s5 + $0x1a8] sm:$0xff] }
 0x46d   : >> { %v15742_v42 = vpop.f32.mrf.mxu1  ;;  %v15780_v14 = vpop.f32.mrf.mxu0 }
 0x46f   : >> { %v4821_v36 = vpop.f32.mrf.mxu1  ;;  %v4987_v2 = vpop.f32.mrf.mxu0  ;;  %16084 = vmatmul.mubr.msk.f32.gmra.mxu1 %vm632_vm1, %v13619_v45  ;;  %16122 = vmatmul.mubr.msk.f32.gmra.mxu0 %vm632_vm1, %v13623_v9 }
 0x470   : >> { %v4822_v27 = vadd.f32 %v4821_v36, %v19870_v39  ;;  %v19943_v16 = vadd.f32 %v4987_v2, %v4817_v8  ;;  %16086 = vmatprep.mubr.msk.f32.mxu1 %vm17336_vm4, %v17335_v21  ;;  %16124 = vmatprep.mubr.msk.f32.mxu0 %vm17336_vm4, %v17335_v21  ;;  %v13648_v36 = vld [vmem:[%s19234_s18 + $0x71] sm:$0xff] }
 0x471   : >> { %v15745_v4 = vpop.f32.mrf.mxu1  ;;  %v15783_v5 = vpop.f32.mrf.mxu0  ;;  %v13675_v2 = vld [vmem:[%s19234_s18 + $0x6a] sm:$0xff] }
 0x472   : >> { %v13712_v4 = vld [vmem:[%s22150_s5 + $0x1a0] sm:$0xff] }
 0x473   : >> { %v4826_v24 = vpop.f32.mrf.mxu1  ;;  %v4992_v31 = vpop.f32.mrf.mxu0  ;;  %16087 = vmatmul.mubr.msk.f32.gmra.mxu1 %vm632_vm1, %v13620_v22  ;;  %16125 = vmatmul.mubr.msk.f32.gmra.mxu0 %vm632_vm1, %v13624_v38  ;;  %v13715_v22 = vld [vmem:[%s22150_s5 + $0x1b8] sm:$0xff] }
 0x474   : >> { %v4827_v34 = vadd.f32 %v4826_v24, %v19891_v50  ;;  %v19953_v10 = vadd.f32 %v4992_v31, %v4822_v27  ;;  %16089 = vmatprep.mubr.msk.f32.mxu1 %vm17336_vm4, %v17335_v21  ;;  %16127 = vmatprep.mubr.msk.f32.mxu0 %vm17336_vm4, %v17335_v21 }
 0x475   : >> { %v15748_v29 = vpop.f32.mrf.mxu1  ;;  %v15786_v3 = vpop.f32.mrf.mxu0 }
 0x476   : >> { %v13676_v29 = vld [vmem:[%s19234_s18 + $0x72] sm:$0xff] }
 0x477   : >> { %v4831_v11 = vpop.f32.mrf.mxu1  ;;  %v4997_v19 = vpop.f32.mrf.mxu0  ;;  %16090 = vmatmul.mubr.msk.f32.gmra.mxu1 %vm632_vm1, %v13621_v43  ;;  %16128 = vmatmul.mubr.msk.f32.gmra.mxu0 %vm632_vm1, %v13625_v26  ;;  %v13649_v26 = vld [vmem:[%s19234_s18 + $0x79] sm:$0xff] }
 0x478   : >> { %v4832_v37 = vadd.f32 %v4831_v11, %v4678_v58  ;;  %v19962_v40 = vadd.f32 %v4997_v19, %v4827_v34  ;;  %16092 = vmatprep.mubr.msk.f32.mxu1 %vm17336_vm4, %v17335_v21  ;;  %16130 = vmatprep.mubr.msk.f32.mxu0 %vm17336_vm4, %v17335_v21  ;;  %v13646_v58 = vld [vmem:[%s19234_s18 + $0x61] sm:$0xff] }
 0x479   : >> { %v15751_v33 = vpop.f32.mrf.mxu1  ;;  %v15789_v59 = vpop.f32.mrf.mxu0 }
 0x47a   : >> { %v13650_v59 = vld [vmem:[%s19234_s18 + $0x81] sm:$0xff] }
 0x47b   : >> { %v4836_v23 = vpop.f32.mrf.mxu1  ;;  %v5002_v39 = vpop.f32.mrf.mxu0  ;;  %16093 = vmatmul.mubr.msk.f32.gmra.mxu1 %vm632_vm1, %v13622_v62  ;;  %16131 = vmatmul.mubr.msk.f32.gmra.mxu0 %vm632_vm1, %v13626_v13  ;;  %v13647_v62 = vld [vmem:[%s19234_s18 + $0x69] sm:$0xff] }
 0x47c   : >> { %v4837_v45 = vadd.f32 %v4836_v23, %v19814_v7  ;;  %v19972_v51 = vadd.f32 %v5002_v39, %v4832_v37  ;;  %16133 = vmatprep.mubr.msk.f32.mxu0 %vm17336_vm4, %v17335_v21  ;;  %16144 = vmatprep.mubr.msk.f32.mxu1 %vm17336_vm4, %v17335_v21  ;;  %v13677_v23 = vld [vmem:[%s19234_s18 + $0x7a] sm:$0xff] }
 0x47d   : >> { %v15754_v6 = vpop.f32.mrf.mxu1  ;;  %v15792_v50 = vpop.f32.mrf.mxu0 }
 0x47e   : >> { %v13651_v50 = vld [vmem:[%s19234_s18 + $0x89] sm:$0xff] }
 0x47f   : >> { %v4841_v25 = vpop.f32.mrf.mxu1  ;;  %v5007_v7 = vpop.f32.mrf.mxu0  ;;  %16134 = vmatmul.mubr.msk.f32.gmra.mxu0 %vm632_vm1, %v13627_v48  ;;  %16145 = vmatmul.mubr.msk.f32.vlgmr.msra.gmra.mxu1 %vm632_vm1, %v13645_v44 }
 0x480   : >> { %v4842_v57 = vadd.f32 %v4841_v25, %v19828_v35  ;;  %v19986_v61 = vadd.f32 %v5007_v7, %v4837_v45  ;;  %16147 = vmatprep.mubr.msk.f32.mxu1 %vm17336_vm4, %v17335_v21  ;;  %16185 = vmatprep.mubr.msk.f32.mxu0 %vm17336_vm4, %v17335_v21  ;;  %v13714_v35 = vld [vmem:[%s22150_s5 + $0x1b0] sm:$0xff] }
 0x481   : >> { %v15757_v1 = vpop.f32.mrf.mxu1  ;;  %v15795_v43 = vpop.f32.mrf.mxu0  ;;  %16219 = vmatpush3.msra.mxu1 %v13715_v22  ;;  %v13678_v22 = vld [vmem:[%s19234_s18 + $0x82] sm:$0xff] }
 0x482   : >> { %16220 = vmatprep.subr.mxu1 %v17335_v21  ;;  %v13652_v1 = vld [vmem:[%s19234_s18 + $0x91] sm:$0xff] }
 0x483   : >> { %v4846_v15 = vpop.f32.mrf.mxu1  ;;  %v5012_v54 = vpop.f32.mrf.mxu0  ;;  %16148 = vmatmul.mubr.msk.f32.gmra.mxu1 %vm632_vm1, %v13646_v58  ;;  %16186 = vmatmul.mubr.msk.f32.vlgmr.msra.gmra.mxu0 %vm632_vm1, %v13673_v63  ;;  %v13679_v43 = vld [vmem:[%s19234_s18 + $0x8a] sm:$0xff] }
 0x484   : >> { %v4847_v20 = vadd.f32 %v4846_v15, %v19849_v12  ;;  %v20004_v32 = vadd.f32 %v5012_v54, %v4842_v57  ;;  %16260 = vmatpush3.msra.mxu0 %v13743_v60  ;;  %16150 = vmatprep.mubr.msk.f32.mxu1 %vm17336_vm4, %v17335_v21  ;;  %v13742_v12 = vld [vmem:[%s22150_s5 + $0x1d0] sm:$0xff] }
 0x485   : >> { %v15760_v18 = vpop.f32.mrf.mxu1  ;;  %v15798_v28 = vpop.f32.mrf.mxu0  ;;  %16188 = vmatprep.mubr.msk.f32.mxu0 %vm17336_vm4, %v17335_v21  ;;  %16221 = vmatpush3.msra.mxu1 %v13714_v35 }
 0x486   : >> { %16261 = vmatprep.subr.mxu0 %v17335_v21  ;;  %16222 = vmatprep.subr.mxu1 %v17335_v21 }
 0x487   : >> { %v4851_v8 = vpop.f32.mrf.mxu1  ;;  %v5017_v9 = vpop.f32.mrf.mxu0  ;;  %16151 = vmatmul.mubr.msk.f32.gmra.mxu1 %vm632_vm1, %v13647_v62  ;;  %16189 = vmatmul.mubr.msk.f32.gmra.mxu0 %vm632_vm1, %v13674_v0  ;;  %v13653_v62 = vld [vmem:[%s19234_s18 + $0x99] sm:$0xff] }
 0x488   : >> { %v4852_v42 = vadd.f32 %v4851_v8, %v19872_v49  ;;  %v20023_v14 = vadd.f32 %v5017_v9, %v4847_v20  ;;  %16153 = vmatprep.mubr.msk.f32.mxu1 %vm17336_vm4, %v17335_v21  ;;  %16191 = vmatprep.mubr.msk.f32.mxu0 %vm17336_vm4, %v17335_v21  ;;  %v13741_v49 = vld [vmem:[%s22150_s5 + $0x1c8] sm:$0xff]  ;;  %v13680_v0 = vld [vmem:[%s19234_s18 + $0x92] sm:$0xff] }
 0x489   : >> { %v15763_v27 = vpop.f32.mrf.mxu1  ;;  %v15801_v38 = vpop.f32.mrf.mxu0  ;;  %16262 = vmatpush3.msra.mxu0 %v13742_v12  ;;  %16223 = vmatpush3.msra.mxu1 %v13713_v30  ;;  %v13654_v9 = vld [vmem:[%s19234_s18 + $0xa1] sm:$0xff] }
 0x48a   : >> { %16263 = vmatprep.subr.mxu0 %v17335_v21  ;;  %16224 = vmatprep.subr.mxu1 %v17335_v21 }
 0x48b   : >> { %v4856_v5 = vpop.f32.mrf.mxu1  ;;  %v5022_v24 = vpop.f32.mrf.mxu0  ;;  %16154 = vmatmul.mubr.msk.f32.gmra.mxu1 %vm632_vm1, %v13648_v36  ;;  %16192 = vmatmul.mubr.msk.f32.gmra.mxu0 %vm632_vm1, %v13675_v2 }
 0x48c   : >> { %v4857_v31 = vadd.f32 %v4856_v5, %v19893_v52  ;;  %v20042_v34 = vadd.f32 %v5022_v24, %v4852_v42  ;;  %16156 = vmatprep.mubr.msk.f32.mxu1 %vm17336_vm4, %v17335_v21  ;;  %16194 = vmatprep.mubr.msk.f32.mxu0 %vm17336_vm4, %v17335_v21  ;;  %v13740_v52 = vld [vmem:[%s22150_s5 + $0x1c0] sm:$0xff] }
 0x48d   : >> { %v15766_v3 = vpop.f32.mrf.mxu1  ;;  %v15804_v11 = vpop.f32.mrf.mxu0  ;;  %16264 = vmatpush3.msra.mxu0 %v13741_v49  ;;  %16225 = vmatpush3.msra.mxu1 %v13712_v4  ;;  %v13681_v42 = vld [vmem:[%s19234_s18 + $0x9a] sm:$0xff]  ;;  %v13655_v4 = vld [vmem:[%s19234_s18 + $0xa9] sm:$0xff] }
 0x48e   : >> { %16265 = vmatprep.subr.mxu0 %v17335_v21  ;;  %16300 = vmatprep.subr.mxu1 %v17335_v21  ;;  %v13682_v5 = vld [vmem:[%s19234_s18 + $0xa2] sm:$0xff]  ;;  %v13683_v11 = vld [vmem:[%s19234_s18 + $0xaa] sm:$0xff] }
 0x48f   : >> { %v5027_v19 = vpop.f32.mrf.mxu0  ;;  %v5159_v37 = vpop.f32.mrf.mxu1  ;;  %16157 = vmatmul.mubr.msk.f32.gmra.mxu1 %vm632_vm1, %v13649_v26  ;;  %16195 = vmatmul.mubr.msk.f32.gmra.mxu0 %vm632_vm1, %v13676_v29 }
 0x490   : >> { %v20057_v13 = vadd.f32 %v5027_v19, %v4857_v31  ;;  %v5213_v33 = vadd.f32 %v5159_v37, %v19922_v56  ;;  %16159 = vmatprep.mubr.msk.f32.mxu1 %vm17336_vm4, %v17335_v21  ;;  %16197 = vmatprep.mubr.msk.f32.mxu0 %vm17336_vm4, %v17335_v21 }
 0x491   : >> { %v15807_v39 = vpop.f32.mrf.mxu0  ;;  %v15818_v45 = vpop.f32.mrf.mxu1  ;;  %16266 = vmatpush3.msra.mxu0 %v13740_v52  ;;  %v13701_v52 = vld [vmem:[%s19234_s18 + $0x5b] sm:$0xff] }
 0x492   : >> { %16341 = vmatprep.subr.mxu0 %v17335_v21  ;;  %v13702_v45 = vld [vmem:[%s19234_s18 + $0x63] sm:$0xff] }
 0x493   : >> { %v5164_v48 = vpop.f32.mrf.mxu1  ;;  %v5341_v44 = vpop.f32.mrf.mxu0  ;;  %16160 = vmatmul.mubr.msk.f32.gmra.mxu1 %vm632_vm1, %v13650_v59  ;;  %16198 = vmatmul.mubr.msk.f32.gmra.mxu0 %vm632_vm1, %v13677_v23 }
 0x494   : >> { %v5214_v56 = vadd.f32 %v5164_v48, %v19933_v55  ;;  %v20070_v6 = vadd.f32 %v5341_v44, %v5213_v33  ;;  %16162 = vmatprep.mubr.msk.f32.mxu1 %vm17336_vm4, %v17335_v21  ;;  %16200 = vmatprep.mubr.msk.f32.mxu0 %vm17336_vm4, %v17335_v21  ;;  %v13771_v33 = vld [vmem:[%s22150_s5 + $0x1f8] sm:$0xff] }
 0x495   : >> { %v15821_v25 = vpop.f32.mrf.mxu1  ;;  %v15859_v7 = vpop.f32.mrf.mxu0 }
 0x497   : >> { %v5169_v57 = vpop.f32.mrf.mxu1  ;;  %v5346_v58 = vpop.f32.mrf.mxu0  ;;  %16163 = vmatmul.mubr.msk.f32.gmra.mxu1 %vm632_vm1, %v13651_v50  ;;  %16201 = vmatmul.mubr.msk.f32.gmra.mxu0 %vm632_vm1, %v13678_v22 }
 0x498   : >> { %v5215_v55 = vadd.f32 %v5169_v57, %v19943_v16  ;;  %v20081_v63 = vadd.f32 %v5346_v58, %v5214_v56  ;;  %16165 = vmatprep.mubr.msk.f32.mxu1 %vm17336_vm4, %v17335_v21  ;;  %16203 = vmatprep.mubr.msk.f32.mxu0 %vm17336_vm4, %v17335_v21  ;;  %v13799_v56 = vld [vmem:[%s22150_s5 + $0x218] sm:$0xff]  ;;  %v13703_v57 = vld [vmem:[%s19234_s18 + $0x6b] sm:$0xff] }
 0x499   : >> { %v15824_v60 = vpop.f32.mrf.mxu1  ;;  %v15862_v35 = vpop.f32.mrf.mxu0 }
 0x49b   : >> { %v5174_v15 = vpop.f32.mrf.mxu1  ;;  %v5351_v54 = vpop.f32.mrf.mxu0  ;;  %16166 = vmatmul.mubr.msk.f32.gmra.mxu1 %vm632_vm1, %v13652_v1  ;;  %16204 = vmatmul.mubr.msk.f32.gmra.mxu0 %vm632_vm1, %v13679_v43 }
 0x49c   : >> { %v5216_v16 = vadd.f32 %v5174_v15, %v19953_v10  ;;  %v20092_v20 = vadd.f32 %v5351_v54, %v5215_v55  ;;  %16168 = vmatprep.mubr.msk.f32.mxu1 %vm17336_vm4, %v17335_v21  ;;  %16206 = vmatprep.mubr.msk.f32.mxu0 %vm17336_vm4, %v17335_v21  ;;  %v13704_v15 = vld [vmem:[%s19234_s18 + $0x73] sm:$0xff] }
 0x49d   : >> { %v15827_v18 = vpop.f32.mrf.mxu1  ;;  %v15865_v28 = vpop.f32.mrf.mxu0 }
 0x49f   : >> { %v5179_v12 = vpop.f32.mrf.mxu1  ;;  %v5356_v30 = vpop.f32.mrf.mxu0  ;;  %16169 = vmatmul.mubr.msk.f32.gmra.mxu1 %vm632_vm1, %v13653_v62  ;;  %16207 = vmatmul.mubr.msk.f32.gmra.mxu0 %vm632_vm1, %v13680_v0 }
 0x4a0   : >> { %v5217_v10 = vadd.f32 %v5179_v12, %v19962_v40  ;;  %v20103_v8 = vadd.f32 %v5356_v30, %v5216_v16  ;;  %16171 = vmatprep.mubr.msk.f32.mxu1 %vm17336_vm4, %v17335_v21  ;;  %16209 = vmatprep.mubr.msk.f32.mxu0 %vm17336_vm4, %v17335_v21  ;;  %v13705_v12 = vld [vmem:[%s19234_s18 + $0x7b] sm:$0xff] }
 0x4a1   : >> { %v15830_v36 = vpop.f32.mrf.mxu1  ;;  %v15868_v2 = vpop.f32.mrf.mxu0 }
 0x4a2   : >> { %v13706_v2 = vld [vmem:[%s19234_s18 + $0x83] sm:$0xff] }
 0x4a3   : >> { %v5184_v27 = vpop.f32.mrf.mxu1  ;;  %v5361_v38 = vpop.f32.mrf.mxu0  ;;  %16172 = vmatmul.mubr.msk.f32.gmra.mxu1 %vm632_vm1, %v13654_v9  ;;  %16210 = vmatmul.mubr.msk.f32.gmra.mxu0 %vm632_vm1, %v13681_v42 }
 0x4a4   : >> { %v5218_v40 = vadd.f32 %v5184_v27, %v19972_v51  ;;  %v20114_v49 = vadd.f32 %v5361_v38, %v5217_v10  ;;  %16174 = vmatprep.mubr.msk.f32.mxu1 %vm17336_vm4, %v17335_v21  ;;  %16212 = vmatprep.mubr.msk.f32.mxu0 %vm17336_vm4, %v17335_v21 }
 0x4a5   : >> { %v15833_v24 = vpop.f32.mrf.mxu1  ;;  %v15871_v31 = vpop.f32.mrf.mxu0 }
 0x4a6   : >> { %v20231_v24 = vld [vmem:[%s19234_s18 + $0x84] sm:$0xff] }
 0x4a7   : >> { %v5189_v26 = vpop.f32.mrf.mxu1  ;;  %v5366_v29 = vpop.f32.mrf.mxu0  ;;  %16175 = vmatmul.mubr.msk.f32.gmra.mxu1 %vm632_vm1, %v13655_v4  ;;  %16213 = vmatmul.mubr.msk.f32.gmra.mxu0 %vm632_vm1, %v13682_v5  ;;  %v13707_v5 = vld [vmem:[%s19234_s18 + $0x8b] sm:$0xff] }
 0x4a8   : >> { %v5219_v51 = vadd.f32 %v5189_v26, %v19986_v61  ;;  %v20125_v3 = vadd.f32 %v5366_v29, %v5218_v40  ;;  %16215 = vmatprep.mubr.msk.f32.mxu0 %vm17336_vm4, %v17335_v21  ;;  %16226 = vmatprep.mubr.msk.f32.mxu1 %vm17336_vm4, %v17335_v21 }
 0x4a9   : >> { %v15836_v19 = vpop.f32.mrf.mxu1  ;;  %v15874_v37 = vpop.f32.mrf.mxu0 }
 0x4ab   : >> { %v5194_v59 = vpop.f32.mrf.mxu1  ;;  %v5371_v23 = vpop.f32.mrf.mxu0  ;;  %16216 = vmatmul.mubr.msk.f32.gmra.mxu0 %vm632_vm1, %v13683_v11  ;;  %16227 = vmatmul.mubr.msk.f32.vlgmr.msra.gmra.mxu1 %vm632_vm1, %v13701_v52  ;;  %v13708_v11 = vld [vmem:[%s19234_s18 + $0x93] sm:$0xff] }
 0x4ac   : >> { %v5220_v61 = vadd.f32 %v5194_v59, %v20004_v32  ;;  %v20139_v39 = vadd.f32 %v5371_v23, %v5219_v51  ;;  %16229 = vmatprep.mubr.msk.f32.mxu1 %vm17336_vm4, %v17335_v21  ;;  %16267 = vmatprep.mubr.msk.f32.mxu0 %vm17336_vm4, %v17335_v21  ;;  %v13770_v32 = vld [vmem:[%s22150_s5 + $0x1f0] sm:$0xff] }
 0x4ad   : >> { %v15839_v48 = vpop.f32.mrf.mxu1  ;;  %v15877_v44 = vpop.f32.mrf.mxu0  ;;  %16301 = vmatpush3.msra.mxu1 %v13771_v33  ;;  %v20245_v52 = vld [vmem:[%s19234_s18 + $0x8c] sm:$0xff] }
 0x4ae   : >> { %16302 = vmatprep.subr.mxu1 %v17335_v21 }
 0x4af   : >> { %v5199_v50 = vpop.f32.mrf.mxu1  ;;  %v5376_v22 = vpop.f32.mrf.mxu0  ;;  %16230 = vmatmul.mubr.msk.f32.gmra.mxu1 %vm632_vm1, %v13702_v45  ;;  %16268 = vmatmul.mubr.msk.f32.vlgmr.msra.gmra.mxu0 %vm632_vm1, %v19644_v47  ;;  %v13798_v47 = vld [vmem:[%s22150_s5 + $0x210] sm:$0xff] }
 0x4b0   : >> { %v5221_v25 = vadd.f32 %v5199_v50, %v20023_v14  ;;  %v20157_v7 = vadd.f32 %v5376_v22, %v5220_v61  ;;  %16342 = vmatpush3.msra.mxu0 %v13799_v56  ;;  %16232 = vmatprep.mubr.msk.f32.mxu1 %vm17336_vm4, %v17335_v21  ;;  %v13769_v14 = vld [vmem:[%s22150_s5 + $0x1e8] sm:$0xff]  ;;  %v13709_v61 = vld [vmem:[%s19234_s18 + $0x9b] sm:$0xff] }
 0x4b1   : >> { %v15842_v58 = vpop.f32.mrf.mxu1  ;;  %v15880_v55 = vpop.f32.mrf.mxu0  ;;  %16270 = vmatprep.mubr.msk.f32.mxu0 %vm17336_vm4, %v17335_v21  ;;  %16303 = vmatpush3.msra.mxu1 %v13770_v32  ;;  %v20259_v45 = vld [vmem:[%s19234_s18 + $0x94] sm:$0xff]  ;;  %v13710_v22 = vld [vmem:[%s19234_s18 + $0xa3] sm:$0xff] }
 0x4b2   : >> { %16343 = vmatprep.subr.mxu0 %v17335_v21  ;;  %16304 = vmatprep.subr.mxu1 %v17335_v21 }
 0x4b3   : >> { %v5204_v1 = vpop.f32.mrf.mxu1  ;;  %v5381_v43 = vpop.f32.mrf.mxu0  ;;  %16233 = vmatmul.mubr.msk.f32.gmra.mxu1 %vm632_vm1, %v13703_v57  ;;  %16271 = vmatmul.mubr.msk.f32.gmra.mxu0 %vm632_vm1, %v19655_v41  ;;  %v13797_v41 = vld [vmem:[%s22150_s5 + $0x208] sm:$0xff] }
 0x4b4   : >> { %v5222_v60 = vadd.f32 %v5204_v1, %v20042_v34  ;;  %v20176_v35 = vadd.f32 %v5381_v43, %v5221_v25  ;;  %16235 = vmatprep.mubr.msk.f32.mxu1 %vm17336_vm4, %v17335_v21  ;;  %16273 = vmatprep.mubr.msk.f32.mxu0 %vm17336_vm4, %v17335_v21  ;;  %v13768_v34 = vld [vmem:[%s22150_s5 + $0x1e0] sm:$0xff]  ;;  %v13711_v1 = vld [vmem:[%s19234_s18 + $0xab] sm:$0xff] }
 0x4b5   : >> { %v15845_v54 = vpop.f32.mrf.mxu1  ;;  %v15883_v16 = vpop.f32.mrf.mxu0  ;;  %16344 = vmatpush3.msra.mxu0 %v13798_v47  ;;  %16305 = vmatpush3.msra.mxu1 %v13769_v14  ;;  %v20273_v25 = vld [vmem:[%s19234_s18 + $0x9c] sm:$0xff]  ;;  %v20287_v43 = vld [vmem:[%s19234_s18 + $0xa4] sm:$0xff] }
 0x4b6   : >> { %16345 = vmatprep.subr.mxu0 %v17335_v21  ;;  %16306 = vmatprep.subr.mxu1 %v17335_v21 }
 0x4b7   : >> { %v5209_v62 = vpop.f32.mrf.mxu1  ;;  %v5386_v0 = vpop.f32.mrf.mxu0  ;;  %16236 = vmatmul.mubr.msk.f32.gmra.mxu1 %vm632_vm1, %v13704_v15  ;;  %16274 = vmatmul.mubr.msk.f32.gmra.mxu0 %vm632_vm1, %v19666_v17  ;;  %v13796_v17 = vld [vmem:[%s22150_s5 + $0x200] sm:$0xff] }
 0x4b8   : >> { %v5223_v18 = vadd.f32 %v5209_v62, %v20057_v13  ;;  %v20195_v28 = vadd.f32 %v5386_v0, %v5222_v60  ;;  %16238 = vmatprep.mubr.msk.f32.mxu1 %vm17336_vm4, %v17335_v21  ;;  %16276 = vmatprep.mubr.msk.f32.mxu0 %vm17336_vm4, %v17335_v21 }
 0x4b9   : >> { %v15848_v30 = vpop.f32.mrf.mxu1  ;;  %v15886_v10 = vpop.f32.mrf.mxu0  ;;  %16346 = vmatpush3.msra.mxu0 %v13797_v41  ;;  %16307 = vmatpush3.msra.mxu1 %v13768_v34  ;;  %v20300_v34 = vld [vmem:[%s19234_s18 + $0xac] sm:$0xff] }
 0x4ba   : >> { %16347 = vmatprep.subr.mxu0 %v17335_v21  ;;  %16382 = vmatprep.subr.mxu1 %v17335_v21 }
 0x4bb   : >> { %v5391_v13 = vpop.f32.mrf.mxu0  ;;  %v5525_v9 = vpop.f32.mrf.mxu1  ;;  %16239 = vmatmul.mubr.msk.f32.gmra.mxu1 %vm632_vm1, %v13705_v12  ;;  %16277 = vmatmul.mubr.msk.f32.gmra.mxu0 %vm632_vm1, %v19677_v46 }
 0x4bc   : >> { %v20210_v42 = vadd.f32 %v5391_v13, %v5223_v18  ;;  %v5579_v36 = vadd.f32 %v5525_v9, %v20070_v6  ;;  %16241 = vmatprep.mubr.msk.f32.mxu1 %vm17336_vm4, %v17335_v21  ;;  %16279 = vmatprep.mubr.msk.f32.mxu0 %vm17336_vm4, %v17335_v21  ;;  %v13827_v18 = vld [vmem:[%s22150_s5 + $0x238] sm:$0xff] }
 0x4bd   : >> { %v15889_v27 = vpop.f32.mrf.mxu0  ;;  %v15900_v38 = vpop.f32.mrf.mxu1  ;;  %16348 = vmatpush3.msra.mxu0 %v13796_v17  ;;  %v13785_v17 = vld [vmem:[%s19234_s18 + $0x85] sm:$0xff] }
 0x4be   : >> { %16423 = vmatprep.subr.mxu0 %v17335_v21 }
 0x4bf   : >> { %v5530_v40 = vpop.f32.mrf.mxu1  ;;  %v5707_v46 = vpop.f32.mrf.mxu0  ;;  %16242 = vmatmul.mubr.msk.f32.gmra.mxu1 %vm632_vm1, %v13706_v2  ;;  %16280 = vmatmul.mubr.msk.f32.gmra.mxu0 %vm632_vm1, %v19688_v53 }
 0x4c0   : >> { %v5580_v6 = vadd.f32 %v5530_v40, %v20081_v63  ;;  %v20223_v4 = vadd.f32 %v5707_v46, %v5579_v36  ;;  %16244 = vmatprep.mubr.msk.f32.mxu1 %vm17336_vm4, %v17335_v21  ;;  %16282 = vmatprep.mubr.msk.f32.mxu0 %vm17336_vm4, %v17335_v21  ;;  %v13855_v36 = vld [vmem:[%s22150_s5 + $0x258] sm:$0xff]  ;;  %v13786_v46 = vld [vmem:[%s19234_s18 + $0x8d] sm:$0xff] }
 0x4c1   : >> { %v15903_v31 = vpop.f32.mrf.mxu1  ;;  %v15941_v26 = vpop.f32.mrf.mxu0 }
 0x4c3   : >> { %v5535_v29 = vpop.f32.mrf.mxu1  ;;  %v5712_v51 = vpop.f32.mrf.mxu0  ;;  %16245 = vmatmul.mubr.msk.f32.gmra.mxu1 %vm632_vm1, %v13707_v5  ;;  %16283 = vmatmul.mubr.msk.f32.gmra.mxu0 %vm632_vm1, %v20231_v24 }
 0x4c4   : >> { %v5581_v53 = vadd.f32 %v5535_v29, %v20092_v20  ;;  %v20237_v63 = vadd.f32 %v5712_v51, %v5580_v6  ;;  %16247 = vmatprep.mubr.msk.f32.mxu1 %vm17336_vm4, %v17335_v21  ;;  %16285 = vmatprep.mubr.msk.f32.mxu0 %vm17336_vm4, %v17335_v21 }
 0x4c5   : >> { %v15906_v19 = vpop.f32.mrf.mxu1  ;;  %v15944_v37 = vpop.f32.mrf.mxu0 }
 0x4c6   : >> { %v13824_v19 = vld [vmem:[%s22150_s5 + $0x220] sm:$0xff] }
 0x4c7   : >> { %v5540_v33 = vpop.f32.mrf.mxu1  ;;  %v5717_v59 = vpop.f32.mrf.mxu0  ;;  %16248 = vmatmul.mubr.msk.f32.gmra.mxu1 %vm632_vm1, %v13708_v11  ;;  %16286 = vmatmul.mubr.msk.f32.gmra.mxu0 %vm632_vm1, %v20245_v52 }
 0x4c8   : >> { %v5582_v20 = vadd.f32 %v5540_v33, %v20103_v8  ;;  %v20251_v23 = vadd.f32 %v5717_v59, %v5581_v53  ;;  %16250 = vmatprep.mubr.msk.f32.mxu1 %vm17336_vm4, %v17335_v21  ;;  %16288 = vmatprep.mubr.msk.f32.mxu0 %vm17336_vm4, %v17335_v21  ;;  %v13787_v53 = vld [vmem:[%s19234_s18 + $0x95] sm:$0xff] }
 0x4c9   : >> { %v15909_v48 = vpop.f32.mrf.mxu1  ;;  %v15947_v44 = vpop.f32.mrf.mxu0 }
 0x4cb   : >> { %v5545_v56 = vpop.f32.mrf.mxu1  ;;  %v5722_v32 = vpop.f32.mrf.mxu0  ;;  %16251 = vmatmul.mubr.msk.f32.gmra.mxu1 %vm632_vm1, %v13709_v61  ;;  %16289 = vmatmul.mubr.msk.f32.gmra.mxu0 %vm632_vm1, %v20259_v45  ;;  %v13788_v61 = vld [vmem:[%s19234_s18 + $0x9d] sm:$0xff] }
 0x4cc   : >> { %v5583_v8 = vadd.f32 %v5545_v56, %v20114_v49  ;;  %v20265_v50 = vadd.f32 %v5722_v32, %v5582_v20  ;;  %16253 = vmatprep.mubr.msk.f32.mxu1 %vm17336_vm4, %v17335_v21  ;;  %16291 = vmatprep.mubr.msk.f32.mxu0 %vm17336_vm4, %v17335_v21 }
 0x4cd   : >> { %v15912_v57 = vpop.f32.mrf.mxu1  ;;  %v15950_v58 = vpop.f32.mrf.mxu0 }
 0x4cf   : >> { %v5550_v55 = vpop.f32.mrf.mxu1  ;;  %v5727_v47 = vpop.f32.mrf.mxu0  ;;  %16254 = vmatmul.mubr.msk.f32.gmra.mxu1 %vm632_vm1, %v13710_v22  ;;  %16292 = vmatmul.mubr.msk.f32.gmra.mxu0 %vm632_vm1, %v20273_v25  ;;  %v13789_v22 = vld [vmem:[%s19234_s18 + $0xa5] sm:$0xff] }
 0x4d0   : >> { %v5584_v49 = vadd.f32 %v5550_v55, %v20125_v3  ;;  %v20279_v14 = vadd.f32 %v5727_v47, %v5583_v8  ;;  %16256 = vmatprep.mubr.msk.f32.mxu1 %vm17336_vm4, %v17335_v21  ;;  %16294 = vmatprep.mubr.msk.f32.mxu0 %vm17336_vm4, %v17335_v21 }
 0x4d1   : >> { %v15915_v60 = vpop.f32.mrf.mxu1  ;;  %v15953_v15 = vpop.f32.mrf.mxu0 }
 0x4d3   : >> { %v5555_v54 = vpop.f32.mrf.mxu1  ;;  %v5732_v16 = vpop.f32.mrf.mxu0  ;;  %16257 = vmatmul.mubr.msk.f32.gmra.mxu1 %vm632_vm1, %v13711_v1  ;;  %16295 = vmatmul.mubr.msk.f32.gmra.mxu0 %vm632_vm1, %v20287_v43  ;;  %v13790_v1 = vld [vmem:[%s19234_s18 + $0xad] sm:$0xff] }
 0x4d4   : >> { %v5585_v3 = vadd.f32 %v5555_v54, %v20139_v39  ;;  %v20293_v41 = vadd.f32 %v5732_v16, %v5584_v49  ;;  %16297 = vmatprep.mubr.msk.f32.mxu0 %vm17336_vm4, %v17335_v21  ;;  %16308 = vmatprep.mubr.msk.f32.mxu1 %vm17336_vm4, %v17335_v21  ;;  %v13763_v49 = vld [vmem:[%s19234_s18 + $0xb4] sm:$0xff] }
 0x4d5   : >> { %v15918_v62 = vpop.f32.mrf.mxu1  ;;  %v15956_v0 = vpop.f32.mrf.mxu0 }
 0x4d7   : >> { %v5560_v12 = vpop.f32.mrf.mxu1  ;;  %v5737_v30 = vpop.f32.mrf.mxu0  ;;  %16298 = vmatmul.mubr.msk.f32.gmra.mxu0 %vm632_vm1, %v20300_v34  ;;  %16309 = vmatmul.mubr.msk.f32.vlgmr.msra.gmra.mxu1 %vm632_vm1, %v20231_v24  ;;  %v13825_v24 = vld [vmem:[%s22150_s5 + $0x228] sm:$0xff] }
 0x4d8   : >> { %v5586_v39 = vadd.f32 %v5560_v12, %v20157_v7  ;;  %v20310_v10 = vadd.f32 %v5737_v30, %v5585_v3  ;;  %16311 = vmatprep.mubr.msk.f32.mxu1 %vm17336_vm4, %v17335_v21  ;;  %16349 = vmatprep.mubr.msk.f32.mxu0 %vm17336_vm4, %v17335_v21  ;;  %v13826_v7 = vld [vmem:[%s22150_s5 + $0x230] sm:$0xff]  ;;  %v13764_v3 = vld [vmem:[%s19234_s18 + $0xbc] sm:$0xff] }
 0x4d9   : >> { %v15921_v13 = vpop.f32.mrf.mxu1  ;;  %v15959_v9 = vpop.f32.mrf.mxu0  ;;  %16383 = vmatpush3.msra.mxu1 %v13827_v18 }
 0x4da   : >> { %16384 = vmatprep.subr.mxu1 %v17335_v21 }
 0x4db   : >> { %v5565_v2 = vpop.f32.mrf.mxu1  ;;  %v5742_v27 = vpop.f32.mrf.mxu0  ;;  %16312 = vmatmul.mubr.msk.f32.gmra.mxu1 %vm632_vm1, %v20245_v52  ;;  %16350 = vmatmul.mubr.msk.f32.vlgmr.msra.gmra.mxu0 %vm632_vm1, %v13785_v17  ;;  %v13792_v17 = vld [vmem:[%s19234_s18 + $0xbd] sm:$0xff] }
 0x4dc   : >> { %v5587_v38 = vadd.f32 %v5565_v2, %v20176_v35  ;;  %v20328_v40 = vadd.f32 %v5742_v27, %v5586_v39  ;;  %16424 = vmatpush3.msra.mxu0 %v13855_v36  ;;  %16314 = vmatprep.mubr.msk.f32.mxu1 %vm17336_vm4, %v17335_v21  ;;  %v13854_v35 = vld [vmem:[%s22150_s5 + $0x250] sm:$0xff]  ;;  %v13765_v39 = vld [vmem:[%s19234_s18 + $0xc4] sm:$0xff] }
 0x4dd   : >> { %v15924_v6 = vpop.f32.mrf.mxu1  ;;  %v15962_v5 = vpop.f32.mrf.mxu0  ;;  %16352 = vmatprep.mubr.msk.f32.mxu0 %vm17336_vm4, %v17335_v21  ;;  %16385 = vmatpush3.msra.mxu1 %v13826_v7  ;;  %v13766_v27 = vld [vmem:[%s19234_s18 + $0xcc] sm:$0xff] }
 0x4de   : >> { %16425 = vmatprep.subr.mxu0 %v17335_v21  ;;  %16386 = vmatprep.subr.mxu1 %v17335_v21 }
 0x4df   : >> { %v5570_v31 = vpop.f32.mrf.mxu1  ;;  %v5747_v26 = vpop.f32.mrf.mxu0  ;;  %16315 = vmatmul.mubr.msk.f32.gmra.mxu1 %vm632_vm1, %v20259_v45  ;;  %16353 = vmatmul.mubr.msk.f32.gmra.mxu0 %vm632_vm1, %v13786_v46 }
 0x4e0   : >> { %v5588_v29 = vadd.f32 %v5570_v31, %v20195_v28  ;;  %v20347_v51 = vadd.f32 %v5747_v26, %v5587_v38  ;;  %16317 = vmatprep.mubr.msk.f32.mxu1 %vm17336_vm4, %v17335_v21  ;;  %16355 = vmatprep.mubr.msk.f32.mxu0 %vm17336_vm4, %v17335_v21  ;;  %v13853_v28 = vld [vmem:[%s22150_s5 + $0x248] sm:$0xff]  ;;  %v13767_v31 = vld [vmem:[%s19234_s18 + $0xd4] sm:$0xff] }
 0x4e1   : >> { %v15927_v11 = vpop.f32.mrf.mxu1  ;;  %v15965_v52 = vpop.f32.mrf.mxu0  ;;  %16426 = vmatpush3.msra.mxu0 %v13854_v35  ;;  %16387 = vmatpush3.msra.mxu1 %v13825_v24  ;;  %v13793_v38 = vld [vmem:[%s19234_s18 + $0xc5] sm:$0xff]  ;;  %v13794_v26 = vld [vmem:[%s19234_s18 + $0xcd] sm:$0xff] }
 0x4e2   : >> { %16427 = vmatprep.subr.mxu0 %v17335_v21  ;;  %16388 = vmatprep.subr.mxu1 %v17335_v21 }
 0x4e3   : >> { %v5575_v37 = vpop.f32.mrf.mxu1  ;;  %v5752_v33 = vpop.f32.mrf.mxu0  ;;  %16318 = vmatmul.mubr.msk.f32.gmra.mxu1 %vm632_vm1, %v20273_v25  ;;  %16356 = vmatmul.mubr.msk.f32.gmra.mxu0 %vm632_vm1, %v13787_v53 }
 0x4e4   : >> { %v5589_v59 = vadd.f32 %v5575_v37, %v20210_v42  ;;  %v20366_v20 = vadd.f32 %v5752_v33, %v5588_v29  ;;  %16320 = vmatprep.mubr.msk.f32.mxu1 %vm17336_vm4, %v17335_v21  ;;  %16358 = vmatprep.mubr.msk.f32.mxu0 %vm17336_vm4, %v17335_v21  ;;  %v13852_v42 = vld [vmem:[%s22150_s5 + $0x240] sm:$0xff] }
 0x4e5   : >> { %v15930_v45 = vpop.f32.mrf.mxu1  ;;  %v15968_v48 = vpop.f32.mrf.mxu0  ;;  %16428 = vmatpush3.msra.mxu0 %v13853_v28  ;;  %16389 = vmatpush3.msra.mxu1 %v13824_v19  ;;  %v13795_v19 = vld [vmem:[%s19234_s18 + $0xd5] sm:$0xff]  ;;  %v13813_v37 = vld [vmem:[%s19234_s18 + $0x86] sm:$0xff] }
 0x4e6   : >> { %16429 = vmatprep.subr.mxu0 %v17335_v21  ;;  %16464 = vmatprep.subr.mxu1 %v17335_v21 }
 0x4e7   : >> { %v5757_v44 = vpop.f32.mrf.mxu0  ;;  %v5889_v56 = vpop.f32.mrf.mxu1  ;;  %16321 = vmatmul.mubr.msk.f32.gmra.mxu1 %vm632_vm1, %v20287_v43  ;;  %16359 = vmatmul.mubr.msk.f32.gmra.mxu0 %vm632_vm1, %v13788_v61  ;;  %v13883_v61 = vld [vmem:[%s22150_s5 + $0x278] sm:$0xff] }
 0x4e8   : >> { %v20381_v32 = vadd.f32 %v5757_v44, %v5589_v59  ;;  %v5943_v8 = vadd.f32 %v5889_v56, %v20223_v4  ;;  %16323 = vmatprep.mubr.msk.f32.mxu1 %vm17336_vm4, %v17335_v21  ;;  %16361 = vmatprep.mubr.msk.f32.mxu0 %vm17336_vm4, %v17335_v21  ;;  %v13814_v44 = vld [vmem:[%s19234_s18 + $0x8e] sm:$0xff] }
 0x4e9   : >> { %v15971_v25 = vpop.f32.mrf.mxu0  ;;  %v15982_v57 = vpop.f32.mrf.mxu1  ;;  %16430 = vmatpush3.msra.mxu0 %v13852_v42  ;;  %v13841_v56 = vld [vmem:[%s19234_s18 + $0x87] sm:$0xff] }
 0x4ea   : >> { %16505 = vmatprep.subr.mxu0 %v17335_v21  ;;  %v13911_v25 = vld [vmem:[%s22150_s5 + $0x298] sm:$0xff] }
 0x4eb   : >> { %v5894_v58 = vpop.f32.mrf.mxu1  ;;  %v6071_v55 = vpop.f32.mrf.mxu0  ;;  %16324 = vmatmul.mubr.msk.f32.gmra.mxu1 %vm632_vm1, %v20300_v34  ;;  %16362 = vmatmul.mubr.msk.f32.gmra.mxu0 %vm632_vm1, %v13789_v22  ;;  %v13791_v34 = vld [vmem:[%s19234_s18 + $0xb5] sm:$0xff] }
 0x4ec   : >> { %v5944_v4 = vadd.f32 %v5894_v58, %v20237_v63  ;;  %v20394_v47 = vadd.f32 %v6071_v55, %v5943_v8  ;;  %16326 = vmatprep.mubr.msk.f32.mxu1 %vm17336_vm4, %v17335_v21  ;;  %16364 = vmatprep.mubr.msk.f32.mxu0 %vm17336_vm4, %v17335_v21 }
 0x4ed   : >> { %v15985_v43 = vpop.f32.mrf.mxu1  ;;  %v16023_v60 = vpop.f32.mrf.mxu0 }
 0x4ef   : >> { %v5899_v15 = vpop.f32.mrf.mxu1  ;;  %v6076_v54 = vpop.f32.mrf.mxu0  ;;  %16327 = vmatmul.mubr.msk.f32.gmra.mxu1 %vm632_vm1, %v13763_v49  ;;  %16365 = vmatmul.mubr.msk.f32.gmra.mxu0 %vm632_vm1, %v13790_v1  ;;  %v13815_v49 = vld [vmem:[%s19234_s18 + $0x96] sm:$0xff] }
 0x4f0   : >> { %v5945_v63 = vadd.f32 %v5899_v15, %v20251_v23  ;;  %v20405_v16 = vadd.f32 %v6076_v54, %v5944_v4  ;;  %16329 = vmatprep.mubr.msk.f32.mxu1 %vm17336_vm4, %v17335_v21  ;;  %16367 = vmatprep.mubr.msk.f32.mxu0 %vm17336_vm4, %v17335_v21  ;;  %v13842_v1 = vld [vmem:[%s19234_s18 + $0x8f] sm:$0xff] }
 0x4f1   : >> { %v15988_v62 = vpop.f32.mrf.mxu1  ;;  %v16026_v0 = vpop.f32.mrf.mxu0  ;;  %v13881_v15 = vld [vmem:[%s22150_s5 + $0x268] sm:$0xff] }
 0x4f2   : >> { %v13816_v62 = vld [vmem:[%s19234_s18 + $0x9e] sm:$0xff] }
 0x4f3   : >> { %v5904_v18 = vpop.f32.mrf.mxu1  ;;  %v6081_v12 = vpop.f32.mrf.mxu0  ;;  %16330 = vmatmul.mubr.msk.f32.gmra.mxu1 %vm632_vm1, %v13764_v3  ;;  %16368 = vmatmul.mubr.msk.f32.gmra.mxu0 %vm632_vm1, %v13791_v34  ;;  %v13843_v0 = vld [vmem:[%s19234_s18 + $0x97] sm:$0xff] }
 0x4f4   : >> { %v5946_v23 = vadd.f32 %v5904_v18, %v20265_v50  ;;  %v20416_v30 = vadd.f32 %v6081_v12, %v5945_v63  ;;  %16332 = vmatprep.mubr.msk.f32.mxu1 %vm17336_vm4, %v17335_v21  ;;  %16370 = vmatprep.mubr.msk.f32.mxu0 %vm17336_vm4, %v17335_v21 }
 0x4f5   : >> { %v15991_v13 = vpop.f32.mrf.mxu1  ;;  %v16029_v9 = vpop.f32.mrf.mxu0 }
 0x4f7   : >> { %v5909_v36 = vpop.f32.mrf.mxu1  ;;  %v6086_v7 = vpop.f32.mrf.mxu0  ;;  %16333 = vmatmul.mubr.msk.f32.gmra.mxu1 %vm632_vm1, %v13765_v39  ;;  %16371 = vmatmul.mubr.msk.f32.gmra.mxu0 %vm632_vm1, %v13792_v17 }
 0x4f8   : >> { %v5947_v50 = vadd.f32 %v5909_v36, %v20279_v14  ;;  %v20427_v2 = vadd.f32 %v6086_v7, %v5946_v23  ;;  %16335 = vmatprep.mubr.msk.f32.mxu1 %vm17336_vm4, %v17335_v21  ;;  %16373 = vmatprep.mubr.msk.f32.mxu0 %vm17336_vm4, %v17335_v21  ;;  %v13880_v23 = vld [vmem:[%s22150_s5 + $0x260] sm:$0xff] }
 0x4f9   : >> { %v15994_v46 = vpop.f32.mrf.mxu1  ;;  %v16032_v6 = vpop.f32.mrf.mxu0  ;;  %v13817_v36 = vld [vmem:[%s19234_s18 + $0xa6] sm:$0xff] }
 0x4fa   : >> { %v13844_v7 = vld [vmem:[%s19234_s18 + $0x9f] sm:$0xff] }
 0x4fb   : >> { %v5914_v5 = vpop.f32.mrf.mxu1  ;;  %v6091_v35 = vpop.f32.mrf.mxu0  ;;  %16336 = vmatmul.mubr.msk.f32.gmra.mxu1 %vm632_vm1, %v13766_v27  ;;  %16374 = vmatmul.mubr.msk.f32.gmra.mxu0 %vm632_vm1, %v13793_v38 }
 0x4fc   : >> { %v5948_v14 = vadd.f32 %v5914_v5, %v20293_v41  ;;  %v20438_v24 = vadd.f32 %v6091_v35, %v5947_v50  ;;  %16338 = vmatprep.mubr.msk.f32.mxu1 %vm17336_vm4, %v17335_v21  ;;  %16376 = vmatprep.mubr.msk.f32.mxu0 %vm17336_vm4, %v17335_v21  ;;  %v13818_v35 = vld [vmem:[%s19234_s18 + $0xae] sm:$0xff] }
 0x4fd   : >> { %v15997_v29 = vpop.f32.mrf.mxu1  ;;  %v16035_v53 = vpop.f32.mrf.mxu0 }
 0x4ff   : >> { %v5919_v11 = vpop.f32.mrf.mxu1  ;;  %v6096_v52 = vpop.f32.mrf.mxu0  ;;  %16339 = vmatmul.mubr.msk.f32.gmra.mxu1 %vm632_vm1, %v13767_v31  ;;  %16377 = vmatmul.mubr.msk.f32.gmra.mxu0 %vm632_vm1, %v13794_v26 }
 0x500   : >> { %v5949_v41 = vadd.f32 %v5919_v11, %v20310_v10  ;;  %v20449_v28 = vadd.f32 %v6096_v52, %v5948_v14  ;;  %16379 = vmatprep.mubr.msk.f32.mxu0 %vm17336_vm4, %v17335_v21  ;;  %16390 = vmatprep.mubr.msk.f32.mxu1 %vm17336_vm4, %v17335_v21  ;;  %v13845_v14 = vld [vmem:[%s19234_s18 + $0xa7] sm:$0xff]  ;;  %v13819_v52 = vld [vmem:[%s19234_s18 + $0xb6] sm:$0xff] }
 0x501   : >> { %v16000_v33 = vpop.f32.mrf.mxu1  ;;  %v16038_v59 = vpop.f32.mrf.mxu0 }
 0x503   : >> { %v5924_v45 = vpop.f32.mrf.mxu1  ;;  %v6101_v10 = vpop.f32.mrf.mxu0  ;;  %16380 = vmatmul.mubr.msk.f32.gmra.mxu0 %vm632_vm1, %v13795_v19  ;;  %16391 = vmatmul.mubr.msk.f32.vlgmr.msra.gmra.mxu1 %vm632_vm1, %v13813_v37 }
 0x504   : >> { %v5950_v48 = vadd.f32 %v5924_v45, %v20328_v40  ;;  %v20463_v42 = vadd.f32 %v6101_v10, %v5949_v41  ;;  %16393 = vmatprep.mubr.msk.f32.mxu1 %vm17336_vm4, %v17335_v21  ;;  %16431 = vmatprep.mubr.msk.f32.mxu0 %vm17336_vm4, %v17335_v21  ;;  %v13882_v40 = vld [vmem:[%s22150_s5 + $0x270] sm:$0xff]  ;;  %v13820_v45 = vld [vmem:[%s19234_s18 + $0xbe] sm:$0xff] }
 0x505   : >> { %v16003_v8 = vpop.f32.mrf.mxu1  ;;  %v16041_v22 = vpop.f32.mrf.mxu0  ;;  %16465 = vmatpush3.msra.mxu1 %v13883_v61  ;;  %v13846_v41 = vld [vmem:[%s19234_s18 + $0xaf] sm:$0xff]  ;;  %v13847_v10 = vld [vmem:[%s19234_s18 + $0xb7] sm:$0xff] }
 0x506   : >> { %16466 = vmatprep.subr.mxu1 %v17335_v21 }
 0x507   : >> { %v5929_v57 = vpop.f32.mrf.mxu1  ;;  %v6106_v58 = vpop.f32.mrf.mxu0  ;;  %16394 = vmatmul.mubr.msk.f32.gmra.mxu1 %vm632_vm1, %v13814_v44  ;;  %16432 = vmatmul.mubr.msk.f32.vlgmr.msra.gmra.mxu0 %vm632_vm1, %v13841_v56 }
 0x508   : >> { %v5951_v55 = vadd.f32 %v5929_v57, %v20347_v51  ;;  %v20481_v4 = vadd.f32 %v6106_v58, %v5950_v48  ;;  %16506 = vmatpush3.msra.mxu0 %v13911_v25  ;;  %16396 = vmatprep.mubr.msk.f32.mxu1 %vm17336_vm4, %v17335_v21  ;;  %v13910_v51 = vld [vmem:[%s22150_s5 + $0x290] sm:$0xff]  ;;  %v13821_v25 = vld [vmem:[%s19234_s18 + $0xc6] sm:$0xff] }
 0x509   : >> { %v16006_v43 = vpop.f32.mrf.mxu1  ;;  %v16044_v60 = vpop.f32.mrf.mxu0  ;;  %16434 = vmatprep.mubr.msk.f32.mxu0 %vm17336_vm4, %v17335_v21  ;;  %16467 = vmatpush3.msra.mxu1 %v13882_v40  ;;  %v13848_v40 = vld [vmem:[%s19234_s18 + $0xbf] sm:$0xff] }
 0x50a   : >> { %16507 = vmatprep.subr.mxu0 %v17335_v21  ;;  %16468 = vmatprep.subr.mxu1 %v17335_v21  ;;  %v13822_v43 = vld [vmem:[%s19234_s18 + $0xce] sm:$0xff] }
 0x50b   : >> { %v5934_v54 = vpop.f32.mrf.mxu1  ;;  %v6111_v63 = vpop.f32.mrf.mxu0  ;;  %16397 = vmatmul.mubr.msk.f32.gmra.mxu1 %vm632_vm1, %v13815_v49  ;;  %16435 = vmatmul.mubr.msk.f32.gmra.mxu0 %vm632_vm1, %v13842_v1  ;;  %v13849_v60 = vld [vmem:[%s19234_s18 + $0xc7] sm:$0xff] }
 0x50c   : >> { %v5952_v3 = vadd.f32 %v5934_v54, %v20366_v20  ;;  %v20500_v34 = vadd.f32 %v6111_v63, %v5951_v55  ;;  %16399 = vmatprep.mubr.msk.f32.mxu1 %vm17336_vm4, %v17335_v21  ;;  %16437 = vmatprep.mubr.msk.f32.mxu0 %vm17336_vm4, %v17335_v21  ;;  %v13909_v20 = vld [vmem:[%s22150_s5 + $0x288] sm:$0xff] }
 0x50d   : >> { %v16009_v18 = vpop.f32.mrf.mxu1  ;;  %v16047_v12 = vpop.f32.mrf.mxu0  ;;  %16508 = vmatpush3.msra.mxu0 %v13910_v51  ;;  %16469 = vmatpush3.msra.mxu1 %v13881_v15 }
 0x50e   : >> { %16509 = vmatprep.subr.mxu0 %v17335_v21  ;;  %16470 = vmatprep.subr.mxu1 %v17335_v21 }
 0x50f   : >> { %v5939_v39 = vpop.f32.mrf.mxu1  ;;  %v6116_v17 = vpop.f32.mrf.mxu0  ;;  %16400 = vmatmul.mubr.msk.f32.gmra.mxu1 %vm632_vm1, %v13816_v62  ;;  %16438 = vmatmul.mubr.msk.f32.gmra.mxu0 %vm632_vm1, %v13843_v0  ;;  %v13823_v62 = vld [vmem:[%s19234_s18 + $0xd6] sm:$0xff] }
 0x510   : >> { %v5953_v13 = vadd.f32 %v5939_v39, %v20381_v32  ;;  %v20519_v9 = vadd.f32 %v6116_v17, %v5952_v3  ;;  %16402 = vmatprep.mubr.msk.f32.mxu1 %vm17336_vm4, %v17335_v21  ;;  %16440 = vmatprep.mubr.msk.f32.mxu0 %vm17336_vm4, %v17335_v21  ;;  %v13908_v32 = vld [vmem:[%s22150_s5 + $0x280] sm:$0xff]  ;;  %v13850_v0 = vld [vmem:[%s19234_s18 + $0xcf] sm:$0xff]  ;;  %v13851_v17 = vld [vmem:[%s19234_s18 + $0xd7] sm:$0xff] }
 0x511   : >> { %v16012_v50 = vpop.f32.mrf.mxu1  ;;  %v16050_v27 = vpop.f32.mrf.mxu0  ;;  %16510 = vmatpush3.msra.mxu0 %v13909_v20  ;;  %16471 = vmatpush3.msra.mxu1 %v13880_v23 }
 0x512   : >> { %16511 = vmatprep.subr.mxu0 %v17335_v21  ;;  %16546 = vmatprep.subr.mxu1 %v17335_v21  ;;  %v13939_v50 = vld [vmem:[%s22150_s5 + $0x2b8] sm:$0xff] }
 0x513   : >> { %v6121_v38 = vpop.f32.mrf.mxu0  ;;  %v6253_v46 = vpop.f32.mrf.mxu1  ;;  %16403 = vmatmul.mubr.msk.f32.gmra.mxu1 %vm632_vm1, %v13817_v36  ;;  %16441 = vmatmul.mubr.msk.f32.gmra.mxu0 %vm632_vm1, %v13844_v7 }
 0x514   : >> { %v20534_v6 = vadd.f32 %v6121_v38, %v5953_v13  ;;  %v6307_v5 = vadd.f32 %v6253_v46, %v20394_v47  ;;  %16405 = vmatprep.mubr.msk.f32.mxu1 %vm17336_vm4, %v17335_v21  ;;  %16443 = vmatprep.mubr.msk.f32.mxu0 %vm17336_vm4, %v17335_v21  ;;  %v13869_v13 = vld [vmem:[%s19234_s18 + $0x88] sm:$0xff]  ;;  %v13870_v46 = vld [vmem:[%s19234_s18 + $0x90] sm:$0xff] }
 0x515   : >> { %v16053_v31 = vpop.f32.mrf.mxu0  ;;  %v16064_v26 = vpop.f32.mrf.mxu1  ;;  %16512 = vmatpush3.msra.mxu0 %v13908_v32 }
 0x516   : >> { %16587 = vmatprep.subr.mxu0 %v17335_v21  ;;  %v13938_v31 = vld [vmem:[%s22150_s5 + $0x2b0] sm:$0xff] }
 0x517   : >> { %v6258_v29 = vpop.f32.mrf.mxu1  ;;  %v6436_v53 = vpop.f32.mrf.mxu0  ;;  %16406 = vmatmul.mubr.msk.f32.gmra.mxu1 %vm632_vm1, %v13818_v35  ;;  %16444 = vmatmul.mubr.msk.f32.gmra.mxu0 %vm632_vm1, %v13845_v14 }
 0x518   : >> { %v6308_v47 = vadd.f32 %v6258_v29, %v20405_v16  ;;  %v20547_v11 = vadd.f32 %v6436_v53, %v6307_v5  ;;  %16408 = vmatprep.mubr.msk.f32.mxu1 %vm17336_vm4, %v17335_v21  ;;  %16446 = vmatprep.mubr.msk.f32.mxu0 %vm17336_vm4, %v17335_v21  ;;  %v20624_v5 = vld [vmem:[%s19234_s18 + $0xb0] sm:$0xff] }
 0x519   : >> { %v16067_v19 = vpop.f32.mrf.mxu1  ;;  %v16105_v37 = vpop.f32.mrf.mxu0 }
 0x51b   : >> { %v6263_v33 = vpop.f32.mrf.mxu1  ;;  %v6441_v59 = vpop.f32.mrf.mxu0  ;;  %16409 = vmatmul.mubr.msk.f32.gmra.mxu1 %vm632_vm1, %v13819_v52  ;;  %16447 = vmatmul.mubr.msk.f32.gmra.mxu0 %vm632_vm1, %v13846_v41  ;;  %v13871_v52 = vld [vmem:[%s19234_s18 + $0x98] sm:$0xff] }
 0x51c   : >> { %v6309_v16 = vadd.f32 %v6263_v33, %v20416_v30  ;;  %v20558_v61 = vadd.f32 %v6441_v59, %v6308_v47  ;;  %16411 = vmatprep.mubr.msk.f32.mxu1 %vm17336_vm4, %v17335_v21  ;;  %16449 = vmatprep.mubr.msk.f32.mxu0 %vm17336_vm4, %v17335_v21  ;;  %v20643_v41 = vld [vmem:[%s19234_s18 + $0xb8] sm:$0xff]  ;;  %v13937_v33 = vld [vmem:[%s22150_s5 + $0x2a8] sm:$0xff] }
 0x51d   : >> { %v16070_v48 = vpop.f32.mrf.mxu1  ;;  %v16108_v44 = vpop.f32.mrf.mxu0 }
 0x51e   : >> { %v13872_v48 = vld [vmem:[%s19234_s18 + $0xa0] sm:$0xff] }
 0x51f   : >> { %v6268_v56 = vpop.f32.mrf.mxu1  ;;  %v6446_v8 = vpop.f32.mrf.mxu0  ;;  %16412 = vmatmul.mubr.msk.f32.gmra.mxu1 %vm632_vm1, %v13820_v45  ;;  %16450 = vmatmul.mubr.msk.f32.gmra.mxu0 %vm632_vm1, %v13847_v10  ;;  %v20667_v44 = vld [vmem:[%s19234_s18 + $0xc0] sm:$0xff] }
 0x520   : >> { %v6310_v30 = vadd.f32 %v6268_v56, %v20427_v2  ;;  %v20569_v22 = vadd.f32 %v6446_v8, %v6309_v16  ;;  %16414 = vmatprep.mubr.msk.f32.mxu1 %vm17336_vm4, %v17335_v21  ;;  %16452 = vmatprep.mubr.msk.f32.mxu0 %vm17336_vm4, %v17335_v21 }
 0x521   : >> { %v16073_v57 = vpop.f32.mrf.mxu1  ;;  %v16111_v58 = vpop.f32.mrf.mxu0 }
 0x523   : >> { %v6273_v55 = vpop.f32.mrf.mxu1  ;;  %v6451_v49 = vpop.f32.mrf.mxu0  ;;  %16415 = vmatmul.mubr.msk.f32.gmra.mxu1 %vm632_vm1, %v13821_v25  ;;  %16453 = vmatmul.mubr.msk.f32.gmra.mxu0 %vm632_vm1, %v13848_v40 }
 0x524   : >> { %v6311_v2 = vadd.f32 %v6273_v55, %v20438_v24  ;;  %v20580_v1 = vadd.f32 %v6451_v49, %v6310_v30  ;;  %16417 = vmatprep.mubr.msk.f32.mxu1 %vm17336_vm4, %v17335_v21  ;;  %16455 = vmatprep.mubr.msk.f32.mxu0 %vm17336_vm4, %v17335_v21  ;;  %v13936_v30 = vld [vmem:[%s22150_s5 + $0x2a0] sm:$0xff]  ;;  %v13873_v55 = vld [vmem:[%s19234_s18 + $0xa8] sm:$0xff] }
 0x525   : >> { %v16076_v51 = vpop.f32.mrf.mxu1  ;;  %v16114_v15 = vpop.f32.mrf.mxu0  ;;  %v13900_v49 = vld [vmem:[%s19234_s18 + $0xc8] sm:$0xff] }
 0x527   : >> { %v6278_v54 = vpop.f32.mrf.mxu1  ;;  %v6456_v63 = vpop.f32.mrf.mxu0  ;;  %16418 = vmatmul.mubr.msk.f32.gmra.mxu1 %vm632_vm1, %v13822_v43  ;;  %16456 = vmatmul.mubr.msk.f32.gmra.mxu0 %vm632_vm1, %v13849_v60 }
 0x528   : >> { %v6312_v24 = vadd.f32 %v6278_v54, %v20449_v28  ;;  %v20591_v3 = vadd.f32 %v6456_v63, %v6311_v2  ;;  %16420 = vmatprep.mubr.msk.f32.mxu1 %vm17336_vm4, %v17335_v21  ;;  %16458 = vmatprep.mubr.msk.f32.mxu0 %vm17336_vm4, %v17335_v21  ;;  %v13901_v63 = vld [vmem:[%s19234_s18 + $0xd0] sm:$0xff] }
 0x529   : >> { %v16079_v18 = vpop.f32.mrf.mxu1  ;;  %v16117_v12 = vpop.f32.mrf.mxu0 }
 0x52b   : >> { %v6283_v20 = vpop.f32.mrf.mxu1  ;;  %v6461_v23 = vpop.f32.mrf.mxu0  ;;  %16421 = vmatmul.mubr.msk.f32.gmra.mxu1 %vm632_vm1, %v13823_v62  ;;  %16459 = vmatmul.mubr.msk.f32.gmra.mxu0 %vm632_vm1, %v13850_v0 }
 0x52c   : >> { %v6313_v28 = vadd.f32 %v6283_v20, %v20463_v42  ;;  %v20602_v39 = vadd.f32 %v6461_v23, %v6312_v24  ;;  %16461 = vmatprep.mubr.msk.f32.mxu0 %vm17336_vm4, %v17335_v21  ;;  %16472 = vmatprep.mubr.msk.f32.mxu1 %vm17336_vm4, %v17335_v21  ;;  %v13902_v20 = vld [vmem:[%s19234_s18 + $0xd8] sm:$0xff] }
 0x52d   : >> { %v16082_v36 = vpop.f32.mrf.mxu1  ;;  %v16120_v7 = vpop.f32.mrf.mxu0 }
 0x52e   : >> { %v13903_v7 = vld [vmem:[%s19234_s18 + $0xe0] sm:$0xff] }
 0x52f   : >> { %v6288_v27 = vpop.f32.mrf.mxu1  ;;  %v6466_v42 = vpop.f32.mrf.mxu0  ;;  %16462 = vmatmul.mubr.msk.f32.gmra.mxu0 %vm632_vm1, %v13851_v17  ;;  %16473 = vmatmul.mubr.msk.f32.vlgmr.msra.gmra.mxu1 %vm632_vm1, %v13869_v13 }
 0x530   : >> { %v6314_v32 = vadd.f32 %v6288_v27, %v20481_v4  ;;  %v20616_v38 = vadd.f32 %v6466_v42, %v6313_v28  ;;  %16475 = vmatprep.mubr.msk.f32.mxu1 %vm17336_vm4, %v17335_v21  ;;  %16513 = vmatprep.mubr.msk.f32.mxu0 %vm17336_vm4, %v17335_v21  ;;  %v13967_v4 = vld [vmem:[%s22150_s5 + $0x2d8] sm:$0xff] }
 0x531   : >> { %v16085_v35 = vpop.f32.mrf.mxu1  ;;  %v16123_v14 = vpop.f32.mrf.mxu0  ;;  %16547 = vmatpush3.msra.mxu1 %v13939_v50 }
 0x532   : >> { %16548 = vmatprep.subr.mxu1 %v17335_v21 }
 0x533   : >> { %v6293_v26 = vpop.f32.mrf.mxu1  ;;  %v6471_v29 = vpop.f32.mrf.mxu0  ;;  %16476 = vmatmul.mubr.msk.f32.gmra.mxu1 %vm632_vm1, %v13870_v46  ;;  %16514 = vmatmul.mubr.msk.f32.vlgmr.msra.gmra.mxu0 %vm632_vm1, %v20624_v5 }
 0x534   : >> { %v6315_v53 = vadd.f32 %v6293_v26, %v20500_v34  ;;  %v20637_v47 = vadd.f32 %v6471_v29, %v6314_v32  ;;  %16588 = vmatpush3.msra.mxu0 %v13967_v4  ;;  %16478 = vmatprep.mubr.msk.f32.mxu1 %vm17336_vm4, %v17335_v21  ;;  %v13966_v34 = vld [vmem:[%s22150_s5 + $0x2d0] sm:$0xff] }
 0x535   : >> { %v16088_v19 = vpop.f32.mrf.mxu1  ;;  %v16126_v37 = vpop.f32.mrf.mxu0  ;;  %16516 = vmatprep.mubr.msk.f32.mxu0 %vm17336_vm4, %v17335_v21  ;;  %16549 = vmatpush3.msra.mxu1 %v13938_v31  ;;  %v13905_v29 = vld [vmem:[%s19234_s18 + $0xf0] sm:$0xff] }
 0x536   : >> { %16589 = vmatprep.subr.mxu0 %v17335_v21  ;;  %16550 = vmatprep.subr.mxu1 %v17335_v21 }
 0x537   : >> { %v6298_v59 = vpop.f32.mrf.mxu1  ;;  %v6476_v16 = vpop.f32.mrf.mxu0  ;;  %16479 = vmatmul.mubr.msk.f32.gmra.mxu1 %vm632_vm1, %v13871_v52  ;;  %16517 = vmatmul.mubr.msk.f32.gmra.mxu0 %vm632_vm1, %v20643_v41 }
 0x538   : >> { %v6316_v45 = vadd.f32 %v6298_v59, %v20519_v9  ;;  %v20659_v10 = vadd.f32 %v6476_v16, %v6315_v53  ;;  %16481 = vmatprep.mubr.msk.f32.mxu1 %vm17336_vm4, %v17335_v21  ;;  %16519 = vmatprep.mubr.msk.f32.mxu0 %vm17336_vm4, %v17335_v21  ;;  %v13965_v9 = vld [vmem:[%s22150_s5 + $0x2c8] sm:$0xff] }
 0x539   : >> { %v16091_v56 = vpop.f32.mrf.mxu1  ;;  %v16129_v8 = vpop.f32.mrf.mxu0  ;;  %16590 = vmatpush3.msra.mxu0 %v13966_v34  ;;  %16551 = vmatpush3.msra.mxu1 %v13937_v33  ;;  %v13906_v34 = vld [vmem:[%s19234_s18 + $0xf8] sm:$0xff] }
 0x53a   : >> { %16591 = vmatprep.subr.mxu0 %v17335_v21  ;;  %16552 = vmatprep.subr.mxu1 %v17335_v21  ;;  %v13925_v56 = vld [vmem:[%s19234_s18 + $0xb1] sm:$0xff] }
 0x53b   : >> { %v6303_v25 = vpop.f32.mrf.mxu1  ;;  %v6481_v40 = vpop.f32.mrf.mxu0  ;;  %16482 = vmatmul.mubr.msk.f32.gmra.mxu1 %vm632_vm1, %v13872_v48  ;;  %16520 = vmatmul.mubr.msk.f32.gmra.mxu0 %vm632_vm1, %v20667_v44 }
 0x53c   : >> { %v6317_v57 = vadd.f32 %v6303_v25, %v20534_v6  ;;  %v20681_v58 = vadd.f32 %v6481_v40, %v6316_v45  ;;  %16484 = vmatprep.mubr.msk.f32.mxu1 %vm17336_vm4, %v17335_v21  ;;  %16522 = vmatprep.mubr.msk.f32.mxu0 %vm17336_vm4, %v17335_v21  ;;  %v13964_v6 = vld [vmem:[%s22150_s5 + $0x2c0] sm:$0xff] }
 0x53d   : >> { %v16094_v2 = vpop.f32.mrf.mxu1  ;;  %v16132_v43 = vpop.f32.mrf.mxu0  ;;  %16592 = vmatpush3.msra.mxu0 %v13965_v9  ;;  %16553 = vmatpush3.msra.mxu1 %v13936_v30  ;;  %v13995_v30 = vld [vmem:[%s22150_s5 + $0x2f8] sm:$0xff] }
 0x53e   : >> { %16593 = vmatprep.subr.mxu0 %v17335_v21  ;;  %16628 = vmatprep.subr.mxu1 %v17335_v21 }
 0x53f   : >> { %v6486_v60 = vpop.f32.mrf.mxu0  ;;  %v6618_v51 = vpop.f32.mrf.mxu1  ;;  %16485 = vmatmul.mubr.msk.f32.gmra.mxu1 %vm632_vm1, %v13873_v55  ;;  %16523 = vmatmul.mubr.msk.f32.gmra.mxu0 %vm632_vm1, %v13900_v49  ;;  %v13926_v55 = vld [vmem:[%s19234_s18 + $0xb9] sm:$0xff] }
 0x540   : >> { %v20696_v15 = vadd.f32 %v6486_v60, %v6317_v57  ;;  %v6672_v54 = vadd.f32 %v6618_v51, %v20547_v11  ;;  %16487 = vmatprep.mubr.msk.f32.mxu1 %vm17336_vm4, %v17335_v21  ;;  %16525 = vmatprep.mubr.msk.f32.mxu0 %vm17336_vm4, %v17335_v21 }
 0x541   : >> { %v16135_v24 = vpop.f32.mrf.mxu0  ;;  %v16146_v62 = vpop.f32.mrf.mxu1  ;;  %16594 = vmatpush3.msra.mxu0 %v13964_v6  ;;  %v14023_v6 = vld [vmem:[%s22150_s5 + $0x318] sm:$0xff] }
 0x542   : >> { %16669 = vmatprep.subr.mxu0 %v17335_v21  ;;  %v13927_v24 = vld [vmem:[%s19234_s18 + $0xc1] sm:$0xff] }
 0x543   : >> { %v6623_v0 = vpop.f32.mrf.mxu1  ;;  %v6800_v18 = vpop.f32.mrf.mxu0  ;;  %16488 = vmatmul.mubr.msk.f32.gmra.mxu1 %vm632_vm1, %v20624_v5  ;;  %16526 = vmatmul.mubr.msk.f32.gmra.mxu0 %vm632_vm1, %v13901_v63  ;;  %v13904_v5 = vld [vmem:[%s19234_s18 + $0xe8] sm:$0xff]  ;;  %v13954_v62 = vld [vmem:[%s19234_s18 + $0xba] sm:$0xff] }
 0x544   : >> { %v6673_v11 = vadd.f32 %v6623_v0, %v20558_v61  ;;  %v20709_v12 = vadd.f32 %v6800_v18, %v6672_v54  ;;  %16490 = vmatprep.mubr.msk.f32.mxu1 %vm17336_vm4, %v17335_v21  ;;  %16528 = vmatprep.mubr.msk.f32.mxu0 %vm17336_vm4, %v17335_v21 }
 0x545   : >> { %v16149_v23 = vpop.f32.mrf.mxu1  ;;  %v16187_v28 = vpop.f32.mrf.mxu0 }
 0x547   : >> { %v6628_v17 = vpop.f32.mrf.mxu1  ;;  %v6805_v13 = vpop.f32.mrf.mxu0  ;;  %16491 = vmatmul.mubr.msk.f32.gmra.mxu1 %vm632_vm1, %v20643_v41  ;;  %16529 = vmatmul.mubr.msk.f32.gmra.mxu0 %vm632_vm1, %v13902_v20 }
 0x548   : >> { %v6674_v61 = vadd.f32 %v6628_v17, %v20569_v22  ;;  %v20720_v36 = vadd.f32 %v6805_v13, %v6673_v11  ;;  %16493 = vmatprep.mubr.msk.f32.mxu1 %vm17336_vm4, %v17335_v21  ;;  %16531 = vmatprep.mubr.msk.f32.mxu0 %vm17336_vm4, %v17335_v21  ;;  %v13993_v11 = vld [vmem:[%s22150_s5 + $0x2e8] sm:$0xff] }
 0x549   : >> { %v16152_v50 = vpop.f32.mrf.mxu1  ;;  %v16190_v27 = vpop.f32.mrf.mxu0  ;;  %v13928_v13 = vld [vmem:[%s19234_s18 + $0xc9] sm:$0xff] }
 0x54a   : >> { %v13992_v27 = vld [vmem:[%s22150_s5 + $0x2e0] sm:$0xff] }
 0x54b   : >> { %v6633_v42 = vpop.f32.mrf.mxu1  ;;  %v6810_v32 = vpop.f32.mrf.mxu0  ;;  %16494 = vmatmul.mubr.msk.f32.gmra.mxu1 %vm632_vm1, %v20667_v44  ;;  %16532 = vmatmul.mubr.msk.f32.gmra.mxu0 %vm632_vm1, %v13903_v7  ;;  %v13907_v44 = vld [vmem:[%s19234_s18 + $0x100] sm:$0xff] }
 0x54c   : >> { %v6675_v22 = vadd.f32 %v6633_v42, %v20580_v1  ;;  %v20731_v46 = vadd.f32 %v6810_v32, %v6674_v61  ;;  %16496 = vmatprep.mubr.msk.f32.mxu1 %vm17336_vm4, %v17335_v21  ;;  %16534 = vmatprep.mubr.msk.f32.mxu0 %vm17336_vm4, %v17335_v21  ;;  %v13955_v61 = vld [vmem:[%s19234_s18 + $0xc2] sm:$0xff] }
 0x54d   : >> { %v16155_v35 = vpop.f32.mrf.mxu1  ;;  %v16193_v14 = vpop.f32.mrf.mxu0 }
 0x54e   : >> { %v13929_v35 = vld [vmem:[%s19234_s18 + $0xd1] sm:$0xff] }
 0x54f   : >> { %v6638_v4 = vpop.f32.mrf.mxu1  ;;  %v6815_v31 = vpop.f32.mrf.mxu0  ;;  %16497 = vmatmul.mubr.msk.f32.gmra.mxu1 %vm632_vm1, %v13900_v49  ;;  %16535 = vmatmul.mubr.msk.f32.gmra.mxu0 %vm632_vm1, %v13904_v5  ;;  %v13953_v49 = vld [vmem:[%s19234_s18 + $0xb2] sm:$0xff]  ;;  %v13956_v14 = vld [vmem:[%s19234_s18 + $0xca] sm:$0xff] }
 0x550   : >> { %v6676_v1 = vadd.f32 %v6638_v4, %v20591_v3  ;;  %v20741_v26 = vadd.f32 %v6815_v31, %v6675_v22  ;;  %16499 = vmatprep.mubr.msk.f32.mxu1 %vm17336_vm4, %v17335_v21  ;;  %16537 = vmatprep.mubr.msk.f32.mxu0 %vm17336_vm4, %v17335_v21 }
 0x551   : >> { %v16158_v53 = vpop.f32.mrf.mxu1  ;;  %v16196_v52 = vpop.f32.mrf.mxu0 }
 0x553   : >> { %v6643_v41 = vpop.f32.mrf.mxu1  ;;  %v6820_v19 = vpop.f32.mrf.mxu0  ;;  %16500 = vmatmul.mubr.msk.f32.gmra.mxu1 %vm632_vm1, %v13901_v63  ;;  %16538 = vmatmul.mubr.msk.f32.gmra.mxu0 %vm632_vm1, %v13905_v29 }
 0x554   : >> { %v6677_v3 = vadd.f32 %v6643_v41, %v20602_v39  ;;  %v20751_v37 = vadd.f32 %v6820_v19, %v6676_v1  ;;  %16502 = vmatprep.mubr.msk.f32.mxu1 %vm17336_vm4, %v17335_v21  ;;  %16540 = vmatprep.mubr.msk.f32.mxu0 %vm17336_vm4, %v17335_v21  ;;  %v13930_v41 = vld [vmem:[%s19234_s18 + $0xd9] sm:$0xff] }
 0x555   : >> { %v16161_v33 = vpop.f32.mrf.mxu1  ;;  %v16199_v59 = vpop.f32.mrf.mxu0  ;;  %v13957_v19 = vld [vmem:[%s19234_s18 + $0xd2] sm:$0xff] }
 0x557   : >> { %v6648_v16 = vpop.f32.mrf.mxu1  ;;  %v6825_v45 = vpop.f32.mrf.mxu0  ;;  %16503 = vmatmul.mubr.msk.f32.gmra.mxu1 %vm632_vm1, %v13902_v20  ;;  %16541 = vmatmul.mubr.msk.f32.gmra.mxu0 %vm632_vm1, %v13906_v34 }
 0x558   : >> { %v6678_v39 = vadd.f32 %v6648_v16, %v20616_v38  ;;  %v20761_v48 = vadd.f32 %v6825_v45, %v6677_v3  ;;  %16543 = vmatprep.mubr.msk.f32.mxu0 %vm17336_vm4, %v17335_v21  ;;  %16554 = vmatprep.mubr.msk.f32.mxu1 %vm17336_vm4, %v17335_v21  ;;  %v13931_v45 = vld [vmem:[%s19234_s18 + $0xe1] sm:$0xff] }
 0x559   : >> { %v16164_v8 = vpop.f32.mrf.mxu1  ;;  %v16202_v9 = vpop.f32.mrf.mxu0 }
 0x55b   : >> { %v6653_v25 = vpop.f32.mrf.mxu1  ;;  %v6830_v38 = vpop.f32.mrf.mxu0  ;;  %16544 = vmatmul.mubr.msk.f32.gmra.mxu0 %vm632_vm1, %v13907_v44  ;;  %16555 = vmatmul.mubr.msk.f32.vlgmr.msra.gmra.mxu1 %vm632_vm1, %v13925_v56 }
 0x55c   : >> { %v6679_v40 = vadd.f32 %v6653_v25, %v20637_v47  ;;  %v20775_v57 = vadd.f32 %v6830_v38, %v6678_v39  ;;  %16557 = vmatprep.mubr.msk.f32.mxu1 %vm17336_vm4, %v17335_v21  ;;  %16595 = vmatprep.mubr.msk.f32.mxu0 %vm17336_vm4, %v17335_v21  ;;  %v13994_v47 = vld [vmem:[%s22150_s5 + $0x2f0] sm:$0xff]  ;;  %v13958_v39 = vld [vmem:[%s19234_s18 + $0xda] sm:$0xff]  ;;  %v13959_v38 = vld [vmem:[%s19234_s18 + $0xe2] sm:$0xff] }
 0x55d   : >> { %v16167_v2 = vpop.f32.mrf.mxu1  ;;  %v16205_v43 = vpop.f32.mrf.mxu0  ;;  %16629 = vmatpush3.msra.mxu1 %v13995_v30  ;;  %v13932_v25 = vld [vmem:[%s19234_s18 + $0xe9] sm:$0xff] }
 0x55e   : >> { %16630 = vmatprep.subr.mxu1 %v17335_v21 }
 0x55f   : >> { %v6658_v60 = vpop.f32.mrf.mxu1  ;;  %v6835_v51 = vpop.f32.mrf.mxu0  ;;  %16558 = vmatmul.mubr.msk.f32.gmra.mxu1 %vm632_vm1, %v13926_v55  ;;  %16596 = vmatmul.mubr.msk.f32.vlgmr.msra.gmra.mxu0 %vm632_vm1, %v13953_v49 }
 0x560   : >> { %v6680_v54 = vadd.f32 %v6658_v60, %v20659_v10  ;;  %v20793_v63 = vadd.f32 %v6835_v51, %v6679_v40  ;;  %16670 = vmatpush3.msra.mxu0 %v14023_v6  ;;  %16560 = vmatprep.mubr.msk.f32.mxu1 %vm17336_vm4, %v17335_v21  ;;  %v14022_v10 = vld [vmem:[%s22150_s5 + $0x310] sm:$0xff] }
 0x561   : >> { %v16170_v0 = vpop.f32.mrf.mxu1  ;;  %v16208_v18 = vpop.f32.mrf.mxu0  ;;  %16598 = vmatprep.mubr.msk.f32.mxu0 %vm17336_vm4, %v17335_v21  ;;  %16631 = vmatpush3.msra.mxu1 %v13994_v47  ;;  %v13933_v6 = vld [vmem:[%s19234_s18 + $0xf1] sm:$0xff] }
 0x562   : >> { %16671 = vmatprep.subr.mxu0 %v17335_v21  ;;  %16632 = vmatprep.subr.mxu1 %v17335_v21  ;;  %v13960_v47 = vld [vmem:[%s19234_s18 + $0xea] sm:$0xff]  ;;  %v13934_v0 = vld [vmem:[%s19234_s18 + $0xf9] sm:$0xff] }
 0x563   : >> { %v6663_v20 = vpop.f32.mrf.mxu1  ;;  %v6840_v23 = vpop.f32.mrf.mxu0  ;;  %16561 = vmatmul.mubr.msk.f32.gmra.mxu1 %vm632_vm1, %v13927_v24  ;;  %16599 = vmatmul.mubr.msk.f32.gmra.mxu0 %vm632_vm1, %v13954_v62  ;;  %v13961_v18 = vld [vmem:[%s19234_s18 + $0xf2] sm:$0xff] }
 0x564   : >> { %v6681_v28 = vadd.f32 %v6663_v20, %v20681_v58  ;;  %v20812_v17 = vadd.f32 %v6840_v23, %v6680_v54  ;;  %16563 = vmatprep.mubr.msk.f32.mxu1 %vm17336_vm4, %v17335_v21  ;;  %16601 = vmatprep.mubr.msk.f32.mxu0 %vm17336_vm4, %v17335_v21  ;;  %v14021_v58 = vld [vmem:[%s22150_s5 + $0x308] sm:$0xff] }
 0x565   : >> { %v16173_v7 = vpop.f32.mrf.mxu1  ;;  %v16211_v50 = vpop.f32.mrf.mxu0  ;;  %16672 = vmatpush3.msra.mxu0 %v14022_v10  ;;  %16633 = vmatpush3.msra.mxu1 %v13993_v11 }
 0x566   : >> { %16673 = vmatprep.subr.mxu0 %v17335_v21  ;;  %16634 = vmatprep.subr.mxu1 %v17335_v21 }
 0x567   : >> { %v6668_v42 = vpop.f32.mrf.mxu1  ;;  %v6845_v32 = vpop.f32.mrf.mxu0  ;;  %16564 = vmatmul.mubr.msk.f32.gmra.mxu1 %vm632_vm1, %v13928_v13  ;;  %16602 = vmatmul.mubr.msk.f32.gmra.mxu0 %vm632_vm1, %v13955_v61  ;;  %v13935_v13 = vld [vmem:[%s19234_s18 + $0x101] sm:$0xff] }
 0x568   : >> { %v6682_v22 = vadd.f32 %v6668_v42, %v20696_v15  ;;  %v20831_v5 = vadd.f32 %v6845_v32, %v6681_v28  ;;  %16566 = vmatprep.mubr.msk.f32.mxu1 %vm17336_vm4, %v17335_v21  ;;  %16604 = vmatprep.mubr.msk.f32.mxu0 %vm17336_vm4, %v17335_v21  ;;  %v14020_v15 = vld [vmem:[%s22150_s5 + $0x300] sm:$0xff] }
 0x569   : >> { %v16176_v4 = vpop.f32.mrf.mxu1  ;;  %v16214_v31 = vpop.f32.mrf.mxu0  ;;  %16674 = vmatpush3.msra.mxu0 %v14021_v58  ;;  %16635 = vmatpush3.msra.mxu1 %v13992_v27  ;;  %v13962_v61 = vld [vmem:[%s19234_s18 + $0xfa] sm:$0xff]  ;;  %v13963_v32 = vld [vmem:[%s19234_s18 + $0x102] sm:$0xff] }
 0x56a   : >> { %16675 = vmatprep.subr.mxu0 %v17335_v21 }
 0x56b   : >> { %v6850_v1 = vpop.f32.mrf.mxu0  ;;  %v6982_v29 = vpop.f32.mrf.mxu1  ;;  %16567 = vmatmul.mubr.msk.f32.gmra.mxu1 %vm632_vm1, %v13929_v35  ;;  %16605 = vmatmul.mubr.msk.f32.gmra.mxu0 %vm632_vm1, %v13956_v14 }
 0x56c   : >> { %v20845_v53 = vadd.f32 %v6850_v1, %v6682_v22  ;;  %v7036_v52 = vadd.f32 %v6982_v29, %v20709_v12  ;;  %16569 = vmatprep.mubr.msk.f32.mxu1 %vm17336_vm4, %v17335_v21  ;;  %16607 = vmatprep.mubr.msk.f32.mxu0 %vm17336_vm4, %v17335_v21  ;;  %v13981_v22 = vld [vmem:[%s19234_s18 + $0xb3] sm:$0xff]  ;;  %v13982_v1 = vld [vmem:[%s19234_s18 + $0xbb] sm:$0xff] }
 0x56d   : >> { %v16217_v3 = vpop.f32.mrf.mxu0  ;;  %v16228_v34 = vpop.f32.mrf.mxu1  ;;  %16676 = vmatpush3.msra.mxu0 %v14020_v15  ;;  %v14009_v29 = vld [vmem:[%s19234_s18 + $0xb4] sm:$0xff] }
 0x56f   : >> { %v6987_v33 = vpop.f32.mrf.mxu1  ;;  %v7164_v59 = vpop.f32.mrf.mxu0  ;;  %16570 = vmatmul.mubr.msk.f32.gmra.mxu1 %vm632_vm1, %v13930_v41  ;;  %16608 = vmatmul.mubr.msk.f32.gmra.mxu0 %vm632_vm1, %v13957_v19 }
 0x570   : >> { %v7037_v12 = vadd.f32 %v6987_v33, %v20720_v36  ;;  %v20857_v16 = vadd.f32 %v7164_v59, %v7036_v52  ;;  %16572 = vmatprep.mubr.msk.f32.mxu1 %vm17336_vm4, %v17335_v21  ;;  %16610 = vmatprep.mubr.msk.f32.mxu0 %vm17336_vm4, %v17335_v21  ;;  %v13983_v33 = vld [vmem:[%s19234_s18 + $0xc3] sm:$0xff] }
 0x571   : >> { %v16231_v44 = vpop.f32.mrf.mxu1  ;;  %v16269_v56 = vpop.f32.mrf.mxu0  ;;  %v14010_v59 = vld [vmem:[%s19234_s18 + $0xbc] sm:$0xff] }
 0x573   : >> { %v6992_v8 = vpop.f32.mrf.mxu1  ;;  %v7169_v9 = vpop.f32.mrf.mxu0  ;;  %16573 = vmatmul.mubr.msk.f32.gmra.mxu1 %vm632_vm1, %v13931_v45  ;;  %16611 = vmatmul.mubr.msk.f32.gmra.mxu0 %vm632_vm1, %v13958_v39 }
 0x574   : >> { %v7038_v36 = vadd.f32 %v6992_v8, %v20731_v46  ;;  %v20868_v30 = vadd.f32 %v7169_v9, %v7037_v12  ;;  %16575 = vmatprep.mubr.msk.f32.mxu1 %vm17336_vm4, %v17335_v21  ;;  %16613 = vmatprep.mubr.msk.f32.mxu0 %vm17336_vm4, %v17335_v21  ;;  %v13984_v8 = vld [vmem:[%s19234_s18 + $0xcb] sm:$0xff] }
 0x575   : >> { %v16234_v40 = vpop.f32.mrf.mxu1  ;;  %v16272_v55 = vpop.f32.mrf.mxu0  ;;  %v14011_v9 = vld [vmem:[%s19234_s18 + $0xc4] sm:$0xff] }
 0x577   : >> { %v6997_v49 = vpop.f32.mrf.mxu1  ;;  %v7174_v2 = vpop.f32.mrf.mxu0  ;;  %16576 = vmatmul.mubr.msk.f32.gmra.mxu1 %vm632_vm1, %v13932_v25  ;;  %16614 = vmatmul.mubr.msk.f32.gmra.mxu0 %vm632_vm1, %v13959_v38 }
 0x578   : >> { %v7039_v46 = vadd.f32 %v6997_v49, %v20741_v26  ;;  %v20879_v43 = vadd.f32 %v7174_v2, %v7038_v36  ;;  %16578 = vmatprep.mubr.msk.f32.mxu1 %vm17336_vm4, %v17335_v21  ;;  %16616 = vmatprep.mubr.msk.f32.mxu0 %vm17336_vm4, %v17335_v21  ;;  %v13985_v49 = vld [vmem:[%s19234_s18 + $0xd3] sm:$0xff] }
 0x579   : >> { %v16237_v60 = vpop.f32.mrf.mxu1  ;;  %v16275_v51 = vpop.f32.mrf.mxu0  ;;  %v14012_v2 = vld [vmem:[%s19234_s18 + $0xcc] sm:$0xff] }
 0x57b   : >> { %v7002_v54 = vpop.f32.mrf.mxu1  ;;  %v7179_v24 = vpop.f32.mrf.mxu0  ;;  %16579 = vmatmul.mubr.msk.f32.gmra.mxu1 %vm632_vm1, %v13933_v6  ;;  %16617 = vmatmul.mubr.msk.f32.gmra.mxu0 %vm632_vm1, %v13960_v47 }
 0x57c   : >> { %v7040_v26 = vadd.f32 %v7002_v54, %v20751_v37  ;;  %v20890_v62 = vadd.f32 %v7179_v24, %v7039_v46  ;;  %16581 = vmatprep.mubr.msk.f32.mxu1 %vm17336_vm4, %v17335_v21  ;;  %16619 = vmatprep.mubr.msk.f32.mxu0 %vm17336_vm4, %v17335_v21  ;;  %v13986_v54 = vld [vmem:[%s19234_s18 + $0xdb] sm:$0xff] }
 0x57d   : >> { %v16240_v10 = vpop.f32.mrf.mxu1  ;;  %v16278_v11 = vpop.f32.mrf.mxu0  ;;  %v14013_v24 = vld [vmem:[%s19234_s18 + $0xd4] sm:$0xff] }
 0x57f   : >> { %v7007_v20 = vpop.f32.mrf.mxu1  ;;  %v7184_v23 = vpop.f32.mrf.mxu0  ;;  %16582 = vmatmul.mubr.msk.f32.gmra.mxu1 %vm632_vm1, %v13934_v0  ;;  %16620 = vmatmul.mubr.msk.f32.gmra.mxu0 %vm632_vm1, %v13961_v18 }
 0x580   : >> { %v7041_v37 = vadd.f32 %v7007_v20, %v20761_v48  ;;  %v20901_v28 = vadd.f32 %v7184_v23, %v7040_v26  ;;  %16584 = vmatprep.mubr.msk.f32.mxu1 %vm17336_vm4, %v17335_v21  ;;  %16622 = vmatprep.mubr.msk.f32.mxu0 %vm17336_vm4, %v17335_v21  ;;  %v13987_v20 = vld [vmem:[%s19234_s18 + $0xe3] sm:$0xff] }
 0x581   : >> { %v16243_v7 = vpop.f32.mrf.mxu1  ;;  %v16281_v50 = vpop.f32.mrf.mxu0  ;;  %v14014_v23 = vld [vmem:[%s19234_s18 + $0xdc] sm:$0xff] }
 0x583   : >> { %v7012_v58 = vpop.f32.mrf.mxu1  ;;  %v7189_v27 = vpop.f32.mrf.mxu0  ;;  %16585 = vmatmul.mubr.msk.f32.gmra.mxu1 %vm632_vm1, %v13935_v13  ;;  %16623 = vmatmul.mubr.msk.f32.gmra.mxu0 %vm632_vm1, %v13962_v61 }
 0x584   : >> { %v7042_v48 = vadd.f32 %v7012_v58, %v20775_v57  ;;  %v20912_v42 = vadd.f32 %v7189_v27, %v7041_v37  ;;  %16625 = vmatprep.mubr.msk.f32.mxu0 %vm17336_vm4, %v17335_v21  ;;  %16636 = vmatprep.mubr.msk.f32.mxu1 %vm17336_vm4, %v17335_v21  ;;  %v13988_v58 = vld [vmem:[%s19234_s18 + $0xeb] sm:$0xff] }
 0x585   : >> { %v16246_v35 = vpop.f32.mrf.mxu1  ;;  %v16284_v14 = vpop.f32.mrf.mxu0  ;;  %v14015_v27 = vld [vmem:[%s19234_s18 + $0xe4] sm:$0xff] }
 0x587   : >> { %v7017_v4 = vpop.f32.mrf.mxu1  ;;  %v7194_v31 = vpop.f32.mrf.mxu0  ;;  %16626 = vmatmul.mubr.msk.f32.gmra.mxu0 %vm632_vm1, %v13963_v32  ;;  %16637 = vmatmul.mubr.msk.f32.vlgmr.msra.gmra.mxu1 %vm632_vm1, %v13981_v22 }
 0x588   : >> { %v7043_v57 = vadd.f32 %v7017_v4, %v20793_v63  ;;  %v20923_v15 = vadd.f32 %v7194_v31, %v7042_v48  ;;  %16639 = vmatprep.mubr.msk.f32.mxu1 %vm17336_vm4, %v17335_v21  ;;  %16677 = vmatprep.mubr.msk.f32.mxu0 %vm17336_vm4, %v17335_v21  ;;  %v13989_v4 = vld [vmem:[%s19234_s18 + $0xf3] sm:$0xff] }
 0x589   : >> { %v16249_v52 = vpop.f32.mrf.mxu1  ;;  %v16287_v41 = vpop.f32.mrf.mxu0  ;;  %v14016_v31 = vld [vmem:[%s19234_s18 + $0xec] sm:$0xff] }
 0x58b   : >> { %v7022_v19 = vpop.f32.mrf.mxu1  ;;  %v7199_v3 = vpop.f32.mrf.mxu0  ;;  %16640 = vmatmul.mubr.msk.f32.gmra.mxu1 %vm632_vm1, %v13982_v1  ;;  %16678 = vmatmul.mubr.msk.f32.vlgmr.msra.gmra.mxu0 %vm632_vm1, %v14009_v29 }
 0x58c   : >> { %v7044_v63 = vadd.f32 %v7022_v19, %v20812_v17  ;;  %v20934_v34 = vadd.f32 %v7199_v3, %v7043_v57  ;;  %16642 = vmatprep.mubr.msk.f32.mxu1 %vm17336_vm4, %v17335_v21  ;;  %16680 = vmatprep.mubr.msk.f32.mxu0 %vm17336_vm4, %v17335_v21  ;;  %v13990_v19 = vld [vmem:[%s19234_s18 + $0xfb] sm:$0xff] }
 0x58d   : >> { %v16252_v12 = vpop.f32.mrf.mxu1  ;;  %v16290_v45 = vpop.f32.mrf.mxu0  ;;  %v14017_v3 = vld [vmem:[%s19234_s18 + $0xf4] sm:$0xff] }
 0x58f   : >> { %v7027_v39 = vpop.f32.mrf.mxu1  ;;  %v7204_v44 = vpop.f32.mrf.mxu0  ;;  %16643 = vmatmul.mubr.msk.f32.gmra.mxu1 %vm632_vm1, %v13983_v33  ;;  %16681 = vmatmul.mubr.msk.f32.gmra.mxu0 %vm632_vm1, %v14010_v59 }
 0x590   : >> { %v7045_v17 = vadd.f32 %v7027_v39, %v20831_v5  ;;  %v20945_v56 = vadd.f32 %v7204_v44, %v7044_v63  ;;  %16645 = vmatprep.mubr.msk.f32.mxu1 %vm17336_vm4, %v17335_v21  ;;  %16683 = vmatprep.mubr.msk.f32.mxu0 %vm17336_vm4, %v17335_v21  ;;  %v13991_v39 = vld [vmem:[%s19234_s18 + $0x103] sm:$0xff] }
 0x591   : >> { %v16255_v36 = vpop.f32.mrf.mxu1  ;;  %v16293_v25 = vpop.f32.mrf.mxu0  ;;  %v14018_v44 = vld [vmem:[%s19234_s18 + $0xfc] sm:$0xff] }
 0x593   : >> { %v7032_v38 = vpop.f32.mrf.mxu1  ;;  %v7209_v40 = vpop.f32.mrf.mxu0  ;;  %16646 = vmatmul.mubr.msk.f32.gmra.mxu1 %vm632_vm1, %v13984_v8  ;;  %16684 = vmatmul.mubr.msk.f32.gmra.mxu0 %vm632_vm1, %v14011_v9 }
 0x594   : >> { %v7046_v5 = vadd.f32 %v7032_v38, %v20845_v53  ;;  %v20956_v55 = vadd.f32 %v7209_v40, %v7045_v17  ;;  %16648 = vmatprep.mubr.msk.f32.mxu1 %vm17336_vm4, %v17335_v21  ;;  %16686 = vmatprep.mubr.msk.f32.mxu0 %vm17336_vm4, %v17335_v21  ;;  %v14019_v38 = vld [vmem:[%s19234_s18 + $0x104] sm:$0xff] }
 0x595   : >> { %v16258_v46 = vpop.f32.mrf.mxu1  ;;  %v16296_v6 = vpop.f32.mrf.mxu0 }
 0x597   : >> { %v7214_v47 = vpop.f32.mrf.mxu0  ;;  %v7347_v60 = vpop.f32.mrf.mxu1  ;;  %16649 = vmatmul.mubr.msk.f32.gmra.mxu1 %vm632_vm1, %v13985_v49  ;;  %16687 = vmatmul.mubr.msk.f32.gmra.mxu0 %vm632_vm1, %v14012_v2 }
 0x598   : >> { %v20966_v53 = vadd.f32 %v7214_v47, %v7046_v5  ;;  %v7401_v51 = vadd.f32 %v7347_v60, %v20857_v16  ;;  %16651 = vmatprep.mubr.msk.f32.mxu1 %vm17336_vm4, %v17335_v21  ;;  %16689 = vmatprep.mubr.msk.f32.mxu0 %vm17336_vm4, %v17335_v21 }
 0x599   : >> { %v16299_v26 = vpop.f32.mrf.mxu0  ;;  %v16310_v0 = vpop.f32.mrf.mxu1 }
 0x59b   : >> { %v7352_v18 = vpop.f32.mrf.mxu1  ;;  %v7529_v10 = vpop.f32.mrf.mxu0  ;;  %16652 = vmatmul.mubr.msk.f32.gmra.mxu1 %vm632_vm1, %v13986_v54  ;;  %16690 = vmatmul.mubr.msk.f32.gmra.mxu0 %vm632_vm1, %v14013_v24 }
 0x59c   : >> { %v7402_v11 = vadd.f32 %v7352_v18, %v20868_v30  ;;  %v20978_v16 = vadd.f32 %v7529_v10, %v7401_v51  ;;  %16654 = vmatprep.mubr.msk.f32.mxu1 %vm17336_vm4, %v17335_v21  ;;  %16692 = vmatprep.mubr.msk.f32.mxu0 %vm17336_vm4, %v17335_v21 }
 0x59d   : >> { %v16313_v37 = vpop.f32.mrf.mxu1  ;;  %v16351_v13 = vpop.f32.mrf.mxu0 }
 0x59f   : >> { %v7357_v61 = vpop.f32.mrf.mxu1  ;;  %v7534_v7 = vpop.f32.mrf.mxu0  ;;  %16655 = vmatmul.mubr.msk.f32.gmra.mxu1 %vm632_vm1, %v13987_v20  ;;  %16693 = vmatmul.mubr.msk.f32.gmra.mxu0 %vm632_vm1, %v14014_v23 }
 0x5a0   : >> { %v7403_v30 = vadd.f32 %v7357_v61, %v20879_v43  ;;  %v20989_v50 = vadd.f32 %v7534_v7, %v7402_v11  ;;  %16657 = vmatprep.mubr.msk.f32.mxu1 %vm17336_vm4, %v17335_v21  ;;  %16695 = vmatprep.mubr.msk.f32.mxu0 %vm17336_vm4, %v17335_v21 }
 0x5a1   : >> { %v16316_v48 = vpop.f32.mrf.mxu1  ;;  %v16354_v32 = vpop.f32.mrf.mxu0 }
 0x5a3   : >> { %v7362_v22 = vpop.f32.mrf.mxu1  ;;  %v7539_v35 = vpop.f32.mrf.mxu0  ;;  %16658 = vmatmul.mubr.msk.f32.gmra.mxu1 %vm632_vm1, %v13988_v58  ;;  %16696 = vmatmul.mubr.msk.f32.gmra.mxu0 %vm632_vm1, %v14015_v27 }
 0x5a4   : >> { %v7404_v43 = vadd.f32 %v7362_v22, %v20890_v62  ;;  %v21000_v14 = vadd.f32 %v7539_v35, %v7403_v30  ;;  %16660 = vmatprep.mubr.msk.f32.mxu1 %vm17336_vm4, %v17335_v21  ;;  %16698 = vmatprep.mubr.msk.f32.mxu0 %vm17336_vm4, %v17335_v21 }
 0x5a5   : >> { %v16319_v57 = vpop.f32.mrf.mxu1  ;;  %v16357_v1 = vpop.f32.mrf.mxu0 }
 0x5a7   : >> { %v7367_v29 = vpop.f32.mrf.mxu1  ;;  %v7544_v52 = vpop.f32.mrf.mxu0  ;;  %16661 = vmatmul.mubr.msk.f32.gmra.mxu1 %vm632_vm1, %v13989_v4  ;;  %16699 = vmatmul.mubr.msk.f32.gmra.mxu0 %vm632_vm1, %v14016_v31 }
 0x5a8   : >> { %v7405_v62 = vadd.f32 %v7367_v29, %v20901_v28  ;;  %v21011_v41 = vadd.f32 %v7544_v52, %v7404_v43  ;;  %16663 = vmatprep.mubr.msk.f32.mxu1 %vm17336_vm4, %v17335_v21  ;;  %16701 = vmatprep.mubr.msk.f32.mxu0 %vm17336_vm4, %v17335_v21 }
 0x5a9   : >> { %v16322_v63 = vpop.f32.mrf.mxu1  ;;  %v16360_v33 = vpop.f32.mrf.mxu0 }
 0x5ab   : >> { %v7372_v59 = vpop.f32.mrf.mxu1  ;;  %v7549_v12 = vpop.f32.mrf.mxu0  ;;  %16664 = vmatmul.mubr.msk.f32.gmra.mxu1 %vm632_vm1, %v13990_v19  ;;  %16702 = vmatmul.mubr.msk.f32.gmra.mxu0 %vm632_vm1, %v14017_v3 }
 0x5ac   : >> { %v7406_v28 = vadd.f32 %v7372_v59, %v20912_v42  ;;  %v21022_v45 = vadd.f32 %v7549_v12, %v7405_v62  ;;  %16666 = vmatprep.mubr.msk.f32.mxu1 %vm17336_vm4, %v17335_v21  ;;  %16704 = vmatprep.mubr.msk.f32.mxu0 %vm17336_vm4, %v17335_v21 }
 0x5ad   : >> { %v16325_v17 = vpop.f32.mrf.mxu1  ;;  %v16363_v8 = vpop.f32.mrf.mxu0 }
 0x5af   : >> { %v7377_v9 = vpop.f32.mrf.mxu1  ;;  %v7554_v36 = vpop.f32.mrf.mxu0  ;;  %16667 = vmatmul.mubr.msk.f32.gmra.mxu1 %vm632_vm1, %v13991_v39  ;;  %16705 = vmatmul.mubr.msk.f32.gmra.mxu0 %vm632_vm1, %v14018_v44 }
 0x5b0   : >> { %v7407_v42 = vadd.f32 %v7377_v9, %v20923_v15  ;;  %v7588_v25 = vadd.f32 %v7554_v36, %v7406_v28  ;;  %16707 = vmatprep.mubr.msk.f32.mxu0 %vm17336_vm4, %v17335_v21 }
 0x5b1   : >> { %v16328_v40 = vpop.f32.mrf.mxu1  ;;  %v16366_v5 = vpop.f32.mrf.mxu0 }
 0x5b3   : >> { %v7382_v49 = vpop.f32.mrf.mxu1  ;;  %v7559_v2 = vpop.f32.mrf.mxu0  ;;  %16708 = vmatmul.mubr.msk.f32.gmra.mxu0 %vm632_vm1, %v14019_v38 }
 0x5b4   : >> { %v7408_v46 = vadd.f32 %v7382_v49, %v20934_v34  ;;  %v7589_v6 = vadd.f32 %v7559_v2, %v7407_v42 }
 0x5b5   : >> { %v16331_v47 = vpop.f32.mrf.mxu1  ;;  %v16369_v60 = vpop.f32.mrf.mxu0 }
 0x5b7   : >> { %v7387_v51 = vpop.f32.mrf.mxu1  ;;  %v7564_v54 = vpop.f32.mrf.mxu0 }
 0x5b8   : >> { %v7409_v15 = vadd.f32 %v7387_v51, %v20945_v56  ;;  %v7590_v24 = vadd.f32 %v7564_v54, %v7408_v46 }
 0x5b9   : >> { %v16334_v26 = vpop.f32.mrf.mxu1  ;;  %v16372_v0 = vpop.f32.mrf.mxu0 }
 0x5bb   : >> { %v7392_v21 = vpop.f32.mrf.mxu1  ;;  %v7569_v18 = vpop.f32.mrf.mxu0 }
 0x5bc   : >> { %v7410_v10 = vadd.f32 %v7392_v21, %v20956_v55  ;;  %v7591_v11 = vadd.f32 %v7569_v18, %v7409_v15 }
 0x5bd   : >> { %v16337_v20 = vpop.f32.mrf.mxu1  ;;  %v16375_v23 = vpop.f32.mrf.mxu0 }
 0x5bf   : >> { %v7397_v37 = vpop.f32.mrf.mxu1  ;;  %v7574_v13 = vpop.f32.mrf.mxu0 }
 0x5c0   : >> { %v7411_v34 = vadd.f32 %v7397_v37, %v20966_v53  ;;  %v7592_v61 = vadd.f32 %v7574_v13, %v7410_v10 }
 0x5c1   : >> { %v16340_v7 = vpop.f32.mrf.mxu1  ;;  %v16378_v30 = vpop.f32.mrf.mxu0 }
 0x5c3   : >> { %v7579_v58 = vpop.f32.mrf.mxu0  ;;  %v7711_v27 = vpop.f32.mrf.mxu1 }
 0x5c4   : >> { %v7593_v56 = vadd.f32 %v7579_v58, %v7411_v34  ;;  %v7765_v48 = vadd.f32 %v7711_v27, %v20978_v16 }
 0x5c5   : >> { %v16381_v32 = vpop.f32.mrf.mxu0  ;;  %v16392_v22 = vpop.f32.mrf.mxu1 }
 0x5c7   : >> { %v7716_v35 = vpop.f32.mrf.mxu1  ;;  %v7893_v43 = vpop.f32.mrf.mxu0 }
 0x5c8   : >> { %v7766_v55 = vadd.f32 %v7716_v35, %v20989_v50  ;;  %v7947_v4 = vadd.f32 %v7893_v43, %v7765_v48 }
 0x5c9   : >> { %v16395_v31 = vpop.f32.mrf.mxu1  ;;  %v16433_v57 = vpop.f32.mrf.mxu0 }
 0x5cb   : >> { %v7721_v1 = vpop.f32.mrf.mxu1  ;;  %v7898_v29 = vpop.f32.mrf.mxu0 }
 0x5cc   : >> { %v7767_v53 = vadd.f32 %v7721_v1, %v21000_v14  ;;  %v7948_v52 = vadd.f32 %v7898_v29, %v7766_v55 }
 0x5cd   : >> { %v16398_v62 = vpop.f32.mrf.mxu1  ;;  %v16436_v19 = vpop.f32.mrf.mxu0 }
 0x5cf   : >> { %v7726_v3 = vpop.f32.mrf.mxu1  ;;  %v7903_v63 = vpop.f32.mrf.mxu0 }
 0x5d0   : >> { %v7768_v16 = vadd.f32 %v7726_v3, %v21011_v41  ;;  %v7949_v33 = vadd.f32 %v7903_v63, %v7767_v53 }
 0x5d1   : >> { %v16401_v59 = vpop.f32.mrf.mxu1  ;;  %v16439_v12 = vpop.f32.mrf.mxu0 }
 0x5d3   : >> { %v7731_v28 = vpop.f32.mrf.mxu1  ;;  %v7908_v39 = vpop.f32.mrf.mxu0 }
 0x5d4   : >> { %v7769_v50 = vadd.f32 %v7731_v28, %v21022_v45  ;;  %v7950_v44 = vadd.f32 %v7908_v39, %v7768_v16 }
 0x5d5   : >> { %v16404_v17 = vpop.f32.mrf.mxu1  ;;  %v16442_v8 = vpop.f32.mrf.mxu0 }
 0x5d7   : >> { %v7736_v9 = vpop.f32.mrf.mxu1  ;;  %v7913_v36 = vpop.f32.mrf.mxu0 }
 0x5d8   : >> { %v7770_v14 = vadd.f32 %v7736_v9, %v7588_v25  ;;  %v7951_v42 = vadd.f32 %v7913_v36, %v7769_v50 }
 0x5d9   : >> { %v16407_v38 = vpop.f32.mrf.mxu1  ;;  %v16445_v40 = vpop.f32.mrf.mxu0 }
 0x5db   : >> { %v7741_v5 = vpop.f32.mrf.mxu1  ;;  %v7918_v49 = vpop.f32.mrf.mxu0 }
 0x5dc   : >> { %v7771_v2 = vadd.f32 %v7741_v5, %v7589_v6  ;;  %v7952_v41 = vadd.f32 %v7918_v49, %v7770_v14 }
 0x5dd   : >> { %v16410_v46 = vpop.f32.mrf.mxu1  ;;  %v16448_v47 = vpop.f32.mrf.mxu0 }
 0x5df   : >> { %v7746_v60 = vpop.f32.mrf.mxu1  ;;  %v7923_v51 = vpop.f32.mrf.mxu0 }
 0x5e0   : >> { %v7772_v54 = vadd.f32 %v7746_v60, %v7590_v24  ;;  %v7953_v15 = vadd.f32 %v7923_v51, %v7771_v2 }
 0x5e1   : >> { %v16413_v45 = vpop.f32.mrf.mxu1  ;;  %v16451_v26 = vpop.f32.mrf.mxu0 }
 0x5e3   : >> { %v7751_v0 = vpop.f32.mrf.mxu1  ;;  %v7928_v21 = vpop.f32.mrf.mxu0 }
 0x5e4   : >> { %v7773_v18 = vadd.f32 %v7751_v0, %v7591_v11  ;;  %v7954_v10 = vadd.f32 %v7928_v21, %v7772_v54 }
 0x5e5   : >> { %v16416_v25 = vpop.f32.mrf.mxu1  ;;  %v16454_v20 = vpop.f32.mrf.mxu0 }
 0x5e7   : >> { %v7756_v23 = vpop.f32.mrf.mxu1  ;;  %v7933_v37 = vpop.f32.mrf.mxu0 }
 0x5e8   : >> { %v7774_v13 = vadd.f32 %v7756_v23, %v7592_v61  ;;  %v7955_v34 = vadd.f32 %v7933_v37, %v7773_v18 }
 0x5e9   : >> { %v16419_v6 = vpop.f32.mrf.mxu1  ;;  %v16457_v7 = vpop.f32.mrf.mxu0 }
 0x5eb   : >> { %v7761_v30 = vpop.f32.mrf.mxu1  ;;  %v7938_v58 = vpop.f32.mrf.mxu0 }
 0x5ec   : >> { %v7775_v27 = vadd.f32 %v7761_v30, %v7593_v56  ;;  %v7956_v48 = vadd.f32 %v7938_v58, %v7774_v13 }
 0x5ed   : >> { %v16422_v24 = vpop.f32.mrf.mxu1  ;;  %v16460_v32 = vpop.f32.mrf.mxu0 }
 0x5ef   : >> { %v7943_v22 = vpop.f32.mrf.mxu0  ;;  %v8075_v35 = vpop.f32.mrf.mxu1 }
 0x5f0   : >> { %v7957_v43 = vadd.f32 %v7943_v22, %v7775_v27  ;;  %v8129_v55 = vadd.f32 %v8075_v35, %v7947_v4 }
 0x5f1   : >> { %v16463_v11 = vpop.f32.mrf.mxu0  ;;  %v16474_v31 = vpop.f32.mrf.mxu1 }
 0x5f3   : >> { %v8080_v57 = vpop.f32.mrf.mxu1  ;;  %v8258_v1 = vpop.f32.mrf.mxu0 }
 0x5f4   : >> { %v8130_v29 = vadd.f32 %v8080_v57, %v7948_v52  ;;  %v8312_v53 = vadd.f32 %v8258_v1, %v8129_v55 }
 0x5f5   : >> { %v16477_v61 = vpop.f32.mrf.mxu1  ;;  %v16515_v62 = vpop.f32.mrf.mxu0 }
 0x5f7   : >> { %v8085_v19 = vpop.f32.mrf.mxu1  ;;  %v8263_v3 = vpop.f32.mrf.mxu0 }
 0x5f8   : >> { %v8131_v63 = vadd.f32 %v8085_v19, %v7949_v33  ;;  %v8313_v16 = vadd.f32 %v8263_v3, %v8130_v29 }
 0x5f9   : >> { %v16480_v56 = vpop.f32.mrf.mxu1  ;;  %v16518_v59 = vpop.f32.mrf.mxu0 }
 0x5fb   : >> { %v8090_v12 = vpop.f32.mrf.mxu1  ;;  %v8268_v28 = vpop.f32.mrf.mxu0 }
 0x5fc   : >> { %v8132_v39 = vadd.f32 %v8090_v12, %v7950_v44  ;;  %v8314_v50 = vadd.f32 %v8268_v28, %v8131_v63 }
 0x5fd   : >> { %v16483_v17 = vpop.f32.mrf.mxu1  ;;  %v16521_v4 = vpop.f32.mrf.mxu0 }
 0x5ff   : >> { %v8095_v8 = vpop.f32.mrf.mxu1  ;;  %v8273_v9 = vpop.f32.mrf.mxu0 }
 0x600   : >> { %v8133_v36 = vadd.f32 %v8095_v8, %v7951_v42  ;;  %v8315_v14 = vadd.f32 %v8273_v9, %v8132_v39 }
 0x601   : >> { %v16486_v52 = vpop.f32.mrf.mxu1  ;;  %v16524_v38 = vpop.f32.mrf.mxu0 }
 0x603   : >> { %v8100_v40 = vpop.f32.mrf.mxu1  ;;  %v8278_v5 = vpop.f32.mrf.mxu0 }
 0x604   : >> { %v8134_v49 = vadd.f32 %v8100_v40, %v7952_v41  ;;  %v8316_v2 = vadd.f32 %v8278_v5, %v8133_v36 }
 0x605   : >> { %v16489_v33 = vpop.f32.mrf.mxu1  ;;  %v16527_v46 = vpop.f32.mrf.mxu0 }
 0x607   : >> { %v8105_v47 = vpop.f32.mrf.mxu1  ;;  %v8283_v60 = vpop.f32.mrf.mxu0 }
 0x608   : >> { %v8135_v51 = vadd.f32 %v8105_v47, %v7953_v15  ;;  %v21046_v54 = vadd.f32 %v8283_v60, %v8134_v49 }
 0x609   : >> { %v16492_v44 = vpop.f32.mrf.mxu1  ;;  %v16530_v45 = vpop.f32.mrf.mxu0 }
 0x60b   : >> { %v8110_v26 = vpop.f32.mrf.mxu1  ;;  %v8288_v0 = vpop.f32.mrf.mxu0 }
 0x60c   : >> { %v8136_v21 = vadd.f32 %v8110_v26, %v7954_v10  ;;  %v21048_v42 = vadd.f32 %v8288_v0, %v8135_v51 }
 0x60d   : >> { %v16495_v18 = vpop.f32.mrf.mxu1  ;;  %v16533_v25 = vpop.f32.mrf.mxu0 }
 0x60f   : >> { %v8115_v20 = vpop.f32.mrf.mxu1  ;;  %v8293_v23 = vpop.f32.mrf.mxu0 }
 0x610   : >> { %v8137_v41 = vadd.f32 %v8115_v20, %v7955_v34  ;;  %v21050_v37 = vadd.f32 %v8293_v23, %v8136_v21 }
 0x611   : >> { %v16498_v13 = vpop.f32.mrf.mxu1  ;;  %v16536_v6 = vpop.f32.mrf.mxu0 }
 0x613   : >> { %v8120_v7 = vpop.f32.mrf.mxu1  ;;  %v8298_v15 = vpop.f32.mrf.mxu0 }
 0x614   : >> { %v8138_v30 = vadd.f32 %v8120_v7, %v7956_v48  ;;  %v21052_v58 = vadd.f32 %v8298_v15, %v8137_v41 }
 0x615   : >> { %v16501_v27 = vpop.f32.mrf.mxu1  ;;  %v16539_v24 = vpop.f32.mrf.mxu0 }
 0x617   : >> { %v8125_v32 = vpop.f32.mrf.mxu1  ;;  %v8303_v10 = vpop.f32.mrf.mxu0 }
 0x618   : >> { %v8139_v22 = vadd.f32 %v8125_v32, %v7957_v43  ;;  %v21054_v35 = vadd.f32 %v8303_v10, %v8138_v30 }
 0x619   : >> { %v16504_v55 = vpop.f32.mrf.mxu1  ;;  %v16542_v11 = vpop.f32.mrf.mxu0 }
 0x61b   : >> { %v8308_v31 = vpop.f32.mrf.mxu0  ;;  %v8440_v34 = vpop.f32.mrf.mxu1 }
 0x61c   : >> { %v21056_v57 = vadd.f32 %v8308_v31, %v8139_v22  ;;  %v8494_v1 = vadd.f32 %v8440_v34, %v8312_v53 }
 0x61d   : >> { %v16545_v29 = vpop.f32.mrf.mxu0  ;;  %v16556_v61 = vpop.f32.mrf.mxu1 }
 0x61f   : >> { %v8445_v62 = vpop.f32.mrf.mxu1  ;;  %v8622_v48 = vpop.f32.mrf.mxu0 }
 0x620   : >> { %v8495_v19 = vadd.f32 %v8445_v62, %v8313_v16  ;;  %v21058_v3 = vadd.f32 %v8622_v48, %v8494_v1 }
 0x621   : >> { %v16559_v63 = vpop.f32.mrf.mxu1  ;;  %v16597_v56 = vpop.f32.mrf.mxu0 }
 0x623   : >> { %v8450_v59 = vpop.f32.mrf.mxu1  ;;  %v8627_v43 = vpop.f32.mrf.mxu0 }
 0x624   : >> { %v8496_v12 = vadd.f32 %v8450_v59, %v8314_v50  ;;  %v21060_v28 = vadd.f32 %v8627_v43, %v8495_v19 }
 0x625   : >> { %v16562_v39 = vpop.f32.mrf.mxu1  ;;  %v16600_v17 = vpop.f32.mrf.mxu0 }
 0x627   : >> { %v8455_v4 = vpop.f32.mrf.mxu1  ;;  %v8632_v8 = vpop.f32.mrf.mxu0 }
 0x628   : >> { %v8497_v9 = vadd.f32 %v8455_v4, %v8315_v14  ;;  %v21062_v53 = vadd.f32 %v8632_v8, %v8496_v12 }
 0x629   : >> { %v16565_v36 = vpop.f32.mrf.mxu1  ;;  %v16603_v52 = vpop.f32.mrf.mxu0 }
 0x62b   : >> { %v8460_v38 = vpop.f32.mrf.mxu1  ;;  %v8637_v16 = vpop.f32.mrf.mxu0 }
 0x62c   : >> { %v8498_v40 = vadd.f32 %v8460_v38, %v8316_v2  ;;  %v21064_v5 = vadd.f32 %v8637_v16, %v8497_v9 }
 0x62d   : >> { %v16568_v49 = vpop.f32.mrf.mxu1  ;;  %v16606_v33 = vpop.f32.mrf.mxu0 }
 0x62f   : >> { %v8465_v46 = vpop.f32.mrf.mxu1  ;;  %v8642_v50 = vpop.f32.mrf.mxu0 }
 0x630   : >> { %v21066_v47 = vadd.f32 %v8642_v50, %v8498_v40  ;;  %v8499_v8 = vadd.f32 %v8465_v46, %v21046_v54 }
 0x631   : >> { %v16571_v60 = vpop.f32.mrf.mxu1  ;;  %v16609_v51 = vpop.f32.mrf.mxu0 }
 0x633   : >> { %v8470_v44 = vpop.f32.mrf.mxu1  ;;  %v8647_v45 = vpop.f32.mrf.mxu0 }
 0x634   : >> { %v8681_v52 = vadd.f32 %v8647_v45, %v8499_v8  ;;  %v8500_v40 = vadd.f32 %v8470_v44, %v21048_v42 }
 0x635   : >> { %v16574_v14 = vpop.f32.mrf.mxu1  ;;  %v16612_v26 = vpop.f32.mrf.mxu0 }
 0x636   : >> { %v21090_v26 = vld [vmem:[%s22151_s6] ss:$0 sm:$0xff] }
 0x637   : >> { %v8475_v0 = vpop.f32.mrf.mxu1  ;;  %v8652_v21 = vpop.f32.mrf.mxu0 }
 0x638   : >> { %v8682_v60 = vadd.f32 %v8652_v21, %v8500_v40  ;;  %v8501_v45 = vadd.f32 %v8475_v0, %v21050_v37 }
 0x639   : >> { %v16577_v18 = vpop.f32.mrf.mxu1  ;;  %v16615_v25 = vpop.f32.mrf.mxu0 }
 0x63b   : >> { %v8480_v20 = vpop.f32.mrf.mxu1  ;;  %v8657_v2 = vpop.f32.mrf.mxu0 }
 0x63d   : >> { %v16580_v23 = vpop.f32.mrf.mxu1  ;;  %v16618_v41 = vpop.f32.mrf.mxu0 }
 0x63e   : >> { %v8683_v41 = vadd.f32 %v8657_v2, %v8501_v45 }
 0x63f   : >> { %v21068_v13 = vpop.f32.mrf.mxu1  ;;  %v8662_v6 = vpop.f32.mrf.mxu0 }
 0x640   : >> { %v8503_v2 = vadd.f32 %v21068_v13, %v21054_v35 }
 0x641   : >> { %v16583_v7 = vpop.f32.mrf.mxu1  ;;  %v16621_v15 = vpop.f32.mrf.mxu0 }
 0x643   : >> { %v21070_v30 = vpop.f32.mrf.mxu1  ;;  %v21072_v27 = vpop.f32.mrf.mxu0 }
 0x644   : >> { %v8504_v40 = vadd.f32 %v21070_v30, %v21056_v57 }
 0x645   : >> { %v16586_v24 = vpop.f32.mrf.mxu1  ;;  %v16624_v32 = vpop.f32.mrf.mxu0 }
 0x646   : >> { %v8502_v24 = vadd.f32 %v8480_v20, %v21052_v58 }
 0x647   : >> { %v21074_v10 = vpop.f32.mrf.mxu0  ;;  %v8804_v22 = vpop.f32.mrf.mxu1 }
 0x648   : >> { %v8858_v14 = vadd.f32 %v8804_v22, %v21058_v3 }
 0x649   : >> { %v16627_v55 = vpop.f32.mrf.mxu0  ;;  %v16638_v11 = vpop.f32.mrf.mxu1 }
 0x64b   : >> { %v8809_v31 = vpop.f32.mrf.mxu1  ;;  %v8986_v34 = vpop.f32.mrf.mxu0 }
 0x64c   : >> { %v9040_v42 = vadd.f32 %v8986_v34, %v8858_v14  ;;  %v8859_v7 = vadd.f32 %v8809_v31, %v21060_v28  ;;  %v8684_v34 = vadd.f32 %v8662_v6, %v8502_v24 }
 0x64d   : >> { %v16641_v1 = vpop.f32.mrf.mxu1  ;;  %v16679_v29 = vpop.f32.mrf.mxu0 }
 0x64e   : >> { %v9058_v37 = vadd.f32 %v21090_v26, %v9040_v42 }
 0x64f   : >> { %v8814_v61 = vpop.f32.mrf.mxu1  ;;  %v8991_v62 = vpop.f32.mrf.mxu0 }
 0x650   : >> { %v9041_v0 = vadd.f32 %v8991_v62, %v8859_v7  ;;  %v8860_v28 = vadd.f32 %v8814_v61, %v21062_v53 }
 0x651   : >> { %v16644_v48 = vpop.f32.mrf.mxu1  ;;  %v16682_v19 = vpop.f32.mrf.mxu0 }
 0x652   : >> { %v9059_v62 = vadd.f32 %v21090_v26, %v9041_v0 }
 0x653   : >> { %v21076_v63 = vpop.f32.mrf.mxu1  ;;  %v8996_v56 = vpop.f32.mrf.mxu0 }
 0x654   : >> { %v8861_v61 = vadd.f32 %v21076_v63, %v21064_v5  ;;  %v8686_v5 = vadd.f32 %v21074_v10, %v8504_v40 }
 0x655   : >> { %v16647_v59 = vpop.f32.mrf.mxu1  ;;  %v16685_v43 = vpop.f32.mrf.mxu0 }
 0x657   : >> { %v21078_v12 = vpop.f32.mrf.mxu1  ;;  %v21080_v39 = vpop.f32.mrf.mxu0 }
 0x658   : >> { %v8862_v57 = vadd.f32 %v21078_v12, %v21066_v47 }
 0x659   : >> { %v16650_v17 = vpop.f32.mrf.mxu1  ;;  %v16688_v4 = vpop.f32.mrf.mxu0 }
 0x65a   : >> { %v9069_v17 = vmax.f32 %v9058_v37, 0.0  ;;  %v9042_v4 = vadd.f32 %v8996_v56, %v8860_v28 }
 0x65b   : >> { %v8829_v9 = vpop.f32.mrf.mxu1  ;;  %v21083_v36 = vpop.f32.mrf.mxu0 }
 0x65c   : >> { %v8863_v49 = vadd.f32 %v8829_v9, %v8681_v52  ;;  %v8685_v9 = vadd.f32 %v21072_v27, %v8503_v2  ;;  %v9060_v27 = vadd.f32 %v21090_v26, %v9042_v4  ;;  %v9044_v10 = vadd.f32 %v21083_v36, %v8862_v57 }
 0x65d   : >> { %v16653_v38 = vpop.f32.mrf.mxu1  ;;  %v16691_v16 = vpop.f32.mrf.mxu0 }
 0x65f   : >> { %v8834_v33 = vpop.f32.mrf.mxu1  ;;  %v9011_v50 = vpop.f32.mrf.mxu0 }
 0x660   : >> { %v9045_v51 = vadd.f32 %v9011_v50, %v8863_v49  ;;  %v8864_v18 = vadd.f32 %v8834_v33, %v8682_v60  ;;  %v9070_v50 = vmax.f32 %v9059_v62, 0.0  ;;  %v9043_v60 = vadd.f32 %v21080_v39, %v8861_v61 }
 0x661   : >> { %v16656_v54 = vpop.f32.mrf.mxu1  ;;  %v16694_v46 = vpop.f32.mrf.mxu0 }
 0x662   : >> { %v9063_v25 = vadd.f32 %v21090_v26, %v9045_v51 }
 0x663   : >> { %v8839_v44 = vpop.f32.mrf.mxu1  ;;  %v9016_v23 = vpop.f32.mrf.mxu0 }
 0x664   : >> { %v9046_v21 = vadd.f32 %v9016_v23, %v8864_v18  ;;  %v9074_v32 = vmax.f32 %v9063_v25, 0.0  ;;  %v8865_v22 = vadd.f32 %v8839_v44, %v8683_v41  ;;  %v9071_v44 = vmax.f32 %v9060_v27, 0.0 }
 0x665   : >> { %v16659_v3 = vpop.f32.mrf.mxu1  ;;  %v16697_v15 = vpop.f32.mrf.mxu0  ;;  %v9061_v23 = vadd.f32 %v21090_v26, %v9043_v60 }
 0x666   : >> { %v9064_v55 = vadd.f32 %v21090_v26, %v9046_v21  ;;  %v9087_v20 = vrot.slane %v9074_v32, 4 }
 0x667   : >> { %v8844_v11 = vpop.f32.mrf.mxu1  ;;  %v9021_v1 = vpop.f32.mrf.mxu0  ;;  %v9072_v32 = vmax.f32 %v9061_v23, 0.0 }
 0x668   : >> { %v9075_v29 = vmax.f32 %v9064_v55, 0.0  ;;  %v9047_v48 = vadd.f32 %v9021_v1, %v8865_v22  ;;  %v8866_v59 = vadd.f32 %v8844_v11, %v8684_v34  ;;  %v9062_v22 = vadd.f32 %v21090_v26, %v9044_v10 }
 0x669   : >> { %v16662_v31 = vpop.f32.mrf.mxu1  ;;  %v16700_v58 = vpop.f32.mrf.mxu0 }
 0x66a   : >> { %v9088_v19 = vrot.slane %v9075_v29, 4  ;;  %v9065_v43 = vadd.f32 %v21090_v26, %v9047_v48  ;;  %v9073_v34 = vmax.f32 %v9062_v22, 0.0 }
 0x66b   : >> { %v8849_v6 = vpop.f32.mrf.mxu1  ;;  %v9026_v8 = vpop.f32.mrf.mxu0 }
 0x66c   : >> { %v9089_v35 = vsel %vm9086_vm5, %v9087_v20, %v9088_v19  ;;  %v9076_v13 = vmax.f32 %v9065_v43, 0.0  ;;  %v9048_v53 = vadd.f32 %v9026_v8, %v8866_v59  ;;  %v8867_v33 = vadd.f32 %v8849_v6, %v8685_v9 }
 0x66d   : >> { %v9104_v52 = vmax.f32 %v9069_v17, %v9089_v35  ;;  %v16665_v38 = vpop.f32.mrf.mxu1  ;;  %v16703_v16 = vpop.f32.mrf.mxu0 }
 0x66e   : >> { %v9090_v49 = vrot.slane %v9076_v13, 4  ;;  %v9066_v56 = vadd.f32 %v21090_v26, %v9048_v53 }
 0x66f   : >> { %9110 = vst.msk [vmem:[#allocation7] sm:$0xff] %vm632_vm1, %v9104_v52  ;;  %v8854_v51 = vpop.f32.mrf.mxu1  ;;  %v9031_v14 = vpop.f32.mrf.mxu0 }
 0x670   : >> { %v9091_v63 = vsel %vm9086_vm5, %v9088_v19, %v9090_v49  ;;  %v9077_v54 = vmax.f32 %v9066_v56, 0.0  ;;  %v9049_v46 = vadd.f32 %v9031_v14, %v8867_v33  ;;  %v8868_v42 = vadd.f32 %v8854_v51, %v8686_v5 }
 0x671   : >> { %v9105_v30 = vmax.f32 %v9070_v50, %v9091_v63  ;;  %v16706_v45 = vpop.f32.mrf.mxu0  ;;  %v16668_v18 = vpop.f32.mrf.mxu1 }
 0x672   : >> { %v9092_v25 = vrot.slane %v9077_v54, 4  ;;  %v9067_v39 = vadd.f32 %v21090_v26, %v9049_v46 }
 0x673   : >> { %9111 = vst.msk [vmem:[#allocation7 + $0x8] sm:$0xff] %vm632_vm1, %v9105_v30  ;;  %v9036_v41 = vpop.f32.mrf.mxu0 }
 0x674   : >> { %v9093_v21 = vsel %vm9086_vm5, %v9090_v49, %v9092_v25  ;;  %v9078_v7 = vmax.f32 %v9067_v39, 0.0  ;;  %v9050_v47 = vadd.f32 %v9036_v41, %v8868_v42 }
 0x675   : >> { %v9106_v12 = vmax.f32 %v9071_v44, %v9093_v21  ;;  %v16709_v3 = vpop.f32.mrf.mxu0 }
 0x676   : >> { %v9094_v15 = vrot.slane %v9078_v7, 4  ;;  %v9068_v24 = vadd.f32 %v21090_v26, %v9050_v47 }
 0x677   : >> { %9112 = vst.msk [vmem:[#allocation7 + $0x10] sm:$0xff] %vm632_vm1, %v9106_v12 }
 0x678   : >> { %v9095_v36 = vsel %vm9086_vm5, %v9092_v25, %v9094_v15  ;;  %v9079_v55 = vmax.f32 %v9068_v24, 0.0 }
 0x679   : >> { %v9107_v37 = vmax.f32 %v9072_v32, %v9095_v36 }
 0x67a   : >> { %v9096_v0 = vrot.slane %v9079_v55, 4  ;;  %v9117_v11 = vld [vmem:[#allocation7] ss:$2 sm:$0xff]  ;;  %v9123_v1 = vld [vmem:[#allocation7 + $0x1] ss:$2 sm:$0xff] }
 0x67b   : >> { %9113 = vst.msk [vmem:[#allocation7 + $0x18] sm:$0xff] %vm632_vm1, %v9107_v37  ;;  %v9128_v29 = vmax.f32 %v9117_v11, %v9123_v1 }
 0x67c   : >> { %v9097_v48 = vsel %vm9086_vm5, %v9094_v15, %v9096_v0 }
 0x67d   : >> { %v9108_v2 = vmax.f32 %v9073_v34, %v9097_v48  ;;  %14036 = vst.msk [vmem:[%s12835_s14 + $0x32] sm:$0xff] %vm632_vm1, %v9128_v29 }
 0x67f   : >> { %9114 = vst.msk [vmem:[#allocation7 + $0x20] sm:$0xff] %vm632_vm1, %v9108_v2 }
 0x682   : >> { %v9119_v26 = vld [vmem:[#allocation7 + $0x10] ss:$2 sm:$0xff]  ;;  %v9125_v28 = vld [vmem:[#allocation7 + $0x11] ss:$2 sm:$0xff] }
 0x683   : >> { %v9129_v31 = vmax.f32 %v9119_v26, %v9125_v28 }
 0x685   : >> { %14037 = vst.msk [vmem:[%s12835_s14 + $0x3a] sm:$0xff] %vm632_vm1, %v9129_v31  ;;  %4517 = sbr.rel (!%p4515_p13) target bundleno = 901 (0x385), region = 318 }
 0x686   : >> { %v9121_v58 = vld [vmem:[#allocation7 + $0x20] ss:$2 sm:$0xf]  ;;  %v9127_v20 = vld [vmem:[#allocation7 + $0x21] ss:$2 sm:$0xf] }
 0x687   : >> { %v9130_v19 = vmax.f32 %v9121_v58, %v9127_v20 }
 0x689   : >> { %14038 = vst.msk [vmem:[%s12835_s14 + $0x42] sm:$0xf] %vm9115_vm6, %v9130_v19 }
 0x68a LB: >> { %v14048_v59 = vld [vmem:[%s22152_s7 + $0x38] sm:$0xff]  ;;  %v14047_v43 = vld [vmem:[%s22152_s7 + $0x30] sm:$0xff]  ;;  %v14046_v17 = vld [vmem:[%s22152_s7 + $0x28] sm:$0xff]  ;;  %s9144_s12 = smul.u32 48, %s17332_s13  ;;  %vm12458_vm7 = vcmask 7168   ;;  %vm12474_vm8 = vcmask 1024   ;;  %s17332_s13 = sphi %s21135_s13, %s9143_s13  }
 0x68b   : >> { %17155 = vmatprep.subr.mxu1 %v14048_v59  ;;  %16710 = vmatprep.subr.mxu0 %v14048_v59  ;;  %v14045_v62 = vld [vmem:[%s22152_s7 + $0x20] sm:$0xff]  ;;  %v9155_v9 = vld [vmem:[%s22152_s7 + $0x18] sm:$0xff]  ;;  %v9154_v53 = vld [vmem:[%s22152_s7 + $0x10] sm:$0xff] }
 0x68c   : >> { %17159 = vmatpush3.msra.mxu1 %v14048_v59  ;;  %16711 = vmatpush3.msra.mxu0 %v14048_v59  ;;  %s21153_s23 = scalar_lea.vmem [#allocation4], %s9144_s12  ;;  %v14070_v13 = vld [vmem:[%s22152_s7 + $0x58] sm:$0xff]  ;;  %v14069_v61 = vld [vmem:[%s22152_s7 + $0x50] sm:$0xff]  ;;  %v9153_v38 = vld [vmem:[%s22152_s7 + $0x8] sm:$0xff] }
 0x68d   : >> { %17156 = vmatprep.subr.mxu1 %v14047_v43  ;;  %16712 = vmatprep.subr.mxu0 %v14047_v43  ;;  %v14068_v40 = vld [vmem:[%s22152_s7 + $0x48] sm:$0xff]  ;;  %v9152_v49 = vld [vmem:[%s22152_s7] sm:$0xff]  ;;  %v14086_v60 = vld [vmem:[%s22152_s7 + $0x78] sm:$0xff] }
 0x68e   : >> { %17160 = vmatpush3.msra.mxu1 %v14047_v43  ;;  %16713 = vmatpush3.msra.mxu0 %v14047_v43  ;;  %v14067_v56 = vld [vmem:[%s22152_s7 + $0x40] sm:$0xff]  ;;  %v14102_v14 = vld [vmem:[%s22152_s7 + $0x98] sm:$0xff]  ;;  %v14085_v63 = vld [vmem:[%s22152_s7 + $0x70] sm:$0xff] }
 0x68f   : >> { %17157 = vmatprep.subr.mxu1 %v14046_v17  ;;  %16714 = vmatprep.subr.mxu0 %v14046_v17  ;;  %v14101_v30 = vld [vmem:[%s22152_s7 + $0x90] sm:$0xff]  ;;  %v14084_v45 = vld [vmem:[%s22152_s7 + $0x68] sm:$0xff]  ;;  %v14083_v23 = vld [vmem:[%s22152_s7 + $0x60] sm:$0xff] }
 0x690   : >> { %v21156_v4 = vld [vmem:[%s21153_s23 + $0x21] sm:$0xff]  ;;  %17161 = vmatpush3.msra.mxu1 %v14046_v17  ;;  %16715 = vmatpush3.msra.mxu0 %v14046_v17  ;;  %v21160_v8 = vld [vmem:[%s21153_s23 + $0x29] sm:$0xff]  ;;  %v14041_v52 = vld [vmem:[%s21153_s23 + $0x11] sm:$0xff] }
 0x691   : >> { %v14039_v6 = vld [vmem:[%s21153_s23 + $0x1] sm:$0xff]  ;;  %17158 = vmatprep.subr.mxu1 %v14045_v62  ;;  %16716 = vmatprep.subr.mxu0 %v14045_v62  ;;  %v14040_v35 = vld [vmem:[%s21153_s23 + $0x9] sm:$0xff]  ;;  %v21186_v16 = vld [vmem:[%s21153_s23 + $0x19] sm:$0xff] }
 0x692   : >> { %17162 = vmatpush3.msra.mxu1 %v14045_v62  ;;  %16724 = vmatprep.mubr.msk.f32.mxu1 %vm632_vm1, %v21156_v4  ;;  %v9146_v33 = vld [vmem:[%s21153_s23] sm:$0xff]  ;;  %v9147_v50 = vld [vmem:[%s21153_s23 + $0x8] sm:$0xff]  ;;  %v9148_v5 = vld [vmem:[%s21153_s23 + $0x10] sm:$0xff] }
 0x693   : >> { %16717 = vmatpush3.msra.mxu0 %v14045_v62  ;;  %16718 = vmatprep.mubr.msk.f32.mxu0 %vm632_vm1, %v14039_v6  ;;  %v14061_v27 = vld [vmem:[%s21153_s23 + $0x2] sm:$0xff]  ;;  %v14062_v51 = vld [vmem:[%s21153_s23 + $0xa] sm:$0xff]  ;;  %v21219_v54 = vld [vmem:[%s21153_s23 + $0x18] sm:$0xff] }
 0x694   : >> { %16725 = vmatmul.mubr.msk.f32.vlgmr.msra.gmra.mxu1 %vm632_vm1, %v21160_v8  ;;  %16727 = vmatprep.subr.mxu1 %v9155_v9  ;;  %v14063_v46 = vld [vmem:[%s21153_s23 + $0x12] sm:$0xff]  ;;  %v21224_v57 = vld [vmem:[%s21153_s23 + $0x1a] sm:$0xff]  ;;  %v21241_v25 = vld [vmem:[%s21153_s23 + $0x22] sm:$0xff] }
 0x695   : >> { %16719 = vmatmul.mubr.msk.f32.vlgmr.msra.gmra.mxu0 %vm632_vm1, %v14040_v35  ;;  %16728 = vmatpush3.msra.mxu1 %v9155_v9  ;;  %v21236_v18 = vld [vmem:[%s21153_s23 + $0x20] sm:$0xff]  ;;  %v21244_v42 = vld [vmem:[%s21153_s23 + $0x28] sm:$0xff]  ;;  %v14120_v47 = vld [vmem:[%s22152_s7 + $0xb8] sm:$0xff] }
 0x696   : >> { %16744 = vmatprep.subr.mxu0 %v14070_v13  ;;  %16729 = vmatprep.subr.mxu1 %v9154_v53  ;;  %v14100_v39 = vld [vmem:[%s22152_s7 + $0x88] sm:$0xff]  ;;  %v14099_v41 = vld [vmem:[%s22152_s7 + $0x80] sm:$0xff]  ;;  %v14138_v3 = vld [vmem:[%s22152_s7 + $0xd8] sm:$0xff] }
 0x697   : >> { %16745 = vmatpush3.msra.mxu0 %v14070_v13  ;;  %16730 = vmatpush3.msra.mxu1 %v9154_v53  ;;  %v21252_v44 = vld [vmem:[%s21153_s23 + $0x2a] sm:$0xff]  ;;  %v14079_v15 = vld [vmem:[%s21153_s23 + $0x13] sm:$0xff]  ;;  %v21285_v32 = vld [vmem:[%s21153_s23 + $0x1b] sm:$0xff] }
 0x698   : >> { %16746 = vmatprep.subr.mxu0 %v14069_v61  ;;  %16721 = vmatprep.mubr.msk.f32.mxu0 %vm632_vm1, %v14041_v52  ;;  %v14077_v10 = vld [vmem:[%s21153_s23 + $0x3] sm:$0xff]  ;;  %v14078_v21 = vld [vmem:[%s21153_s23 + $0xb] sm:$0xff]  ;;  %v14095_v22 = vld [vmem:[%s21153_s23 + $0x14] sm:$0xff] }
 0x699   : >> { %16731 = vmatprep.subr.mxu1 %v9153_v38  ;;  %16747 = vmatpush3.msra.mxu0 %v14069_v61  ;;  %v14093_v7 = vld [vmem:[%s21153_s23 + $0x4] sm:$0xff]  ;;  %v14094_v12 = vld [vmem:[%s21153_s23 + $0xc] sm:$0xff]  ;;  %v21290_v36 = vld [vmem:[%s21153_s23 + $0x1c] sm:$0xff] }
 0x69a   : >> { %16722 = vmatmul.mubr.msk.f32.gmra.mxu0 %vm632_vm1, %v21186_v16  ;;  %16732 = vmatpush3.msra.mxu1 %v9153_v38  ;;  %v14119_v24 = vld [vmem:[%s22152_s7 + $0xb0] sm:$0xff]  ;;  %v14118_v37 = vld [vmem:[%s22152_s7 + $0xa8] sm:$0xff]  ;;  %v14117_v48 = vld [vmem:[%s22152_s7 + $0xa0] sm:$0xff] }
 0x69b   : >> { %16748 = vmatprep.subr.mxu0 %v14068_v40  ;;  %16733 = vmatprep.subr.mxu1 %v9152_v49  ;;  %v14137_v55 = vld [vmem:[%s22152_s7 + $0xd0] sm:$0xff]  ;;  %v21302_v0 = vld [vmem:[%s21153_s23 + $0x23] sm:$0xff]  ;;  %v14156_v26 = vld [vmem:[%s22152_s7 + $0xf8] sm:$0xff] }
 0x69c   : >> { %16749 = vmatpush3.msra.mxu0 %v14068_v40  ;;  %16734 = vmatpush3.msra.mxu1 %v9152_v49  ;;  %v21307_v11 = vld [vmem:[%s21153_s23 + $0x24] sm:$0xff]  ;;  %v21318_v29 = vld [vmem:[%s21153_s23 + $0x2c] sm:$0xff]  ;;  %v14174_v28 = vld [vmem:[%s22152_s7 + $0x118] sm:$0xff] }
 0x69d   : >> { %16735 = vmatprep.mubr.msk.f32.mxu1 %vm632_vm1, %v9146_v33  ;;  %16750 = vmatprep.subr.mxu0 %v14067_v56  ;;  %v21310_v1 = vld [vmem:[%s21153_s23 + $0x2b] sm:$0xff]  ;;  %v14135_v2 = vld [vmem:[%s22152_s7 + $0xc0] sm:$0xff]  ;;  %v21368_v43 = vld [vmem:[%s21153_s23 + $0x38] sm:$0xff] }
 0x69e   : >> { %16736 = vmatmul.mubr.msk.f32.vlgmr.msra.gmra.mxu1 %vm632_vm1, %v9147_v50  ;;  %16751 = vmatpush3.msra.mxu0 %v14067_v56  ;;  %v14136_v34 = vld [vmem:[%s22152_s7 + $0xc8] sm:$0xff]  ;;  %v14155_v31 = vld [vmem:[%s22152_s7 + $0xf0] sm:$0xff]  ;;  %v21373_v17 = vld [vmem:[%s21153_s23 + $0x39] sm:$0xff] }
 0x69f   : >> { %16752 = vmatprep.mubr.msk.f32.mxu0 %vm632_vm1, %v14061_v27  ;;  %16761 = vmatprep.subr.mxu1 %v14086_v60  ;;  %v21350_v58 = vld [vmem:[%s21153_s23 + $0x30] sm:$0xff]  ;;  %v14154_v59 = vld [vmem:[%s22152_s7 + $0xe8] sm:$0xff]  ;;  %v21376_v62 = vld [vmem:[%s21153_s23 + $0x40] sm:$0xff] }
 0x6a0   : >> { %16753 = vmatmul.mubr.msk.f32.vlgmr.msra.gmra.mxu0 %vm632_vm1, %v14062_v51  ;;  %16762 = vmatpush3.msra.mxu1 %v14086_v60  ;;  %v21355_v20 = vld [vmem:[%s21153_s23 + $0x31] sm:$0xff]  ;;  %v21384_v6 = vld [vmem:[%s21153_s23 + $0x41] sm:$0xff] }
 0x6a1   : >> { %16778 = vmatprep.subr.mxu0 %v14102_v14  ;;  %16738 = vmatprep.mubr.msk.f32.mxu1 %vm632_vm1, %v9148_v5  ;;  %v14173_v19 = vld [vmem:[%s22152_s7 + $0x110] sm:$0xff]  ;;  %v14171_v9 = vld [vmem:[%s22152_s7 + $0x100] sm:$0xff]  ;;  %v14192_v35 = vld [vmem:[%s22152_s7 + $0x138] sm:$0xff] }
 0x6a2   : >> { %16763 = vmatprep.subr.mxu1 %v14085_v63  ;;  %16779 = vmatpush3.msra.mxu0 %v14102_v14  ;;  %v14210_v13 = vld [vmem:[%s22152_s7 + $0x158] sm:$0xff]  ;;  %v14191_v53 = vld [vmem:[%s22152_s7 + $0x130] sm:$0xff]  ;;  %v21442_v33 = vld [vmem:[%s21153_s23 + $0x42] sm:$0xff] }
 0x6a3   : >> { %16739 = vmatmul.mubr.msk.f32.gmra.mxu1 %vm632_vm1, %v21219_v54  ;;  %16755 = vmatprep.mubr.msk.f32.mxu0 %vm632_vm1, %v14063_v46  ;;  %v21416_v61 = vld [vmem:[%s21153_s23 + $0x32] sm:$0xff]  ;;  %v21434_v40 = vld [vmem:[%s21153_s23 + $0x3a] sm:$0xff]  ;;  %v14208_v56 = vld [vmem:[%s22152_s7 + $0x148] sm:$0xff] }
 0x6a4   : >> { %16764 = vmatpush3.msra.mxu1 %v14085_v63  ;;  %16756 = vmatmul.mubr.msk.f32.gmra.mxu0 %vm632_vm1, %v21224_v57  ;;  %v21421_v52 = vld [vmem:[%s21153_s23 + $0x33] sm:$0xff]  ;;  %v21439_v49 = vld [vmem:[%s21153_s23 + $0x3b] sm:$0xff]  ;;  %v21450_v50 = vld [vmem:[%s21153_s23 + $0x43] sm:$0xff] }
 0x6a5   : >> { %16780 = vmatprep.subr.mxu0 %v14101_v30  ;;  %16765 = vmatprep.subr.mxu1 %v14084_v45  ;;  %v14209_v38 = vld [vmem:[%s22152_s7 + $0x150] sm:$0xff]  ;;  %v14189_v27 = vld [vmem:[%s22152_s7 + $0x120] sm:$0xff]  ;;  %v14228_v51 = vld [vmem:[%s22152_s7 + $0x178] sm:$0xff] }
 0x6a6   : >> { %16781 = vmatpush3.msra.mxu0 %v14101_v30  ;;  %16741 = vmatprep.mubr.msk.f32.mxu1 %vm632_vm1, %v21236_v18  ;;  %v14207_v60 = vld [vmem:[%s22152_s7 + $0x140] sm:$0xff]  ;;  %v14246_v14 = vld [vmem:[%s22152_s7 + $0x198] sm:$0xff]  ;;  %v14227_v5 = vld [vmem:[%s22152_s7 + $0x170] sm:$0xff] }
 0x6a7   : >> { %16766 = vmatpush3.msra.mxu1 %v14084_v45  ;;  %16758 = vmatprep.mubr.msk.f32.mxu0 %vm632_vm1, %v21241_v25  ;;  %v21482_v63 = vld [vmem:[%s21153_s23 + $0x34] sm:$0xff]  ;;  %v21500_v30 = vld [vmem:[%s21153_s23 + $0x3c] sm:$0xff] }
 0x6a8   : >> { %16742 = vmatmul.mubr.msk.f32.gmra.mxu1 %vm632_vm1, %v21244_v42  ;;  %16782 = vmatprep.subr.mxu0 %v14100_v39  ;;  %v14245_v46 = vld [vmem:[%s22152_s7 + $0x190] sm:$0xff] }
 0x6a9   : >> { %16759 = vmatmul.mubr.msk.f32.gmra.mxu0 %vm632_vm1, %v21252_v44  ;;  %16767 = vmatprep.subr.mxu1 %v14083_v23  ;;  %v21505_v45 = vld [vmem:[%s21153_s23 + $0x50] sm:$0xff] }
 0x6aa   : >> { %16783 = vmatpush3.msra.mxu0 %v14100_v39  ;;  %16768 = vmatpush3.msra.mxu1 %v14083_v23  ;;  %v14225_v39 = vld [vmem:[%s22152_s7 + $0x160] sm:$0xff]  ;;  %v14264_v23 = vld [vmem:[%s22152_s7 + $0x1b8] sm:$0xff] }
 0x6ab   : >> { %16769 = vmatprep.mubr.msk.f32.mxu1 %vm632_vm1, %v14077_v10  ;;  %16784 = vmatprep.subr.mxu0 %v14099_v41  ;;  %v14282_v10 = vld [vmem:[%s22152_s7 + $0x1d8] sm:$0xff] }
 0x6ac   : >> { %16770 = vmatmul.mubr.msk.f32.vlgmr.msra.gmra.mxu1 %vm632_vm1, %v14078_v21  ;;  %16785 = vmatpush3.msra.mxu0 %v14099_v41  ;;  %v14263_v41 = vld [vmem:[%s22152_s7 + $0x1b0] sm:$0xff] }
 0x6ad   : >> { %16786 = vmatprep.mubr.msk.f32.mxu0 %vm632_vm1, %v14093_v7  ;;  %16795 = vmatprep.subr.mxu1 %v14120_v47  ;;  %v21548_v21 = vld [vmem:[%s21153_s23 + $0x49] sm:$0xff] }
 0x6ae   : >> { %16787 = vmatmul.mubr.msk.f32.vlgmr.msra.gmra.mxu0 %vm632_vm1, %v14094_v12  ;;  %16796 = vmatpush3.msra.mxu1 %v14120_v47  ;;  %v21553_v7 = vld [vmem:[%s21153_s23 + $0x4a] sm:$0xff] }
 0x6af   : >> { %16812 = vmatprep.subr.mxu0 %v14138_v3  ;;  %16772 = vmatprep.mubr.msk.f32.mxu1 %vm632_vm1, %v14079_v15  ;;  %v14281_v47 = vld [vmem:[%s22152_s7 + $0x1d0] sm:$0xff]  ;;  %v14262_v12 = vld [vmem:[%s22152_s7 + $0x1a8] sm:$0xff] }
 0x6b0   : >> { %16797 = vmatprep.subr.mxu1 %v14119_v24  ;;  %16813 = vmatpush3.msra.mxu0 %v14138_v3  ;;  %v21566_v3 = vld [vmem:[%s21153_s23 + $0x51] sm:$0xff] }
 0x6b1   : >> { %16773 = vmatmul.mubr.msk.f32.gmra.mxu1 %vm632_vm1, %v21285_v32  ;;  %16789 = vmatprep.mubr.msk.f32.mxu0 %vm632_vm1, %v14095_v22  ;;  %v21571_v15 = vld [vmem:[%s21153_s23 + $0x52] sm:$0xff]  ;;  %v21582_v22 = vld [vmem:[%s21153_s23 + $0x5a] sm:$0xff] }
 0x6b2   : >> { %16798 = vmatpush3.msra.mxu1 %v14119_v24  ;;  %16790 = vmatmul.mubr.msk.f32.gmra.mxu0 %vm632_vm1, %v21290_v36  ;;  %v21574_v24 = vld [vmem:[%s21153_s23 + $0x59] sm:$0xff] }
 0x6b3   : >> { %16814 = vmatprep.subr.mxu0 %v14137_v55  ;;  %16799 = vmatprep.subr.mxu1 %v14118_v37 }
 0x6b4   : >> { %16815 = vmatpush3.msra.mxu0 %v14137_v55  ;;  %16775 = vmatprep.mubr.msk.f32.mxu1 %vm632_vm1, %v21302_v0  ;;  %v14279_v55 = vld [vmem:[%s22152_s7 + $0x1c0] sm:$0xff] }
 0x6b5   : >> { %16800 = vmatpush3.msra.mxu1 %v14118_v37  ;;  %16792 = vmatprep.mubr.msk.f32.mxu0 %vm632_vm1, %v21307_v11  ;;  %v14300_v37 = vld [vmem:[%s22152_s7 + $0x1f8] sm:$0xff] }
 0x6b6   : >> { %16776 = vmatmul.mubr.msk.f32.gmra.mxu1 %vm632_vm1, %v21310_v1  ;;  %16816 = vmatprep.subr.mxu0 %v14136_v34 }
 0x6b7   : >> { %16793 = vmatmul.mubr.msk.f32.gmra.mxu0 %vm632_vm1, %v21318_v29  ;;  %16801 = vmatprep.subr.mxu1 %v14117_v48 }
 0x6b8   : >> { %16817 = vmatpush3.msra.mxu0 %v14136_v34  ;;  %16802 = vmatpush3.msra.mxu1 %v14117_v48  ;;  %v21619_v34 = vld [vmem:[%s21153_s23 + $0x4c] sm:$0xff] }
 0x6b9   : >> { %16803 = vmatprep.mubr.msk.f32.mxu1 %vm632_vm1, %v21219_v54  ;;  %16818 = vmatprep.subr.mxu0 %v14135_v2  ;;  %v21487_v54 = vld [vmem:[%s21153_s23 + $0x48] sm:$0xff] }
 0x6ba   : >> { %16804 = vmatmul.mubr.msk.f32.vlgmr.msra.gmra.mxu1 %vm632_vm1, %v21236_v18  ;;  %16819 = vmatpush3.msra.mxu0 %v14135_v2  ;;  %v21508_v18 = vld [vmem:[%s21153_s23 + $0x44] sm:$0xff]  ;;  %v21632_v2 = vld [vmem:[%s21153_s23 + $0x53] sm:$0xff] }
 0x6bb   : >> { %16820 = vmatprep.mubr.msk.f32.mxu0 %vm632_vm1, %v21186_v16  ;;  %16829 = vmatprep.subr.mxu1 %v14156_v26  ;;  %v14190_v16 = vld [vmem:[%s22152_s7 + $0x128] sm:$0xff] }
 0x6bc   : >> { %16821 = vmatmul.mubr.msk.f32.vlgmr.msra.gmra.mxu0 %vm632_vm1, %v21156_v4  ;;  %16830 = vmatpush3.msra.mxu1 %v14156_v26  ;;  %v14172_v4 = vld [vmem:[%s22152_s7 + $0x108] sm:$0xff]  ;;  %v21637_v26 = vld [vmem:[%s21153_s23 + $0x54] sm:$0xff] }
 0x6bd   : >> { %16846 = vmatprep.subr.mxu0 %v14174_v28  ;;  %16806 = vmatprep.mubr.msk.f32.mxu1 %vm632_vm1, %v21244_v42  ;;  %v21516_v42 = vld [vmem:[%s21153_s23 + $0x58] sm:$0xff]  ;;  %v14298_v48 = vld [vmem:[%s22152_s7 + $0x1e8] sm:$0xff] }
 0x6be   : >> { %16831 = vmatprep.subr.mxu1 %v14155_v31  ;;  %16847 = vmatpush3.msra.mxu0 %v14174_v28  ;;  %v21640_v28 = vld [vmem:[%s21153_s23 + $0x5b] sm:$0xff] }
 0x6bf   : >> { %16807 = vmatmul.mubr.msk.f32.gmra.mxu1 %vm632_vm1, %v21350_v58  ;;  %16823 = vmatprep.mubr.msk.f32.mxu0 %vm632_vm1, %v21160_v8  ;;  %v14153_v8 = vld [vmem:[%s22152_s7 + $0xe0] sm:$0xff] }
 0x6c0   : >> { %16832 = vmatpush3.msra.mxu1 %v14155_v31  ;;  %16824 = vmatmul.mubr.msk.f32.gmra.mxu0 %vm632_vm1, %v21355_v20  ;;  %v14316_v31 = vld [vmem:[%s22152_s7 + $0x208] sm:$0xff] }
 0x6c1   : >> { %16848 = vmatprep.subr.mxu0 %v14173_v19  ;;  %16833 = vmatprep.subr.mxu1 %v14154_v59 }
 0x6c2   : >> { %16849 = vmatpush3.msra.mxu0 %v14173_v19  ;;  %16809 = vmatprep.mubr.msk.f32.mxu1 %vm632_vm1, %v21368_v43  ;;  %v14315_v19 = vld [vmem:[%s22152_s7 + $0x200] sm:$0xff] }
 0x6c3   : >> { %16834 = vmatpush3.msra.mxu1 %v14154_v59  ;;  %16826 = vmatprep.mubr.msk.f32.mxu0 %vm632_vm1, %v21373_v17  ;;  %v14336_v59 = vld [vmem:[%s22152_s7 + $0x238] sm:$0xff] }
 0x6c4   : >> { %16810 = vmatmul.mubr.msk.f32.gmra.mxu1 %vm632_vm1, %v21376_v62  ;;  %16850 = vmatprep.subr.mxu0 %v14172_v4 }
 0x6c5   : >> { %16827 = vmatmul.mubr.msk.f32.gmra.mxu0 %vm632_vm1, %v21384_v6  ;;  %16835 = vmatprep.subr.mxu1 %v14153_v8 }
 0x6c6   : >> { %16851 = vmatpush3.msra.mxu0 %v14172_v4  ;;  %16836 = vmatpush3.msra.mxu1 %v14153_v8  ;;  %v21685_v4 = vld [vmem:[%s21153_s23 + $0x61] sm:$0xff] }
 0x6c7   : >> { %16837 = vmatprep.mubr.msk.f32.mxu1 %vm632_vm1, %v21224_v57  ;;  %16852 = vmatprep.subr.mxu0 %v14171_v9  ;;  %v14226_v57 = vld [vmem:[%s22152_s7 + $0x168] sm:$0xff] }
 0x6c8   : >> { %16838 = vmatmul.mubr.msk.f32.vlgmr.msra.gmra.mxu1 %vm632_vm1, %v21241_v25  ;;  %16853 = vmatpush3.msra.mxu0 %v14171_v9  ;;  %v14244_v25 = vld [vmem:[%s22152_s7 + $0x188] sm:$0xff] }
 0x6c9   : >> { %16854 = vmatprep.mubr.msk.f32.mxu0 %vm632_vm1, %v21285_v32  ;;  %16863 = vmatprep.subr.mxu1 %v14192_v35  ;;  %v14280_v32 = vld [vmem:[%s22152_s7 + $0x1c8] sm:$0xff] }
 0x6ca   : >> { %16855 = vmatmul.mubr.msk.f32.vlgmr.msra.gmra.mxu0 %vm632_vm1, %v21302_v0  ;;  %16864 = vmatpush3.msra.mxu1 %v14192_v35  ;;  %v14318_v0 = vld [vmem:[%s22152_s7 + $0x218] sm:$0xff]  ;;  %v14334_v8 = vld [vmem:[%s22152_s7 + $0x228] sm:$0xff] }
 0x6cb   : >> { %16880 = vmatprep.subr.mxu0 %v14210_v13  ;;  %16840 = vmatprep.mubr.msk.f32.mxu1 %vm632_vm1, %v21252_v44  ;;  %v14243_v44 = vld [vmem:[%s22152_s7 + $0x180] sm:$0xff]  ;;  %v21698_v9 = vld [vmem:[%s21153_s23 + $0x68] sm:$0xff] }
 0x6cc   : >> { %16865 = vmatprep.subr.mxu1 %v14191_v53  ;;  %16881 = vmatpush3.msra.mxu0 %v14210_v13  ;;  %v21703_v35 = vld [vmem:[%s21153_s23 + $0x69] sm:$0xff] }
 0x6cd   : >> { %16841 = vmatmul.mubr.msk.f32.gmra.mxu1 %vm632_vm1, %v21416_v61  ;;  %16857 = vmatprep.mubr.msk.f32.mxu0 %vm632_vm1, %v21310_v1  ;;  %v21614_v1 = vld [vmem:[%s21153_s23 + $0x4b] sm:$0xff] }
 0x6ce   : >> { %16866 = vmatpush3.msra.mxu1 %v14191_v53  ;;  %16858 = vmatmul.mubr.msk.f32.gmra.mxu0 %vm632_vm1, %v21421_v52  ;;  %v21706_v13 = vld [vmem:[%s21153_s23 + $0x70] sm:$0xff]  ;;  %v14352_v53 = vld [vmem:[%s22152_s7 + $0x248] sm:$0xff] }
 0x6cf   : >> { %16882 = vmatprep.subr.mxu0 %v14209_v38  ;;  %16867 = vmatprep.subr.mxu1 %v14190_v16 }
 0x6d0   : >> { %16883 = vmatpush3.msra.mxu0 %v14209_v38  ;;  %16843 = vmatprep.mubr.msk.f32.mxu1 %vm632_vm1, %v21434_v40  ;;  %v14351_v38 = vld [vmem:[%s22152_s7 + $0x240] sm:$0xff] }
 0x6d1   : >> { %16868 = vmatpush3.msra.mxu1 %v14190_v16  ;;  %16860 = vmatprep.mubr.msk.f32.mxu0 %vm632_vm1, %v21439_v49  ;;  %v14372_v16 = vld [vmem:[%s22152_s7 + $0x278] sm:$0xff] }
 0x6d2   : >> { %16844 = vmatmul.mubr.msk.f32.gmra.mxu1 %vm632_vm1, %v21442_v33  ;;  %16884 = vmatprep.subr.mxu0 %v14208_v56 }
 0x6d3   : >> { %16861 = vmatmul.mubr.msk.f32.gmra.mxu0 %vm632_vm1, %v21450_v50  ;;  %16869 = vmatprep.subr.mxu1 %v14189_v27 }
 0x6d4   : >> { %16885 = vmatpush3.msra.mxu0 %v14208_v56  ;;  %16870 = vmatpush3.msra.mxu1 %v14189_v27  ;;  %v21751_v56 = vld [vmem:[%s21153_s23 + $0x63] sm:$0xff] }
 0x6d5   : >> { %16871 = vmatprep.mubr.msk.f32.mxu1 %vm632_vm1, %v21290_v36  ;;  %16886 = vmatprep.subr.mxu0 %v14207_v60  ;;  %v14261_v36 = vld [vmem:[%s22152_s7 + $0x1a0] sm:$0xff]  ;;  %v14370_v27 = vld [vmem:[%s22152_s7 + $0x268] sm:$0xff] }
 0x6d6   : >> { %16872 = vmatmul.mubr.msk.f32.vlgmr.msra.gmra.mxu1 %vm632_vm1, %v21307_v11  ;;  %16887 = vmatpush3.msra.mxu0 %v14207_v60  ;;  %v14299_v11 = vld [vmem:[%s22152_s7 + $0x1f0] sm:$0xff] }
 0x6d7   : >> { %16888 = vmatprep.mubr.msk.f32.mxu0 %vm632_vm1, %v21350_v58  ;;  %16897 = vmatprep.subr.mxu1 %v14228_v51  ;;  %v21648_v58 = vld [vmem:[%s21153_s23 + $0x5c] sm:$0xff]  ;;  %v21764_v60 = vld [vmem:[%s21153_s23 + $0x6a] sm:$0xff] }
 0x6d8   : >> { %16889 = vmatmul.mubr.msk.f32.vlgmr.msra.gmra.mxu0 %vm632_vm1, %v21368_v43  ;;  %16898 = vmatpush3.msra.mxu1 %v14228_v51  ;;  %v14354_v43 = vld [vmem:[%s22152_s7 + $0x258] sm:$0xff]  ;;  %v21769_v51 = vld [vmem:[%s21153_s23 + $0x6b] sm:$0xff] }
 0x6d9   : >> { %16914 = vmatprep.subr.mxu0 %v14246_v14  ;;  %16874 = vmatprep.mubr.msk.f32.mxu1 %vm632_vm1, %v21318_v29  ;;  %v14317_v29 = vld [vmem:[%s22152_s7 + $0x210] sm:$0xff] }
 0x6da   : >> { %16899 = vmatprep.subr.mxu1 %v14227_v5  ;;  %16915 = vmatpush3.msra.mxu0 %v14246_v14  ;;  %v21772_v14 = vld [vmem:[%s21153_s23 + $0x72] sm:$0xff] }
 0x6db   : >> { %16875 = vmatmul.mubr.msk.f32.gmra.mxu1 %vm632_vm1, %v21482_v63  ;;  %16891 = vmatprep.mubr.msk.f32.mxu0 %vm632_vm1, %v21376_v62  ;;  %v21680_v62 = vld [vmem:[%s21153_s23 + $0x60] sm:$0xff] }
 0x6dc   : >> { %16900 = vmatpush3.msra.mxu1 %v14227_v5  ;;  %16892 = vmatmul.mubr.msk.f32.gmra.mxu0 %vm632_vm1, %v21487_v54  ;;  %v14388_v5 = vld [vmem:[%s22152_s7 + $0x288] sm:$0xff] }
 0x6dd   : >> { %16916 = vmatprep.subr.mxu0 %v14245_v46  ;;  %16901 = vmatprep.subr.mxu1 %v14226_v57 }
 0x6de   : >> { %16917 = vmatpush3.msra.mxu0 %v14245_v46  ;;  %16877 = vmatprep.mubr.msk.f32.mxu1 %vm632_vm1, %v21500_v30  ;;  %v14387_v46 = vld [vmem:[%s22152_s7 + $0x280] sm:$0xff] }
 0x6df   : >> { %16902 = vmatpush3.msra.mxu1 %v14226_v57  ;;  %16894 = vmatprep.mubr.msk.f32.mxu0 %vm632_vm1, %v21505_v45  ;;  %v14408_v57 = vld [vmem:[%s22152_s7 + $0x2b8] sm:$0xff] }
 0x6e0   : >> { %16878 = vmatmul.mubr.msk.f32.gmra.mxu1 %vm632_vm1, %v21508_v18  ;;  %16918 = vmatprep.subr.mxu0 %v14244_v25 }
 0x6e1   : >> { %16895 = vmatmul.mubr.msk.f32.gmra.mxu0 %vm632_vm1, %v21516_v42  ;;  %16903 = vmatprep.subr.mxu1 %v14225_v39 }
 0x6e2   : >> { %16919 = vmatpush3.msra.mxu0 %v14244_v25  ;;  %16904 = vmatpush3.msra.mxu1 %v14225_v39  ;;  %v14384_v25 = vld [vmem:[%s21153_s23 + $0x78] sm:$0xff]  ;;  %v14406_v39 = vld [vmem:[%s22152_s7 + $0x2a8] sm:$0xff] }
 0x6e3   : >> { %16905 = vmatprep.mubr.msk.f32.mxu1 %vm632_vm1, %v21355_v20  ;;  %16920 = vmatprep.subr.mxu0 %v14243_v44  ;;  %v14297_v20 = vld [vmem:[%s22152_s7 + $0x1e0] sm:$0xff] }
 0x6e4   : >> { %16906 = vmatmul.mubr.msk.f32.vlgmr.msra.gmra.mxu1 %vm632_vm1, %v21373_v17  ;;  %16921 = vmatpush3.msra.mxu0 %v14243_v44  ;;  %v14335_v17 = vld [vmem:[%s22152_s7 + $0x230] sm:$0xff] }
 0x6e5   : >> { %16922 = vmatprep.mubr.msk.f32.mxu0 %vm632_vm1, %v21416_v61  ;;  %16931 = vmatprep.subr.mxu1 %v14264_v23  ;;  %v21714_v61 = vld [vmem:[%s21153_s23 + $0x71] sm:$0xff] }
 0x6e6   : >> { %16923 = vmatmul.mubr.msk.f32.vlgmr.msra.gmra.mxu0 %vm632_vm1, %v21434_v40  ;;  %16932 = vmatpush3.msra.mxu1 %v14264_v23  ;;  %v14390_v40 = vld [vmem:[%s22152_s7 + $0x298] sm:$0xff]  ;;  %v21828_v44 = vld [vmem:[%s21153_s23 + $0x6c] sm:$0xff]  ;;  %v14385_v23 = vld [vmem:[%s21153_s23 + $0x80] sm:$0xff] }
 0x6e7   : >> { %16948 = vmatprep.subr.mxu0 %v14282_v10  ;;  %16908 = vmatprep.mubr.msk.f32.mxu1 %vm632_vm1, %v21384_v6  ;;  %v14353_v6 = vld [vmem:[%s22152_s7 + $0x250] sm:$0xff] }
 0x6e8   : >> { %16933 = vmatprep.subr.mxu1 %v14263_v41  ;;  %16949 = vmatpush3.msra.mxu0 %v14282_v10  ;;  %v21833_v10 = vld [vmem:[%s21153_s23 + $0x74] sm:$0xff] }
 0x6e9   : >> { %16909 = vmatmul.mubr.msk.f32.gmra.mxu1 %vm632_vm1, %v21548_v21  ;;  %16925 = vmatprep.mubr.msk.f32.mxu0 %vm632_vm1, %v21442_v33  ;;  %v21746_v33 = vld [vmem:[%s21153_s23 + $0x62] sm:$0xff] }
 0x6ea   : >> { %16934 = vmatpush3.msra.mxu1 %v14263_v41  ;;  %16926 = vmatmul.mubr.msk.f32.gmra.mxu0 %vm632_vm1, %v21553_v7  ;;  %v14424_v41 = vld [vmem:[%s22152_s7 + $0x2c8] sm:$0xff] }
 0x6eb   : >> { %16950 = vmatprep.subr.mxu0 %v14281_v47  ;;  %16935 = vmatprep.subr.mxu1 %v14262_v12 }
 0x6ec   : >> { %16951 = vmatpush3.msra.mxu0 %v14281_v47  ;;  %16911 = vmatprep.mubr.msk.f32.mxu1 %vm632_vm1, %v21566_v3  ;;  %v14423_v47 = vld [vmem:[%s22152_s7 + $0x2c0] sm:$0xff] }
 0x6ed   : >> { %16936 = vmatpush3.msra.mxu1 %v14262_v12  ;;  %16928 = vmatprep.mubr.msk.f32.mxu0 %vm632_vm1, %v21571_v15  ;;  %v14444_v12 = vld [vmem:[%s22152_s7 + $0x2f8] sm:$0xff] }
 0x6ee   : >> { %16912 = vmatmul.mubr.msk.f32.gmra.mxu1 %vm632_vm1, %v21574_v24  ;;  %16952 = vmatprep.subr.mxu0 %v14280_v32 }
 0x6ef   : >> { %16929 = vmatmul.mubr.msk.f32.gmra.mxu0 %vm632_vm1, %v21582_v22  ;;  %16937 = vmatprep.subr.mxu1 %v14261_v36 }
 0x6f0   : >> { %16953 = vmatpush3.msra.mxu0 %v14280_v32  ;;  %16938 = vmatpush3.msra.mxu1 %v14261_v36  ;;  %v14420_v32 = vld [vmem:[%s21153_s23 + $0x7a] sm:$0xff]  ;;  %v14442_v36 = vld [vmem:[%s22152_s7 + $0x2e8] sm:$0xff] }
 0x6f1   : >> { %16939 = vmatprep.mubr.msk.f32.mxu1 %vm632_vm1, %v21421_v52  ;;  %16954 = vmatprep.subr.mxu0 %v14279_v55  ;;  %v14333_v52 = vld [vmem:[%s22152_s7 + $0x220] sm:$0xff] }
 0x6f2   : >> { %16940 = vmatmul.mubr.msk.f32.vlgmr.msra.gmra.mxu1 %vm632_vm1, %v21439_v49  ;;  %16955 = vmatpush3.msra.mxu0 %v14279_v55  ;;  %v14371_v49 = vld [vmem:[%s22152_s7 + $0x270] sm:$0xff]  ;;  %v14403_v55 = vld [vmem:[%s21153_s23 + $0x81] sm:$0xff] }
 0x6f3   : >> { %16956 = vmatprep.mubr.msk.f32.mxu0 %vm632_vm1, %v21482_v63  ;;  %16965 = vmatprep.subr.mxu1 %v14300_v37  ;;  %v21780_v63 = vld [vmem:[%s21153_s23 + $0x73] sm:$0xff] }
 0x6f4   : >> { %16957 = vmatmul.mubr.msk.f32.vlgmr.msra.gmra.mxu0 %vm632_vm1, %v21500_v30  ;;  %16966 = vmatpush3.msra.mxu1 %v14300_v37  ;;  %v14426_v30 = vld [vmem:[%s22152_s7 + $0x2d8] sm:$0xff]  ;;  %v14421_v37 = vld [vmem:[%s21153_s23 + $0x82] sm:$0xff] }
 0x6f5   : >> { %16982 = vmatprep.subr.mxu0 %v14318_v0  ;;  %16942 = vmatprep.mubr.msk.f32.mxu1 %vm632_vm1, %v21450_v50  ;;  %v14389_v50 = vld [vmem:[%s22152_s7 + $0x290] sm:$0xff] }
 0x6f6   : >> { %16967 = vmatprep.subr.mxu1 %v14299_v11  ;;  %16983 = vmatpush3.msra.mxu0 %v14318_v0  ;;  %v14404_v0 = vld [vmem:[%s21153_s23 + $0x89] sm:$0xff] }
 0x6f7   : >> { %16943 = vmatmul.mubr.msk.f32.gmra.mxu1 %vm632_vm1, %v21614_v1  ;;  %16959 = vmatprep.mubr.msk.f32.mxu0 %vm632_vm1, %v21508_v18  ;;  %v21812_v18 = vld [vmem:[%s21153_s23 + $0x64] sm:$0xff] }
 0x6f8   : >> { %16968 = vmatpush3.msra.mxu1 %v14299_v11  ;;  %16960 = vmatmul.mubr.msk.f32.gmra.mxu0 %vm632_vm1, %v21619_v34  ;;  %v14460_v11 = vld [vmem:[%s22152_s7 + $0x308] sm:$0xff] }
 0x6f9   : >> { %16984 = vmatprep.subr.mxu0 %v14317_v29  ;;  %16969 = vmatprep.subr.mxu1 %v14298_v48 }
 0x6fa   : >> { %16985 = vmatpush3.msra.mxu0 %v14317_v29  ;;  %16945 = vmatprep.mubr.msk.f32.mxu1 %vm632_vm1, %v21632_v2  ;;  %v14459_v29 = vld [vmem:[%s22152_s7 + $0x300] sm:$0xff] }
 0x6fb   : >> { %16970 = vmatpush3.msra.mxu1 %v14298_v48  ;;  %16962 = vmatprep.mubr.msk.f32.mxu0 %vm632_vm1, %v21637_v26  ;;  %v14438_v48 = vld [vmem:[%s21153_s23 + $0x7b] sm:$0xff] }
 0x6fc   : >> { %16946 = vmatmul.mubr.msk.f32.gmra.mxu1 %vm632_vm1, %v21640_v28  ;;  %16986 = vmatprep.subr.mxu0 %v14316_v31 }
 0x6fd   : >> { %16963 = vmatmul.mubr.msk.f32.gmra.mxu0 %vm632_vm1, %v21648_v58  ;;  %16971 = vmatprep.subr.mxu1 %v14297_v20 }
 0x6fe   : >> { %16987 = vmatpush3.msra.mxu0 %v14316_v31  ;;  %16972 = vmatpush3.msra.mxu1 %v14297_v20  ;;  %v14440_v31 = vld [vmem:[%s21153_s23 + $0x8b] sm:$0xff] }
 0x6ff   : >> { %16973 = vmatprep.mubr.msk.f32.mxu1 %vm632_vm1, %v21487_v54  ;;  %16988 = vmatprep.subr.mxu0 %v14315_v19  ;;  %v14369_v54 = vld [vmem:[%s22152_s7 + $0x260] sm:$0xff] }
 0x700   : >> { %16974 = vmatmul.mubr.msk.f32.vlgmr.msra.gmra.mxu1 %vm632_vm1, %v21505_v45  ;;  %16989 = vmatpush3.msra.mxu0 %v14315_v19  ;;  %v14407_v45 = vld [vmem:[%s22152_s7 + $0x2b0] sm:$0xff] }
 0x701   : >> { %16990 = vmatprep.mubr.msk.f32.mxu0 %vm632_vm1, %v21548_v21  ;;  %16999 = vmatprep.subr.mxu1 %v14336_v59  ;;  %v14386_v21 = vld [vmem:[%s21153_s23 + $0x88] sm:$0xff] }
 0x702   : >> { %16991 = vmatmul.mubr.msk.f32.vlgmr.msra.gmra.mxu0 %vm632_vm1, %v21566_v3  ;;  %17000 = vmatpush3.msra.mxu1 %v14336_v59  ;;  %v14462_v3 = vld [vmem:[%s22152_s7 + $0x318] sm:$0xff] }
 0x703   : >> { %17016 = vmatprep.subr.mxu0 %v14354_v43  ;;  %16976 = vmatprep.mubr.msk.f32.mxu1 %vm632_vm1, %v21516_v42  ;;  %v14425_v42 = vld [vmem:[%s22152_s7 + $0x2d0] sm:$0xff] }
 0x704   : >> { %17001 = vmatprep.subr.mxu1 %v14335_v17  ;;  %17017 = vmatpush3.msra.mxu0 %v14354_v43 }
 0x705   : >> { %16977 = vmatmul.mubr.msk.f32.gmra.mxu1 %vm632_vm1, %v21680_v62  ;;  %16993 = vmatprep.mubr.msk.f32.mxu0 %vm632_vm1, %v21574_v24  ;;  %v14402_v24 = vld [vmem:[%s21153_s23 + $0x79] sm:$0xff] }
 0x706   : >> { %17002 = vmatpush3.msra.mxu1 %v14335_v17  ;;  %16994 = vmatmul.mubr.msk.f32.gmra.mxu0 %vm632_vm1, %v21685_v4 }
 0x707   : >> { %17018 = vmatprep.subr.mxu0 %v14353_v6  ;;  %17003 = vmatprep.subr.mxu1 %v14334_v8 }
 0x708   : >> { %17019 = vmatpush3.msra.mxu0 %v14353_v6  ;;  %16979 = vmatprep.mubr.msk.f32.mxu1 %vm632_vm1, %v21698_v9 }
 0x709   : >> { %17004 = vmatpush3.msra.mxu1 %v14334_v8  ;;  %16996 = vmatprep.mubr.msk.f32.mxu0 %vm632_vm1, %v21703_v35 }
 0x70a   : >> { %16980 = vmatmul.mubr.msk.f32.gmra.mxu1 %vm632_vm1, %v21706_v13  ;;  %17020 = vmatprep.subr.mxu0 %v14352_v53 }
 0x70b   : >> { %16997 = vmatmul.mubr.msk.f32.gmra.mxu0 %vm632_vm1, %v21714_v61  ;;  %17005 = vmatprep.subr.mxu1 %v14333_v52 }
 0x70c   : >> { %17021 = vmatpush3.msra.mxu0 %v14352_v53  ;;  %17006 = vmatpush3.msra.mxu1 %v14333_v52 }
 0x70d   : >> { %17007 = vmatprep.mubr.msk.f32.mxu1 %vm632_vm1, %v21553_v7  ;;  %17022 = vmatprep.subr.mxu0 %v14351_v38  ;;  %v14405_v7 = vld [vmem:[%s22152_s7 + $0x2a0] sm:$0xff] }
 0x70e   : >> { %17008 = vmatmul.mubr.msk.f32.vlgmr.msra.gmra.mxu1 %vm632_vm1, %v21571_v15  ;;  %17023 = vmatpush3.msra.mxu0 %v14351_v38  ;;  %v14443_v15 = vld [vmem:[%s22152_s7 + $0x2f0] sm:$0xff] }
 0x70f   : >> { %17024 = vmatprep.mubr.msk.f32.mxu0 %vm632_vm1, %v21614_v1  ;;  %17033 = vmatprep.subr.mxu1 %v14372_v16  ;;  %v14422_v1 = vld [vmem:[%s21153_s23 + $0x8a] sm:$0xff] }
 0x710   : >> { %17025 = vmatmul.mubr.msk.f32.vlgmr.msra.gmra.mxu0 %vm632_vm1, %v21632_v2  ;;  %17034 = vmatpush3.msra.mxu1 %v14372_v16  ;;  %v14439_v2 = vld [vmem:[%s21153_s23 + $0x83] sm:$0xff] }
 0x711   : >> { %17050 = vmatprep.subr.mxu0 %v14390_v40  ;;  %17010 = vmatprep.mubr.msk.f32.mxu1 %vm632_vm1, %v21582_v22  ;;  %v14461_v22 = vld [vmem:[%s22152_s7 + $0x310] sm:$0xff] }
 0x712   : >> { %17035 = vmatprep.subr.mxu1 %v14371_v49  ;;  %17051 = vmatpush3.msra.mxu0 %v14390_v40 }
 0x713   : >> { %17011 = vmatmul.mubr.msk.f32.gmra.mxu1 %vm632_vm1, %v21746_v33  ;;  %17027 = vmatprep.mubr.msk.f32.mxu0 %vm632_vm1, %v21640_v28  ;;  %v14457_v28 = vld [vmem:[%s21153_s23 + $0x84] sm:$0xff] }
 0x714   : >> { %17036 = vmatpush3.msra.mxu1 %v14371_v49  ;;  %17028 = vmatmul.mubr.msk.f32.gmra.mxu0 %vm632_vm1, %v21751_v56 }
 0x715   : >> { %17052 = vmatprep.subr.mxu0 %v14389_v50  ;;  %17037 = vmatprep.subr.mxu1 %v14370_v27 }
 0x716   : >> { %17053 = vmatpush3.msra.mxu0 %v14389_v50  ;;  %17013 = vmatprep.mubr.msk.f32.mxu1 %vm632_vm1, %v21764_v60 }
 0x717   : >> { %17038 = vmatpush3.msra.mxu1 %v14370_v27  ;;  %17030 = vmatprep.mubr.msk.f32.mxu0 %vm632_vm1, %v21769_v51 }
 0x718   : >> { %17014 = vmatmul.mubr.msk.f32.gmra.mxu1 %vm632_vm1, %v21772_v14  ;;  %17054 = vmatprep.subr.mxu0 %v14388_v5 }
 0x719   : >> { %17031 = vmatmul.mubr.msk.f32.gmra.mxu0 %vm632_vm1, %v21780_v63  ;;  %17039 = vmatprep.subr.mxu1 %v14369_v54 }
 0x71a   : >> { %17055 = vmatpush3.msra.mxu0 %v14388_v5  ;;  %17040 = vmatpush3.msra.mxu1 %v14369_v54 }
 0x71b   : >> { %17041 = vmatprep.mubr.msk.f32.mxu1 %vm632_vm1, %v21619_v34  ;;  %17056 = vmatprep.subr.mxu0 %v14387_v46  ;;  %v14441_v34 = vld [vmem:[%s22152_s7 + $0x2e0] sm:$0xff] }
 0x71c   : >> { %17042 = vmatmul.mubr.msk.f32.vlgmr.msra.gmra.mxu1 %vm632_vm1, %v21637_v26  ;;  %17057 = vmatpush3.msra.mxu0 %v14387_v46  ;;  %v14456_v26 = vld [vmem:[%s21153_s23 + $0x7c] sm:$0xff] }
 0x71d   : >> { %17058 = vmatprep.mubr.msk.f32.mxu0 %vm632_vm1, %v21680_v62  ;;  %17067 = vmatprep.subr.mxu1 %v14408_v57 }
 0x71e   : >> { %17059 = vmatmul.mubr.msk.f32.vlgmr.msra.gmra.mxu0 %vm632_vm1, %v21698_v9  ;;  %17068 = vmatpush3.msra.mxu1 %v14408_v57 }
 0x71f   : >> { %17084 = vmatprep.subr.mxu0 %v14426_v30  ;;  %17044 = vmatprep.mubr.msk.f32.mxu1 %vm632_vm1, %v21648_v58  ;;  %v14458_v58 = vld [vmem:[%s21153_s23 + $0x8c] sm:$0xff]  ;;  %s12471_s23 = smul.u32 10, %s17332_s13  ;;  %s9143_s13 = sadd.s32 1, %s17332_s13  }
 0x720   : >> { %17069 = vmatprep.subr.mxu1 %v14407_v45  ;;  %17085 = vmatpush3.msra.mxu0 %v14426_v30  ;;  %p9140_p0 = scmp.ge.s32.totalorder %s9143_s13, 10  }
 0x721   : >> { %17045 = vmatmul.mubr.msk.f32.gmra.mxu1 %vm632_vm1, %v21812_v18  ;;  %17061 = vmatprep.mubr.msk.f32.mxu0 %vm632_vm1, %v21706_v13  ;;  %s12472_s15 = scalar_lea.vmem [#allocation5], %s12471_s23  ;;  %vm12580_vm9 = vcmask (%p9140_p0), 31744   ;;  %vm12604_vm10 = vcmask (%p9140_p0), 27648   ;;  %s14470_s23 = sshll.u32 (%p9140_p0), %s17423_s8, 4  ;;  %vm12615_vm11 = vcmask (%p9140_p0), 24576  }
 0x722   : >> { %17070 = vmatpush3.msra.mxu1 %v14407_v45  ;;  %17062 = vmatmul.mubr.msk.f32.gmra.mxu0 %vm632_vm1, %v14384_v25  ;;  %s12628_s26 = scalar_lea.hbm (%p9140_p0), %s22156_s11, %s14470_s23  ;;  %s22174_s16 = sand.u32 (%p9140_p0), 1, %s17308_s20  }
 0x723   : >> { %17086 = vmatprep.subr.mxu0 %v14425_v42  ;;  %17071 = vmatprep.subr.mxu1 %v14406_v39  ;;  %s12618_s18 = scalar_lea.sflag (%p9140_p0), [#allocation11], %s22174_s16  ;;  %s17338_s30 = smov (%p9140_p0), [#allocation10]  }
 0x724   : >> { %17087 = vmatpush3.msra.mxu0 %v14425_v42  ;;  %17047 = vmatprep.mubr.msk.f32.mxu1 %vm632_vm1, %v21828_v44  ;;  %s17244_s14 = sshll.u32 (%p9140_p0), %s17338_s30, 4  ;;  %s17245_s14 = int_to_ptr.vmem [resolvable:$false] %s17244_s14 }
 0x725   : >> { %17072 = vmatpush3.msra.mxu1 %v14406_v39  ;;  %17064 = vmatprep.mubr.msk.f32.mxu0 %vm632_vm1, %v14385_v23  ;;  %s17246_s8 = scalar_lea.vmem (%p9140_p0), %s17245_s14, 32 }
 0x726   : >> { %17048 = vmatmul.mubr.msk.f32.gmra.mxu1 %vm632_vm1, %v21833_v10  ;;  %17088 = vmatprep.subr.mxu0 %v14424_v41 }
 0x727   : >> { %17065 = vmatmul.mubr.msk.f32.gmra.mxu0 %vm632_vm1, %v14386_v21  ;;  %17073 = vmatprep.subr.mxu1 %v14405_v7 }
 0x728   : >> { %17089 = vmatpush3.msra.mxu0 %v14424_v41  ;;  %17074 = vmatpush3.msra.mxu1 %v14405_v7 }
 0x729   : >> { %17075 = vmatprep.mubr.msk.f32.mxu1 %vm632_vm1, %v21685_v4  ;;  %17090 = vmatprep.subr.mxu0 %v14423_v47 }
 0x72a   : >> { %17076 = vmatmul.mubr.msk.f32.vlgmr.msra.gmra.mxu1 %vm632_vm1, %v21703_v35  ;;  %17091 = vmatpush3.msra.mxu0 %v14423_v47 }
 0x72b   : >> { %17092 = vmatprep.mubr.msk.f32.mxu0 %vm632_vm1, %v21746_v33  ;;  %17101 = vmatprep.subr.mxu1 %v14444_v12 }
 0x72c   : >> { %17093 = vmatmul.mubr.msk.f32.vlgmr.msra.gmra.mxu0 %vm632_vm1, %v21764_v60  ;;  %17102 = vmatpush3.msra.mxu1 %v14444_v12 }
 0x72d   : >> { %17118 = vmatprep.subr.mxu0 %v14462_v3  ;;  %17078 = vmatprep.mubr.msk.f32.mxu1 %vm632_vm1, %v21714_v61 }
 0x72e   : >> { %17103 = vmatprep.subr.mxu1 %v14443_v15  ;;  %17119 = vmatpush3.msra.mxu0 %v14462_v3 }
 0x72f   : >> { %17079 = vmatmul.mubr.msk.f32.gmra.mxu1 %vm632_vm1, %v14402_v24  ;;  %17095 = vmatprep.mubr.msk.f32.mxu0 %vm632_vm1, %v21772_v14 }
 0x730   : >> { %17104 = vmatpush3.msra.mxu1 %v14443_v15  ;;  %17096 = vmatmul.mubr.msk.f32.gmra.mxu0 %vm632_vm1, %v14420_v32 }
 0x731   : >> { %17120 = vmatprep.subr.mxu0 %v14461_v22  ;;  %17105 = vmatprep.subr.mxu1 %v14442_v36 }
 0x732   : >> { %17121 = vmatpush3.msra.mxu0 %v14461_v22  ;;  %17081 = vmatprep.mubr.msk.f32.mxu1 %vm632_vm1, %v14403_v55 }
 0x733   : >> { %17106 = vmatpush3.msra.mxu1 %v14442_v36  ;;  %17098 = vmatprep.mubr.msk.f32.mxu0 %vm632_vm1, %v14421_v37 }
 0x734   : >> { %17082 = vmatmul.mubr.msk.f32.gmra.mxu1 %vm632_vm1, %v14404_v0  ;;  %17122 = vmatprep.subr.mxu0 %v14460_v11 }
 0x735   : >> { %17099 = vmatmul.mubr.msk.f32.gmra.mxu0 %vm632_vm1, %v14422_v1  ;;  %17107 = vmatprep.subr.mxu1 %v14441_v34 }
 0x736   : >> { %17123 = vmatpush3.msra.mxu0 %v14460_v11  ;;  %17108 = vmatpush3.msra.mxu1 %v14441_v34 }
 0x737   : >> { %17109 = vmatprep.mubr.msk.f32.mxu1 %vm632_vm1, %v21751_v56  ;;  %17124 = vmatprep.subr.mxu0 %v14459_v29 }
 0x738   : >> { %17110 = vmatmul.mubr.msk.f32.vlgmr.msra.gmra.mxu1 %vm632_vm1, %v21769_v51  ;;  %17125 = vmatpush3.msra.mxu0 %v14459_v29 }
 0x739   : >> { %17126 = vmatprep.mubr.msk.f32.mxu0 %vm632_vm1, %v21812_v18  ;;  %17112 = vmatprep.mubr.msk.f32.mxu1 %vm632_vm1, %v21780_v63 }
 0x73a   : >> { %17127 = vmatmul.mubr.msk.f32.vlgmr.msra.gmra.mxu0 %vm632_vm1, %v21828_v44 }
 0x73b   : >> { %17129 = vmatprep.mubr.msk.f32.mxu0 %vm632_vm1, %v21833_v10 }
 0x73c   : >> { %17113 = vmatmul.mubr.msk.f32.gmra.mxu1 %vm632_vm1, %v14438_v48 }
 0x73d   : >> { %17115 = vmatprep.mubr.msk.f32.mxu1 %vm632_vm1, %v14439_v2 }
 0x73e   : >> { %17130 = vmatmul.mubr.msk.f32.gmra.mxu0 %vm632_vm1, %v14456_v26 }
 0x73f   : >> { %17132 = vmatprep.mubr.msk.f32.mxu0 %vm632_vm1, %v14457_v28 }
 0x740   : >> { %17116 = vmatmul.mubr.msk.f32.gmra.mxu1 %vm632_vm1, %v14440_v31 }
 0x742   : >> { %17133 = vmatmul.mubr.msk.f32.gmra.mxu0 %vm632_vm1, %v14458_v58 }
 0x754   : >> { %v16726_v59 = vpop.f32.mrf.mxu1 }
 0x755   : >> { %v16720_v20 = vpop.f32.mrf.mxu0 }
 0x756   : >> { %v9273_v17 = vpop.f32.mrf.mxu1 }
 0x757   : >> { %v9253_v19 = vpop.f32.mrf.mxu0 }
 0x75a   : >> { %v16723_v43 = vpop.f32.mrf.mxu0 }
 0x75c   : >> { %v9263_v62 = vpop.f32.mrf.mxu0 }
 0x75e   : >> { %v16737_v4 = vpop.f32.mrf.mxu1 }
 0x75f   : >> { %v9372_v6 = vadd.f32 %v16737_v4, %v16720_v20 }
 0x760   : >> { %v16754_v8 = vpop.f32.mrf.mxu0  ;;  %v9366_v9 = vpop.f32.mrf.mxu1 }
 0x761   : >> { %v9522_v35 = vadd.f32 %v16754_v8, %v9372_v6  ;;  %v9367_v13 = vadd.f32 %v9366_v9, %v9253_v19 }
 0x762   : >> { %v9492_v53 = vpop.f32.mrf.mxu0 }
 0x763   : >> { %v9521_v61 = vadd.f32 %v9492_v53, %v9367_v13  ;;  %v16740_v52 = vpop.f32.mrf.mxu1 }
 0x764   : >> { %v9382_v38 = vadd.f32 %v16740_v52, %v16723_v43  ;;  %v16757_v16 = vpop.f32.mrf.mxu0 }
 0x765   : >> { %v9376_v40 = vpop.f32.mrf.mxu1 }
 0x766   : >> { %v9524_v49 = vadd.f32 %v16757_v16, %v9382_v38  ;;  %v9377_v33 = vadd.f32 %v9376_v40, %v9263_v62  ;;  %v9502_v56 = vpop.f32.mrf.mxu0 }
 0x768   : >> { %v9523_v50 = vadd.f32 %v9502_v56, %v9377_v33  ;;  %v16743_v27 = vpop.f32.mrf.mxu1 }
 0x769   : >> { %v9392_v60 = vadd.f32 %v16743_v27, %v16726_v59  ;;  %v16760_v51 = vpop.f32.mrf.mxu0 }
 0x76a   : >> { %v9386_v14 = vpop.f32.mrf.mxu1 }
 0x76b   : >> { %v9526_v5 = vadd.f32 %v16760_v51, %v9392_v60  ;;  %v9387_v63 = vadd.f32 %v9386_v14, %v9273_v17  ;;  %v9512_v54 = vpop.f32.mrf.mxu0 }
 0x76c   : >> { %v16771_v46 = vpop.f32.mrf.mxu1 }
 0x76d   : >> { %v9525_v57 = vadd.f32 %v9512_v54, %v9387_v63  ;;  %v9654_v30 = vadd.f32 %v16771_v46, %v9522_v35 }
 0x76e   : >> { %v16788_v45 = vpop.f32.mrf.mxu0  ;;  %v9624_v18 = vpop.f32.mrf.mxu1 }
 0x76f   : >> { %v9786_v25 = vadd.f32 %v16788_v45, %v9654_v30  ;;  %v9653_v42 = vadd.f32 %v9624_v18, %v9521_v61 }
 0x770   : >> { %v9756_v39 = vpop.f32.mrf.mxu0 }
 0x771   : >> { %v9785_v44 = vadd.f32 %v9756_v39, %v9653_v42  ;;  %v16774_v23 = vpop.f32.mrf.mxu1 }
 0x772   : >> { %v9656_v10 = vadd.f32 %v16774_v23, %v9524_v49  ;;  %v16791_v41 = vpop.f32.mrf.mxu0 }
 0x773   : >> { %v9634_v21 = vpop.f32.mrf.mxu1 }
 0x774   : >> { %v9788_v7 = vadd.f32 %v16791_v41, %v9656_v10  ;;  %v9655_v47 = vadd.f32 %v9634_v21, %v9523_v50  ;;  %v9766_v12 = vpop.f32.mrf.mxu0 }
 0x776   : >> { %v9787_v3 = vadd.f32 %v9766_v12, %v9655_v47  ;;  %v16777_v15 = vpop.f32.mrf.mxu1 }
 0x777   : >> { %v9658_v24 = vadd.f32 %v16777_v15, %v9526_v5  ;;  %v16794_v32 = vpop.f32.mrf.mxu0 }
 0x778   : >> { %v9644_v22 = vpop.f32.mrf.mxu1 }
 0x779   : >> { %v9790_v36 = vadd.f32 %v16794_v32, %v9658_v24  ;;  %v9657_v55 = vadd.f32 %v9644_v22, %v9525_v57  ;;  %v9776_v37 = vpop.f32.mrf.mxu0 }
 0x77a   : >> { %v16805_v0 = vpop.f32.mrf.mxu1 }
 0x77b   : >> { %v9789_v11 = vadd.f32 %v9776_v37, %v9657_v55  ;;  %v9920_v1 = vadd.f32 %v16805_v0, %v9786_v25 }
 0x77c   : >> { %v16822_v34 = vpop.f32.mrf.mxu0  ;;  %v9890_v29 = vpop.f32.mrf.mxu1 }
 0x77d   : >> { %v10052_v48 = vadd.f32 %v16822_v34, %v9920_v1  ;;  %v9919_v2 = vadd.f32 %v9890_v29, %v9785_v44 }
 0x77e   : >> { %v10022_v26 = vpop.f32.mrf.mxu0 }
 0x77f   : >> { %v10051_v28 = vadd.f32 %v10022_v26, %v9919_v2  ;;  %v16808_v31 = vpop.f32.mrf.mxu1 }
 0x780   : >> { %v9922_v58 = vadd.f32 %v16808_v31, %v9788_v7  ;;  %v16825_v20 = vpop.f32.mrf.mxu0 }
 0x781   : >> { %v9900_v19 = vpop.f32.mrf.mxu1 }
 0x782   : >> { %v10054_v59 = vadd.f32 %v16825_v20, %v9922_v58  ;;  %v9921_v43 = vadd.f32 %v9900_v19, %v9787_v3  ;;  %v10032_v17 = vpop.f32.mrf.mxu0 }
 0x784   : >> { %v10053_v62 = vadd.f32 %v10032_v17, %v9921_v43  ;;  %v16811_v4 = vpop.f32.mrf.mxu1 }
 0x785   : >> { %v9924_v6 = vadd.f32 %v16811_v4, %v9790_v36  ;;  %v16828_v8 = vpop.f32.mrf.mxu0 }
 0x786   : >> { %v9910_v9 = vpop.f32.mrf.mxu1 }
 0x787   : >> { %v10056_v35 = vadd.f32 %v16828_v8, %v9924_v6  ;;  %v9923_v13 = vadd.f32 %v9910_v9, %v9789_v11  ;;  %v10042_v53 = vpop.f32.mrf.mxu0 }
 0x788   : >> { %v16839_v61 = vpop.f32.mrf.mxu1 }
 0x789   : >> { %v10055_v52 = vadd.f32 %v10042_v53, %v9923_v13  ;;  %v10184_v38 = vadd.f32 %v16839_v61, %v10052_v48 }
 0x78a   : >> { %v16856_v16 = vpop.f32.mrf.mxu0  ;;  %v10154_v40 = vpop.f32.mrf.mxu1 }
 0x78b   : >> { %v10316_v49 = vadd.f32 %v16856_v16, %v10184_v38  ;;  %v10183_v33 = vadd.f32 %v10154_v40, %v10051_v28 }
 0x78c   : >> { %v10286_v56 = vpop.f32.mrf.mxu0 }
 0x78d   : >> { %v21923_v50 = vadd.f32 %v10286_v56, %v10183_v33  ;;  %v16842_v27 = vpop.f32.mrf.mxu1 }
 0x78e   : >> { %v10186_v60 = vadd.f32 %v16842_v27, %v10054_v59  ;;  %v16859_v51 = vpop.f32.mrf.mxu0 }
 0x78f   : >> { %v10164_v14 = vpop.f32.mrf.mxu1 }
 0x790   : >> { %v21925_v5 = vadd.f32 %v16859_v51, %v10186_v60  ;;  %v10185_v63 = vadd.f32 %v10164_v14, %v10053_v62  ;;  %v10296_v54 = vpop.f32.mrf.mxu0 }
 0x792   : >> { %v21927_v46 = vadd.f32 %v10296_v54, %v10185_v63  ;;  %v16845_v57 = vpop.f32.mrf.mxu1 }
 0x793   : >> { %v10188_v30 = vadd.f32 %v16845_v57, %v10056_v35  ;;  %v16862_v45 = vpop.f32.mrf.mxu0 }
 0x794   : >> { %v10174_v18 = vpop.f32.mrf.mxu1 }
 0x795   : >> { %v21929_v25 = vadd.f32 %v16862_v45, %v10188_v30  ;;  %v10187_v42 = vadd.f32 %v10174_v18, %v10055_v52  ;;  %v10306_v39 = vpop.f32.mrf.mxu0 }
 0x796   : >> { %v16873_v44 = vpop.f32.mrf.mxu1 }
 0x797   : >> { %v21931_v23 = vadd.f32 %v10306_v39, %v10187_v42  ;;  %v10448_v10 = vadd.f32 %v16873_v44, %v10316_v49 }
 0x798   : >> { %v16890_v41 = vpop.f32.mrf.mxu0  ;;  %v10418_v21 = vpop.f32.mrf.mxu1 }
 0x799   : >> { %v21933_v7 = vadd.f32 %v16890_v41, %v10448_v10  ;;  %v10447_v57 = vadd.f32 %v10418_v21, %v21923_v50 }
 0x79a   : >> { %v10551_v47 = vpop.f32.mrf.mxu0 }
 0x79b   : >> { %v16876_v12 = vpop.f32.mrf.mxu1  ;;  %v10580_v39 = vadd.f32 %v10551_v47, %v10447_v57 }
 0x79c   : >> { %v16893_v3 = vpop.f32.mrf.mxu0  ;;  %v10450_v45 = vadd.f32 %v16876_v12, %v21925_v5 }
 0x79d   : >> { %v10428_v15 = vpop.f32.mrf.mxu1 }
 0x79e   : >> { %v10561_v24 = vpop.f32.mrf.mxu0  ;;  %v10449_v44 = vadd.f32 %v10428_v15, %v21927_v46 }
 0x7a0   : >> { %v16879_v32 = vpop.f32.mrf.mxu1  ;;  %v10582_v5 = vadd.f32 %v10561_v24, %v10449_v44 }
 0x7a1   : >> { %v16896_v22 = vpop.f32.mrf.mxu0 }
 0x7a2   : >> { %v10438_v36 = vpop.f32.mrf.mxu1 }
 0x7a3   : >> { %v21935_v55 = vpop.f32.mrf.mxu0  ;;  %v10451_v50 = vadd.f32 %v10438_v36, %v21931_v23 }
 0x7a4   : >> { %v16907_v37 = vpop.f32.mrf.mxu1 }
 0x7a5   : >> { %v10713_v12 = vadd.f32 %v16907_v37, %v21933_v7 }
 0x7a6   : >> { %v21937_v0 = vpop.f32.mrf.mxu0  ;;  %v10683_v11 = vpop.f32.mrf.mxu1 }
 0x7a7   : >> { %v10845_v23 = vadd.f32 %v21937_v0, %v10713_v12 }
 0x7a8   : >> { %v10815_v1 = vpop.f32.mrf.mxu0 }
 0x7a9   : >> { %v16910_v34 = vpop.f32.mrf.mxu1 }
 0x7aa   : >> { %v16927_v29 = vpop.f32.mrf.mxu0 }
 0x7ab   : >> { %v10693_v48 = vpop.f32.mrf.mxu1 }
 0x7ac   : >> { %v21939_v2 = vpop.f32.mrf.mxu0  ;;  %v10714_v57 = vadd.f32 %v10693_v48, %v10582_v5 }
 0x7ae   : >> { %v16913_v26 = vpop.f32.mrf.mxu1 }
 0x7af   : >> { %v21941_v28 = vpop.f32.mrf.mxu0 }
 0x7b0   : >> { %v10703_v31 = vpop.f32.mrf.mxu1 }
 0x7b1   : >> { %v21943_v58 = vpop.f32.mrf.mxu0 }
 0x7b2   : >> { %v16941_v20 = vpop.f32.mrf.mxu1 }
 0x7b4   : >> { %v21945_v19 = vpop.f32.mrf.mxu0  ;;  %v10947_v59 = vpop.f32.mrf.mxu1 }
 0x7b6   : >> { %v11079_v43 = vpop.f32.mrf.mxu0 }
 0x7b7   : >> { %v16944_v17 = vpop.f32.mrf.mxu1 }
 0x7b8   : >> { %v21947_v62 = vpop.f32.mrf.mxu0 }
 0x7b9   : >> { %v10957_v4 = vpop.f32.mrf.mxu1 }
 0x7ba   : >> { %v21949_v6 = vpop.f32.mrf.mxu0 }
 0x7bc   : >> { %v21951_v8 = vpop.f32.mrf.mxu1 }
 0x7bd   : >> { %v21953_v9 = vpop.f32.mrf.mxu0 }
 0x7be   : >> { %v21955_v35 = vpop.f32.mrf.mxu1 }
 0x7bf   : >> { %v21957_v13 = vpop.f32.mrf.mxu0 }
 0x7c0   : >> { %v21959_v53 = vpop.f32.mrf.mxu1 }
 0x7c2   : >> { %v21961_v61 = vpop.f32.mrf.mxu0  ;;  %v11212_v52 = vpop.f32.mrf.mxu1 }
 0x7c4   : >> { %v21963_v38 = vpop.f32.mrf.mxu0 }
 0x7c5   : >> { %v16978_v16 = vpop.f32.mrf.mxu1 }
 0x7c6   : >> { %v21965_v40 = vpop.f32.mrf.mxu0 }
 0x7c7   : >> { %v21967_v49 = vpop.f32.mrf.mxu1 }
 0x7c8   : >> { %v21969_v33 = vpop.f32.mrf.mxu0 }
 0x7ca   : >> { %v21971_v56 = vpop.f32.mrf.mxu1 }
 0x7cb   : >> { %v21973_v27 = vpop.f32.mrf.mxu0 }
 0x7cc   : >> { %22162 = vst [vmem:[#allocation13_spill] sm:$0xff] %v21973_v27  ;;  %v21975_v60 = vpop.f32.mrf.mxu1  ;;  %v10712_v27 = vadd.f32 %v10683_v11, %v10580_v39 }
 0x7cd   : >> { %v21977_v51 = vpop.f32.mrf.mxu0 }
 0x7ce   : >> { %22163 = vst [vmem:[#allocation14_spill] sm:$0xff] %v21977_v51  ;;  %v21979_v14 = vpop.f32.mrf.mxu1  ;;  %v10452_v51 = vadd.f32 %v16879_v32, %v21929_v25  ;;  %v10844_v15 = vadd.f32 %v10815_v1, %v10712_v27  ;;  %v10584_v25 = vadd.f32 %v21935_v55, %v10451_v50 }
 0x7d0   : >> { %v21981_v63 = vpop.f32.mrf.mxu0  ;;  %v21983_v54 = vpop.f32.mrf.mxu1  ;;  %v10585_v46 = vadd.f32 %v16896_v22, %v10452_v51  ;;  %v10976_v24 = vadd.f32 %v10947_v59, %v10844_v15  ;;  %v10716_v11 = vadd.f32 %v10703_v31, %v10584_v25 }
 0x7d1   : >> { %22164 = vst [vmem:[#allocation15_spill] sm:$0xff] %v21981_v63  ;;  %v10583_v63 = vadd.f32 %v16893_v3, %v10450_v45 }
 0x7d2   : >> { %v21986_v30 = vpop.f32.mrf.mxu0  ;;  %v10717_v36 = vadd.f32 %v16913_v26, %v10585_v46  ;;  %v11108_v27 = vadd.f32 %v11079_v43, %v10976_v24  ;;  %v10848_v45 = vadd.f32 %v21943_v58, %v10716_v11 }
 0x7d3   : >> { %22165 = vst [vmem:[#allocation16_spill] sm:$0xff] %v21986_v30  ;;  %v21989_v18 = vpop.f32.mrf.mxu1  ;;  %v10715_v30 = vadd.f32 %v16910_v34, %v10583_v63  ;;  %v10846_v34 = vadd.f32 %v21939_v2, %v10714_v57  ;;  %v10977_v63 = vadd.f32 %v16941_v20, %v10845_v23  ;;  %v22168_v46 = vld [vmem:[#allocation13_spill] sm:$0xff] }
 0x7d4   : >> { %v21991_v42 = vpop.f32.mrf.mxu0  ;;  %v10849_v48 = vadd.f32 %v21941_v28, %v10717_v36  ;;  %v11241_v59 = vadd.f32 %v11212_v52, %v11108_v27  ;;  %v10980_v2 = vadd.f32 %v21955_v35, %v10848_v45 }
 0x7d5   : >> { %22166 = vst [vmem:[#allocation17_spill] sm:$0xff] %v21991_v42  ;;  %v21994_v10 = vpop.f32.mrf.mxu1  ;;  %v10847_v32 = vadd.f32 %v16927_v29, %v10715_v30  ;;  %v10978_v51 = vadd.f32 %v10957_v4, %v10846_v34  ;;  %v11109_v29 = vadd.f32 %v21945_v19, %v10977_v63  ;;  %v22170_v57 = vld [vmem:[#allocation14_spill] sm:$0xff] }
 0x7d6   : >> { %v21996_v41 = vpop.f32.mrf.mxu0  ;;  %v10981_v31 = vadd.f32 %v21951_v8, %v10849_v48  ;;  %v11373_v39 = vadd.f32 %v21963_v38, %v11241_v59  ;;  %v11112_v8 = vadd.f32 %v21957_v13, %v10980_v2 }
 0x7d7   : >> { %22167 = vst [vmem:[#allocation18_spill] sm:$0xff] %v21996_v41  ;;  %v10979_v22 = vadd.f32 %v16944_v17, %v10847_v32  ;;  %v11110_v17 = vadd.f32 %v21949_v6, %v10978_v51  ;;  %v11242_v28 = vadd.f32 %v21959_v53, %v11109_v29 }
 0x7d8   : >> { %v22000_v21 = vpop.f32.mrf.mxu1  ;;  %v11113_v58 = vadd.f32 %v21953_v9, %v10981_v31  ;;  %v11505_v53 = vadd.f32 %v21983_v54, %v11373_v39  ;;  %v11245_v50 = vadd.f32 %v21975_v60, %v11112_v8  ;;  %v22171_v23 = vld [vmem:[#allocation15_spill] sm:$0xff] }
 0x7d9   : >> { %v22003_v42 = vpop.f32.mrf.mxu0  ;;  %v11111_v26 = vadd.f32 %v21947_v62, %v10979_v22  ;;  %v11243_v19 = vadd.f32 %v21967_v49, %v11110_v17  ;;  %v11374_v44 = vadd.f32 %v21961_v61, %v11242_v28 }
 0x7da   : >> { %v22005_v47 = vpop.f32.mrf.mxu1  ;;  %v11246_v6 = vadd.f32 %v21971_v56, %v11113_v58  ;;  %v22169_v15 = vld [vmem:[#allocation16_spill] sm:$0xff]  ;;  %v11377_v54 = vadd.f32 %v22170_v57, %v11245_v50 }
 0x7db   : >> { %v22007_v41 = vpop.f32.mrf.mxu0  ;;  %v11244_v43 = vadd.f32 %v16978_v16, %v11111_v26  ;;  %v11375_v38 = vadd.f32 %v21969_v33, %v11243_v19  ;;  %v11506_v49 = vadd.f32 %v21979_v14, %v11374_v44 }
 0x7dc   : >> { %v17043_v3 = vpop.f32.mrf.mxu1  ;;  %v11378_v61 = vadd.f32 %v22168_v46, %v11246_v6  ;;  %v22172_v32 = vld [vmem:[#allocation17_spill] sm:$0xff] }
 0x7dd   : >> { %v11376_v35 = vadd.f32 %v21965_v40, %v11244_v43  ;;  %v11637_v40 = vadd.f32 %v22169_v15, %v11505_v53  ;;  %v11507_v56 = vadd.f32 %v21994_v10, %v11375_v38  ;;  %v11638_v60 = vadd.f32 %v22171_v23, %v11506_v49  ;;  %v14469_v38 = vld [vmem:[#allocation9] ss:$0 sm:$0xff] }
 0x7de   : >> { %v22011_v7 = vpop.f32.mrf.mxu0  ;;  %v11740_v37 = vpop.f32.mrf.mxu1  ;;  %v11510_v33 = vadd.f32 %v22000_v21, %v11378_v61  ;;  %v22173_v34 = vld [vmem:[#allocation18_spill] sm:$0xff] }
 0x7df   : >> { %v11508_v5 = vadd.f32 %v21989_v18, %v11376_v35  ;;  %v11769_v14 = vadd.f32 %v11740_v37, %v11637_v40  ;;  %v11509_v18 = vadd.f32 %v22005_v47, %v11377_v54  ;;  %v11639_v63 = vadd.f32 %v22173_v34, %v11507_v56 }
 0x7e0   : >> { %v11873_v1 = vpop.f32.mrf.mxu0  ;;  %v11770_v22 = vadd.f32 %v17043_v3, %v11638_v60  ;;  %v11642_v51 = vadd.f32 %v22003_v42, %v11510_v33 }
 0x7e1   : >> { %v17046_v55 = vpop.f32.mrf.mxu1  ;;  %v11640_v36 = vadd.f32 %v22172_v32, %v11508_v5  ;;  %v11902_v45 = vadd.f32 %v11873_v1, %v11769_v14  ;;  %v11641_v26 = vadd.f32 %v22007_v41, %v11509_v18 }
 0x7e2   : >> { %v17063_v0 = vpop.f32.mrf.mxu0  ;;  %v11903_v21 = vadd.f32 %v22011_v7, %v11770_v22 }
 0x7e3   : >> { %v11750_v30 = vpop.f32.mrf.mxu1  ;;  %v11772_v48 = vadd.f32 %v17046_v55, %v11640_v36 }
 0x7e4   : >> { %v11883_v20 = vpop.f32.mrf.mxu0  ;;  %v11771_v29 = vadd.f32 %v11750_v30, %v11639_v63 }
 0x7e5   : >> { %v11905_v37 = vadd.f32 %v17063_v0, %v11772_v48 }
 0x7e6   : >> { %v17049_v4 = vpop.f32.mrf.mxu1  ;;  %v11904_v43 = vadd.f32 %v11883_v20, %v11771_v29 }
 0x7e7   : >> { %v17066_v62 = vpop.f32.mrf.mxu0  ;;  %v11774_v59 = vadd.f32 %v17049_v4, %v11642_v51 }
 0x7e8   : >> { %v11760_v52 = vpop.f32.mrf.mxu1 }
 0x7e9   : >> { %v11893_v16 = vpop.f32.mrf.mxu0  ;;  %v11773_v17 = vadd.f32 %v11760_v52, %v11641_v26  ;;  %v11907_v19 = vadd.f32 %v17066_v62, %v11774_v59 }
 0x7ea   : >> { %v17077_v9 = vpop.f32.mrf.mxu1 }
 0x7eb   : >> { %v12035_v3 = vadd.f32 %v17077_v9, %v11903_v21  ;;  %v11906_v30 = vadd.f32 %v11893_v16, %v11773_v17 }
 0x7ec   : >> { %v17094_v13 = vpop.f32.mrf.mxu0  ;;  %v12005_v12 = vpop.f32.mrf.mxu1 }
 0x7ed   : >> { %v12034_v2 = vadd.f32 %v12005_v12, %v11902_v45  ;;  %v12167_v44 = vadd.f32 %v17094_v13, %v12035_v3 }
 0x7ee   : >> { %v12137_v25 = vpop.f32.mrf.mxu0 }
 0x7ef   : >> { %v17080_v24 = vpop.f32.mrf.mxu1  ;;  %v12166_v42 = vadd.f32 %v12137_v25, %v12034_v2 }
 0x7f0   : >> { %v17097_v11 = vpop.f32.mrf.mxu0  ;;  %v12037_v55 = vadd.f32 %v17080_v24, %v11905_v37 }
 0x7f1   : >> { %v12015_v27 = vpop.f32.mrf.mxu1 }
 0x7f2   : >> { %v12147_v10 = vpop.f32.mrf.mxu0  ;;  %v12036_v1 = vadd.f32 %v12015_v27, %v11904_v43  ;;  %v12169_v35 = vadd.f32 %v17097_v11, %v12037_v55 }
 0x7f4   : >> { %v17083_v31 = vpop.f32.mrf.mxu1  ;;  %v12168_v52 = vadd.f32 %v12147_v10, %v12036_v1 }
 0x7f5   : >> { %v17100_v47 = vpop.f32.mrf.mxu0  ;;  %v12039_v7 = vadd.f32 %v17083_v31, %v11907_v19 }
 0x7f6   : >> { %v12025_v28 = vpop.f32.mrf.mxu1 }
 0x7f7   : >> { %v12157_v58 = vpop.f32.mrf.mxu0  ;;  %v12038_v4 = vadd.f32 %v12025_v28, %v11906_v30  ;;  %v12171_v62 = vadd.f32 %v17100_v47, %v12039_v7  ;;  %v17337_v28 = vmov (%p9140_p0), 0  }
 0x7f8   : >> { %v17111_v39 = vpop.f32.mrf.mxu1  ;;  %17239 = vset.pattern.permute.xlu1 (%p9140_p0), %v17337_v28  ;;  %17238 = vset.pattern.permute.xlu0 (%p9140_p0), %v17337_v28  ;;  %v12501_v28 = vld [vmem:[%s22154_s9 + $0x60] sm:$0xf] (%p9140_p0) }
 0x7f9   : >> { %v12299_v50 = vadd.f32 %v17111_v39, %v12167_v44  ;;  %v12170_v61 = vadd.f32 %v12157_v58, %v12038_v4  ;;  %v12490_v4 = vld [vmem:[%s22154_s9 + $0x8] sm:$0xff] (%p9140_p0) }
 0x7fa   : >> { %v17128_v8 = vpop.f32.mrf.mxu0  ;;  %v12269_v41 = vpop.f32.mrf.mxu1 }
 0x7fb   : >> { %v12298_v0 = vadd.f32 %v12269_v41, %v12166_v42  ;;  %v12431_v40 = vadd.f32 %v17128_v8, %v12299_v50 }
 0x7fc   : >> { %v12401_v6 = vpop.f32.mrf.mxu0  ;;  %v17114_v53 = vpop.f32.mrf.mxu1 }
 0x7fd   : >> { %v12430_v20 = vadd.f32 %v12401_v6, %v12298_v0  ;;  %v12301_v9 = vadd.f32 %v17114_v53, %v12169_v35  ;;  %v12444_v18 = vadd.f32 %v14469_v38, %v12431_v40  ;;  %v12489_v35 = vld [vmem:[%s22154_s9] sm:$0xff] (%p9140_p0)  ;;  %v12491_v0 = vld [vmem:[%s22154_s9 + $0x10] sm:$0xff] (%p9140_p0)  ;;  %v12492_v53 = vld [vmem:[%s22154_s9 + $0x18] sm:$0xff] (%p9140_p0) }
 0x7fe   : >> { %v17131_v49 = vpop.f32.mrf.mxu0  ;;  %v12279_v5 = vpop.f32.mrf.mxu1 }
 0x7ff   : >> { %v12443_v12 = vadd.f32 %v14469_v38, %v12430_v20  ;;  %v12433_v46 = vadd.f32 %v17131_v49, %v12301_v9  ;;  %v12300_v16 = vadd.f32 %v12279_v5, %v12168_v52  ;;  %v12450_v10 = vmax.f32 %v12444_v18, 0.0 }
 0x800   : >> { %v12411_v15 = vpop.f32.mrf.mxu0  ;;  %v17117_v13 = vpop.f32.mrf.mxu1 }
 0x801   : >> { %v12446_v56 = vadd.f32 %v14469_v38, %v12433_v46  ;;  %v12432_v57 = vadd.f32 %v12411_v15, %v12300_v16  ;;  %v12303_v54 = vadd.f32 %v17117_v13, %v12171_v62  ;;  %v12449_v25 = vmax.f32 %v12443_v12, 0.0  ;;  %v12494_v46 = vld [vmem:[%s22154_s9 + $0x28] sm:$0xff] (%p9140_p0) }
 0x802   : >> { %v17134_v23 = vpop.f32.mrf.mxu0  ;;  %v12289_v60 = vpop.f32.mrf.mxu1 }
 0x803   : >> { %v12452_v32 = vmax.f32 %v12446_v56, 0.0  ;;  %v12445_v36 = vadd.f32 %v14469_v38, %v12432_v57  ;;  %v12435_v33 = vadd.f32 %v17134_v23, %v12303_v54  ;;  %v12302_v14 = vadd.f32 %v12289_v60, %v12170_v61  ;;  %v12495_v56 = vld [vmem:[%s22154_s9 + $0x30] sm:$0xff] (%p9140_p0)  ;;  %v12496_v23 = vld [vmem:[%s22154_s9 + $0x38] sm:$0xff] (%p9140_p0) }
 0x804   : >> { %v12421_v24 = vpop.f32.mrf.mxu0 }
 0x805   : >> { %v12455_v11 = vmax.f32 %v12449_v25, %v12452_v32  ;;  %v12448_v34 = vadd.f32 %v14469_v38, %v12435_v33  ;;  %v12434_v63 = vadd.f32 %v12421_v24, %v12302_v14  ;;  %v12451_v22 = vmax.f32 %v12445_v36, 0.0  ;;  %v12497_v24 = vld [vmem:[%s22154_s9 + $0x40] sm:$0xff] (%p9140_p0) }
 0x807   : >> { %12459 = vst.msk [vmem:[#allocation8] sm:$0xff] %vm12458_vm7, %v12455_v11  ;;  %v12454_v48 = vmax.f32 %v12448_v34, 0.0  ;;  %v12447_v27 = vadd.f32 %v14469_v38, %v12434_v63  ;;  %v12493_v38 = vld [vmem:[%s22154_s9 + $0x20] sm:$0xff] (%p9140_p0)  ;;  %v12498_v63 = vld [vmem:[%s22154_s9 + $0x48] sm:$0xff] (%p9140_p0) }
 0x809   : >> { %v12457_v51 = vmax.f32 %v12451_v22, %v12454_v48  ;;  %v12453_v45 = vmax.f32 %v12447_v27, 0.0 }
 0x80b   : >> { %12461 = vst.msk [vmem:[#allocation8 + $0x10] sm:$0xff] %vm12458_vm7, %v12457_v51  ;;  %v12456_v29 = vmax.f32 %v12450_v10, %v12453_v45  ;;  %v12499_v45 = vld [vmem:[%s22154_s9 + $0x50] sm:$0xff] (%p9140_p0) }
 0x80d   : >> { %12460 = vst.msk [vmem:[#allocation8 + $0x8] sm:$0xff] %vm12458_vm7, %v12456_v29 }
 0x812   : >> { %v12464_v26 = vld [vmem:[#allocation8 + $0x10] ss:$2 sm:$0x3]  ;;  %v12468_v31 = vld [vmem:[#allocation8 + $0x11] ss:$2 sm:$0x3] }
 0x813   : >> { %v12470_v21 = vmax.f32 %v12464_v26, %v12468_v31  ;;  %9142 = sbr.rel (!%p9140_p0) target bundleno = 1674 (0x68a), region = 329 }
 0x814   : >> { %v12462_v37 = vld [vmem:[#allocation8] ss:$2 sm:$0xff]  ;;  %v12466_v59 = vld [vmem:[#allocation8 + $0x1] ss:$2 sm:$0xff] }
 0x815   : >> { %12475 = vst.msk [vmem:[%s12472_s15 + $0x8] sm:$0x3] %vm12474_vm8, %v12470_v21  ;;  %v12469_v2 = vmax.f32 %v12462_v37, %v12466_v59  ;;  %v12500_v21 = vld [vmem:[%s22154_s9 + $0x58] sm:$0xff] (%p9140_p0) }
 0x817   : >> { %12473 = vst.msk [vmem:[%s12472_s15] sm:$0xff] %vm12458_vm7, %v12469_v2  ;;  %s12630_s15 = sshll.u32 (%p9140_p0), %s18581_s17, 4  ;;  %s12631_s15 = int_to_ptr.vmem [resolvable:$true] %s12630_s15 }
 0x818   : > { %s17240_s12 = scalar_lea.vmem %s12631_s15, 16  ;;  %p17247_p4 = scmp.lt.s32.totalorder %s12631_s15, %s17245_s14 }
 0x819   : > { %p17241_p1 = scmp.ne.s32.totalorder %s12631_s15, %s17240_s12  ;;  %p17248_p7 = scmp.lt.s32.totalorder %s17246_s8, %s17240_s12 }
 0x81b   : > { %p17242_p2 = pnand %p17241_p1, %p17440_p5  ;;  %p17249_p8 = por %p17248_p7, %p17247_p4 }
 0x81d   : > { %p17243_p3 = pneg %p17242_p2 }
 0x81e   : > { %v12478_v47 = vld [vmem:[#allocation5 + $0x10] sm:$0xff]  ;;  %v12476_v17 = vld [vmem:[#allocation5] sm:$0xff]  ;;  %v12479_v43 = vld [vmem:[#allocation5 + $0x18] sm:$0xff] }
 0x81f   : > { %12514 = vperm.xlu1 %17239, %v12478_v47   ;;  %12504 = vperm.xlu0 %17238, %v12476_v17   ;;  %v12477_v3 = vld [vmem:[#allocation5 + $0x8] sm:$0xff]  ;;  %v12480_v58 = vld [vmem:[#allocation5 + $0x20] sm:$0xff]  ;;  %v12483_v39 = vld [vmem:[#allocation5 + $0x38] sm:$0xff]  ;;  %p17250_p9 = pnand %p17249_p8, %p17243_p3 }
 0x820   : > { %v12481_v55 = vld [vmem:[#allocation5 + $0x28] sm:$0xff]  ;;  %v12482_v19 = vld [vmem:[#allocation5 + $0x30] sm:$0xff]  ;;  %v12484_v1 = vld [vmem:[#allocation5 + $0x40] sm:$0xff] }
 0x821   : > { %v12485_v42 = vld [vmem:[#allocation5 + $0x48] sm:$0xff]  ;;  %v12487_v30 = vld [vmem:[#allocation5 + $0x58] sm:$0xff]  ;;  %v12486_v8 = vld [vmem:[#allocation5 + $0x50] sm:$0xff] }
 0x822   : > { %v12488_v41 = vld [vmem:[#allocation5 + $0x60] sm:$0xf] }
 0x823   : > { %12519 = vperm.xlu1 %17239, %v12479_v43   ;;  %12509 = vperm.xlu0 %17238, %v12477_v3  }
 0x827   : > { %12529 = vperm.xlu1 %17239, %v12481_v55   ;;  %12524 = vperm.xlu0 %17238, %v12480_v58  }
 0x82b   : > { %12539 = vperm.xlu1 %17239, %v12483_v39   ;;  %12534 = vperm.xlu0 %17238, %v12482_v19  }
 0x82f   : > { %12549 = vperm.xlu1 %17239, %v12485_v42   ;;  %12544 = vperm.xlu0 %17238, %v12484_v1  }
 0x833   : > { %12559 = vperm.xlu1 %17239, %v12487_v30   ;;  %12554 = vperm.xlu0 %17238, %v12486_v8  }
 0x837   : > { %12564 = vperm.xlu0 %17238, %v12488_v41  }
 0x89a   : > { %v12515_v44 = vpop.permute.xlu1 %12514  ;;  %v12505_v7 = vpop.permute.xlu0 %12504 }
 0x89b   : > { %v12567_v6 = vmul.f32 %v12505_v7, %v12489_v35  ;;  %v12569_v20 = vmul.f32 %v12515_v44, %v12491_v0 }
 0x89d   : > { %v12581_v49 = vsel %vm12580_vm9, %v12567_v6, 0.0  ;;  %v12584_v15 = vsel %vm12580_vm9, %v12569_v20, 0.0  ;;  %v12613_v6 = vld [vmem:[%s22155_s10] sm:$0x1] }
 0x89e   : > { %v12520_v52 = vpop.permute.xlu1 %12519  ;;  %v12510_v50 = vpop.permute.xlu0 %12509 }
 0x89f   : > { %v12568_v9 = vmul.f32 %v12510_v50, %v12490_v4  ;;  %v12570_v5 = vmul.f32 %v12520_v52, %v12492_v53 }
 0x8a1   : > { %v12582_v62 = vsel %vm12580_vm9, %v12568_v9, 0.0  ;;  %v12586_v57 = vsel %vm12580_vm9, %v12570_v5, 0.0 }
 0x8a2   : > { %v12583_v12 = vadd.f32 %v12582_v62, %v12581_v49  ;;  %v12530_v16 = vpop.permute.xlu1 %12529  ;;  %v12525_v61 = vpop.permute.xlu0 %12524 }
 0x8a3   : > { %v12571_v13 = vmul.f32 %v12525_v61, %v12493_v38  ;;  %v12572_v54 = vmul.f32 %v12530_v16, %v12494_v46 }
 0x8a4   : > { %v12585_v40 = vadd.f32 %v12584_v15, %v12583_v12 }
 0x8a5   : > { %v12588_v36 = vsel %vm12580_vm9, %v12571_v13, 0.0  ;;  %v12590_v18 = vsel %vm12580_vm9, %v12572_v54, 0.0 }
 0x8a6   : > { %v12587_v25 = vadd.f32 %v12586_v57, %v12585_v40  ;;  %v12540_v60 = vpop.permute.xlu1 %12539  ;;  %v12535_v32 = vpop.permute.xlu0 %12534 }
 0x8a7   : > { %v12573_v33 = vmul.f32 %v12535_v32, %v12495_v56  ;;  %v12574_v11 = vmul.f32 %v12540_v60, %v12496_v23 }
 0x8a8   : > { %v12589_v14 = vadd.f32 %v12588_v36, %v12587_v25 }
 0x8a9   : > { %v12592_v27 = vsel %vm12580_vm9, %v12573_v33, 0.0  ;;  %v12594_v29 = vsel %vm12580_vm9, %v12574_v11, 0.0 }
 0x8aa   : > { %v12591_v34 = vadd.f32 %v12590_v18, %v12589_v14  ;;  %v12550_v22 = vpop.permute.xlu1 %12549  ;;  %v12545_v48 = vpop.permute.xlu0 %12544 }
 0x8ab   : > { %v12575_v10 = vmul.f32 %v12545_v48, %v12497_v24  ;;  %v12576_v26 = vmul.f32 %v12550_v22, %v12498_v63 }
 0x8ac   : > { %v12593_v51 = vadd.f32 %v12592_v27, %v12591_v34 }
 0x8ad   : > { %v12596_v2 = vsel %vm12580_vm9, %v12575_v10, 0.0  ;;  %v12598_v43 = vsel %vm12580_vm9, %v12576_v26, 0.0 }
 0x8ae   : > { %v12595_v31 = vadd.f32 %v12594_v29, %v12593_v51  ;;  %v12560_v37 = vpop.permute.xlu1 %12559  ;;  %v12555_v59 = vpop.permute.xlu0 %12554 }
 0x8af   : > { %v12577_v47 = vmul.f32 %v12555_v59, %v12499_v45  ;;  %v12578_v3 = vmul.f32 %v12560_v37, %v12500_v21 }
 0x8b0   : > { %v12597_v17 = vadd.f32 %v12596_v2, %v12595_v31 }
 0x8b1   : > { %v12600_v39 = vsel %vm12580_vm9, %v12577_v47, 0.0  ;;  %v12602_v1 = vsel %vm12580_vm9, %v12578_v3, 0.0 }
 0x8b2   : > { %v12599_v55 = vadd.f32 %v12598_v43, %v12597_v17  ;;  %v12565_v58 = vpop.permute.xlu0 %12564 }
 0x8b3   : > { %v12579_v19 = vmul.f32 %v12565_v58, %v12501_v28 }
 0x8b4   : > { %v12601_v42 = vadd.f32 %v12600_v39, %v12599_v55 }
 0x8b5   : > { %v12605_v8 = vsel %vm12604_vm10, %v12579_v19, 0.0 }
 0x8b6   : > { %v12603_v30 = vadd.f32 %v12602_v1, %v12601_v42 }
 0x8b8   : > { %v12606_v41 = vadd.f32 %v12605_v8, %v12603_v30 }
 0x8ba   : > { %v12607_v44 = vrot.slane %v12606_v41, 4 }
 0x8bc   : > { %v12608_v35 = vadd.f32 %v12607_v44, %v12606_v41 }
 0x8be   : > { %v12609_v7 = vrot.slane %v12608_v35, 2 }
 0x8c0   : > { %v12610_v0 = vadd.f32 %v12609_v7, %v12608_v35 }
 0x8c2   : > { %v12611_v4 = vrot.slane %v12610_v0, 1 }
 0x8c4   : > { %v12612_v53 = vadd.f32 %v12611_v4, %v12610_v0 }
 0x8c6   : > { %v12614_v52 = vadd.f32 %v12613_v6, %v12612_v53 }
 0x8c8   : > { %12616 = vst.msk [vmem:[%s18581_s17] sm:$0x1] %vm12615_vm11, %v12614_v52 }
 0x8c9   : > { %17253 = shalt.err (!%p17250_p9)
}
 0x8ca   : > { %s17254_s13 = scalar_lea.hbm %s12628_s26, 16  ;;  %s17258_s25 = scalar_lea.hbm %s22156_s11, 32 }
 0x8cb   : > { %p17255_p10 = scmp.ne.s32.totalorder %s12628_s26, %s17254_s13  ;;  %p17259_p13 = scmp.lt.s32.totalorder %s12628_s26, %s22156_s11 }
 0x8cc   : > { %p17260_p0 = scmp.lt.s32.totalorder %s17258_s25, %s17254_s13 }
 0x8cd   : > { %p17256_p11 = pnand %p17255_p10, %p17440_p5 }
 0x8ce   : > { %p17261_p1 = por %p17260_p0, %p17259_p13 }
 0x8cf   : > { %p17257_p12 = pneg %p17256_p11 }
 0x8d1   : > { %p17262_p2 = pnand %p17261_p1, %p17257_p12 }
 0x8d3   : > { %17265 = shalt.err (!%p17262_p2)
}
 0x8d4   : > { %17163 = dma.vmem_to_hbm [thread:$0]  (%p17440_p5), %s12631_s15, 16, %s12628_s26, %s12618_s18  }
 0x8d5 PF: > { %p17169_p3 = scmp.ge.s32.totalorder %s17316_s22, 2  ;;  %s12642_s12 = sand.u32 1, %s17304_s19  }
 0x8d6   : > { %s12643_s30 = scalar_lea.sflag [#allocation11], %s12642_s12 }
 0x8d7   : > { %p17166_p4 = pnand %p17169_p3, %p17444_p6 }
 0x8d9   : > { %p17167_p7 = pneg %p17166_p4 }
 0x8db   : > { %17299 = dma.done.wait (%p17167_p7), %s12643_s30, 16  }
 0x8dc   : > { %17301 = vsyncadd (%p17167_p7), %s12643_s30, 4294967280  ;;  %p23_p8 = scmp.ge.s32.totalorder %s17427_s24, 4   ;;  %s22175_s19 = smov %s17308_s20 }
 0x8dd   : > { %s22176_s20 = smov %s17312_s21  ;;  %s22177_s21 = smov %s17438_s27 }
 0x8de   : > { %s22178_s22 = smov %s17427_s24  ;;  %25 = sbr.rel (!%p23_p8) target bundleno = 6 (0x6), region = 340 }
 0x8e3   :  { %12647 = vsyncpa [#allocation11], 1 }
 0x8e4   :  { %12649 = vsyncpa [#allocation11 + $0x1], 1 }

</bundles_post_ra>
